<compile_context>
chip_gen: v6e
topology: v6e:2x2x1
jax: 0.10.0
libtpu: 0.0.40
codegen_flags: <defaults>
</compile_context>

<pallas_src>
import functools

import jax
import jax.numpy as jnp
from jax import lax
from jax.experimental import pallas as pl
from jax.experimental.pallas import tpu as pltpu


# ----------------------------------------------------------------------------
# Pallas kernel: full LSTM recurrence in a single invocation
# ----------------------------------------------------------------------------
def _lstm_kernel(x_ref, len_ref, wih_ref, whh_ref, b_ref,
                 h_out_ref, c_out_ref, xp_ref,
                 *, seq_len, batch_pad, hidden):
    """x_ref:(T*Bp,E) time-major rows (row = t*Bp + b); len_ref:(Bp,1) int32;
    wih_ref:(E,4H), whh_ref:(H,4H), b_ref:(1,4H) with gate columns [i,f,o,g];
    h_out/c_out:(Bp,H); xp_ref:(T*Bp,4H) VMEM scratch for the batched input
    projection."""
    T, Bp, H = seq_len, batch_pad, hidden

    # One time-batched MXU matmul for the input projection of all timesteps;
    # the combined bias is added once here (hoisted out of the recurrence).
    xp_ref[...] = (
        jnp.dot(x_ref[...], wih_ref[...], preferred_element_type=jnp.float32)
        + b_ref[...])

    # Hoist loop-invariant loads out of the serial recurrence.
    whh = whh_ref[...]            # (H, 4H)
    lens = len_ref[...]           # (Bp, 1) int32

    def step(t, carry):
        h, c = carry
        row = pl.multiple_of(t * Bp, Bp)          # Bp is a multiple of 8
        gates = xp_ref[pl.ds(row, Bp), :] + jnp.dot(
            h, whh, preferred_element_type=jnp.float32)      # (Bp, 4H)

        # Gate columns are pre-permuted to [i, f, o, g]: a single sigmoid over
        # the first 3H lanes and a single tanh over the last H lanes.
        sig = jax.nn.sigmoid(gates[:, 0:3 * H])
        i_g = sig[:, 0 * H:1 * H]
        f_g = sig[:, 1 * H:2 * H]
        o_g = sig[:, 2 * H:3 * H]
        g_g = jnp.tanh(gates[:, 3 * H:4 * H])

        c_new = f_g * c + i_g * g_g
        h_new = o_g * jnp.tanh(c_new)

        # pack_padded_sequence semantics: freeze state for rows past length.
        valid = lens > t
        return jnp.where(valid, h_new, h), jnp.where(valid, c_new, c)

    h0 = jnp.zeros((Bp, H), jnp.float32)
    c0 = jnp.zeros((Bp, H), jnp.float32)
    h, c = lax.fori_loop(0, T, step, (h0, c0), unroll=True)

    h_out_ref[...] = h
    c_out_ref[...] = c


def _permute_gates_to_ifog(w):
    """Permute last axis (4H, torch gate order i,f,g,o) to [i, f, o, g]."""
    i, f, g, o = jnp.split(w, 4, axis=-1)
    return jnp.concatenate([i, f, o, g], axis=-1)


def lstm_final_state(x_bte, lengths, w_ih, w_hh, bias):
    """x_bte: (B, T, E) f32; lengths: (B,) int32; w_ih: (E,4H); w_hh: (H,4H);
    bias: (4H,) (b_ih + b_hh), all in PyTorch gate order (i,f,g,o).
    Returns (h_n, c_n), each (B, H) f32."""
    B, T, E = x_bte.shape
    H = w_hh.shape[0]
    Bp = max(8, ((B + 7) // 8) * 8)   # pad batch to the sublane width

    # --- layout glue (runs once, outside the kernel) ---
    x_pad = jnp.zeros((Bp, T, E), jnp.float32).at[:B].set(
        x_bte.astype(jnp.float32))
    x2d = jnp.transpose(x_pad, (1, 0, 2)).reshape(T * Bp, E)  # time-major rows
    len_pad = jnp.zeros((Bp, 1), jnp.int32).at[:B, 0].set(
        lengths.astype(jnp.int32))                            # padded rows: 0

    wih = _permute_gates_to_ifog(w_ih.astype(jnp.float32))
    whh = _permute_gates_to_ifog(w_hh.astype(jnp.float32))
    b2d = _permute_gates_to_ifog(bias.astype(jnp.float32)).reshape(1, 4 * H)

    kernel = functools.partial(_lstm_kernel, seq_len=T, batch_pad=Bp, hidden=H)
    vmem = pl.BlockSpec(memory_space=pltpu.MemorySpace.VMEM)

    h_n, c_n = pl.pallas_call(
        kernel,
        out_shape=(jax.ShapeDtypeStruct((Bp, H), jnp.float32),
                   jax.ShapeDtypeStruct((Bp, H), jnp.float32)),
        in_specs=[vmem, vmem, vmem, vmem, vmem],
        out_specs=(vmem, vmem),
        scratch_shapes=[pltpu.VMEM((T * Bp, 4 * H), jnp.float32)],
    )(x2d, len_pad, wih, whh, b2d)
    return h_n[:B], c_n[:B]


# ----------------------------------------------------------------------------
# Encoder wrapper (embedding gather is glue; LSTM recurrence is the kernel)
# ----------------------------------------------------------------------------
class PallasEncoder:
    def __init__(self, vocab_size, padding_idx, num_layer=1,
                 embedding_size=32, hidden_size=256, key=None):
        assert num_layer == 1, "kernel implements a single LSTM layer"
        assert hidden_size % 128 == 0, "keep H a multiple of 128 (lane width)"
        self.num_layer = num_layer
        self.hidden_size = hidden_size
        key = jax.random.PRNGKey(0) if key is None else key
        k_emb, k_wi, k_wh, k_bi, k_bh = jax.random.split(key, 5)

        # Embedding: N(0,1) like torch, padding_idx row zeroed.
        emb = jax.random.normal(k_emb, (vocab_size, embedding_size), jnp.float32)
        emb = emb.at[padding_idx].set(0.0)
        self.embedding = emb

        # LSTM params: uniform(-1/sqrt(H), 1/sqrt(H)) like torch.nn.LSTM.
        # PyTorch stores weight_ih_l0 as (4H, E); we keep the transposed
        # layout (E, 4H) / (H, 4H) so gates = x @ W; gate order is i,f,g,o.
        s = 1.0 / jnp.sqrt(jnp.float32(hidden_size))
        self.w_ih = jax.random.uniform(k_wi, (embedding_size, 4 * hidden_size),
                                       jnp.float32, -s, s)
        self.w_hh = jax.random.uniform(k_wh, (hidden_size, 4 * hidden_size),
                                       jnp.float32, -s, s)
        b_ih = jax.random.uniform(k_bi, (4 * hidden_size,), jnp.float32, -s, s)
        b_hh = jax.random.uniform(k_bh, (4 * hidden_size,), jnp.float32, -s, s)
        self.bias = b_ih + b_hh

    def __call__(self, src, lengths):
        # src: (B, T) int32, lengths: (B,) int32 (sorted descending, as
        # pack_padded_sequence(enforce_sorted=True) requires).
        x = self.embedding[src]                       # (B, T, E) gather (glue)
        h_n, c_n = lstm_final_state(x, lengths, self.w_ih, self.w_hh, self.bias)
        # match torch: (num_layers, B, H)
        return h_n[None, :, :], c_n[None, :, :]


# ----------------------------------------------------------------------------
# Pure-JAX reference (for correctness check)
# ----------------------------------------------------------------------------
def _reference(src, lengths, enc: PallasEncoder):
    x = enc.embedding[src]                            # (B, T, E)
    B, T, _ = x.shape
    H = enc.hidden_size

    def step(carry, t):
        h, c = carry
        x_t = x[:, t, :]
        gates = (x_t @ enc.w_ih + h @ enc.w_hh + enc.bias)
        i_g = jax.nn.sigmoid(gates[:, 0 * H:1 * H])
        f_g = jax.nn.sigmoid(gates[:, 1 * H:2 * H])
        g_g = jnp.tanh(gates[:, 2 * H:3 * H])
        o_g = jax.nn.sigmoid(gates[:, 3 * H:4 * H])
        c_new = f_g * c + i_g * g_g
        h_new = o_g * jnp.tanh(c_new)
        valid = (lengths > t)[:, None]
        return (jnp.where(valid, h_new, h), jnp.where(valid, c_new, c)), None

    init = (jnp.zeros((B, H), jnp.float32), jnp.zeros((B, H), jnp.float32))
    (h, c), _ = jax.lax.scan(step, init, jnp.arange(T))
    return h[None], c[None]


if __name__ == "__main__":
    vocab_size = 50
    padding_idx = 0
    B, T, E, H = 2, 8, 32, 256   # module defaults: embedding=32, hidden=256

    key = jax.random.PRNGKey(0)
    k_tok, k_param = jax.random.split(key)

    # lengths sorted descending (pack_padded_sequence enforce_sorted=True)
    lengths = jnp.array([8, 5], dtype=jnp.int32)
    tokens = jax.random.randint(k_tok, (B, T), 1, vocab_size, dtype=jnp.int32)
    # pad out-of-length positions with padding_idx
    t_idx = jnp.arange(T)[None, :]
    src = jnp.where(t_idx < lengths[:, None], tokens, padding_idx)

    enc = PallasEncoder(vocab_size, padding_idx, num_layer=1,
                        embedding_size=E, hidden_size=H, key=k_param)

    h_n, c_n = enc(src, lengths)
    h_n, c_n = jax.block_until_ready((h_n, c_n))

    h_ref, c_ref = _reference(src, lengths, enc)
    assert h_n.shape == (1, B, H) and c_n.shape == (1, B, H)
    assert jnp.allclose(h_n, h_ref, atol=1e-2, rtol=1e-2)
    assert jnp.allclose(c_n, c_ref, atol=1e-2, rtol=1e-2)

    print("KERNEL_OK")
</pallas_src>

<mosaic_0001>
module attributes {stable_mosaic.version = 11 : i64} {
  func.func @_lstm_kernel(%arg0: memref<64x32xf32, #tpu.memory_space<vmem>>, %arg1: memref<8x1xi32, #tpu.memory_space<vmem>>, %arg2: memref<32x1024xf32, #tpu.memory_space<vmem>>, %arg3: memref<256x1024xf32, #tpu.memory_space<vmem>>, %arg4: memref<1x1024xf32, #tpu.memory_space<vmem>>, %arg5: memref<8x256xf32, #tpu.memory_space<vmem>>, %arg6: memref<8x256xf32, #tpu.memory_space<vmem>>, %arg7: memref<64x1024xf32, #tpu.memory_space<vmem>>) attributes {dimension_semantics = [], scalar_prefetch = 0 : i64, scratch_operands = 1 : i64, tpu.core_type = #tpu.core_type<tc>} {
    %c0 = arith.constant 0 : index
    %c0_0 = arith.constant 0 : index
    %0 = vector.load %arg0[%c0, %c0_0] : memref<64x32xf32, #tpu.memory_space<vmem>>, vector<64x32xf32>
    %c0_1 = arith.constant 0 : index
    %c0_2 = arith.constant 0 : index
    %1 = vector.load %arg2[%c0_1, %c0_2] : memref<32x1024xf32, #tpu.memory_space<vmem>>, vector<32x1024xf32>
    %cst = arith.constant dense<0.000000e+00> : vector<64x1024xf32>
    %2 = tpu.matmul %0, %1, %cst {dimension_numbers = #tpu.dot_dimension_numbers<[1], [0], [0], [1], [0, 0, 1, 1], [], []>} : vector<64x32xf32>, vector<32x1024xf32>, vector<64x1024xf32> -> vector<64x1024xf32>
    %c0_3 = arith.constant 0 : index
    %c0_4 = arith.constant 0 : index
    %3 = vector.load %arg4[%c0_3, %c0_4] : memref<1x1024xf32, #tpu.memory_space<vmem>>, vector<1x1024xf32>
    %4 = vector.broadcast %3 : vector<1x1024xf32> to vector<64x1024xf32>
    %5 = arith.addf %2, %4 : vector<64x1024xf32>
    %c0_5 = arith.constant 0 : index
    %c0_6 = arith.constant 0 : index
    %6 = vector.load %arg7[%c0_5, %c0_6] : memref<64x1024xf32, #tpu.memory_space<vmem>>, vector<64x1024xf32>
    tpu.vector_store %arg7[%c0_5, %c0_6], %5 {strides = array<i32>} : memref<64x1024xf32, #tpu.memory_space<vmem>>, vector<64x1024xf32>,
    %c0_7 = arith.constant 0 : index
    %c0_8 = arith.constant 0 : index
    %7 = vector.load %arg3[%c0_7, %c0_8] : memref<256x1024xf32, #tpu.memory_space<vmem>>, vector<256x1024xf32>
    %c0_9 = arith.constant 0 : index
    %c0_10 = arith.constant 0 : index
    %8 = vector.load %arg1[%c0_9, %c0_10] : memref<8x1xi32, #tpu.memory_space<vmem>>, vector<8x1xi32>
    %cst_11 = arith.constant 0.000000e+00 : f32
    %9 = vector.broadcast %cst_11 : f32 to vector<8x256xf32>
    %cst_12 = arith.constant 0.000000e+00 : f32
    %10 = vector.broadcast %cst_12 : f32 to vector<8x256xf32>
    %c0_i32 = arith.constant 0 : i32
    %c8_i32 = arith.constant 8 : i32
    %11 = arith.muli %c0_i32, %c8_i32 : i32
    %12 = tpu.assume_multiple %11, 8 : i32
    %13 = arith.index_cast %12 : i32 to index
    %c0_13 = arith.constant 0 : index
    %14 = vector.load %arg7[%13, %c0_13] : memref<64x1024xf32, #tpu.memory_space<vmem>>, vector<8x1024xf32>
    %cst_14 = arith.constant dense<0.000000e+00> : vector<8x1024xf32>
    %15 = tpu.matmul %9, %7, %cst_14 {dimension_numbers = #tpu.dot_dimension_numbers<[1], [0], [0], [1], [0, 0, 1, 1], [], []>} : vector<8x256xf32>, vector<256x1024xf32>, vector<8x1024xf32> -> vector<8x1024xf32>
    %16 = arith.addf %14, %15 : vector<8x1024xf32>
    %17 = vector.extract_strided_slice %16 {offsets = [0, 0], sizes = [8, 768], strides = [1, 1]} : vector<8x1024xf32> to vector<8x768xf32>
    %18 = arith.negf %17 : vector<8x768xf32>
    %19 = math.exp %18 : vector<8x768xf32>
    %cst_15 = arith.constant 1.000000e+00 : f32
    %20 = vector.broadcast %cst_15 : f32 to vector<8x768xf32>
    %21 = arith.addf %20, %19 : vector<8x768xf32>
    %22 = arith.divf %20, %21 : vector<8x768xf32>
    %23 = vector.extract_strided_slice %22 {offsets = [0, 0], sizes = [8, 256], strides = [1, 1]} : vector<8x768xf32> to vector<8x256xf32>
    %24 = vector.extract_strided_slice %22 {offsets = [0, 256], sizes = [8, 256], strides = [1, 1]} : vector<8x768xf32> to vector<8x256xf32>
    %25 = vector.extract_strided_slice %22 {offsets = [0, 512], sizes = [8, 256], strides = [1, 1]} : vector<8x768xf32> to vector<8x256xf32>
    %26 = vector.extract_strided_slice %16 {offsets = [0, 768], sizes = [8, 256], strides = [1, 1]} : vector<8x1024xf32> to vector<8x256xf32>
    %27 = math.tanh %26 : vector<8x256xf32>
    %28 = arith.mulf %24, %10 : vector<8x256xf32>
    %29 = arith.mulf %23, %27 : vector<8x256xf32>
    %30 = arith.addf %28, %29 : vector<8x256xf32>
    %31 = math.tanh %30 : vector<8x256xf32>
    %32 = arith.mulf %25, %31 : vector<8x256xf32>
    %33 = vector.broadcast %c0_i32 : i32 to vector<8x1xi32>
    %34 = arith.cmpi sgt, %8, %33 : vector<8x1xi32>
    %35 = vector.shape_cast %34 : vector<8x1xi1> to vector<8x1xi1>
    %36 = vector.broadcast %35 : vector<8x1xi1> to vector<8x256xi1>
    %37 = arith.select %36, %32, %9 : vector<8x256xi1>, vector<8x256xf32>
    %38 = vector.shape_cast %34 : vector<8x1xi1> to vector<8x1xi1>
    %39 = vector.broadcast %38 : vector<8x1xi1> to vector<8x256xi1>
    %40 = arith.select %39, %30, %10 : vector<8x256xi1>, vector<8x256xf32>
    %c1_i32 = arith.constant 1 : i32
    %c8_i32_16 = arith.constant 8 : i32
    %41 = arith.muli %c1_i32, %c8_i32_16 : i32
    %42 = tpu.assume_multiple %41, 8 : i32
    %43 = arith.index_cast %42 : i32 to index
    %c0_17 = arith.constant 0 : index
    %44 = vector.load %arg7[%43, %c0_17] : memref<64x1024xf32, #tpu.memory_space<vmem>>, vector<8x1024xf32>
    %cst_18 = arith.constant dense<0.000000e+00> : vector<8x1024xf32>
    %45 = tpu.matmul %37, %7, %cst_18 {dimension_numbers = #tpu.dot_dimension_numbers<[1], [0], [0], [1], [0, 0, 1, 1], [], []>} : vector<8x256xf32>, vector<256x1024xf32>, vector<8x1024xf32> -> vector<8x1024xf32>
    %46 = arith.addf %44, %45 : vector<8x1024xf32>
    %47 = vector.extract_strided_slice %46 {offsets = [0, 0], sizes = [8, 768], strides = [1, 1]} : vector<8x1024xf32> to vector<8x768xf32>
    %48 = arith.negf %47 : vector<8x768xf32>
    %49 = math.exp %48 : vector<8x768xf32>
    %cst_19 = arith.constant 1.000000e+00 : f32
    %50 = vector.broadcast %cst_19 : f32 to vector<8x768xf32>
    %51 = arith.addf %50, %49 : vector<8x768xf32>
    %52 = arith.divf %50, %51 : vector<8x768xf32>
    %53 = vector.extract_strided_slice %52 {offsets = [0, 0], sizes = [8, 256], strides = [1, 1]} : vector<8x768xf32> to vector<8x256xf32>
    %54 = vector.extract_strided_slice %52 {offsets = [0, 256], sizes = [8, 256], strides = [1, 1]} : vector<8x768xf32> to vector<8x256xf32>
    %55 = vector.extract_strided_slice %52 {offsets = [0, 512], sizes = [8, 256], strides = [1, 1]} : vector<8x768xf32> to vector<8x256xf32>
    %56 = vector.extract_strided_slice %46 {offsets = [0, 768], sizes = [8, 256], strides = [1, 1]} : vector<8x1024xf32> to vector<8x256xf32>
    %57 = math.tanh %56 : vector<8x256xf32>
    %58 = arith.mulf %54, %40 : vector<8x256xf32>
    %59 = arith.mulf %53, %57 : vector<8x256xf32>
    %60 = arith.addf %58, %59 : vector<8x256xf32>
    %61 = math.tanh %60 : vector<8x256xf32>
    %62 = arith.mulf %55, %61 : vector<8x256xf32>
    %63 = vector.broadcast %c1_i32 : i32 to vector<8x1xi32>
    %64 = arith.cmpi sgt, %8, %63 : vector<8x1xi32>
    %65 = vector.shape_cast %64 : vector<8x1xi1> to vector<8x1xi1>
    %66 = vector.broadcast %65 : vector<8x1xi1> to vector<8x256xi1>
    %67 = arith.select %66, %62, %37 : vector<8x256xi1>, vector<8x256xf32>
    %68 = vector.shape_cast %64 : vector<8x1xi1> to vector<8x1xi1>
    %69 = vector.broadcast %68 : vector<8x1xi1> to vector<8x256xi1>
    %70 = arith.select %69, %60, %40 : vector<8x256xi1>, vector<8x256xf32>
    %c2_i32 = arith.constant 2 : i32
    %c8_i32_20 = arith.constant 8 : i32
    %71 = arith.muli %c2_i32, %c8_i32_20 : i32
    %72 = tpu.assume_multiple %71, 8 : i32
    %73 = arith.index_cast %72 : i32 to index
    %c0_21 = arith.constant 0 : index
    %74 = vector.load %arg7[%73, %c0_21] : memref<64x1024xf32, #tpu.memory_space<vmem>>, vector<8x1024xf32>
    %cst_22 = arith.constant dense<0.000000e+00> : vector<8x1024xf32>
    %75 = tpu.matmul %67, %7, %cst_22 {dimension_numbers = #tpu.dot_dimension_numbers<[1], [0], [0], [1], [0, 0, 1, 1], [], []>} : vector<8x256xf32>, vector<256x1024xf32>, vector<8x1024xf32> -> vector<8x1024xf32>
    %76 = arith.addf %74, %75 : vector<8x1024xf32>
    %77 = vector.extract_strided_slice %76 {offsets = [0, 0], sizes = [8, 768], strides = [1, 1]} : vector<8x1024xf32> to vector<8x768xf32>
    %78 = arith.negf %77 : vector<8x768xf32>
    %79 = math.exp %78 : vector<8x768xf32>
    %cst_23 = arith.constant 1.000000e+00 : f32
    %80 = vector.broadcast %cst_23 : f32 to vector<8x768xf32>
    %81 = arith.addf %80, %79 : vector<8x768xf32>
    %82 = arith.divf %80, %81 : vector<8x768xf32>
    %83 = vector.extract_strided_slice %82 {offsets = [0, 0], sizes = [8, 256], strides = [1, 1]} : vector<8x768xf32> to vector<8x256xf32>
    %84 = vector.extract_strided_slice %82 {offsets = [0, 256], sizes = [8, 256], strides = [1, 1]} : vector<8x768xf32> to vector<8x256xf32>
    %85 = vector.extract_strided_slice %82 {offsets = [0, 512], sizes = [8, 256], strides = [1, 1]} : vector<8x768xf32> to vector<8x256xf32>
    %86 = vector.extract_strided_slice %76 {offsets = [0, 768], sizes = [8, 256], strides = [1, 1]} : vector<8x1024xf32> to vector<8x256xf32>
    %87 = math.tanh %86 : vector<8x256xf32>
    %88 = arith.mulf %84, %70 : vector<8x256xf32>
    %89 = arith.mulf %83, %87 : vector<8x256xf32>
    %90 = arith.addf %88, %89 : vector<8x256xf32>
    %91 = math.tanh %90 : vector<8x256xf32>
    %92 = arith.mulf %85, %91 : vector<8x256xf32>
    %93 = vector.broadcast %c2_i32 : i32 to vector<8x1xi32>
    %94 = arith.cmpi sgt, %8, %93 : vector<8x1xi32>
    %95 = vector.shape_cast %94 : vector<8x1xi1> to vector<8x1xi1>
    %96 = vector.broadcast %95 : vector<8x1xi1> to vector<8x256xi1>
    %97 = arith.select %96, %92, %67 : vector<8x256xi1>, vector<8x256xf32>
    %98 = vector.shape_cast %94 : vector<8x1xi1> to vector<8x1xi1>
    %99 = vector.broadcast %98 : vector<8x1xi1> to vector<8x256xi1>
    %100 = arith.select %99, %90, %70 : vector<8x256xi1>, vector<8x256xf32>
    %c3_i32 = arith.constant 3 : i32
    %c8_i32_24 = arith.constant 8 : i32
    %101 = arith.muli %c3_i32, %c8_i32_24 : i32
    %102 = tpu.assume_multiple %101, 8 : i32
    %103 = arith.index_cast %102 : i32 to index
    %c0_25 = arith.constant 0 : index
    %104 = vector.load %arg7[%103, %c0_25] : memref<64x1024xf32, #tpu.memory_space<vmem>>, vector<8x1024xf32>
    %cst_26 = arith.constant dense<0.000000e+00> : vector<8x1024xf32>
    %105 = tpu.matmul %97, %7, %cst_26 {dimension_numbers = #tpu.dot_dimension_numbers<[1], [0], [0], [1], [0, 0, 1, 1], [], []>} : vector<8x256xf32>, vector<256x1024xf32>, vector<8x1024xf32> -> vector<8x1024xf32>
    %106 = arith.addf %104, %105 : vector<8x1024xf32>
    %107 = vector.extract_strided_slice %106 {offsets = [0, 0], sizes = [8, 768], strides = [1, 1]} : vector<8x1024xf32> to vector<8x768xf32>
    %108 = arith.negf %107 : vector<8x768xf32>
    %109 = math.exp %108 : vector<8x768xf32>
    %cst_27 = arith.constant 1.000000e+00 : f32
    %110 = vector.broadcast %cst_27 : f32 to vector<8x768xf32>
    %111 = arith.addf %110, %109 : vector<8x768xf32>
    %112 = arith.divf %110, %111 : vector<8x768xf32>
    %113 = vector.extract_strided_slice %112 {offsets = [0, 0], sizes = [8, 256], strides = [1, 1]} : vector<8x768xf32> to vector<8x256xf32>
    %114 = vector.extract_strided_slice %112 {offsets = [0, 256], sizes = [8, 256], strides = [1, 1]} : vector<8x768xf32> to vector<8x256xf32>
    %115 = vector.extract_strided_slice %112 {offsets = [0, 512], sizes = [8, 256], strides = [1, 1]} : vector<8x768xf32> to vector<8x256xf32>
    %116 = vector.extract_strided_slice %106 {offsets = [0, 768], sizes = [8, 256], strides = [1, 1]} : vector<8x1024xf32> to vector<8x256xf32>
    %117 = math.tanh %116 : vector<8x256xf32>
    %118 = arith.mulf %114, %100 : vector<8x256xf32>
    %119 = arith.mulf %113, %117 : vector<8x256xf32>
    %120 = arith.addf %118, %119 : vector<8x256xf32>
    %121 = math.tanh %120 : vector<8x256xf32>
    %122 = arith.mulf %115, %121 : vector<8x256xf32>
    %123 = vector.broadcast %c3_i32 : i32 to vector<8x1xi32>
    %124 = arith.cmpi sgt, %8, %123 : vector<8x1xi32>
    %125 = vector.shape_cast %124 : vector<8x1xi1> to vector<8x1xi1>
    %126 = vector.broadcast %125 : vector<8x1xi1> to vector<8x256xi1>
    %127 = arith.select %126, %122, %97 : vector<8x256xi1>, vector<8x256xf32>
    %128 = vector.shape_cast %124 : vector<8x1xi1> to vector<8x1xi1>
    %129 = vector.broadcast %128 : vector<8x1xi1> to vector<8x256xi1>
    %130 = arith.select %129, %120, %100 : vector<8x256xi1>, vector<8x256xf32>
    %c4_i32 = arith.constant 4 : i32
    %c8_i32_28 = arith.constant 8 : i32
    %131 = arith.muli %c4_i32, %c8_i32_28 : i32
    %132 = tpu.assume_multiple %131, 8 : i32
    %133 = arith.index_cast %132 : i32 to index
    %c0_29 = arith.constant 0 : index
    %134 = vector.load %arg7[%133, %c0_29] : memref<64x1024xf32, #tpu.memory_space<vmem>>, vector<8x1024xf32>
    %cst_30 = arith.constant dense<0.000000e+00> : vector<8x1024xf32>
    %135 = tpu.matmul %127, %7, %cst_30 {dimension_numbers = #tpu.dot_dimension_numbers<[1], [0], [0], [1], [0, 0, 1, 1], [], []>} : vector<8x256xf32>, vector<256x1024xf32>, vector<8x1024xf32> -> vector<8x1024xf32>
    %136 = arith.addf %134, %135 : vector<8x1024xf32>
    %137 = vector.extract_strided_slice %136 {offsets = [0, 0], sizes = [8, 768], strides = [1, 1]} : vector<8x1024xf32> to vector<8x768xf32>
    %138 = arith.negf %137 : vector<8x768xf32>
    %139 = math.exp %138 : vector<8x768xf32>
    %cst_31 = arith.constant 1.000000e+00 : f32
    %140 = vector.broadcast %cst_31 : f32 to vector<8x768xf32>
    %141 = arith.addf %140, %139 : vector<8x768xf32>
    %142 = arith.divf %140, %141 : vector<8x768xf32>
    %143 = vector.extract_strided_slice %142 {offsets = [0, 0], sizes = [8, 256], strides = [1, 1]} : vector<8x768xf32> to vector<8x256xf32>
    %144 = vector.extract_strided_slice %142 {offsets = [0, 256], sizes = [8, 256], strides = [1, 1]} : vector<8x768xf32> to vector<8x256xf32>
    %145 = vector.extract_strided_slice %142 {offsets = [0, 512], sizes = [8, 256], strides = [1, 1]} : vector<8x768xf32> to vector<8x256xf32>
    %146 = vector.extract_strided_slice %136 {offsets = [0, 768], sizes = [8, 256], strides = [1, 1]} : vector<8x1024xf32> to vector<8x256xf32>
    %147 = math.tanh %146 : vector<8x256xf32>
    %148 = arith.mulf %144, %130 : vector<8x256xf32>
    %149 = arith.mulf %143, %147 : vector<8x256xf32>
    %150 = arith.addf %148, %149 : vector<8x256xf32>
    %151 = math.tanh %150 : vector<8x256xf32>
    %152 = arith.mulf %145, %151 : vector<8x256xf32>
    %153 = vector.broadcast %c4_i32 : i32 to vector<8x1xi32>
    %154 = arith.cmpi sgt, %8, %153 : vector<8x1xi32>
    %155 = vector.shape_cast %154 : vector<8x1xi1> to vector<8x1xi1>
    %156 = vector.broadcast %155 : vector<8x1xi1> to vector<8x256xi1>
    %157 = arith.select %156, %152, %127 : vector<8x256xi1>, vector<8x256xf32>
    %158 = vector.shape_cast %154 : vector<8x1xi1> to vector<8x1xi1>
    %159 = vector.broadcast %158 : vector<8x1xi1> to vector<8x256xi1>
    %160 = arith.select %159, %150, %130 : vector<8x256xi1>, vector<8x256xf32>
    %c5_i32 = arith.constant 5 : i32
    %c8_i32_32 = arith.constant 8 : i32
    %161 = arith.muli %c5_i32, %c8_i32_32 : i32
    %162 = tpu.assume_multiple %161, 8 : i32
    %163 = arith.index_cast %162 : i32 to index
    %c0_33 = arith.constant 0 : index
    %164 = vector.load %arg7[%163, %c0_33] : memref<64x1024xf32, #tpu.memory_space<vmem>>, vector<8x1024xf32>
    %cst_34 = arith.constant dense<0.000000e+00> : vector<8x1024xf32>
    %165 = tpu.matmul %157, %7, %cst_34 {dimension_numbers = #tpu.dot_dimension_numbers<[1], [0], [0], [1], [0, 0, 1, 1], [], []>} : vector<8x256xf32>, vector<256x1024xf32>, vector<8x1024xf32> -> vector<8x1024xf32>
    %166 = arith.addf %164, %165 : vector<8x1024xf32>
    %167 = vector.extract_strided_slice %166 {offsets = [0, 0], sizes = [8, 768], strides = [1, 1]} : vector<8x1024xf32> to vector<8x768xf32>
    %168 = arith.negf %167 : vector<8x768xf32>
    %169 = math.exp %168 : vector<8x768xf32>
    %cst_35 = arith.constant 1.000000e+00 : f32
    %170 = vector.broadcast %cst_35 : f32 to vector<8x768xf32>
    %171 = arith.addf %170, %169 : vector<8x768xf32>
    %172 = arith.divf %170, %171 : vector<8x768xf32>
    %173 = vector.extract_strided_slice %172 {offsets = [0, 0], sizes = [8, 256], strides = [1, 1]} : vector<8x768xf32> to vector<8x256xf32>
    %174 = vector.extract_strided_slice %172 {offsets = [0, 256], sizes = [8, 256], strides = [1, 1]} : vector<8x768xf32> to vector<8x256xf32>
    %175 = vector.extract_strided_slice %172 {offsets = [0, 512], sizes = [8, 256], strides = [1, 1]} : vector<8x768xf32> to vector<8x256xf32>
    %176 = vector.extract_strided_slice %166 {offsets = [0, 768], sizes = [8, 256], strides = [1, 1]} : vector<8x1024xf32> to vector<8x256xf32>
    %177 = math.tanh %176 : vector<8x256xf32>
    %178 = arith.mulf %174, %160 : vector<8x256xf32>
    %179 = arith.mulf %173, %177 : vector<8x256xf32>
    %180 = arith.addf %178, %179 : vector<8x256xf32>
    %181 = math.tanh %180 : vector<8x256xf32>
    %182 = arith.mulf %175, %181 : vector<8x256xf32>
    %183 = vector.broadcast %c5_i32 : i32 to vector<8x1xi32>
    %184 = arith.cmpi sgt, %8, %183 : vector<8x1xi32>
    %185 = vector.shape_cast %184 : vector<8x1xi1> to vector<8x1xi1>
    %186 = vector.broadcast %185 : vector<8x1xi1> to vector<8x256xi1>
    %187 = arith.select %186, %182, %157 : vector<8x256xi1>, vector<8x256xf32>
    %188 = vector.shape_cast %184 : vector<8x1xi1> to vector<8x1xi1>
    %189 = vector.broadcast %188 : vector<8x1xi1> to vector<8x256xi1>
    %190 = arith.select %189, %180, %160 : vector<8x256xi1>, vector<8x256xf32>
    %c6_i32 = arith.constant 6 : i32
    %c8_i32_36 = arith.constant 8 : i32
    %191 = arith.muli %c6_i32, %c8_i32_36 : i32
    %192 = tpu.assume_multiple %191, 8 : i32
    %193 = arith.index_cast %192 : i32 to index
    %c0_37 = arith.constant 0 : index
    %194 = vector.load %arg7[%193, %c0_37] : memref<64x1024xf32, #tpu.memory_space<vmem>>, vector<8x1024xf32>
    %cst_38 = arith.constant dense<0.000000e+00> : vector<8x1024xf32>
    %195 = tpu.matmul %187, %7, %cst_38 {dimension_numbers = #tpu.dot_dimension_numbers<[1], [0], [0], [1], [0, 0, 1, 1], [], []>} : vector<8x256xf32>, vector<256x1024xf32>, vector<8x1024xf32> -> vector<8x1024xf32>
    %196 = arith.addf %194, %195 : vector<8x1024xf32>
    %197 = vector.extract_strided_slice %196 {offsets = [0, 0], sizes = [8, 768], strides = [1, 1]} : vector<8x1024xf32> to vector<8x768xf32>
    %198 = arith.negf %197 : vector<8x768xf32>
    %199 = math.exp %198 : vector<8x768xf32>
    %cst_39 = arith.constant 1.000000e+00 : f32
    %200 = vector.broadcast %cst_39 : f32 to vector<8x768xf32>
    %201 = arith.addf %200, %199 : vector<8x768xf32>
    %202 = arith.divf %200, %201 : vector<8x768xf32>
    %203 = vector.extract_strided_slice %202 {offsets = [0, 0], sizes = [8, 256], strides = [1, 1]} : vector<8x768xf32> to vector<8x256xf32>
    %204 = vector.extract_strided_slice %202 {offsets = [0, 256], sizes = [8, 256], strides = [1, 1]} : vector<8x768xf32> to vector<8x256xf32>
    %205 = vector.extract_strided_slice %202 {offsets = [0, 512], sizes = [8, 256], strides = [1, 1]} : vector<8x768xf32> to vector<8x256xf32>
    %206 = vector.extract_strided_slice %196 {offsets = [0, 768], sizes = [8, 256], strides = [1, 1]} : vector<8x1024xf32> to vector<8x256xf32>
    %207 = math.tanh %206 : vector<8x256xf32>
    %208 = arith.mulf %204, %190 : vector<8x256xf32>
    %209 = arith.mulf %203, %207 : vector<8x256xf32>
    %210 = arith.addf %208, %209 : vector<8x256xf32>
    %211 = math.tanh %210 : vector<8x256xf32>
    %212 = arith.mulf %205, %211 : vector<8x256xf32>
    %213 = vector.broadcast %c6_i32 : i32 to vector<8x1xi32>
    %214 = arith.cmpi sgt, %8, %213 : vector<8x1xi32>
    %215 = vector.shape_cast %214 : vector<8x1xi1> to vector<8x1xi1>
    %216 = vector.broadcast %215 : vector<8x1xi1> to vector<8x256xi1>
    %217 = arith.select %216, %212, %187 : vector<8x256xi1>, vector<8x256xf32>
    %218 = vector.shape_cast %214 : vector<8x1xi1> to vector<8x1xi1>
    %219 = vector.broadcast %218 : vector<8x1xi1> to vector<8x256xi1>
    %220 = arith.select %219, %210, %190 : vector<8x256xi1>, vector<8x256xf32>
    %c7_i32 = arith.constant 7 : i32
    %c8_i32_40 = arith.constant 8 : i32
    %221 = arith.muli %c7_i32, %c8_i32_40 : i32
    %222 = tpu.assume_multiple %221, 8 : i32
    %223 = arith.index_cast %222 : i32 to index
    %c0_41 = arith.constant 0 : index
    %224 = vector.load %arg7[%223, %c0_41] : memref<64x1024xf32, #tpu.memory_space<vmem>>, vector<8x1024xf32>
    %cst_42 = arith.constant dense<0.000000e+00> : vector<8x1024xf32>
    %225 = tpu.matmul %217, %7, %cst_42 {dimension_numbers = #tpu.dot_dimension_numbers<[1], [0], [0], [1], [0, 0, 1, 1], [], []>} : vector<8x256xf32>, vector<256x1024xf32>, vector<8x1024xf32> -> vector<8x1024xf32>
    %226 = arith.addf %224, %225 : vector<8x1024xf32>
    %227 = vector.extract_strided_slice %226 {offsets = [0, 0], sizes = [8, 768], strides = [1, 1]} : vector<8x1024xf32> to vector<8x768xf32>
    %228 = arith.negf %227 : vector<8x768xf32>
    %229 = math.exp %228 : vector<8x768xf32>
    %cst_43 = arith.constant 1.000000e+00 : f32
    %230 = vector.broadcast %cst_43 : f32 to vector<8x768xf32>
    %231 = arith.addf %230, %229 : vector<8x768xf32>
    %232 = arith.divf %230, %231 : vector<8x768xf32>
    %233 = vector.extract_strided_slice %232 {offsets = [0, 0], sizes = [8, 256], strides = [1, 1]} : vector<8x768xf32> to vector<8x256xf32>
    %234 = vector.extract_strided_slice %232 {offsets = [0, 256], sizes = [8, 256], strides = [1, 1]} : vector<8x768xf32> to vector<8x256xf32>
    %235 = vector.extract_strided_slice %232 {offsets = [0, 512], sizes = [8, 256], strides = [1, 1]} : vector<8x768xf32> to vector<8x256xf32>
    %236 = vector.extract_strided_slice %226 {offsets = [0, 768], sizes = [8, 256], strides = [1, 1]} : vector<8x1024xf32> to vector<8x256xf32>
    %237 = math.tanh %236 : vector<8x256xf32>
    %238 = arith.mulf %234, %220 : vector<8x256xf32>
    %239 = arith.mulf %233, %237 : vector<8x256xf32>
    %240 = arith.addf %238, %239 : vector<8x256xf32>
    %241 = math.tanh %240 : vector<8x256xf32>
    %242 = arith.mulf %235, %241 : vector<8x256xf32>
    %243 = vector.broadcast %c7_i32 : i32 to vector<8x1xi32>
    %244 = arith.cmpi sgt, %8, %243 : vector<8x1xi32>
    %245 = vector.shape_cast %244 : vector<8x1xi1> to vector<8x1xi1>
    %246 = vector.broadcast %245 : vector<8x1xi1> to vector<8x256xi1>
    %247 = arith.select %246, %242, %217 : vector<8x256xi1>, vector<8x256xf32>
    %248 = vector.shape_cast %244 : vector<8x1xi1> to vector<8x1xi1>
    %249 = vector.broadcast %248 : vector<8x1xi1> to vector<8x256xi1>
    %250 = arith.select %249, %240, %220 : vector<8x256xi1>, vector<8x256xf32>
    %c8_i32_44 = arith.constant 8 : i32
    %c0_45 = arith.constant 0 : index
    %c0_46 = arith.constant 0 : index
    %251 = vector.load %arg5[%c0_45, %c0_46] : memref<8x256xf32, #tpu.memory_space<vmem>>, vector<8x256xf32>
    tpu.vector_store %arg5[%c0_45, %c0_46], %247 {strides = array<i32>} : memref<8x256xf32, #tpu.memory_space<vmem>>, vector<8x256xf32>,
    %c0_47 = arith.constant 0 : index
    %c0_48 = arith.constant 0 : index
    %252 = vector.load %arg6[%c0_47, %c0_48] : memref<8x256xf32, #tpu.memory_space<vmem>>, vector<8x256xf32>
    tpu.vector_store %arg6[%c0_47, %c0_48], %250 {strides = array<i32>} : memref<8x256xf32, #tpu.memory_space<vmem>>, vector<8x256xf32>,
    return
  }
}

</mosaic_0001>

<bundles_post_ra>
// kernel: tpu_custom_call.1
= control target key start
LH: loop header
LB: loop body
LE: loop exit
PB: predicated region body
PF: predicated region fallthrough
CT: control target
= control target key end

     0   :  { %12 = vsyncpa [#allocation4], 0  ;;  %s9307_s0 = inlined_call_operand.vmem [shape: f32[64,32], index: 0, kind: input, shape index: {}]   ;;  %s9308_s1 = inlined_call_operand.vmem [shape: s32[8,1], index: 1, kind: input, shape index: {}]   ;;  %s9309_s2 = inlined_call_operand.hbm [shape: f32[32,1024], index: 2, kind: input, shape index: {}]   ;;  %s9310_s3 = inlined_call_operand.hbm [shape: f32[256,1024], index: 3, kind: input, shape index: {}]   ;;  %s9311_s4 = inlined_call_operand.vmem [shape: f32[1,1024], index: 4, kind: input, shape index: {}]   ;;  %s9312_s5 = inlined_call_operand.hbm [shape: f32[8,256], index: 5, kind: output, shape index: {0}]   ;;  %s9313_s6 = inlined_call_operand.hbm [shape: f32[8,256], index: 6, kind: output, shape index: {1}]  }
   0x1   :  { %13 = vsyncpa [#allocation7], 0 }
   0x2   :  { %14 = vsyncpa [#allocation5], 0 }
   0x3   :  { %15 = vsyncpa [#allocation10], 0  ;;  %s5270_s21 = smov [#allocation3]  }
   0x4   :  { %s25_s22 = sshll.u32 %s5270_s21, 4  ;;  %s26_s22 = int_to_ptr.vmem [resolvable:$true] %s25_s22 }
   0x5   :  { %s5190_s23 = scalar_lea.vmem %s26_s22, 4096  ;;  %p5195_p1 = scmp.lt.s32.totalorder %s26_s22, %s26_s22 }
   0x6   :  { %p5191_p0 = scmp.ne.s32.totalorder %s26_s22, %s5190_s23  ;;  %p5196_p2 = scmp.lt.s32.totalorder %s5190_s23, %s5190_s23 }
   0x8   :  { %p5197_p3 = por %p5196_p2, %p5195_p1 }
   0xa   :  { %p5198_p4 = pnand %p5197_p3, %p5191_p0 }
   0xc   :  { %5201 = shalt.err (!%p5198_p4)
}
   0xd   :  { %s5271_s24 = smov 1024   ;;  %s5272_s25 = smov 64  }
   0xe   :  { %31 = dma.hbm_to_vmem [thread:$0]  %s9309_s2, 4096, %s26_s22, [#allocation4], %s5271_s24, %s5271_s24, %s5272_s25  }
   0xf   :  { %s5273_s28 = smov [#allocation6]  }
  0x10   :  { %s37_s29 = sshll.u32 %s5273_s28, 4  ;;  %s38_s29 = int_to_ptr.vmem [resolvable:$true] %s37_s29 }
  0x11   :  { %s5210_s30 = scalar_lea.vmem %s38_s29, 32768  ;;  %p5215_p6 = scmp.lt.s32.totalorder %s38_s29, %s38_s29 }
  0x12   :  { %p5211_p5 = scmp.ne.s32.totalorder %s38_s29, %s5210_s30  ;;  %p5216_p7 = scmp.lt.s32.totalorder %s5210_s30, %s5210_s30 }
  0x14   :  { %p5217_p8 = por %p5216_p7, %p5215_p6 }
  0x16   :  { %p5218_p9 = pnand %p5217_p8, %p5211_p5 }
  0x18   :  { %5221 = shalt.err (!%p5218_p9)
}
  0x19   :  { %43 = dma.hbm_to_vmem [thread:$0]  %s9310_s3, 32768, %s38_s29, [#allocation7], %s5271_s24, %s5271_s24, %s5272_s25  }
  0x1a   :  { %5262 = dma.done.wait [#allocation4], 4096  }
  0x1b   :  { %5263 = vsyncadd [#allocation4], 4294963200 }
  0x1c   :  { %5264 = dma.done.wait [#allocation7], 32768  }
  0x1d   :  { %5265 = vsyncadd [#allocation7], 4294934528  ;;  %v5274_v0 = vmov 0.0   ;;  %v85_v1 = vld [vmem:[#allocation3 + $0xc8] sm:$0xff]  ;;  %v87_v2 = vld [vmem:[#allocation3 + $0xd8] sm:$0xff]  ;;  %vm134_vm0 = vcmask 261120  }
  0x1e   :  { %223 = vmatprep.mubr.f32.mxu0 %v5274_v0  ;;  %336 = vmatprep.mubr.f32.mxu1 %v5274_v0  ;;  %v84_v3 = vld [vmem:[#allocation3 + $0xc0] sm:$0xff]  ;;  %v86_v4 = vld [vmem:[#allocation3 + $0xd0] sm:$0xff]  ;;  %v77_v5 = vld [vmem:[#allocation3 + $0x88] sm:$0xff] }
  0x1f   :  { %183 = vmatprep.subr.mxu0 %v85_v1  ;;  %296 = vmatprep.subr.mxu1 %v87_v2  ;;  %v79_v6 = vld [vmem:[#allocation3 + $0x98] sm:$0xff]  ;;  %v76_v7 = vld [vmem:[#allocation3 + $0x80] sm:$0xff]  ;;  %v78_v8 = vld [vmem:[#allocation3 + $0x90] sm:$0xff] }
  0x20   :  { %184 = vmatpush1.msra.mxu0 %v84_v3  ;;  %297 = vmatpush1.msra.mxu1 %v86_v4  ;;  %v69_v9 = vld [vmem:[#allocation3 + $0x48] sm:$0xff]  ;;  %v71_v10 = vld [vmem:[#allocation3 + $0x58] sm:$0xff]  ;;  %v68_v11 = vld [vmem:[#allocation3 + $0x40] sm:$0xff] }
  0x21   :  { %185 = vmatprep.subr.mxu0 %v77_v5  ;;  %298 = vmatprep.subr.mxu1 %v79_v6  ;;  %v70_v12 = vld [vmem:[#allocation3 + $0x50] sm:$0xff]  ;;  %v61_v13 = vld [vmem:[#allocation3 + $0x8] sm:$0xff]  ;;  %v63_v14 = vld [vmem:[#allocation3 + $0x18] sm:$0xff] }
  0x22   :  { %186 = vmatpush1.msra.mxu0 %v76_v7  ;;  %299 = vmatpush1.msra.mxu1 %v78_v8  ;;  %v60_v15 = vld [vmem:[#allocation3] sm:$0xff]  ;;  %v62_v16 = vld [vmem:[#allocation3 + $0x10] sm:$0xff]  ;;  %v89_v18 = vld [vmem:[#allocation3 + $0xe8] sm:$0xff] }
  0x23   :  { %187 = vmatprep.subr.mxu0 %v69_v9  ;;  %300 = vmatprep.subr.mxu1 %v71_v10  ;;  %v5324_v17 = vld [vmem:[%s9307_s0] sm:$0xff]  ;;  %v91_v19 = vld [vmem:[#allocation3 + $0xf8] sm:$0xff]  ;;  %v90_v21 = vld [vmem:[#allocation3 + $0xf0] sm:$0xff] }
  0x24   :  { %188 = vmatpush1.msra.mxu0 %v68_v11  ;;  %301 = vmatpush1.msra.mxu1 %v70_v12  ;;  %v88_v20 = vld [vmem:[#allocation3 + $0xe0] sm:$0xff]  ;;  %v5333_v22 = vld [vmem:[%s9307_s0 + $0x8] sm:$0xff]  ;;  %v83_v24 = vld [vmem:[#allocation3 + $0xb8] sm:$0xff] }
  0x25   :  { %189 = vmatprep.subr.mxu0 %v61_v13  ;;  %302 = vmatprep.subr.mxu1 %v63_v14  ;;  %v81_v23 = vld [vmem:[#allocation3 + $0xa8] sm:$0xff]  ;;  %v80_v25 = vld [vmem:[#allocation3 + $0xa0] sm:$0xff]  ;;  %v82_v26 = vld [vmem:[#allocation3 + $0xb0] sm:$0xff] }
  0x26   :  { %190 = vmatpush1.msra.mxu0 %v60_v15  ;;  %303 = vmatpush1.msra.mxu1 %v62_v16  ;;  %v5346_v27 = vld [vmem:[%s9307_s0 + $0x10] sm:$0xff]  ;;  %v73_v28 = vld [vmem:[#allocation3 + $0x68] sm:$0xff]  ;;  %v75_v29 = vld [vmem:[#allocation3 + $0x78] sm:$0xff] }
  0x27   :  { %3861 = vmatmul.mubr.msk.f32.vlgmr.msra.gmra.mxu0 %vm134_vm0, %v5324_v17  ;;  %3869 = vmatmul.mubr.msk.f32.vlgmr.msra.gmra.mxu1 %vm134_vm0, %v5324_v17  ;;  %v72_v30 = vld [vmem:[#allocation3 + $0x60] sm:$0xff]  ;;  %v74_v31 = vld [vmem:[#allocation3 + $0x70] sm:$0xff]  ;;  %v5357_v32 = vld [vmem:[%s9307_s0 + $0x18] sm:$0xff] }
  0x28   :  { %409 = vmatprep.subr.mxu0 %v89_v18  ;;  %522 = vmatprep.subr.mxu1 %v91_v19  ;;  %v65_v33 = vld [vmem:[#allocation3 + $0x28] sm:$0xff]  ;;  %v67_v34 = vld [vmem:[#allocation3 + $0x38] sm:$0xff]  ;;  %v64_v35 = vld [vmem:[#allocation3 + $0x20] sm:$0xff] }
  0x29   :  { %410 = vmatpush1.msra.mxu0 %v88_v20  ;;  %523 = vmatpush1.msra.mxu1 %v90_v21  ;;  %v66_v36 = vld [vmem:[#allocation3 + $0x30] sm:$0xff]  ;;  %v5368_v37 = vld [vmem:[%s9307_s0 + $0x20] sm:$0xff]  ;;  %v796_v38 = vld [vmem:[#allocation6 + $0x3c8] sm:$0xff] }
  0x2a   :  { %229 = vmatprep.mubr.f32.mxu0 %v5274_v0  ;;  %342 = vmatprep.mubr.f32.mxu1 %v5274_v0  ;;  %v798_v39 = vld [vmem:[#allocation6 + $0x3d8] sm:$0xff]  ;;  %v5379_v40 = vld [vmem:[%s9307_s0 + $0x28] sm:$0xff]  ;;  %v5390_v41 = vld [vmem:[%s9307_s0 + $0x30] sm:$0xff] }
  0x2b   :  { %3862 = vmatmul.mubr.msk.f32.gmra.mxu0 %vm134_vm0, %v5333_v22  ;;  %3870 = vmatmul.mubr.msk.f32.gmra.mxu1 %vm134_vm0, %v5333_v22  ;;  %v5401_v42 = vld [vmem:[%s9307_s0 + $0x38] sm:$0xff]  ;;  %v795_v43 = vld [vmem:[#allocation6 + $0x3c0] sm:$0xff]  ;;  %v797_v44 = vld [vmem:[#allocation6 + $0x3d0] sm:$0xff] }
  0x2c   :  { %235 = vmatprep.mubr.f32.mxu0 %v5274_v0  ;;  %348 = vmatprep.mubr.f32.mxu1 %v5274_v0  ;;  %v788_v45 = vld [vmem:[#allocation6 + $0x388] sm:$0xff]  ;;  %v790_v46 = vld [vmem:[#allocation6 + $0x398] sm:$0xff]  ;;  %v787_v47 = vld [vmem:[#allocation6 + $0x380] sm:$0xff] }
  0x2d   :  { %411 = vmatprep.subr.mxu0 %v81_v23  ;;  %524 = vmatprep.subr.mxu1 %v83_v24  ;;  %v789_v48 = vld [vmem:[#allocation6 + $0x390] sm:$0xff]  ;;  %v780_v49 = vld [vmem:[#allocation6 + $0x348] sm:$0xff]  ;;  %v782_v50 = vld [vmem:[#allocation6 + $0x358] sm:$0xff] }
  0x2e   :  { %412 = vmatpush1.msra.mxu0 %v80_v25  ;;  %525 = vmatpush1.msra.mxu1 %v82_v26  ;;  %v779_v51 = vld [vmem:[#allocation6 + $0x340] sm:$0xff]  ;;  %v781_v52 = vld [vmem:[#allocation6 + $0x350] sm:$0xff]  ;;  %v772_v53 = vld [vmem:[#allocation6 + $0x308] sm:$0xff] }
  0x2f   :  { %3863 = vmatmul.mubr.msk.f32.gmra.mxu0 %vm134_vm0, %v5346_v27  ;;  %3871 = vmatmul.mubr.msk.f32.gmra.mxu1 %vm134_vm0, %v5346_v27  ;;  %v774_v54 = vld [vmem:[#allocation6 + $0x318] sm:$0xff]  ;;  %v771_v55 = vld [vmem:[#allocation6 + $0x300] sm:$0xff]  ;;  %v773_v56 = vld [vmem:[#allocation6 + $0x310] sm:$0xff] }
  0x30   :  { %241 = vmatprep.mubr.f32.mxu0 %v5274_v0  ;;  %354 = vmatprep.mubr.f32.mxu1 %v5274_v0  ;;  %v764_v57 = vld [vmem:[#allocation6 + $0x2c8] sm:$0xff]  ;;  %v766_v58 = vld [vmem:[#allocation6 + $0x2d8] sm:$0xff]  ;;  %v763_v59 = vld [vmem:[#allocation6 + $0x2c0] sm:$0xff] }
  0x31   :  { %413 = vmatprep.subr.mxu0 %v73_v28  ;;  %526 = vmatprep.subr.mxu1 %v75_v29  ;;  %v765_v60 = vld [vmem:[#allocation6 + $0x2d0] sm:$0xff]  ;;  %v756_v61 = vld [vmem:[#allocation6 + $0x288] sm:$0xff]  ;;  %v758_v62 = vld [vmem:[#allocation6 + $0x298] sm:$0xff] }
  0x32   :  { %414 = vmatpush1.msra.mxu0 %v72_v30  ;;  %527 = vmatpush1.msra.mxu1 %v74_v31  ;;  %v755_v63 = vld [vmem:[#allocation6 + $0x280] sm:$0xff]  ;;  %v757_v1 = vld [vmem:[#allocation6 + $0x290] sm:$0xff]  ;;  %v748_v2 = vld [vmem:[#allocation6 + $0x248] sm:$0xff] }
  0x33   :  { %3864 = vmatmul.mubr.msk.f32.gmra.mxu0 %vm134_vm0, %v5357_v32  ;;  %3872 = vmatmul.mubr.msk.f32.gmra.mxu1 %vm134_vm0, %v5357_v32  ;;  %v750_v3 = vld [vmem:[#allocation6 + $0x258] sm:$0xff]  ;;  %v747_v4 = vld [vmem:[#allocation6 + $0x240] sm:$0xff]  ;;  %v749_v5 = vld [vmem:[#allocation6 + $0x250] sm:$0xff] }
  0x34   :  { %247 = vmatprep.mubr.f32.mxu0 %v5274_v0  ;;  %360 = vmatprep.mubr.f32.mxu1 %v5274_v0  ;;  %v740_v6 = vld [vmem:[#allocation6 + $0x208] sm:$0xff]  ;;  %v742_v7 = vld [vmem:[#allocation6 + $0x218] sm:$0xff]  ;;  %v739_v8 = vld [vmem:[#allocation6 + $0x200] sm:$0xff] }
  0x35   :  { %415 = vmatprep.subr.mxu0 %v65_v33  ;;  %528 = vmatprep.subr.mxu1 %v67_v34  ;;  %v741_v9 = vld [vmem:[#allocation6 + $0x210] sm:$0xff]  ;;  %v732_v10 = vld [vmem:[#allocation6 + $0x1c8] sm:$0xff]  ;;  %v734_v11 = vld [vmem:[#allocation6 + $0x1d8] sm:$0xff] }
  0x36   :  { %416 = vmatpush1.msra.mxu0 %v64_v35  ;;  %529 = vmatpush1.msra.mxu1 %v66_v36  ;;  %v731_v12 = vld [vmem:[#allocation6 + $0x1c0] sm:$0xff]  ;;  %v733_v13 = vld [vmem:[#allocation6 + $0x1d0] sm:$0xff]  ;;  %v724_v14 = vld [vmem:[#allocation6 + $0x188] sm:$0xff] }
  0x37   :  { %3865 = vmatmul.mubr.msk.f32.gmra.mxu0 %vm134_vm0, %v5368_v37  ;;  %3873 = vmatmul.mubr.msk.f32.gmra.mxu1 %vm134_vm0, %v5368_v37  ;;  %v726_v15 = vld [vmem:[#allocation6 + $0x198] sm:$0xff]  ;;  %v723_v16 = vld [vmem:[#allocation6 + $0x180] sm:$0xff]  ;;  %v716_v18 = vld [vmem:[#allocation6 + $0x148] sm:$0xff] }
  0x38   :  { %253 = vmatprep.mubr.f32.mxu0 %v5274_v0  ;;  %366 = vmatprep.mubr.f32.mxu1 %v5274_v0  ;;  %v718_v19 = vld [vmem:[#allocation6 + $0x158] sm:$0xff]  ;;  %v715_v20 = vld [vmem:[#allocation6 + $0x140] sm:$0xff]  ;;  %v717_v21 = vld [vmem:[#allocation6 + $0x150] sm:$0xff] }
  0x39   :  { %943 = vmatprep.subr.mxu0 %v796_v38  ;;  %1014 = vmatprep.subr.mxu1 %v798_v39  ;;  %v708_v23 = vld [vmem:[#allocation6 + $0x108] sm:$0xff]  ;;  %v710_v24 = vld [vmem:[#allocation6 + $0x118] sm:$0xff]  ;;  %v707_v25 = vld [vmem:[#allocation6 + $0x100] sm:$0xff] }
  0x3a   :  { %v709_v26 = vld [vmem:[#allocation6 + $0x110] sm:$0xff]  ;;  %v700_v28 = vld [vmem:[#allocation6 + $0xc8] sm:$0xff]  ;;  %v702_v29 = vld [vmem:[#allocation6 + $0xd8] sm:$0xff] }
  0x3b   :  { %3866 = vmatmul.mubr.msk.f32.gmra.mxu0 %vm134_vm0, %v5379_v40  ;;  %3874 = vmatmul.mubr.msk.f32.gmra.mxu1 %vm134_vm0, %v5379_v40  ;;  %v699_v30 = vld [vmem:[#allocation6 + $0xc0] sm:$0xff]  ;;  %v701_v31 = vld [vmem:[#allocation6 + $0xd0] sm:$0xff]  ;;  %v692_v33 = vld [vmem:[#allocation6 + $0x88] sm:$0xff] }
  0x3c   :  { %259 = vmatprep.mubr.f32.mxu0 %v5274_v0  ;;  %372 = vmatprep.mubr.f32.mxu1 %v5274_v0  ;;  %v694_v34 = vld [vmem:[#allocation6 + $0x98] sm:$0xff]  ;;  %v691_v35 = vld [vmem:[#allocation6 + $0x80] sm:$0xff]  ;;  %v693_v36 = vld [vmem:[#allocation6 + $0x90] sm:$0xff] }
  0x3d   :  { %v684_v38 = vld [vmem:[#allocation6 + $0x48] sm:$0xff]  ;;  %v686_v39 = vld [vmem:[#allocation6 + $0x58] sm:$0xff] }
  0x3f   :  { %3867 = vmatmul.mubr.msk.f32.gmra.mxu0 %vm134_vm0, %v5390_v41  ;;  %3875 = vmatmul.mubr.msk.f32.gmra.mxu1 %vm134_vm0, %v5390_v41 }
  0x40   :  { %265 = vmatprep.mubr.f32.mxu0 %v5274_v0  ;;  %378 = vmatprep.mubr.f32.mxu1 %v5274_v0 }
  0x43   :  { %3868 = vmatmul.mubr.msk.f32.gmra.mxu0 %vm134_vm0, %v5401_v42  ;;  %3876 = vmatmul.mubr.msk.f32.gmra.mxu1 %vm134_vm0, %v5401_v42 }
  0x44   :  { %449 = vmatprep.mubr.f32.mxu0 %v5274_v0  ;;  %562 = vmatprep.mubr.f32.mxu1 %v5274_v0 }
  0x47   :  { %3877 = vmatmul.mubr.msk.f32.vlgmr.msra.gmra.mxu0 %vm134_vm0, %v5324_v17  ;;  %3885 = vmatmul.mubr.msk.f32.vlgmr.msra.gmra.mxu1 %vm134_vm0, %v5324_v17  ;;  %v725_v17 = vld [vmem:[#allocation6 + $0x190] sm:$0xff] }
  0x48   :  { %944 = vmatpush1.msra.mxu0 %v795_v43  ;;  %1015 = vmatpush1.msra.mxu1 %v797_v44  ;;  %v683_v43 = vld [vmem:[#allocation6 + $0x40] sm:$0xff]  ;;  %v685_v44 = vld [vmem:[#allocation6 + $0x50] sm:$0xff] }
  0x49   :  { %945 = vmatprep.subr.mxu0 %v788_v45  ;;  %1016 = vmatprep.subr.mxu1 %v790_v46  ;;  %v676_v45 = vld [vmem:[#allocation6 + $0x8] sm:$0xff]  ;;  %v678_v46 = vld [vmem:[#allocation6 + $0x18] sm:$0xff] }
  0x4a   :  { %946 = vmatpush1.msra.mxu0 %v787_v47  ;;  %1017 = vmatpush1.msra.mxu1 %v789_v48  ;;  %v675_v47 = vld [vmem:[#allocation6] sm:$0xff]  ;;  %v677_v48 = vld [vmem:[#allocation6 + $0x10] sm:$0xff] }
  0x4b   :  { %947 = vmatprep.subr.mxu0 %v780_v49  ;;  %1018 = vmatprep.subr.mxu1 %v782_v50  ;;  %v924_v49 = vld [vmem:[#allocation6 + $0x7c8] sm:$0xff]  ;;  %v926_v50 = vld [vmem:[#allocation6 + $0x7d8] sm:$0xff] }
  0x4c   :  { %948 = vmatpush1.msra.mxu0 %v779_v51  ;;  %1019 = vmatpush1.msra.mxu1 %v781_v52  ;;  %v923_v51 = vld [vmem:[#allocation6 + $0x7c0] sm:$0xff]  ;;  %v925_v52 = vld [vmem:[#allocation6 + $0x7d0] sm:$0xff] }
  0x4d   :  { %949 = vmatprep.subr.mxu0 %v772_v53  ;;  %1020 = vmatprep.subr.mxu1 %v774_v54  ;;  %v916_v53 = vld [vmem:[#allocation6 + $0x788] sm:$0xff]  ;;  %v918_v54 = vld [vmem:[#allocation6 + $0x798] sm:$0xff] }
  0x4e   :  { %950 = vmatpush1.msra.mxu0 %v771_v55  ;;  %1021 = vmatpush1.msra.mxu1 %v773_v56  ;;  %v915_v55 = vld [vmem:[#allocation6 + $0x780] sm:$0xff]  ;;  %v917_v56 = vld [vmem:[#allocation6 + $0x790] sm:$0xff] }
  0x4f   :  { %951 = vmatprep.subr.mxu0 %v764_v57  ;;  %1022 = vmatprep.subr.mxu1 %v766_v58  ;;  %v908_v57 = vld [vmem:[#allocation6 + $0x748] sm:$0xff]  ;;  %v910_v58 = vld [vmem:[#allocation6 + $0x758] sm:$0xff] }
  0x50   :  { %952 = vmatpush1.msra.mxu0 %v763_v59  ;;  %1023 = vmatpush1.msra.mxu1 %v765_v60  ;;  %v907_v59 = vld [vmem:[#allocation6 + $0x740] sm:$0xff]  ;;  %v909_v60 = vld [vmem:[#allocation6 + $0x750] sm:$0xff] }
  0x51   :  { %953 = vmatprep.subr.mxu0 %v756_v61  ;;  %1024 = vmatprep.subr.mxu1 %v758_v62  ;;  %v900_v61 = vld [vmem:[#allocation6 + $0x708] sm:$0xff]  ;;  %v902_v62 = vld [vmem:[#allocation6 + $0x718] sm:$0xff] }
  0x52   :  { %954 = vmatpush1.msra.mxu0 %v755_v63  ;;  %1025 = vmatpush1.msra.mxu1 %v757_v1  ;;  %v899_v63 = vld [vmem:[#allocation6 + $0x700] sm:$0xff]  ;;  %v901_v1 = vld [vmem:[#allocation6 + $0x710] sm:$0xff] }
  0x53   :  { %955 = vmatprep.subr.mxu0 %v748_v2  ;;  %1026 = vmatprep.subr.mxu1 %v750_v3  ;;  %v892_v2 = vld [vmem:[#allocation6 + $0x6c8] sm:$0xff]  ;;  %v894_v3 = vld [vmem:[#allocation6 + $0x6d8] sm:$0xff] }
  0x54   :  { %956 = vmatpush1.msra.mxu0 %v747_v4  ;;  %1027 = vmatpush1.msra.mxu1 %v749_v5  ;;  %v891_v4 = vld [vmem:[#allocation6 + $0x6c0] sm:$0xff]  ;;  %v884_v5 = vld [vmem:[#allocation6 + $0x688] sm:$0xff] }
  0x55   :  { %957 = vmatprep.subr.mxu0 %v740_v6  ;;  %1028 = vmatprep.subr.mxu1 %v742_v7  ;;  %v886_v6 = vld [vmem:[#allocation6 + $0x698] sm:$0xff]  ;;  %v883_v7 = vld [vmem:[#allocation6 + $0x680] sm:$0xff] }
  0x56   :  { %958 = vmatpush1.msra.mxu0 %v739_v8  ;;  %1029 = vmatpush1.msra.mxu1 %v741_v9  ;;  %v885_v8 = vld [vmem:[#allocation6 + $0x690] sm:$0xff]  ;;  %v876_v9 = vld [vmem:[#allocation6 + $0x648] sm:$0xff] }
  0x57   :  { %959 = vmatprep.subr.mxu0 %v732_v10  ;;  %1030 = vmatprep.subr.mxu1 %v734_v11  ;;  %v878_v10 = vld [vmem:[#allocation6 + $0x658] sm:$0xff]  ;;  %v875_v11 = vld [vmem:[#allocation6 + $0x640] sm:$0xff] }
  0x58   :  { %960 = vmatpush1.msra.mxu0 %v731_v12  ;;  %1031 = vmatpush1.msra.mxu1 %v733_v13  ;;  %v868_v12 = vld [vmem:[#allocation6 + $0x608] sm:$0xff]  ;;  %v870_v13 = vld [vmem:[#allocation6 + $0x618] sm:$0xff] }
  0x59   :  { %961 = vmatprep.subr.mxu0 %v724_v14  ;;  %1032 = vmatprep.subr.mxu1 %v726_v15  ;;  %v867_v14 = vld [vmem:[#allocation6 + $0x600] sm:$0xff]  ;;  %v869_v15 = vld [vmem:[#allocation6 + $0x610] sm:$0xff] }
  0x5a   :  { %962 = vmatpush1.msra.mxu0 %v723_v16  ;;  %1033 = vmatpush1.msra.mxu1 %v725_v17  ;;  %v860_v16 = vld [vmem:[#allocation6 + $0x5c8] sm:$0xff]  ;;  %v862_v17 = vld [vmem:[#allocation6 + $0x5d8] sm:$0xff] }
  0x5b   :  { %963 = vmatprep.subr.mxu0 %v716_v18  ;;  %1034 = vmatprep.subr.mxu1 %v718_v19  ;;  %v859_v18 = vld [vmem:[#allocation6 + $0x5c0] sm:$0xff]  ;;  %v852_v19 = vld [vmem:[#allocation6 + $0x588] sm:$0xff] }
  0x5c   :  { %964 = vmatpush1.msra.mxu0 %v715_v20  ;;  %1035 = vmatpush1.msra.mxu1 %v717_v21  ;;  %v854_v20 = vld [vmem:[#allocation6 + $0x598] sm:$0xff]  ;;  %v851_v21 = vld [vmem:[#allocation6 + $0x580] sm:$0xff] }
  0x5d   :  { %965 = vmatprep.subr.mxu0 %v708_v23  ;;  %1036 = vmatprep.subr.mxu1 %v710_v24  ;;  %v853_v23 = vld [vmem:[#allocation6 + $0x590] sm:$0xff]  ;;  %v844_v24 = vld [vmem:[#allocation6 + $0x548] sm:$0xff] }
  0x5e   :  { %966 = vmatpush1.msra.mxu0 %v707_v25  ;;  %1037 = vmatpush1.msra.mxu1 %v709_v26  ;;  %v846_v25 = vld [vmem:[#allocation6 + $0x558] sm:$0xff]  ;;  %v843_v26 = vld [vmem:[#allocation6 + $0x540] sm:$0xff] }
  0x5f   :  { %967 = vmatprep.subr.mxu0 %v700_v28  ;;  %1038 = vmatprep.subr.mxu1 %v702_v29  ;;  %v5443_v28 = vld [vmem:[#allocation6 + $0x508] sm:$0xff]  ;;  %v5445_v29 = vld [vmem:[#allocation6 + $0x518] sm:$0xff] }
  0x60   :  { %968 = vmatpush1.msra.mxu0 %v699_v30  ;;  %1039 = vmatpush1.msra.mxu1 %v701_v31  ;;  %v5447_v30 = vld [vmem:[#allocation6 + $0x500] sm:$0xff]  ;;  %v5449_v31 = vld [vmem:[#allocation6 + $0x510] sm:$0xff] }
  0x61   :  { %969 = vmatprep.subr.mxu0 %v692_v33  ;;  %1040 = vmatprep.subr.mxu1 %v694_v34  ;;  %v5457_v33 = vld [vmem:[#allocation6 + $0x4d8] sm:$0xff]  ;;  %v5461_v34 = vld [vmem:[#allocation6 + $0x4c0] sm:$0xff] }
  0x62   :  { %970 = vmatpush1.msra.mxu0 %v691_v35  ;;  %1041 = vmatpush1.msra.mxu1 %v693_v36  ;;  %v5463_v35 = vld [vmem:[#allocation6 + $0x4d0] sm:$0xff]  ;;  %v5469_v36 = vld [vmem:[#allocation6 + $0x488] sm:$0xff] }
  0x63   :  { %971 = vmatprep.subr.mxu0 %v684_v38  ;;  %1042 = vmatprep.subr.mxu1 %v686_v39  ;;  %v5471_v38 = vld [vmem:[#allocation6 + $0x498] sm:$0xff]  ;;  %v5477_v39 = vld [vmem:[#allocation6 + $0x480] sm:$0xff] }
  0x64   :  { %972 = vmatpush1.msra.mxu0 %v683_v43  ;;  %1043 = vmatpush1.msra.mxu1 %v685_v44  ;;  %v5479_v43 = vld [vmem:[#allocation6 + $0x490] sm:$0xff]  ;;  %v5487_v44 = vld [vmem:[#allocation6 + $0x458] sm:$0xff] }
  0x65   :  { %973 = vmatprep.subr.mxu0 %v676_v45  ;;  %1044 = vmatprep.subr.mxu1 %v678_v46  ;;  %v5491_v45 = vld [vmem:[#allocation6 + $0x440] sm:$0xff]  ;;  %v5493_v46 = vld [vmem:[#allocation6 + $0x450] sm:$0xff] }
  0x66   :  { %974 = vmatpush1.msra.mxu0 %v675_v47  ;;  %1045 = vmatpush1.msra.mxu1 %v677_v48  ;;  %v5499_v47 = vld [vmem:[#allocation6 + $0x408] sm:$0xff]  ;;  %v5501_v48 = vld [vmem:[#allocation6 + $0x418] sm:$0xff] }
  0x67   :  { %975 = vmatprep.subr.mxu0 %v924_v49  ;;  %1046 = vmatprep.subr.mxu1 %v926_v50  ;;  %v5505_v49 = vld [vmem:[#allocation6 + $0x400] sm:$0xff]  ;;  %v5509_v50 = vld [vmem:[#allocation6 + $0x410] sm:$0xff] }
  0x68   :  { %976 = vmatpush2.msra.mxu0 %v923_v51  ;;  %1047 = vmatpush2.msra.mxu1 %v925_v52  ;;  %v5517_v51 = vld [vmem:[#allocation6 + $0x3f8] sm:$0xff]  ;;  %v799_v52 = vld [vmem:[#allocation6 + $0x3e0] sm:$0xff] }
  0x69   :  { %977 = vmatprep.subr.mxu0 %v916_v53  ;;  %1048 = vmatprep.subr.mxu1 %v918_v54  ;;  %v801_v53 = vld [vmem:[#allocation6 + $0x3f0] sm:$0xff]  ;;  %v792_v54 = vld [vmem:[#allocation6 + $0x3a8] sm:$0xff] }
  0x6a   :  { %455 = vmatprep.mubr.f32.mxu0 %v5274_v0  ;;  %568 = vmatprep.mubr.f32.mxu1 %v5274_v0 }
  0x6b   :  { %978 = vmatpush2.msra.mxu0 %v915_v55  ;;  %1049 = vmatpush2.msra.mxu1 %v917_v56  ;;  %v794_v55 = vld [vmem:[#allocation6 + $0x3b8] sm:$0xff]  ;;  %v791_v56 = vld [vmem:[#allocation6 + $0x3a0] sm:$0xff] }
  0x6c   :  { %3878 = vmatmul.mubr.msk.f32.gmra.mxu0 %vm134_vm0, %v5333_v22  ;;  %3886 = vmatmul.mubr.msk.f32.gmra.mxu1 %vm134_vm0, %v5333_v22  ;;  %v893_v22 = vld [vmem:[#allocation6 + $0x6d0] sm:$0xff] }
  0x6d   :  { %979 = vmatprep.subr.mxu0 %v908_v57  ;;  %1050 = vmatprep.subr.mxu1 %v910_v58  ;;  %v793_v57 = vld [vmem:[#allocation6 + $0x3b0] sm:$0xff]  ;;  %v784_v58 = vld [vmem:[#allocation6 + $0x368] sm:$0xff] }
  0x6e   :  { %980 = vmatpush2.msra.mxu0 %v907_v59  ;;  %1051 = vmatpush2.msra.mxu1 %v909_v60  ;;  %v786_v59 = vld [vmem:[#allocation6 + $0x378] sm:$0xff]  ;;  %v783_v60 = vld [vmem:[#allocation6 + $0x360] sm:$0xff] }
  0x6f   :  { %981 = vmatprep.subr.mxu0 %v900_v61  ;;  %1052 = vmatprep.subr.mxu1 %v902_v62  ;;  %v785_v61 = vld [vmem:[#allocation6 + $0x370] sm:$0xff]  ;;  %v776_v62 = vld [vmem:[#allocation6 + $0x328] sm:$0xff] }
  0x70   :  { %461 = vmatprep.mubr.f32.mxu0 %v5274_v0  ;;  %574 = vmatprep.mubr.f32.mxu1 %v5274_v0 }
  0x71   :  { %982 = vmatpush2.msra.mxu0 %v899_v63  ;;  %1053 = vmatpush2.msra.mxu1 %v901_v1  ;;  %v778_v63 = vld [vmem:[#allocation6 + $0x338] sm:$0xff]  ;;  %v775_v1 = vld [vmem:[#allocation6 + $0x320] sm:$0xff] }
  0x72   :  { %3879 = vmatmul.mubr.msk.f32.gmra.mxu0 %vm134_vm0, %v5346_v27  ;;  %3887 = vmatmul.mubr.msk.f32.gmra.mxu1 %vm134_vm0, %v5346_v27  ;;  %v877_v27 = vld [vmem:[#allocation6 + $0x650] sm:$0xff] }
  0x73   :  { %983 = vmatprep.subr.mxu0 %v892_v2  ;;  %1054 = vmatprep.subr.mxu1 %v894_v3  ;;  %v777_v2 = vld [vmem:[#allocation6 + $0x330] sm:$0xff]  ;;  %v768_v3 = vld [vmem:[#allocation6 + $0x2e8] sm:$0xff] }
  0x74   :  { %984 = vmatpush2.msra.mxu0 %v891_v4  ;;  %1055 = vmatpush2.msra.mxu1 %v893_v22  ;;  %v770_v4 = vld [vmem:[#allocation6 + $0x2f8] sm:$0xff]  ;;  %v767_v22 = vld [vmem:[#allocation6 + $0x2e0] sm:$0xff] }
  0x75   :  { %985 = vmatprep.subr.mxu0 %v884_v5  ;;  %1056 = vmatprep.subr.mxu1 %v886_v6  ;;  %v769_v5 = vld [vmem:[#allocation6 + $0x2f0] sm:$0xff]  ;;  %v760_v6 = vld [vmem:[#allocation6 + $0x2a8] sm:$0xff] }
  0x76   :  { %467 = vmatprep.mubr.f32.mxu0 %v5274_v0  ;;  %580 = vmatprep.mubr.f32.mxu1 %v5274_v0 }
  0x77   :  { %986 = vmatpush2.msra.mxu0 %v883_v7  ;;  %1057 = vmatpush2.msra.mxu1 %v885_v8  ;;  %v762_v7 = vld [vmem:[#allocation6 + $0x2b8] sm:$0xff]  ;;  %v759_v8 = vld [vmem:[#allocation6 + $0x2a0] sm:$0xff] }
  0x78   :  { %3880 = vmatmul.mubr.msk.f32.gmra.mxu0 %vm134_vm0, %v5357_v32  ;;  %3888 = vmatmul.mubr.msk.f32.gmra.mxu1 %vm134_vm0, %v5357_v32  ;;  %v861_v32 = vld [vmem:[#allocation6 + $0x5d0] sm:$0xff] }
  0x79   :  { %987 = vmatprep.subr.mxu0 %v876_v9  ;;  %1058 = vmatprep.subr.mxu1 %v878_v10  ;;  %v761_v9 = vld [vmem:[#allocation6 + $0x2b0] sm:$0xff]  ;;  %v752_v10 = vld [vmem:[#allocation6 + $0x268] sm:$0xff] }
  0x7a   :  { %988 = vmatpush2.msra.mxu0 %v875_v11  ;;  %1059 = vmatpush2.msra.mxu1 %v877_v27  ;;  %v754_v11 = vld [vmem:[#allocation6 + $0x278] sm:$0xff]  ;;  %v751_v27 = vld [vmem:[#allocation6 + $0x260] sm:$0xff] }
  0x7b   :  { %989 = vmatprep.subr.mxu0 %v868_v12  ;;  %1060 = vmatprep.subr.mxu1 %v870_v13  ;;  %v753_v12 = vld [vmem:[#allocation6 + $0x270] sm:$0xff]  ;;  %v744_v13 = vld [vmem:[#allocation6 + $0x228] sm:$0xff] }
  0x7c   :  { %473 = vmatprep.mubr.f32.mxu0 %v5274_v0  ;;  %586 = vmatprep.mubr.f32.mxu1 %v5274_v0 }
  0x7d   :  { %990 = vmatpush2.msra.mxu0 %v867_v14  ;;  %1061 = vmatpush2.msra.mxu1 %v869_v15  ;;  %v746_v14 = vld [vmem:[#allocation6 + $0x238] sm:$0xff]  ;;  %v743_v15 = vld [vmem:[#allocation6 + $0x220] sm:$0xff] }
  0x7e   :  { %3881 = vmatmul.mubr.msk.f32.gmra.mxu0 %vm134_vm0, %v5368_v37  ;;  %3889 = vmatmul.mubr.msk.f32.gmra.mxu1 %vm134_vm0, %v5368_v37  ;;  %v845_v37 = vld [vmem:[#allocation6 + $0x550] sm:$0xff] }
  0x7f   :  { %991 = vmatprep.subr.mxu0 %v860_v16  ;;  %1062 = vmatprep.subr.mxu1 %v862_v17  ;;  %v745_v16 = vld [vmem:[#allocation6 + $0x230] sm:$0xff]  ;;  %v736_v17 = vld [vmem:[#allocation6 + $0x1e8] sm:$0xff] }
  0x80   :  { %992 = vmatpush2.msra.mxu0 %v859_v18  ;;  %1063 = vmatpush2.msra.mxu1 %v861_v32  ;;  %v738_v18 = vld [vmem:[#allocation6 + $0x1f8] sm:$0xff]  ;;  %v735_v32 = vld [vmem:[#allocation6 + $0x1e0] sm:$0xff] }
  0x81   :  { %993 = vmatprep.subr.mxu0 %v852_v19  ;;  %1064 = vmatprep.subr.mxu1 %v854_v20  ;;  %v737_v19 = vld [vmem:[#allocation6 + $0x1f0] sm:$0xff]  ;;  %v728_v20 = vld [vmem:[#allocation6 + $0x1a8] sm:$0xff] }
  0x82   :  { %479 = vmatprep.mubr.f32.mxu0 %v5274_v0  ;;  %592 = vmatprep.mubr.f32.mxu1 %v5274_v0 }
  0x83   :  { %994 = vmatpush2.msra.mxu0 %v851_v21  ;;  %1065 = vmatpush2.msra.mxu1 %v853_v23  ;;  %v730_v21 = vld [vmem:[#allocation6 + $0x1b8] sm:$0xff]  ;;  %v727_v23 = vld [vmem:[#allocation6 + $0x1a0] sm:$0xff] }
  0x84   :  { %3882 = vmatmul.mubr.msk.f32.gmra.mxu0 %vm134_vm0, %v5379_v40  ;;  %3890 = vmatmul.mubr.msk.f32.gmra.mxu1 %vm134_vm0, %v5379_v40  ;;  %v5455_v40 = vld [vmem:[#allocation6 + $0x4c8] sm:$0xff] }
  0x85   :  { %995 = vmatprep.subr.mxu0 %v844_v24  ;;  %1066 = vmatprep.subr.mxu1 %v846_v25  ;;  %v729_v24 = vld [vmem:[#allocation6 + $0x1b0] sm:$0xff]  ;;  %v720_v25 = vld [vmem:[#allocation6 + $0x168] sm:$0xff] }
  0x86   :  { %996 = vmatpush2.msra.mxu0 %v843_v26  ;;  %1067 = vmatpush2.msra.mxu1 %v845_v37  ;;  %v722_v26 = vld [vmem:[#allocation6 + $0x178] sm:$0xff]  ;;  %v719_v37 = vld [vmem:[#allocation6 + $0x160] sm:$0xff] }
  0x87   :  { %997 = vmatprep.subr.mxu0 %v5443_v28  ;;  %1068 = vmatprep.subr.mxu1 %v5445_v29 }
  0x88   :  { %485 = vmatprep.mubr.f32.mxu0 %v5274_v0  ;;  %598 = vmatprep.mubr.f32.mxu1 %v5274_v0 }
  0x89   :  { %998 = vmatpush2.msra.mxu0 %v5447_v30  ;;  %1069 = vmatpush2.msra.mxu1 %v5449_v31 }
  0x8a   :  { %3883 = vmatmul.mubr.msk.f32.gmra.mxu0 %vm134_vm0, %v5390_v41  ;;  %3891 = vmatmul.mubr.msk.f32.gmra.mxu1 %vm134_vm0, %v5390_v41  ;;  %v5485_v41 = vld [vmem:[#allocation6 + $0x448] sm:$0xff] }
  0x8b   :  { %999 = vmatprep.subr.mxu0 %v5455_v40  ;;  %1070 = vmatprep.subr.mxu1 %v5457_v33 }
  0x8c   :  { %1000 = vmatpush2.msra.mxu0 %v5461_v34  ;;  %1071 = vmatpush2.msra.mxu1 %v5463_v35 }
  0x8d   :  { %1001 = vmatprep.subr.mxu0 %v5469_v36  ;;  %1072 = vmatprep.subr.mxu1 %v5471_v38 }
  0x8e   :  { %491 = vmatprep.mubr.f32.mxu0 %v5274_v0  ;;  %604 = vmatprep.mubr.f32.mxu1 %v5274_v0 }
  0x8f   :  { %1002 = vmatpush2.msra.mxu0 %v5477_v39  ;;  %1073 = vmatpush2.msra.mxu1 %v5479_v43 }
  0x90   :  { %3884 = vmatmul.mubr.msk.f32.gmra.mxu0 %vm134_vm0, %v5401_v42  ;;  %3892 = vmatmul.mubr.msk.f32.gmra.mxu1 %vm134_vm0, %v5401_v42  ;;  %v5515_v42 = vld [vmem:[#allocation6 + $0x3e8] sm:$0xff] }
  0x91   :  { %1003 = vmatprep.subr.mxu0 %v5485_v41  ;;  %1074 = vmatprep.subr.mxu1 %v5487_v44 }
  0x92   :  { %1004 = vmatpush2.msra.mxu0 %v5491_v45  ;;  %1075 = vmatpush2.msra.mxu1 %v5493_v46 }
  0x93   :  { %1005 = vmatprep.subr.mxu0 %v5499_v47  ;;  %1076 = vmatprep.subr.mxu1 %v5501_v48 }
  0x94   :  { %1006 = vmatpush2.msra.mxu0 %v5505_v49  ;;  %1007 = vmatprep.mubr.f32.mxu0 %v5274_v0 }
  0x95   :  { %1077 = vmatpush2.msra.mxu1 %v5509_v50  ;;  %1078 = vmatprep.mubr.f32.mxu1 %v5274_v0 }
  0x96   :  { %1008 = vmatmul.mubr.f32.vlgmr.msra.gmra.mxu0 %v5274_v0  ;;  %1079 = vmatmul.mubr.f32.vlgmr.msra.gmra.mxu1 %v5274_v0 }
  0x97   :  { %1085 = vmatprep.subr.mxu0 %v5515_v42  ;;  %1156 = vmatprep.subr.mxu1 %v5517_v51 }
  0x98   :  { %1086 = vmatpush1.msra.mxu0 %v799_v52  ;;  %1157 = vmatpush1.msra.mxu1 %v801_v53  ;;  %v721_v52 = vld [vmem:[#allocation6 + $0x170] sm:$0xff]  ;;  %v712_v53 = vld [vmem:[#allocation6 + $0x128] sm:$0xff] }
  0x99   :  { %1087 = vmatprep.subr.mxu0 %v792_v54  ;;  %1158 = vmatprep.subr.mxu1 %v794_v55  ;;  %v714_v54 = vld [vmem:[#allocation6 + $0x138] sm:$0xff]  ;;  %v711_v55 = vld [vmem:[#allocation6 + $0x120] sm:$0xff] }
  0x9a   :  { %1088 = vmatpush1.msra.mxu0 %v791_v56  ;;  %1159 = vmatpush1.msra.mxu1 %v793_v57  ;;  %v713_v56 = vld [vmem:[#allocation6 + $0x130] sm:$0xff]  ;;  %v704_v57 = vld [vmem:[#allocation6 + $0xe8] sm:$0xff] }
  0x9b   :  { %1089 = vmatprep.subr.mxu0 %v784_v58  ;;  %1160 = vmatprep.subr.mxu1 %v786_v59  ;;  %v706_v58 = vld [vmem:[#allocation6 + $0xf8] sm:$0xff]  ;;  %v703_v59 = vld [vmem:[#allocation6 + $0xe0] sm:$0xff] }
  0x9c   :  { %1090 = vmatpush1.msra.mxu0 %v783_v60  ;;  %1161 = vmatpush1.msra.mxu1 %v785_v61  ;;  %v705_v60 = vld [vmem:[#allocation6 + $0xf0] sm:$0xff]  ;;  %v696_v61 = vld [vmem:[#allocation6 + $0xa8] sm:$0xff] }
  0x9d   :  { %1091 = vmatprep.subr.mxu0 %v776_v62  ;;  %1162 = vmatprep.subr.mxu1 %v778_v63  ;;  %v698_v62 = vld [vmem:[#allocation6 + $0xb8] sm:$0xff]  ;;  %v695_v63 = vld [vmem:[#allocation6 + $0xa0] sm:$0xff] }
  0x9e   :  { %1092 = vmatpush1.msra.mxu0 %v775_v1  ;;  %1163 = vmatpush1.msra.mxu1 %v777_v2  ;;  %v697_v1 = vld [vmem:[#allocation6 + $0xb0] sm:$0xff]  ;;  %v688_v2 = vld [vmem:[#allocation6 + $0x68] sm:$0xff] }
  0x9f   :  { %1093 = vmatprep.subr.mxu0 %v768_v3  ;;  %1164 = vmatprep.subr.mxu1 %v770_v4  ;;  %v690_v3 = vld [vmem:[#allocation6 + $0x78] sm:$0xff]  ;;  %v687_v4 = vld [vmem:[#allocation6 + $0x60] sm:$0xff] }
  0xa0   :  { %1094 = vmatpush1.msra.mxu0 %v767_v22  ;;  %1165 = vmatpush1.msra.mxu1 %v769_v5  ;;  %v689_v22 = vld [vmem:[#allocation6 + $0x70] sm:$0xff]  ;;  %v680_v5 = vld [vmem:[#allocation6 + $0x28] sm:$0xff] }
  0xa1   :  { %1095 = vmatprep.subr.mxu0 %v760_v6  ;;  %1166 = vmatprep.subr.mxu1 %v762_v7  ;;  %v682_v6 = vld [vmem:[#allocation6 + $0x38] sm:$0xff]  ;;  %v679_v7 = vld [vmem:[#allocation6 + $0x20] sm:$0xff] }
  0xa2   :  { %1096 = vmatpush1.msra.mxu0 %v759_v8  ;;  %1167 = vmatpush1.msra.mxu1 %v761_v9  ;;  %v681_v8 = vld [vmem:[#allocation6 + $0x30] sm:$0xff]  ;;  %v928_v9 = vld [vmem:[#allocation6 + $0x7e8] sm:$0xff] }
  0xa3   :  { %1097 = vmatprep.subr.mxu0 %v752_v10  ;;  %1168 = vmatprep.subr.mxu1 %v754_v11  ;;  %v930_v10 = vld [vmem:[#allocation6 + $0x7f8] sm:$0xff]  ;;  %v927_v11 = vld [vmem:[#allocation6 + $0x7e0] sm:$0xff] }
  0xa4   :  { %1098 = vmatpush1.msra.mxu0 %v751_v27  ;;  %1169 = vmatpush1.msra.mxu1 %v753_v12  ;;  %v929_v27 = vld [vmem:[#allocation6 + $0x7f0] sm:$0xff]  ;;  %v920_v12 = vld [vmem:[#allocation6 + $0x7a8] sm:$0xff] }
  0xa5   :  { %1099 = vmatprep.subr.mxu0 %v744_v13  ;;  %1170 = vmatprep.subr.mxu1 %v746_v14  ;;  %v922_v13 = vld [vmem:[#allocation6 + $0x7b8] sm:$0xff]  ;;  %v919_v14 = vld [vmem:[#allocation6 + $0x7a0] sm:$0xff] }
  0xa6   :  { %1100 = vmatpush1.msra.mxu0 %v743_v15  ;;  %1171 = vmatpush1.msra.mxu1 %v745_v16  ;;  %v921_v15 = vld [vmem:[#allocation6 + $0x7b0] sm:$0xff]  ;;  %v912_v16 = vld [vmem:[#allocation6 + $0x768] sm:$0xff] }
  0xa7   :  { %1101 = vmatprep.subr.mxu0 %v736_v17  ;;  %1172 = vmatprep.subr.mxu1 %v738_v18  ;;  %v914_v17 = vld [vmem:[#allocation6 + $0x778] sm:$0xff]  ;;  %v911_v18 = vld [vmem:[#allocation6 + $0x760] sm:$0xff] }
  0xa8   :  { %1102 = vmatpush1.msra.mxu0 %v735_v32  ;;  %1173 = vmatpush1.msra.mxu1 %v737_v19  ;;  %v913_v32 = vld [vmem:[#allocation6 + $0x770] sm:$0xff]  ;;  %v904_v19 = vld [vmem:[#allocation6 + $0x728] sm:$0xff] }
  0xa9   :  { %1103 = vmatprep.subr.mxu0 %v728_v20  ;;  %1174 = vmatprep.subr.mxu1 %v730_v21  ;;  %v906_v20 = vld [vmem:[#allocation6 + $0x738] sm:$0xff]  ;;  %v903_v21 = vld [vmem:[#allocation6 + $0x720] sm:$0xff] }
  0xaa   :  { %1104 = vmatpush1.msra.mxu0 %v727_v23  ;;  %1175 = vmatpush1.msra.mxu1 %v729_v24  ;;  %v905_v23 = vld [vmem:[#allocation6 + $0x730] sm:$0xff]  ;;  %v896_v24 = vld [vmem:[#allocation6 + $0x6e8] sm:$0xff] }
  0xab   :  { %1105 = vmatprep.subr.mxu0 %v720_v25  ;;  %1176 = vmatprep.subr.mxu1 %v722_v26  ;;  %v898_v25 = vld [vmem:[#allocation6 + $0x6f8] sm:$0xff]  ;;  %v895_v26 = vld [vmem:[#allocation6 + $0x6e0] sm:$0xff] }
  0xac   :  { %1106 = vmatpush1.msra.mxu0 %v719_v37  ;;  %1177 = vmatpush1.msra.mxu1 %v721_v52  ;;  %v897_v37 = vld [vmem:[#allocation6 + $0x6f0] sm:$0xff]  ;;  %v888_v52 = vld [vmem:[#allocation6 + $0x6a8] sm:$0xff] }
  0xad   :  { %1107 = vmatprep.subr.mxu0 %v712_v53  ;;  %1178 = vmatprep.subr.mxu1 %v714_v54  ;;  %v890_v53 = vld [vmem:[#allocation6 + $0x6b8] sm:$0xff]  ;;  %v887_v54 = vld [vmem:[#allocation6 + $0x6a0] sm:$0xff] }
  0xae   :  { %1108 = vmatpush1.msra.mxu0 %v711_v55  ;;  %1179 = vmatpush1.msra.mxu1 %v713_v56  ;;  %v889_v55 = vld [vmem:[#allocation6 + $0x6b0] sm:$0xff]  ;;  %v880_v56 = vld [vmem:[#allocation6 + $0x668] sm:$0xff] }
  0xaf   :  { %1109 = vmatprep.subr.mxu0 %v704_v57  ;;  %1180 = vmatprep.subr.mxu1 %v706_v58  ;;  %v882_v57 = vld [vmem:[#allocation6 + $0x678] sm:$0xff]  ;;  %v879_v58 = vld [vmem:[#allocation6 + $0x660] sm:$0xff] }
  0xb0   :  { %1110 = vmatpush1.msra.mxu0 %v703_v59  ;;  %1181 = vmatpush1.msra.mxu1 %v705_v60  ;;  %v881_v59 = vld [vmem:[#allocation6 + $0x670] sm:$0xff]  ;;  %v5525_v60 = vld [vmem:[#allocation6 + $0x628] sm:$0xff] }
  0xb1   :  { %1111 = vmatprep.subr.mxu0 %v696_v61  ;;  %1182 = vmatprep.subr.mxu1 %v698_v62  ;;  %v5527_v61 = vld [vmem:[#allocation6 + $0x638] sm:$0xff]  ;;  %v5529_v62 = vld [vmem:[#allocation6 + $0x620] sm:$0xff] }
  0xb2   :  { %1112 = vmatpush1.msra.mxu0 %v695_v63  ;;  %1183 = vmatpush1.msra.mxu1 %v697_v1  ;;  %v5531_v63 = vld [vmem:[#allocation6 + $0x630] sm:$0xff]  ;;  %v5533_v1 = vld [vmem:[#allocation6 + $0x5e8] sm:$0xff] }
  0xb3   :  { %1113 = vmatprep.subr.mxu0 %v688_v2  ;;  %1184 = vmatprep.subr.mxu1 %v690_v3  ;;  %v5535_v2 = vld [vmem:[#allocation6 + $0x5f8] sm:$0xff]  ;;  %v5539_v3 = vld [vmem:[#allocation6 + $0x5e0] sm:$0xff] }
  0xb4   :  { %1114 = vmatpush1.msra.mxu0 %v687_v4  ;;  %1185 = vmatpush1.msra.mxu1 %v689_v22  ;;  %v5541_v4 = vld [vmem:[#allocation6 + $0x5f0] sm:$0xff]  ;;  %v5545_v22 = vld [vmem:[#allocation6 + $0x5a8] sm:$0xff] }
  0xb5   :  { %1115 = vmatprep.subr.mxu0 %v680_v5  ;;  %1186 = vmatprep.subr.mxu1 %v682_v6  ;;  %v5547_v5 = vld [vmem:[#allocation6 + $0x5b8] sm:$0xff]  ;;  %v5551_v6 = vld [vmem:[#allocation6 + $0x5a0] sm:$0xff] }
  0xb6   :  { %1116 = vmatpush1.msra.mxu0 %v679_v7  ;;  %1187 = vmatpush1.msra.mxu1 %v681_v8  ;;  %v5553_v7 = vld [vmem:[#allocation6 + $0x5b0] sm:$0xff]  ;;  %v5557_v8 = vld [vmem:[#allocation6 + $0x568] sm:$0xff] }
  0xb7   :  { %1117 = vmatprep.subr.mxu0 %v928_v9  ;;  %1188 = vmatprep.subr.mxu1 %v930_v10  ;;  %v5559_v9 = vld [vmem:[#allocation6 + $0x578] sm:$0xff]  ;;  %v5563_v10 = vld [vmem:[#allocation6 + $0x560] sm:$0xff] }
  0xb8   :  { %1118 = vmatpush2.msra.mxu0 %v927_v11  ;;  %1189 = vmatpush2.msra.mxu1 %v929_v27  ;;  %v5565_v11 = vld [vmem:[#allocation6 + $0x570] sm:$0xff]  ;;  %v5569_v27 = vld [vmem:[#allocation6 + $0x528] sm:$0xff] }
  0xb9   :  { %1119 = vmatprep.subr.mxu0 %v920_v12  ;;  %1190 = vmatprep.subr.mxu1 %v922_v13  ;;  %v5571_v12 = vld [vmem:[#allocation6 + $0x538] sm:$0xff]  ;;  %v5575_v13 = vld [vmem:[#allocation6 + $0x520] sm:$0xff] }
  0xba   :  { %1120 = vmatpush2.msra.mxu0 %v919_v14  ;;  %1191 = vmatpush2.msra.mxu1 %v921_v15  ;;  %v5577_v14 = vld [vmem:[#allocation6 + $0x530] sm:$0xff]  ;;  %v5581_v15 = vld [vmem:[#allocation6 + $0x4e8] sm:$0xff] }
  0xbb   :  { %1121 = vmatprep.subr.mxu0 %v912_v16  ;;  %1192 = vmatprep.subr.mxu1 %v914_v17  ;;  %v5583_v16 = vld [vmem:[#allocation6 + $0x4f8] sm:$0xff]  ;;  %v5587_v17 = vld [vmem:[#allocation6 + $0x4e0] sm:$0xff] }
  0xbc   :  { %1122 = vmatpush2.msra.mxu0 %v911_v18  ;;  %1193 = vmatpush2.msra.mxu1 %v913_v32  ;;  %9886 = vst [vmem:[#allocation15_spill] sm:$0xff] %v5583_v16  ;;  %9887 = vst [vmem:[#allocation16_spill] sm:$0xff] %v5587_v17  ;;  %v5589_v18 = vld [vmem:[#allocation6 + $0x4f0] sm:$0xff]  ;;  %v5593_v32 = vld [vmem:[#allocation6 + $0x4a8] sm:$0xff] }
  0xbd   :  { %1123 = vmatprep.subr.mxu0 %v904_v19  ;;  %1194 = vmatprep.subr.mxu1 %v906_v20  ;;  %9888 = vst [vmem:[#allocation17_spill] sm:$0xff] %v5589_v18  ;;  %9889 = vst [vmem:[#allocation18_spill] sm:$0xff] %v5593_v32  ;;  %v5595_v19 = vld [vmem:[#allocation6 + $0x4b8] sm:$0xff]  ;;  %v5599_v20 = vld [vmem:[#allocation6 + $0x4a0] sm:$0xff] }
  0xbe   :  { %1124 = vmatpush2.msra.mxu0 %v903_v21  ;;  %1195 = vmatpush2.msra.mxu1 %v905_v23  ;;  %9890 = vst [vmem:[#allocation19_spill] sm:$0xff] %v5595_v19  ;;  %9891 = vst [vmem:[#allocation20_spill] sm:$0xff] %v5599_v20  ;;  %v5601_v21 = vld [vmem:[#allocation6 + $0x4b0] sm:$0xff]  ;;  %v5605_v23 = vld [vmem:[#allocation6 + $0x468] sm:$0xff] }
  0xbf   :  { %1125 = vmatprep.subr.mxu0 %v896_v24  ;;  %1196 = vmatprep.subr.mxu1 %v898_v25  ;;  %9892 = vst [vmem:[#allocation21_spill] sm:$0xff] %v5601_v21  ;;  %9893 = vst [vmem:[#allocation22_spill] sm:$0xff] %v5605_v23  ;;  %v5607_v24 = vld [vmem:[#allocation6 + $0x478] sm:$0xff]  ;;  %v5611_v25 = vld [vmem:[#allocation6 + $0x460] sm:$0xff] }
  0xc0   :  { %1126 = vmatpush2.msra.mxu0 %v895_v26  ;;  %1197 = vmatpush2.msra.mxu1 %v897_v37  ;;  %9894 = vst [vmem:[#allocation23_spill] sm:$0xff] %v5607_v24  ;;  %9895 = vst [vmem:[#allocation24_spill] sm:$0xff] %v5611_v25  ;;  %v5613_v26 = vld [vmem:[#allocation6 + $0x470] sm:$0xff]  ;;  %v5618_v37 = vld [vmem:[%s9308_s1] sm:$0xff] }
  0xc1   :  { %1127 = vmatprep.subr.mxu0 %v888_v52  ;;  %1198 = vmatprep.subr.mxu1 %v890_v53  ;;  %9896 = vst [vmem:[#allocation25_spill] sm:$0xff] %v5613_v26  ;;  %v5622_v52 = vld [vmem:[#allocation6 + $0x428] sm:$0xff]  ;;  %v5624_v53 = vld [vmem:[#allocation6 + $0x438] sm:$0xff]  ;;  %vm1283_vm1 = vcmp.gt.s32.totalorder %v5618_v37, 0  ;;  %vm1644_vm2 = vcmp.gt.s32.totalorder %v5618_v37, 1  ;;  %vm2727_vm3 = vcmp.gt.s32.totalorder %v5618_v37, 4 }
  0xc2   :  { %1128 = vmatpush2.msra.mxu0 %v887_v54  ;;  %1199 = vmatpush2.msra.mxu1 %v889_v55  ;;  %9897 = vst [vmem:[#allocation26_spill] sm:$0xff] %v5622_v52  ;;  %9898 = vst [vmem:[#allocation27_spill] sm:$0xff] %v5624_v53  ;;  %v5628_v54 = vld [vmem:[#allocation6 + $0x420] sm:$0xff]  ;;  %v5632_v55 = vld [vmem:[#allocation6 + $0x430] sm:$0xff]  ;;  %vm3449_vm4 = vcmp.gt.s32.totalorder %v5618_v37, 6 }
  0xc3   :  { %1129 = vmatprep.subr.mxu0 %v880_v56  ;;  %1200 = vmatprep.subr.mxu1 %v882_v57  ;;  %9899 = vst [vmem:[#allocation28_spill] sm:$0xff] %v5628_v54  ;;  %9900 = vst [vmem:[#allocation29_spill] sm:$0xff] %v5632_v55  ;;  %v9318_v56 = vmov 0   ;;  %v5697_v37 = vld [vmem:[#allocation6 + $0x310] sm:$0xff] }
  0xc4   :  { %1130 = vmatpush2.msra.mxu0 %v879_v58  ;;  %1201 = vmatpush2.msra.mxu1 %v881_v59  ;;  %v1284_v57 = vsel %vm1283_vm1, 1, %v9318_v56  ;;  %v5646_v58 = vld [vmem:[#allocation6 + $0x3c8] sm:$0xff]  ;;  %v5649_v59 = vld [vmem:[#allocation6 + $0x3d8] sm:$0xff]  ;;  %9917 = vst [vmem:[#allocation45_spill] sm:$0xff] %v5697_v37 }
  0xc5   :  { %1131 = vmatprep.subr.mxu0 %v5525_v60  ;;  %1202 = vmatprep.subr.mxu1 %v5527_v61  ;;  %9901 = vst [vmem:[#allocation30_spill] sm:$0xff] %v5646_v58  ;;  %9902 = vst [vmem:[#allocation31_spill] sm:$0xff] %v5649_v59 }
  0xc6   :  { %1132 = vmatpush2.msra.mxu0 %v5529_v62  ;;  %1203 = vmatpush2.msra.mxu1 %v5531_v63 }
  0xc7   :  { %1133 = vmatprep.subr.mxu0 %v5533_v1  ;;  %1204 = vmatprep.subr.mxu1 %v5535_v2 }
  0xc8   :  { %1134 = vmatpush2.msra.mxu0 %v5539_v3  ;;  %1205 = vmatpush2.msra.mxu1 %v5541_v4 }
  0xc9   :  { %1135 = vmatprep.subr.mxu0 %v5545_v22  ;;  %1206 = vmatprep.subr.mxu1 %v5547_v5 }
  0xca   :  { %1136 = vmatpush2.msra.mxu0 %v5551_v6  ;;  %1207 = vmatpush2.msra.mxu1 %v5553_v7 }
  0xcb   :  { %1137 = vmatprep.subr.mxu0 %v5557_v8  ;;  %1208 = vmatprep.subr.mxu1 %v5559_v9 }
  0xcc   :  { %1138 = vmatpush2.msra.mxu0 %v5563_v10  ;;  %1209 = vmatpush2.msra.mxu1 %v5565_v11 }
  0xcd   :  { %1139 = vmatprep.subr.mxu0 %v5569_v27  ;;  %1210 = vmatprep.subr.mxu1 %v5571_v12 }
  0xce   :  { %1140 = vmatpush2.msra.mxu0 %v5575_v13  ;;  %1211 = vmatpush2.msra.mxu1 %v5577_v14 }
  0xcf   :  { %1141 = vmatprep.subr.mxu0 %v5581_v15  ;;  %1212 = vmatprep.subr.mxu1 %v5583_v16 }
  0xd0   :  { %1142 = vmatpush2.msra.mxu0 %v5587_v17  ;;  %1213 = vmatpush2.msra.mxu1 %v5589_v18  ;;  %v5790_v17 = vld [vmem:[#allocation6 + $0x1c0] sm:$0xff] }
  0xd1   :  { %1143 = vmatprep.subr.mxu0 %v5593_v32  ;;  %1214 = vmatprep.subr.mxu1 %v5595_v19  ;;  %v5763_v19 = vld [vmem:[#allocation6 + $0x218] sm:$0xff]  ;;  %9938 = vst [vmem:[#allocation66_spill] sm:$0xff] %v5790_v17 }
  0xd2   :  { %1144 = vmatpush2.msra.mxu0 %v5599_v20  ;;  %1215 = vmatpush2.msra.mxu1 %v5601_v21  ;;  %v5751_v20 = vld [vmem:[#allocation6 + $0x250] sm:$0xff]  ;;  %9931 = vst [vmem:[#allocation59_spill] sm:$0xff] %v5763_v19 }
  0xd3   :  { %1145 = vmatprep.subr.mxu0 %v5605_v23  ;;  %1216 = vmatprep.subr.mxu1 %v5607_v24  ;;  %v5744_v24 = vld [vmem:[#allocation6 + $0x240] sm:$0xff]  ;;  %9929 = vst [vmem:[#allocation57_spill] sm:$0xff] %v5751_v20 }
  0xd4   :  { %1146 = vmatpush2.msra.mxu0 %v5611_v25  ;;  %1217 = vmatpush2.msra.mxu1 %v5613_v26  ;;  %v5734_v26 = vld [vmem:[#allocation6 + $0x290] sm:$0xff]  ;;  %v5741_v25 = vld [vmem:[#allocation6 + $0x258] sm:$0xff]  ;;  %9928 = vst [vmem:[#allocation56_spill] sm:$0xff] %v5744_v24 }
  0xd5   :  { %1147 = vmatprep.subr.mxu0 %v5622_v52  ;;  %1218 = vmatprep.subr.mxu1 %v5624_v53  ;;  %v5660_v53 = vld [vmem:[#allocation6 + $0x388] sm:$0xff]  ;;  %v5676_v52 = vld [vmem:[#allocation6 + $0x358] sm:$0xff]  ;;  %9925 = vst [vmem:[#allocation53_spill] sm:$0xff] %v5734_v26  ;;  %9927 = vst [vmem:[#allocation55_spill] sm:$0xff] %v5741_v25 }
  0xd6   :  { %1148 = vmatpush2.msra.mxu0 %v5628_v54  ;;  %1149 = vmatprep.mubr.f32.mxu0 %v5274_v0  ;;  %v5653_v54 = vld [vmem:[#allocation6 + $0x3c0] sm:$0xff]  ;;  %9905 = vst [vmem:[#allocation34_spill] sm:$0xff] %v5660_v53  ;;  %9911 = vst [vmem:[#allocation39_spill] sm:$0xff] %v5676_v52 }
  0xd7   :  { %1219 = vmatpush2.msra.mxu1 %v5632_v55  ;;  %1220 = vmatprep.mubr.f32.mxu1 %v5274_v0  ;;  %v1645_v55 = vsel %vm1644_vm2, 1, %v9318_v56  ;;  %9903 = vst [vmem:[#allocation32_spill] sm:$0xff] %v5653_v54 }
  0xd8   :  { %1150 = vmatmul.mubr.f32.vlgmr.msra.gmra.mxu0 %v5274_v0  ;;  %1221 = vmatmul.mubr.f32.vlgmr.msra.gmra.mxu1 %v5274_v0  ;;  %v5656_v0 = vld [vmem:[#allocation6 + $0x3d0] sm:$0xff] }
  0xd9   :  { %3957 = vset.pattern.permute.xlu0 %v9318_v56  ;;  %1304 = vmatprep.subr.mxu0 %v5646_v58  ;;  %9904 = vst [vmem:[#allocation33_spill] sm:$0xff] %v5656_v0  ;;  %v5669_v56 = vld [vmem:[#allocation6 + $0x390] sm:$0xff]  ;;  %v9910_v58 = vmov 0  }
  0xda   :  { %1286 = vperm.xlu0 %3957, %v1284_v57   ;;  %1375 = vmatprep.subr.mxu1 %v5649_v59  ;;  %v5663_v57 = vld [vmem:[#allocation6 + $0x398] sm:$0xff]  ;;  %v5666_v59 = vld [vmem:[#allocation6 + $0x380] sm:$0xff]  ;;  %9908 = vst [vmem:[#allocation37_spill] sm:$0xff] %v5669_v56 }
  0xdb   :  { %1305 = vmatpush1.msra.mxu0 %v5653_v54  ;;  %1376 = vmatpush1.msra.mxu1 %v5656_v0  ;;  %9906 = vst [vmem:[#allocation35_spill] sm:$0xff] %v5663_v57  ;;  %9907 = vst [vmem:[#allocation36_spill] sm:$0xff] %v5666_v59  ;;  %v94_v54 = vlaneseq  ;;  %v5672_v0 = vld [vmem:[#allocation6 + $0x348] sm:$0xff] }
  0xdc   :  { %1306 = vmatprep.subr.mxu0 %v5660_v53  ;;  %1377 = vmatprep.subr.mxu1 %v5663_v57  ;;  %9909 = vst [vmem:[#allocation38_spill] sm:$0xff] %v5672_v0  ;;  %v2728_v53 = vsel %vm2727_vm3, 1, %v9910_v58  ;;  %v5679_v57 = vld [vmem:[#allocation6 + $0x340] sm:$0xff] }
  0xdd   :  { %1307 = vmatpush1.msra.mxu0 %v5666_v59  ;;  %1378 = vmatpush1.msra.mxu1 %v5669_v56  ;;  %9912 = vst [vmem:[#allocation40_spill] sm:$0xff] %v5679_v57  ;;  %v5683_v59 = vld [vmem:[#allocation6 + $0x350] sm:$0xff]  ;;  %v5692_v56 = vld [vmem:[#allocation6 + $0x300] sm:$0xff] }
  0xde   :  { %1647 = vperm.xlu0 %3957, %v1645_v55   ;;  %1308 = vmatprep.subr.mxu0 %v5672_v0  ;;  %9913 = vst [vmem:[#allocation41_spill] sm:$0xff] %v5683_v59  ;;  %v5686_v55 = vld [vmem:[#allocation6 + $0x308] sm:$0xff]  ;;  %v5689_v0 = vld [vmem:[#allocation6 + $0x318] sm:$0xff]  ;;  %9916 = vst [vmem:[#allocation44_spill] sm:$0xff] %v5692_v56 }
  0xdf   :  { %1379 = vmatprep.subr.mxu1 %v5676_v52  ;;  %1309 = vmatpush1.msra.mxu0 %v5679_v57  ;;  %9914 = vst [vmem:[#allocation42_spill] sm:$0xff] %v5686_v55  ;;  %9915 = vst [vmem:[#allocation43_spill] sm:$0xff] %v5689_v0  ;;  %v5695_v52 = vshrl.u32 %v94_v54, 7  ;;  %v5701_v57 = vld [vmem:[#allocation6 + $0x2c8] sm:$0xff]  ;;  %v5710_v54 = vld [vmem:[#allocation6 + $0x2d0] sm:$0xff] }
  0xe0   :  { %1380 = vmatpush1.msra.mxu1 %v5683_v59  ;;  %1310 = vmatprep.subr.mxu0 %v5686_v55  ;;  %v3450_v59 = vsel %vm3449_vm4, 1, %v9910_v58  ;;  %9918 = vst [vmem:[#allocation46_spill] sm:$0xff] %v5701_v57  ;;  %v5704_v55 = vld [vmem:[#allocation6 + $0x2d8] sm:$0xff]  ;;  %9921 = vst [vmem:[#allocation49_spill] sm:$0xff] %v5710_v54 }
  0xe1   :  { %1381 = vmatprep.subr.mxu1 %v5689_v0  ;;  %1311 = vmatpush1.msra.mxu0 %v5692_v56  ;;  %9919 = vst [vmem:[#allocation47_spill] sm:$0xff] %v5704_v55  ;;  %v5707_v0 = vld [vmem:[#allocation6 + $0x2c0] sm:$0xff] }
  0xe2   :  { %2730 = vperm.xlu0 %3957, %v2728_v53   ;;  %1382 = vmatpush1.msra.mxu1 %v5697_v37  ;;  %9920 = vst [vmem:[#allocation48_spill] sm:$0xff] %v5707_v0  ;;  %v5713_v53 = vld [vmem:[#allocation6 + $0x288] sm:$0xff]  ;;  %v5716_v37 = vld [vmem:[#allocation6 + $0x298] sm:$0xff]  ;;  %v5721_v56 = vld [vmem:[#allocation6 + $0x280] sm:$0xff] }
  0xe3   :  { %1312 = vmatprep.subr.mxu0 %v5701_v57  ;;  %1383 = vmatprep.subr.mxu1 %v5704_v55  ;;  %9922 = vst [vmem:[#allocation50_spill] sm:$0xff] %v5713_v53  ;;  %9923 = vst [vmem:[#allocation51_spill] sm:$0xff] %v5716_v37  ;;  %v96_v57 = vsub.s32 0, %v5695_v52  ;;  %v104_v55 = vsub.s32 2, %v5695_v52 }
  0xe4   :  { %1313 = vmatpush1.msra.mxu0 %v5707_v0  ;;  %1384 = vmatpush1.msra.mxu1 %v5710_v54  ;;  %9924 = vst [vmem:[#allocation52_spill] sm:$0xff] %v5721_v56  ;;  %v5727_v54 = vld [vmem:[%s9311_s4] sm:$0xff] }
  0xe5   :  { %1314 = vmatprep.subr.mxu0 %v5713_v53  ;;  %1385 = vmatprep.subr.mxu1 %v5716_v37  ;;  %v100_v37 = vsub.s32 1, %v5695_v52 }
  0xe6   :  { %3452 = vperm.xlu0 %3957, %v3450_v59   ;;  %1315 = vmatpush1.msra.mxu0 %v5721_v56  ;;  %v5737_v59 = vld [vmem:[#allocation6 + $0x248] sm:$0xff]  ;;  %v108_v56 = vsub.s32 3, %v5695_v52 }
  0xe7   :  { %v5729_v0 = vpop.f32.mrf.mxu0  ;;  %v5731_v53 = vpop.f32.mrf.mxu1  ;;  %1386 = vmatpush1.msra.mxu1 %v5734_v26  ;;  %9926 = vst [vmem:[#allocation54_spill] sm:$0xff] %v5737_v59  ;;  %1316 = vmatprep.subr.mxu0 %v5737_v59  ;;  %v5754_v26 = vld [vmem:[#allocation6 + $0x208] sm:$0xff]  ;;  %v5758_v59 = vrot.slane %v5727_v54, %v96_v57 }
  0xe8   :  { %1387 = vmatprep.subr.mxu1 %v5741_v25  ;;  %1317 = vmatpush1.msra.mxu0 %v5744_v24  ;;  %9930 = vst [vmem:[#allocation58_spill] sm:$0xff] %v5754_v26  ;;  %v5761_v25 = vrot.slane %v5727_v54, %v104_v55  ;;  %v5766_v24 = vld [vmem:[#allocation6 + $0x200] sm:$0xff]  ;;  %v5775_v57 = vld [vmem:[#allocation6 + $0x1c8] sm:$0xff]  ;;  %v5779_v55 = vrot.slane %v5727_v54, %v108_v56 }
  0xe9   :  { %v5747_v23 = vpop.f32.mrf.mxu0  ;;  %v5749_v21 = vpop.f32.mrf.mxu1  ;;  %1388 = vmatpush1.msra.mxu1 %v5751_v20  ;;  %1318 = vmatprep.subr.mxu0 %v5754_v26  ;;  %9932 = vst [vmem:[#allocation60_spill] sm:$0xff] %v5766_v24  ;;  %v5770_v20 = vrot.slane %v5727_v54, %v100_v37  ;;  %v5772_v26 = vld [vmem:[#allocation6 + $0x210] sm:$0xff]  ;;  %9934 = vst [vmem:[#allocation62_spill] sm:$0xff] %v5775_v57  ;;  %v5787_v37 = vld [vmem:[#allocation6 + $0x1d8] sm:$0xff] }
  0xea   :  { %1389 = vmatprep.subr.mxu1 %v5763_v19  ;;  %1319 = vmatpush1.msra.mxu0 %v5766_v24  ;;  %9933 = vst [vmem:[#allocation61_spill] sm:$0xff] %v5772_v26  ;;  %9937 = vst [vmem:[#allocation65_spill] sm:$0xff] %v5787_v37  ;;  %v5796_v56 = vld [vmem:[#allocation6 + $0x188] sm:$0xff] }
  0xeb   :  { %v231_v32 = vpop.f32.mrf.mxu0  ;;  %v344_v18 = vpop.f32.mrf.mxu1  ;;  %1390 = vmatpush1.msra.mxu1 %v5772_v26  ;;  %1320 = vmatprep.subr.mxu0 %v5775_v57  ;;  %v5793_v57 = vld [vmem:[#allocation6 + $0x1d0] sm:$0xff]  ;;  %9940 = vst [vmem:[#allocation68_spill] sm:$0xff] %v5796_v56 }
  0xec   :  { %v5782_v19 = vadd.f32 %v231_v32, %v5758_v59  ;;  %v5785_v24 = vadd.f32 %v344_v18, %v5761_v25  ;;  %1391 = vmatprep.subr.mxu1 %v5787_v37  ;;  %1321 = vmatpush1.msra.mxu0 %v5790_v17  ;;  %9939 = vst [vmem:[#allocation67_spill] sm:$0xff] %v5793_v57  ;;  %v5811_v37 = vld [vmem:[#allocation6 + $0x190] sm:$0xff] }
  0xed   :  { %v233_v26 = vpop.f32.mrf.mxu0  ;;  %v346_v16 = vpop.f32.mrf.mxu1  ;;  %1392 = vmatpush1.msra.mxu1 %v5793_v57  ;;  %1322 = vmatprep.subr.mxu0 %v5796_v56  ;;  %9945 = vst [vmem:[#allocation73_spill] sm:$0xff] %v5811_v37  ;;  %v5814_v56 = vld [vmem:[#allocation6 + $0x148] sm:$0xff] }
  0xee   :  { %9935 = vst [vmem:[#allocation63_spill] sm:$0xff] %v5782_v19  ;;  %9936 = vst [vmem:[#allocation64_spill] sm:$0xff] %v5785_v24  ;;  %v5800_v18 = vadd.f32 %v233_v26, %v5770_v20  ;;  %v5803_v32 = vadd.f32 %v346_v16, %v5779_v55  ;;  %v5805_v19 = vld [vmem:[#allocation6 + $0x198] sm:$0xff]  ;;  %v5808_v24 = vld [vmem:[#allocation6 + $0x180] sm:$0xff]  ;;  %3958 = vset.pattern.permute.xlu1 %v9910_v58 }
  0xef   :  { %9943 = vst [vmem:[#allocation71_spill] sm:$0xff] %v5805_v19  ;;  %1393 = vmatprep.subr.mxu1 %v5805_v19  ;;  %9944 = vst [vmem:[#allocation72_spill] sm:$0xff] %v5808_v24  ;;  %1323 = vmatpush1.msra.mxu0 %v5808_v24  ;;  %v237_v17 = vpop.f32.mrf.mxu0  ;;  %v350_v57 = vpop.f32.mrf.mxu1  ;;  %v5829_v19 = vld [vmem:[#allocation6 + $0x150] sm:$0xff] }
  0xf0   :  { %9941 = vst [vmem:[#allocation69_spill] sm:$0xff] %v5800_v18  ;;  %9942 = vst [vmem:[#allocation70_spill] sm:$0xff] %v5803_v32  ;;  %1394 = vmatpush1.msra.mxu1 %v5811_v37  ;;  %1324 = vmatprep.subr.mxu0 %v5814_v56  ;;  %v5818_v16 = vadd.f32 %v237_v17, %v5758_v59  ;;  %v5821_v26 = vadd.f32 %v350_v57, %v5761_v25  ;;  %v5823_v18 = vld [vmem:[#allocation6 + $0x158] sm:$0xff]  ;;  %v5826_v32 = vld [vmem:[#allocation6 + $0x140] sm:$0xff] }
  0xf1   :  { %9946 = vst [vmem:[#allocation74_spill] sm:$0xff] %v5814_v56  ;;  %9949 = vst [vmem:[#allocation77_spill] sm:$0xff] %v5823_v18  ;;  %1395 = vmatprep.subr.mxu1 %v5823_v18  ;;  %1325 = vmatpush1.msra.mxu0 %v5826_v32  ;;  %v239_v24 = vpop.f32.mrf.mxu0  ;;  %v352_v37 = vpop.f32.mrf.mxu1  ;;  %v5832_v56 = vld [vmem:[#allocation6 + $0x108] sm:$0xff]  ;;  %v5847_v18 = vld [vmem:[#allocation6 + $0x110] sm:$0xff] }
  0xf2   :  { %9947 = vst [vmem:[#allocation75_spill] sm:$0xff] %v5818_v16  ;;  %9948 = vst [vmem:[#allocation76_spill] sm:$0xff] %v5821_v26  ;;  %1396 = vmatpush1.msra.mxu1 %v5829_v19  ;;  %1326 = vmatprep.subr.mxu0 %v5832_v56  ;;  %v5836_v17 = vadd.f32 %v239_v24, %v5770_v20  ;;  %v5839_v57 = vadd.f32 %v352_v37, %v5779_v55  ;;  %v5841_v16 = vld [vmem:[#allocation6 + $0x118] sm:$0xff]  ;;  %v5844_v26 = vld [vmem:[#allocation6 + $0x100] sm:$0xff] }
  0xf3   :  { %9950 = vst [vmem:[#allocation78_spill] sm:$0xff] %v5826_v32  ;;  %9951 = vst [vmem:[#allocation79_spill] sm:$0xff] %v5829_v19  ;;  %1397 = vmatprep.subr.mxu1 %v5841_v16  ;;  %1327 = vmatpush1.msra.mxu0 %v5844_v26  ;;  %v243_v32 = vpop.f32.mrf.mxu0  ;;  %v356_v19 = vpop.f32.mrf.mxu1 }
  0xf4   :  { %9952 = vst [vmem:[#allocation80_spill] sm:$0xff] %v5832_v56  ;;  %9953 = vst [vmem:[#allocation81_spill] sm:$0xff] %v5836_v17  ;;  %1398 = vmatpush1.msra.mxu1 %v5847_v18  ;;  %v5850_v56 = vld [vmem:[#allocation6 + $0xc8] sm:$0xff]  ;;  %v5854_v24 = vadd.f32 %v243_v32, %v5758_v59  ;;  %v5857_v37 = vadd.f32 %v356_v19, %v5761_v25  ;;  %v5859_v17 = vld [vmem:[#allocation6 + $0xd8] sm:$0xff] }
  0xf5   :  { %9954 = vst [vmem:[#allocation82_spill] sm:$0xff] %v5839_v57  ;;  %9955 = vst [vmem:[#allocation83_spill] sm:$0xff] %v5841_v16  ;;  %1328 = vmatprep.subr.mxu0 %v5850_v56  ;;  %1399 = vmatprep.subr.mxu1 %v5859_v17  ;;  %v5862_v57 = vld [vmem:[#allocation6 + $0xc0] sm:$0xff]  ;;  %v5865_v16 = vld [vmem:[#allocation6 + $0xd0] sm:$0xff] }
  0xf6   :  { %9956 = vst [vmem:[#allocation84_spill] sm:$0xff] %v5844_v26  ;;  %9957 = vst [vmem:[#allocation85_spill] sm:$0xff] %v5847_v18  ;;  %1329 = vmatpush1.msra.mxu0 %v5862_v57  ;;  %v245_v26 = vpop.f32.mrf.mxu0  ;;  %v358_v18 = vpop.f32.mrf.mxu1  ;;  %1400 = vmatpush1.msra.mxu1 %v5865_v16 }
  0xf7   :  { %9958 = vst [vmem:[#allocation86_spill] sm:$0xff] %v5850_v56  ;;  %9959 = vst [vmem:[#allocation87_spill] sm:$0xff] %v5854_v24  ;;  %v5868_v56 = vld [vmem:[#allocation6 + $0x88] sm:$0xff]  ;;  %v5872_v19 = vadd.f32 %v245_v26, %v5770_v20  ;;  %v5875_v32 = vadd.f32 %v358_v18, %v5779_v55  ;;  %v5877_v24 = vld [vmem:[#allocation6 + $0x98] sm:$0xff] }
  0xf8   :  { %9960 = vst [vmem:[#allocation88_spill] sm:$0xff] %v5857_v37  ;;  %9961 = vst [vmem:[#allocation89_spill] sm:$0xff] %v5859_v17  ;;  %1330 = vmatprep.subr.mxu0 %v5868_v56  ;;  %1401 = vmatprep.subr.mxu1 %v5877_v24  ;;  %v5880_v37 = vld [vmem:[#allocation6 + $0x80] sm:$0xff]  ;;  %v5883_v17 = vld [vmem:[#allocation6 + $0x90] sm:$0xff] }
  0xf9   :  { %9962 = vst [vmem:[#allocation90_spill] sm:$0xff] %v5862_v57  ;;  %9963 = vst [vmem:[#allocation91_spill] sm:$0xff] %v5865_v16  ;;  %1331 = vmatpush1.msra.mxu0 %v5880_v37  ;;  %v249_v57 = vpop.f32.mrf.mxu0  ;;  %v362_v16 = vpop.f32.mrf.mxu1  ;;  %1402 = vmatpush1.msra.mxu1 %v5883_v17 }
  0xfa   :  { %9964 = vst [vmem:[#allocation92_spill] sm:$0xff] %v5868_v56  ;;  %9965 = vst [vmem:[#allocation93_spill] sm:$0xff] %v5872_v19  ;;  %v5886_v56 = vld [vmem:[#allocation6 + $0x48] sm:$0xff]  ;;  %v5890_v18 = vadd.f32 %v249_v57, %v5758_v59  ;;  %v5893_v26 = vadd.f32 %v362_v16, %v5761_v25  ;;  %v5895_v19 = vld [vmem:[#allocation6 + $0x58] sm:$0xff] }
  0xfb   :  { %9966 = vst [vmem:[#allocation94_spill] sm:$0xff] %v5875_v32  ;;  %9967 = vst [vmem:[#allocation95_spill] sm:$0xff] %v5877_v24  ;;  %1332 = vmatprep.subr.mxu0 %v5886_v56  ;;  %1403 = vmatprep.subr.mxu1 %v5895_v19  ;;  %v5898_v32 = vld [vmem:[#allocation6 + $0x40] sm:$0xff]  ;;  %v5901_v24 = vld [vmem:[#allocation6 + $0x50] sm:$0xff] }
  0xfc   :  { %9968 = vst [vmem:[#allocation96_spill] sm:$0xff] %v5880_v37  ;;  %9969 = vst [vmem:[#allocation97_spill] sm:$0xff] %v5883_v17  ;;  %1333 = vmatpush1.msra.mxu0 %v5898_v32  ;;  %v251_v37 = vpop.f32.mrf.mxu0  ;;  %v364_v17 = vpop.f32.mrf.mxu1  ;;  %1404 = vmatpush1.msra.mxu1 %v5901_v24 }
  0xfd   :  { %9970 = vst [vmem:[#allocation98_spill] sm:$0xff] %v5886_v56  ;;  %9971 = vst [vmem:[#allocation99_spill] sm:$0xff] %v5890_v18  ;;  %v5904_v56 = vld [vmem:[#allocation6 + $0x8] sm:$0xff]  ;;  %v5908_v16 = vadd.f32 %v251_v37, %v5770_v20  ;;  %v5911_v57 = vadd.f32 %v364_v17, %v5779_v55  ;;  %v5913_v18 = vld [vmem:[#allocation6 + $0x18] sm:$0xff] }
  0xfe   :  { %9972 = vst [vmem:[#allocation100_spill] sm:$0xff] %v5893_v26  ;;  %9973 = vst [vmem:[#allocation101_spill] sm:$0xff] %v5895_v19  ;;  %1334 = vmatprep.subr.mxu0 %v5904_v56  ;;  %1405 = vmatprep.subr.mxu1 %v5913_v18  ;;  %v5916_v26 = vld [vmem:[#allocation6] sm:$0xff]  ;;  %v5919_v19 = vld [vmem:[#allocation6 + $0x10] sm:$0xff] }
  0xff   :  { %9974 = vst [vmem:[#allocation102_spill] sm:$0xff] %v5898_v32  ;;  %9975 = vst [vmem:[#allocation103_spill] sm:$0xff] %v5901_v24  ;;  %1335 = vmatpush1.msra.mxu0 %v5916_v26  ;;  %v255_v32 = vpop.f32.mrf.mxu0  ;;  %v368_v24 = vpop.f32.mrf.mxu1  ;;  %1406 = vmatpush1.msra.mxu1 %v5919_v19 }
 0x100   :  { %9976 = vst [vmem:[#allocation104_spill] sm:$0xff] %v5904_v56  ;;  %9977 = vst [vmem:[#allocation105_spill] sm:$0xff] %v5908_v16  ;;  %v5922_v56 = vld [vmem:[#allocation6 + $0x7c8] sm:$0xff]  ;;  %v5926_v17 = vadd.f32 %v255_v32, %v5758_v59  ;;  %v5929_v37 = vadd.f32 %v368_v24, %v5761_v25  ;;  %v5931_v16 = vld [vmem:[#allocation6 + $0x7d8] sm:$0xff] }
 0x101   :  { %9978 = vst [vmem:[#allocation106_spill] sm:$0xff] %v5911_v57  ;;  %9979 = vst [vmem:[#allocation107_spill] sm:$0xff] %v5913_v18  ;;  %1336 = vmatprep.subr.mxu0 %v5922_v56  ;;  %1407 = vmatprep.subr.mxu1 %v5931_v16  ;;  %v5934_v57 = vld [vmem:[#allocation6 + $0x7c0] sm:$0xff]  ;;  %v5937_v18 = vld [vmem:[#allocation6 + $0x7d0] sm:$0xff] }
 0x102   :  { %9980 = vst [vmem:[#allocation108_spill] sm:$0xff] %v5916_v26  ;;  %9981 = vst [vmem:[#allocation109_spill] sm:$0xff] %v5919_v19  ;;  %1337 = vmatpush2.msra.mxu0 %v5934_v57  ;;  %v257_v26 = vpop.f32.mrf.mxu0  ;;  %v370_v19 = vpop.f32.mrf.mxu1  ;;  %1408 = vmatpush2.msra.mxu1 %v5937_v18 }
 0x103   :  { %9982 = vst [vmem:[#allocation110_spill] sm:$0xff] %v5922_v56  ;;  %9983 = vst [vmem:[#allocation111_spill] sm:$0xff] %v5926_v17  ;;  %v5940_v56 = vld [vmem:[#allocation6 + $0x788] sm:$0xff]  ;;  %v5944_v24 = vadd.f32 %v257_v26, %v5770_v20  ;;  %v5947_v32 = vadd.f32 %v370_v19, %v5779_v55  ;;  %v5949_v17 = vld [vmem:[#allocation6 + $0x798] sm:$0xff] }
 0x104   :  { %9984 = vst [vmem:[#allocation112_spill] sm:$0xff] %v5929_v37  ;;  %9985 = vst [vmem:[#allocation113_spill] sm:$0xff] %v5931_v16  ;;  %1338 = vmatprep.subr.mxu0 %v5940_v56  ;;  %1409 = vmatprep.subr.mxu1 %v5949_v17  ;;  %v5952_v37 = vld [vmem:[#allocation6 + $0x780] sm:$0xff]  ;;  %v5955_v16 = vld [vmem:[#allocation6 + $0x790] sm:$0xff] }
 0x105   :  { %9986 = vst [vmem:[#allocation114_spill] sm:$0xff] %v5934_v57  ;;  %9987 = vst [vmem:[#allocation115_spill] sm:$0xff] %v5937_v18  ;;  %1339 = vmatpush2.msra.mxu0 %v5952_v37  ;;  %v261_v57 = vpop.f32.mrf.mxu0  ;;  %v374_v18 = vpop.f32.mrf.mxu1  ;;  %1410 = vmatpush2.msra.mxu1 %v5955_v16 }
 0x106   :  { %9988 = vst [vmem:[#allocation116_spill] sm:$0xff] %v5940_v56  ;;  %9989 = vst [vmem:[#allocation117_spill] sm:$0xff] %v5944_v24  ;;  %v5958_v56 = vld [vmem:[#allocation6 + $0x748] sm:$0xff]  ;;  %v5962_v19 = vadd.f32 %v261_v57, %v5758_v59  ;;  %v5965_v26 = vadd.f32 %v374_v18, %v5761_v25  ;;  %v5967_v24 = vld [vmem:[#allocation6 + $0x758] sm:$0xff] }
 0x107   :  { %9990 = vst [vmem:[#allocation118_spill] sm:$0xff] %v5947_v32  ;;  %9991 = vst [vmem:[#allocation119_spill] sm:$0xff] %v5949_v17  ;;  %1340 = vmatprep.subr.mxu0 %v5958_v56  ;;  %1411 = vmatprep.subr.mxu1 %v5967_v24  ;;  %v5970_v32 = vld [vmem:[#allocation6 + $0x740] sm:$0xff]  ;;  %v5973_v17 = vld [vmem:[#allocation6 + $0x750] sm:$0xff] }
 0x108   :  { %9992 = vst [vmem:[#allocation120_spill] sm:$0xff] %v5952_v37  ;;  %9993 = vst [vmem:[#allocation121_spill] sm:$0xff] %v5955_v16  ;;  %1341 = vmatpush2.msra.mxu0 %v5970_v32  ;;  %v263_v37 = vpop.f32.mrf.mxu0  ;;  %v376_v16 = vpop.f32.mrf.mxu1  ;;  %1412 = vmatpush2.msra.mxu1 %v5973_v17 }
 0x109   :  { %9994 = vst [vmem:[#allocation122_spill] sm:$0xff] %v5958_v56  ;;  %9995 = vst [vmem:[#allocation123_spill] sm:$0xff] %v5962_v19  ;;  %v5976_v56 = vld [vmem:[#allocation6 + $0x708] sm:$0xff]  ;;  %v5980_v18 = vadd.f32 %v263_v37, %v5770_v20  ;;  %v5983_v57 = vadd.f32 %v376_v16, %v5779_v55  ;;  %v5985_v19 = vld [vmem:[#allocation6 + $0x718] sm:$0xff] }
 0x10a   :  { %9996 = vst [vmem:[#allocation124_spill] sm:$0xff] %v5965_v26  ;;  %9997 = vst [vmem:[#allocation125_spill] sm:$0xff] %v5967_v24  ;;  %1342 = vmatprep.subr.mxu0 %v5976_v56  ;;  %1413 = vmatprep.subr.mxu1 %v5985_v19  ;;  %v5988_v26 = vld [vmem:[#allocation6 + $0x700] sm:$0xff]  ;;  %v5991_v24 = vld [vmem:[#allocation6 + $0x710] sm:$0xff] }
 0x10b   :  { %9998 = vst [vmem:[#allocation126_spill] sm:$0xff] %v5970_v32  ;;  %9999 = vst [vmem:[#allocation127_spill] sm:$0xff] %v5973_v17  ;;  %1343 = vmatpush2.msra.mxu0 %v5988_v26  ;;  %v267_v32 = vpop.f32.mrf.mxu0  ;;  %v380_v17 = vpop.f32.mrf.mxu1  ;;  %1414 = vmatpush2.msra.mxu1 %v5991_v24 }
 0x10c   :  { %10000 = vst [vmem:[#allocation128_spill] sm:$0xff] %v5976_v56  ;;  %10001 = vst [vmem:[#allocation129_spill] sm:$0xff] %v5980_v18  ;;  %v5994_v56 = vld [vmem:[#allocation6 + $0x6c8] sm:$0xff]  ;;  %v5998_v16 = vadd.f32 %v267_v32, %v5758_v59  ;;  %v6001_v37 = vadd.f32 %v380_v17, %v5761_v25  ;;  %v6003_v18 = vld [vmem:[#allocation6 + $0x6d8] sm:$0xff] }
 0x10d   :  { %10002 = vst [vmem:[#allocation130_spill] sm:$0xff] %v5983_v57  ;;  %10003 = vst [vmem:[#allocation131_spill] sm:$0xff] %v5985_v19  ;;  %1344 = vmatprep.subr.mxu0 %v5994_v56  ;;  %1415 = vmatprep.subr.mxu1 %v6003_v18  ;;  %v6006_v57 = vld [vmem:[#allocation6 + $0x6c0] sm:$0xff]  ;;  %v6009_v19 = vld [vmem:[#allocation6 + $0x6d0] sm:$0xff] }
 0x10e   :  { %10004 = vst [vmem:[#allocation132_spill] sm:$0xff] %v5988_v26  ;;  %10005 = vst [vmem:[#allocation133_spill] sm:$0xff] %v5991_v24  ;;  %1345 = vmatpush2.msra.mxu0 %v6006_v57  ;;  %v269_v26 = vpop.f32.mrf.mxu0  ;;  %v382_v24 = vpop.f32.mrf.mxu1  ;;  %1416 = vmatpush2.msra.mxu1 %v6009_v19 }
 0x10f   :  { %10006 = vst [vmem:[#allocation134_spill] sm:$0xff] %v5994_v56  ;;  %10007 = vst [vmem:[#allocation135_spill] sm:$0xff] %v5998_v16  ;;  %v6012_v56 = vld [vmem:[#allocation6 + $0x688] sm:$0xff]  ;;  %v6016_v17 = vadd.f32 %v269_v26, %v5770_v20  ;;  %v6019_v32 = vadd.f32 %v382_v24, %v5779_v55  ;;  %v6021_v16 = vld [vmem:[#allocation6 + $0x698] sm:$0xff] }
 0x110   :  { %10008 = vst [vmem:[#allocation136_spill] sm:$0xff] %v6001_v37  ;;  %10009 = vst [vmem:[#allocation137_spill] sm:$0xff] %v6006_v57  ;;  %1346 = vmatprep.subr.mxu0 %v6012_v56  ;;  %1417 = vmatprep.subr.mxu1 %v6021_v16  ;;  %v6024_v37 = vld [vmem:[#allocation6 + $0x680] sm:$0xff]  ;;  %v6027_v57 = vld [vmem:[#allocation6 + $0x690] sm:$0xff] }
 0x111   :  { %10010 = vst [vmem:[#allocation138_spill] sm:$0xff] %v6009_v19  ;;  %10011 = vst [vmem:[#allocation139_spill] sm:$0xff] %v6016_v17  ;;  %1347 = vmatpush2.msra.mxu0 %v6024_v37  ;;  %1418 = vmatpush2.msra.mxu1 %v6027_v57  ;;  %v6030_v19 = vld [vmem:[#allocation6 + $0x648] sm:$0xff]  ;;  %v6033_v26 = vld [vmem:[#allocation6 + $0x658] sm:$0xff] }
 0x112   :  { %10012 = vst [vmem:[#allocation140_spill] sm:$0xff] %v6019_v32  ;;  %10013 = vst [vmem:[#allocation141_spill] sm:$0xff] %v6027_v57  ;;  %1348 = vmatprep.subr.mxu0 %v6030_v19  ;;  %1419 = vmatprep.subr.mxu1 %v6033_v26  ;;  %v6036_v24 = vld [vmem:[#allocation6 + $0x640] sm:$0xff]  ;;  %v6039_v17 = vld [vmem:[#allocation6 + $0x650] sm:$0xff] }
 0x113   :  { %10014 = vst [vmem:[#allocation142_spill] sm:$0xff] %v6030_v19  ;;  %10015 = vst [vmem:[#allocation143_spill] sm:$0xff] %v6033_v26  ;;  %1349 = vmatpush2.msra.mxu0 %v6036_v24  ;;  %1420 = vmatpush2.msra.mxu1 %v6039_v17  ;;  %v6042_v32 = vld [vmem:[#allocation6 + $0x608] sm:$0xff]  ;;  %v6045_v57 = vld [vmem:[#allocation6 + $0x618] sm:$0xff] }
 0x114   :  { %10016 = vst [vmem:[#allocation144_spill] sm:$0xff] %v6036_v24  ;;  %10017 = vst [vmem:[#allocation145_spill] sm:$0xff] %v6039_v17  ;;  %1350 = vmatprep.subr.mxu0 %v6042_v32  ;;  %1421 = vmatprep.subr.mxu1 %v6045_v57  ;;  %v6048_v19 = vld [vmem:[#allocation6 + $0x600] sm:$0xff]  ;;  %v6051_v26 = vld [vmem:[#allocation6 + $0x610] sm:$0xff] }
 0x115   :  { %10018 = vst [vmem:[#allocation146_spill] sm:$0xff] %v6042_v32  ;;  %10019 = vst [vmem:[#allocation147_spill] sm:$0xff] %v6045_v57  ;;  %1351 = vmatpush2.msra.mxu0 %v6048_v19  ;;  %1422 = vmatpush2.msra.mxu1 %v6051_v26  ;;  %v6054_v24 = vld [vmem:[#allocation6 + $0x5c8] sm:$0xff]  ;;  %v6057_v17 = vld [vmem:[#allocation6 + $0x5d8] sm:$0xff] }
 0x116   :  { %10020 = vst [vmem:[#allocation148_spill] sm:$0xff] %v6048_v19  ;;  %10021 = vst [vmem:[#allocation149_spill] sm:$0xff] %v6051_v26  ;;  %1352 = vmatprep.subr.mxu0 %v6054_v24  ;;  %1423 = vmatprep.subr.mxu1 %v6057_v17  ;;  %v6060_v32 = vld [vmem:[#allocation6 + $0x5c0] sm:$0xff]  ;;  %v6063_v57 = vld [vmem:[#allocation6 + $0x5d0] sm:$0xff] }
 0x117   :  { %10022 = vst [vmem:[#allocation150_spill] sm:$0xff] %v6054_v24  ;;  %10023 = vst [vmem:[#allocation151_spill] sm:$0xff] %v6057_v17  ;;  %1353 = vmatpush2.msra.mxu0 %v6060_v32  ;;  %1424 = vmatpush2.msra.mxu1 %v6063_v57  ;;  %v6066_v19 = vld [vmem:[#allocation6 + $0x588] sm:$0xff]  ;;  %v6069_v26 = vld [vmem:[#allocation6 + $0x598] sm:$0xff] }
 0x118   :  { %10024 = vst [vmem:[#allocation152_spill] sm:$0xff] %v6060_v32  ;;  %10025 = vst [vmem:[#allocation153_spill] sm:$0xff] %v6063_v57  ;;  %1354 = vmatprep.subr.mxu0 %v6066_v19  ;;  %1425 = vmatprep.subr.mxu1 %v6069_v26  ;;  %v6072_v24 = vld [vmem:[#allocation6 + $0x580] sm:$0xff]  ;;  %v6075_v17 = vld [vmem:[#allocation6 + $0x590] sm:$0xff] }
 0x119   :  { %10026 = vst [vmem:[#allocation154_spill] sm:$0xff] %v6066_v19  ;;  %10027 = vst [vmem:[#allocation155_spill] sm:$0xff] %v6069_v26  ;;  %1355 = vmatpush2.msra.mxu0 %v6072_v24  ;;  %1426 = vmatpush2.msra.mxu1 %v6075_v17  ;;  %v6078_v32 = vld [vmem:[#allocation6 + $0x548] sm:$0xff]  ;;  %v6081_v57 = vld [vmem:[#allocation6 + $0x558] sm:$0xff] }
 0x11a   :  { %1356 = vmatprep.subr.mxu0 %v6078_v32  ;;  %1427 = vmatprep.subr.mxu1 %v6081_v57  ;;  %v6084_v19 = vld [vmem:[#allocation6 + $0x540] sm:$0xff]  ;;  %v6087_v26 = vld [vmem:[#allocation6 + $0x550] sm:$0xff] }
 0x11b   :  { %1357 = vmatpush2.msra.mxu0 %v6084_v19  ;;  %1428 = vmatpush2.msra.mxu1 %v6087_v26 }
 0x11c   :  { %1358 = vmatprep.subr.mxu0 %v5443_v28  ;;  %1429 = vmatprep.subr.mxu1 %v5445_v29  ;;  %v6113_v28 = vpop.f32.mrf.mxu0  ;;  %v6115_v29 = vpop.f32.mrf.mxu1 }
 0x11d   :  { %1359 = vmatpush2.msra.mxu0 %v5447_v30  ;;  %1430 = vmatpush2.msra.mxu1 %v5449_v31 }
 0x11e   :  { %1360 = vmatprep.subr.mxu0 %v5455_v40  ;;  %1431 = vmatprep.subr.mxu1 %v5457_v33  ;;  %v6117_v30 = vpop.f32.mrf.mxu0  ;;  %v6119_v31 = vpop.f32.mrf.mxu1 }
 0x11f   :  { %1361 = vmatpush2.msra.mxu0 %v5461_v34  ;;  %1432 = vmatpush2.msra.mxu1 %v5463_v35 }
 0x120   :  { %1362 = vmatprep.subr.mxu0 %v5469_v36  ;;  %1433 = vmatprep.subr.mxu1 %v5471_v38 }
 0x121   :  { %1363 = vmatpush2.msra.mxu0 %v5477_v39  ;;  %1434 = vmatpush2.msra.mxu1 %v5479_v43 }
 0x122   :  { %1364 = vmatprep.subr.mxu0 %v5485_v41  ;;  %1435 = vmatprep.subr.mxu1 %v5487_v44 }
 0x123   :  { %1365 = vmatpush2.msra.mxu0 %v5491_v45  ;;  %1436 = vmatpush2.msra.mxu1 %v5493_v46 }
 0x124   :  { %1366 = vmatprep.subr.mxu0 %v5499_v47  ;;  %1437 = vmatprep.subr.mxu1 %v5501_v48 }
 0x125   :  { %1367 = vmatpush2.msra.mxu0 %v5505_v49  ;;  %1438 = vmatpush2.msra.mxu1 %v5509_v50 }
 0x126   :  { %1446 = vmatprep.subr.mxu0 %v5515_v42  ;;  %1517 = vmatprep.subr.mxu1 %v5517_v51 }
 0x12c   :  { %v6121_v40 = vpop.f32.mrf.mxu0  ;;  %v6123_v33 = vpop.f32.mrf.mxu1 }
 0x12e   :  { %v6125_v34 = vpop.f32.mrf.mxu0  ;;  %v6127_v35 = vpop.f32.mrf.mxu1 }
 0x12f   :  { %10028 = vst [vmem:[#allocation156_spill] sm:$0xff] %v6127_v35 }
 0x132   :  { %v6129_v36 = vpop.f32.mrf.mxu0  ;;  %v6131_v38 = vpop.f32.mrf.mxu1 }
 0x133   :  { %10029 = vst [vmem:[#allocation157_spill] sm:$0xff] %v6129_v36  ;;  %10030 = vst [vmem:[#allocation158_spill] sm:$0xff] %v6131_v38 }
 0x134   :  { %v6133_v39 = vpop.f32.mrf.mxu0  ;;  %v6135_v43 = vpop.f32.mrf.mxu1 }
 0x135   :  { %10031 = vst [vmem:[#allocation159_spill] sm:$0xff] %v6133_v39  ;;  %10032 = vst [vmem:[#allocation160_spill] sm:$0xff] %v6135_v43 }
 0x138   :  { %v6137_v41 = vpop.f32.mrf.mxu0  ;;  %v6139_v44 = vpop.f32.mrf.mxu1 }
 0x139   :  { %10033 = vst [vmem:[#allocation161_spill] sm:$0xff] %v6137_v41  ;;  %10034 = vst [vmem:[#allocation162_spill] sm:$0xff] %v6139_v44 }
 0x13a   :  { %v6141_v45 = vpop.f32.mrf.mxu0  ;;  %v6143_v46 = vpop.f32.mrf.mxu1 }
 0x13b   :  { %10035 = vst [vmem:[#allocation163_spill] sm:$0xff] %v6141_v45  ;;  %10036 = vst [vmem:[#allocation164_spill] sm:$0xff] %v6143_v46 }
 0x13e   :  { %v6145_v47 = vpop.f32.mrf.mxu0  ;;  %v6147_v48 = vpop.f32.mrf.mxu1 }
 0x13f   :  { %10037 = vst [vmem:[#allocation165_spill] sm:$0xff] %v6145_v47  ;;  %10038 = vst [vmem:[#allocation166_spill] sm:$0xff] %v6147_v48 }
 0x140   :  { %v6149_v49 = vpop.f32.mrf.mxu0  ;;  %v6151_v50 = vpop.f32.mrf.mxu1 }
 0x141   :  { %10039 = vst [vmem:[#allocation167_spill] sm:$0xff] %v6149_v49  ;;  %10040 = vst [vmem:[#allocation168_spill] sm:$0xff] %v6151_v50 }
 0x144   :  { %v6153_v42 = vpop.f32.mrf.mxu0  ;;  %v6155_v51 = vpop.f32.mrf.mxu1 }
 0x145   :  { %10041 = vst [vmem:[#allocation169_spill] sm:$0xff] %v6153_v42  ;;  %10042 = vst [vmem:[#allocation170_spill] sm:$0xff] %v6155_v51 }
 0x146   :  { %v6157_v43 = vpop.f32.mrf.mxu0  ;;  %v6159_v41 = vpop.f32.mrf.mxu1 }
 0x147   :  { %10043 = vst [vmem:[#allocation171_spill] sm:$0xff] %v6157_v43  ;;  %10044 = vst [vmem:[#allocation172_spill] sm:$0xff] %v6159_v41  ;;  %v226_v41 = vadd.f32 %v5729_v0, %v5758_v59  ;;  %v124_v59 = vsub.s32 7, %v5695_v52 }
 0x14a   :  { %v6161_v44 = vpop.f32.mrf.mxu0  ;;  %v6163_v45 = vpop.f32.mrf.mxu1 }
 0x14b   :  { %10045 = vst [vmem:[#allocation173_spill] sm:$0xff] %v6161_v44  ;;  %10046 = vst [vmem:[#allocation174_spill] sm:$0xff] %v6163_v45  ;;  %v339_v45 = vadd.f32 %v5731_v53, %v5761_v25  ;;  %v112_v25 = vsub.s32 4, %v5695_v52 }
 0x14c   :  { %v6165_v46 = vpop.f32.mrf.mxu0  ;;  %v6167_v47 = vpop.f32.mrf.mxu1 }
 0x14d   :  { %10047 = vst [vmem:[#allocation175_spill] sm:$0xff] %v6165_v46  ;;  %10048 = vst [vmem:[#allocation176_spill] sm:$0xff] %v6167_v47  ;;  %v228_v47 = vadd.f32 %v5747_v23, %v5770_v20  ;;  %v120_v20 = vsub.s32 6, %v5695_v52  ;;  %v116_v23 = vsub.s32 5, %v5695_v52 }
 0x150   :  { %v6169_v48 = vpop.f32.mrf.mxu0  ;;  %v6171_v49 = vpop.f32.mrf.mxu1 }
 0x151   :  { %10049 = vst [vmem:[#allocation177_spill] sm:$0xff] %v6169_v48  ;;  %10050 = vst [vmem:[#allocation178_spill] sm:$0xff] %v6171_v49 }
 0x152   :  { %v6173_v50 = vpop.f32.mrf.mxu0  ;;  %v6175_v42 = vpop.f32.mrf.mxu1 }
 0x153   :  { %10051 = vst [vmem:[#allocation179_spill] sm:$0xff] %v6173_v50  ;;  %10052 = vst [vmem:[#allocation180_spill] sm:$0xff] %v6175_v42  ;;  %v341_v50 = vadd.f32 %v5749_v21, %v5779_v55 }
 0x156   :  { %v1009_v51 = vpop.f32.mrf.mxu0  ;;  %v1080_v43 = vpop.f32.mrf.mxu1 }
 0x157   :  { %v1227_v46 = vadd.f32 %v1009_v51, %v226_v41  ;;  %v1229_v48 = vadd.f32 %v1080_v43, %v339_v45  ;;  %v6193_v43 = vrot.slane %v5727_v54, %v120_v20  ;;  %v6199_v41 = vrot.slane %v5727_v54, %v124_v59 }
 0x158   :  { %v1011_v44 = vpop.f32.mrf.mxu0  ;;  %v1082_v39 = vpop.f32.mrf.mxu1 }
 0x159   :  { %v1228_v49 = vadd.f32 %v1011_v44, %v228_v47  ;;  %v3893_v42 = vmul.f32 -1.442695, %v1227_v46  ;;  %v1230_v38 = vadd.f32 %v1082_v39, %v341_v50  ;;  %v3895_v36 = vmul.f32 -1.442695, %v1229_v48  ;;  %10054 = vst [vmem:[#allocation182_spill] sm:$0xff] %v6193_v43 }
 0x15a   :  { %v6190_v39 = vrot.slane %v5727_v54, %v112_v25  ;;  %v565_v46 = vadd.f32 %v6115_v29, %v6193_v43 }
 0x15b   :  { %v3894_v35 = vmul.f32 -1.442695, %v1228_v49  ;;  %3959 = vpow2.f32 %v3893_v42  ;;  %v3896_v0 = vmul.f32 -1.442695, %v1230_v38  ;;  %v567_v42 = vadd.f32 %v6119_v31, %v6199_v41 }
 0x15c   :  { %3961 = vpow2.f32 %v3895_v36  ;;  %10053 = vst [vmem:[#allocation181_spill] sm:$0xff] %v6190_v39  ;;  %v452_v52 = vadd.f32 %v6113_v28, %v6190_v39 }
 0x15d   :  { %3963 = vpow2.f32 %v3894_v35  ;;  %v6196_v35 = vrot.slane %v5727_v54, %v116_v23 }
 0x15e   :  { %3965 = vpow2.f32 %v3896_v0 }
 0x15f   :  { %10055 = vst [vmem:[#allocation183_spill] sm:$0xff] %v6196_v35  ;;  %v454_v47 = vadd.f32 %v6117_v30, %v6196_v35 }
 0x168   :  { %v3960_v53 = vpop.eup %3959 }
 0x169   :  { %v3962_v21 = vpop.eup %3961  ;;  %v1253_v36 = vadd.f32 1.0, %v3960_v53 }
 0x16a   :  { %v3964_v55 = vpop.eup %3963  ;;  %v1255_v44 = vadd.f32 1.0, %v3962_v21 }
 0x16b   :  { %v3966_v38 = vpop.eup %3965  ;;  %v1254_v45 = vadd.f32 1.0, %v3964_v55  ;;  %3967 = vrcp.f32 %v1253_v36 }
 0x16c   :  { %v1256_v48 = vadd.f32 1.0, %v3966_v38  ;;  %3969 = vrcp.f32 %v1255_v44 }
 0x16d   :  { %3971 = vrcp.f32 %v1254_v45 }
 0x178   :  { %v3968_v23 = vpop.eup %3967 }
 0x179   :  { %v3970_v53 = vpop.eup %3969 }
 0x17a   :  { %v3972_v59 = vpop.eup %3971  ;;  %v1273_v55 = vmul.f32 0.0, %v3970_v53  ;;  %v6246_v53 = vld [vmem:[#allocation6 + $0x3b8] sm:$0xff] }
 0x198   :  { %v1151_v49 = vpop.f32.mrf.mxu0  ;;  %v1222_v50 = vpop.f32.mrf.mxu1 }
 0x199   :  { %v1231_v54 = vadd.f32 %v1151_v49, %v452_v52  ;;  %v1233_v51 = vadd.f32 %v1222_v50, %v565_v46 }
 0x19a   :  { %v1153_v0 = vpop.f32.mrf.mxu0  ;;  %v1224_v25 = vpop.f32.mrf.mxu1 }
 0x19b   :  { %v3897_v28 = vmul.f32 -1.442695, %v1231_v54  ;;  %3973 = vtanh.f32 %v1233_v51  ;;  %v1232_v20 = vadd.f32 %v1153_v0, %v454_v47  ;;  %v1234_v29 = vadd.f32 %v1224_v25, %v567_v42  ;;  %v6215_v0 = vpop.permute.xlu0 %1286 }
 0x19c   :  { %3975 = vrcp.f32 %v1256_v48  ;;  %vm1288_vm5 = vcmp.eq.s32.totalorder %v6215_v0, 1 }
 0x19d   :  { %3977 = vpow2.f32 %v3897_v28  ;;  %v3898_v30 = vmul.f32 -1.442695, %v1232_v20 }
 0x19e   :  { %3979 = vtanh.f32 %v1234_v29  ;;  %v6234_v29 = vld [vmem:[#allocation6 + $0x3e0] sm:$0xff] }
 0x19f   :  { %3981 = vpow2.f32 %v3898_v30  ;;  %v6237_v30 = vld [vmem:[#allocation6 + $0x3f0] sm:$0xff] }
 0x1a8   :  { %v3974_v21 = vpop.eup %3973 }
 0x1a9   :  { %v3976_v31 = vpop.eup %3975  ;;  %v1275_v36 = vmul.f32 %v3974_v21, %v3968_v23  ;;  %v6240_v23 = vld [vmem:[#allocation6 + $0x3a8] sm:$0xff]  ;;  %v6255_v21 = vld [vmem:[#allocation6 + $0x3b0] sm:$0xff] }
 0x1aa   :  { %v3978_v38 = vpop.eup %3977  ;;  %v1274_v47 = vmul.f32 0.0, %v3976_v31  ;;  %v6258_v31 = vld [vmem:[#allocation6 + $0x368] sm:$0xff] }
 0x1ab   :  { %v3980_v44 = vpop.eup %3979  ;;  %v1257_v45 = vadd.f32 1.0, %v3978_v38  ;;  %v6209_v52 = vadd.f32 %v1275_v36, %v1273_v55  ;;  %v6261_v55 = vld [vmem:[#allocation6 + $0x378] sm:$0xff]  ;;  %v6264_v36 = vld [vmem:[#allocation6 + $0x360] sm:$0xff]  ;;  %v6267_v38 = vld [vmem:[#allocation6 + $0x370] sm:$0xff] }
 0x1ac   :  { %v3982_v46 = vpop.eup %3981  ;;  %v1276_v49 = vmul.f32 %v3980_v44, %v3972_v59  ;;  %v6252_v59 = vld [vmem:[#allocation6 + $0x3a0] sm:$0xff]  ;;  %v6270_v44 = vld [vmem:[#allocation6 + $0x328] sm:$0xff] }
 0x1ad   :  { %3983 = vrcp.f32 %v1257_v45  ;;  %v1258_v48 = vadd.f32 1.0, %v3982_v46  ;;  %v6273_v45 = vld [vmem:[#allocation6 + $0x338] sm:$0xff]  ;;  %v6276_v46 = vld [vmem:[#allocation6 + $0x320] sm:$0xff] }
 0x1ae   :  { %3985 = vtanh.f32 %v6209_v52  ;;  %v6212_v50 = vadd.f32 %v1276_v49, %v1274_v47  ;;  %v6279_v47 = vld [vmem:[#allocation6 + $0x330] sm:$0xff]  ;;  %v6282_v49 = vld [vmem:[#allocation6 + $0x2e8] sm:$0xff] }
 0x1af   :  { %3987 = vrcp.f32 %v1258_v48  ;;  %10056 = vst [vmem:[#allocation184_spill] sm:$0xff] %v6282_v49  ;;  %v6285_v48 = vld [vmem:[#allocation6 + $0x2f8] sm:$0xff] }
 0x1b0   :  { %3989 = vtanh.f32 %v6212_v50  ;;  %10057 = vst [vmem:[#allocation185_spill] sm:$0xff] %v6285_v48 }
 0x1b6   :  { %v10252_v0 = vld [vmem:[#allocation184_spill] sm:$0xff] }
 0x1ba   :  { %v3984_v42 = vpop.eup %3983 }
 0x1bb   :  { %v3986_v54 = vpop.eup %3985 }
 0x1bc   :  { %v3988_v51 = vpop.eup %3987  ;;  %v6220_v20 = vmul.f32 %v3986_v54, %v3984_v42  ;;  %v6288_v42 = vld [vmem:[#allocation6 + $0x2e0] sm:$0xff]  ;;  %v6291_v54 = vld [vmem:[#allocation6 + $0x2f0] sm:$0xff] }
 0x1bd   :  { %v3990_v25 = vpop.eup %3989  ;;  %10058 = vst [vmem:[#allocation186_spill] sm:$0xff] %v6288_v42  ;;  %10059 = vst [vmem:[#allocation187_spill] sm:$0xff] %v6291_v54 }
 0x1be   :  { %v6217_v28 = vmul.f32 %v3990_v25, %v3988_v51  ;;  %v6294_v51 = vld [vmem:[#allocation6 + $0x2a8] sm:$0xff]  ;;  %v6297_v25 = vld [vmem:[#allocation6 + $0x2b8] sm:$0xff] }
 0x1bf   :  { %10060 = vst [vmem:[#allocation188_spill] sm:$0xff] %v6294_v51  ;;  %10061 = vst [vmem:[#allocation189_spill] sm:$0xff] %v6297_v25 }
 0x1c0   :  { %3899 = vmatprep.mubr.msk.f32.mxu0 %vm1288_vm5, %v6217_v28  ;;  %3901 = vmatprep.mubr.msk.f32.mxu1 %vm1288_vm5, %v6217_v28 }
 0x1c1   :  { %3900 = vmatmul.mubr.msk.f32.vlgmr.msra.gmra.mxu0 %vm1288_vm5, %v6220_v20  ;;  %3902 = vmatmul.mubr.msk.f32.vlgmr.msra.gmra.mxu1 %vm1288_vm5, %v6220_v20 }
 0x1c2   :  { %1447 = vmatpush1.msra.mxu0 %v6234_v29  ;;  %1518 = vmatpush1.msra.mxu1 %v6237_v30 }
 0x1c3   :  { %1448 = vmatprep.subr.mxu0 %v6240_v23  ;;  %3903 = vmatprep.mubr.msk.f32.mxu0 %vm1288_vm5, %v6217_v28 }
 0x1c4   :  { %1519 = vmatprep.subr.mxu1 %v6246_v53  ;;  %3905 = vmatprep.mubr.msk.f32.mxu1 %vm1288_vm5, %v6217_v28 }
 0x1c5   :  { %1449 = vmatpush1.msra.mxu0 %v6252_v59  ;;  %1520 = vmatpush1.msra.mxu1 %v6255_v21 }
 0x1c6   :  { %1450 = vmatprep.subr.mxu0 %v6258_v31  ;;  %1521 = vmatprep.subr.mxu1 %v6261_v55 }
 0x1c7   :  { %1451 = vmatpush1.msra.mxu0 %v6264_v36  ;;  %1522 = vmatpush1.msra.mxu1 %v6267_v38 }
 0x1c8   :  { %1452 = vmatprep.subr.mxu0 %v6270_v44  ;;  %1523 = vmatprep.subr.mxu1 %v6273_v45 }
 0x1c9   :  { %1453 = vmatpush1.msra.mxu0 %v6276_v46  ;;  %1524 = vmatpush1.msra.mxu1 %v6279_v47 }
 0x1ca   :  { %1454 = vmatprep.subr.mxu0 %v6282_v49  ;;  %1525 = vmatprep.subr.mxu1 %v6285_v48  ;;  %v6300_v49 = vld [vmem:[#allocation6 + $0x2a0] sm:$0xff]  ;;  %v6303_v48 = vld [vmem:[#allocation6 + $0x2b0] sm:$0xff] }
 0x1cb   :  { %1455 = vmatpush1.msra.mxu0 %v6288_v42  ;;  %1526 = vmatpush1.msra.mxu1 %v6291_v54  ;;  %10062 = vst [vmem:[#allocation190_spill] sm:$0xff] %v6300_v49  ;;  %10063 = vst [vmem:[#allocation191_spill] sm:$0xff] %v6303_v48  ;;  %v6306_v42 = vld [vmem:[#allocation6 + $0x268] sm:$0xff]  ;;  %v6309_v54 = vld [vmem:[#allocation6 + $0x278] sm:$0xff] }
 0x1cc   :  { %1456 = vmatprep.subr.mxu0 %v6294_v51  ;;  %1527 = vmatprep.subr.mxu1 %v6297_v25  ;;  %10064 = vst [vmem:[#allocation192_spill] sm:$0xff] %v6306_v42  ;;  %10065 = vst [vmem:[#allocation193_spill] sm:$0xff] %v6309_v54  ;;  %v6312_v51 = vld [vmem:[#allocation6 + $0x260] sm:$0xff]  ;;  %v6315_v25 = vld [vmem:[#allocation6 + $0x270] sm:$0xff] }
 0x1cd   :  { %1457 = vmatpush1.msra.mxu0 %v6300_v49  ;;  %1528 = vmatpush1.msra.mxu1 %v6303_v48  ;;  %10066 = vst [vmem:[#allocation194_spill] sm:$0xff] %v6312_v51  ;;  %10067 = vst [vmem:[#allocation195_spill] sm:$0xff] %v6315_v25  ;;  %v6318_v49 = vld [vmem:[#allocation6 + $0x228] sm:$0xff]  ;;  %v6321_v48 = vld [vmem:[#allocation6 + $0x238] sm:$0xff] }
 0x1ce   :  { %1458 = vmatprep.subr.mxu0 %v6306_v42  ;;  %1529 = vmatprep.subr.mxu1 %v6309_v54  ;;  %10068 = vst [vmem:[#allocation196_spill] sm:$0xff] %v6318_v49  ;;  %10069 = vst [vmem:[#allocation197_spill] sm:$0xff] %v6321_v48  ;;  %v6324_v42 = vld [vmem:[#allocation6 + $0x220] sm:$0xff]  ;;  %v6327_v54 = vld [vmem:[#allocation6 + $0x230] sm:$0xff] }
 0x1cf   :  { %1459 = vmatpush1.msra.mxu0 %v6312_v51  ;;  %1530 = vmatpush1.msra.mxu1 %v6315_v25  ;;  %10070 = vst [vmem:[#allocation198_spill] sm:$0xff] %v6324_v42  ;;  %10071 = vst [vmem:[#allocation199_spill] sm:$0xff] %v6327_v54  ;;  %v6330_v51 = vld [vmem:[#allocation6 + $0x1e8] sm:$0xff]  ;;  %v6333_v25 = vld [vmem:[#allocation6 + $0x1f8] sm:$0xff] }
 0x1d0   :  { %1460 = vmatprep.subr.mxu0 %v6318_v49  ;;  %1531 = vmatprep.subr.mxu1 %v6321_v48  ;;  %10072 = vst [vmem:[#allocation200_spill] sm:$0xff] %v6330_v51  ;;  %10073 = vst [vmem:[#allocation201_spill] sm:$0xff] %v6333_v25  ;;  %v6336_v49 = vld [vmem:[#allocation6 + $0x1e0] sm:$0xff]  ;;  %v6339_v48 = vld [vmem:[#allocation6 + $0x1f0] sm:$0xff] }
 0x1d1   :  { %1461 = vmatpush1.msra.mxu0 %v6324_v42  ;;  %1532 = vmatpush1.msra.mxu1 %v6327_v54  ;;  %10074 = vst [vmem:[#allocation202_spill] sm:$0xff] %v6336_v49  ;;  %10075 = vst [vmem:[#allocation203_spill] sm:$0xff] %v6339_v48  ;;  %v6342_v42 = vld [vmem:[#allocation6 + $0x1a8] sm:$0xff]  ;;  %v6345_v54 = vld [vmem:[#allocation6 + $0x1b8] sm:$0xff] }
 0x1d2   :  { %1462 = vmatprep.subr.mxu0 %v6330_v51  ;;  %1533 = vmatprep.subr.mxu1 %v6333_v25  ;;  %10076 = vst [vmem:[#allocation204_spill] sm:$0xff] %v6342_v42  ;;  %10077 = vst [vmem:[#allocation205_spill] sm:$0xff] %v6345_v54  ;;  %v6348_v51 = vld [vmem:[#allocation6 + $0x1a0] sm:$0xff]  ;;  %v6351_v25 = vld [vmem:[#allocation6 + $0x1b0] sm:$0xff] }
 0x1d3   :  { %1463 = vmatpush1.msra.mxu0 %v6336_v49  ;;  %1534 = vmatpush1.msra.mxu1 %v6339_v48  ;;  %10078 = vst [vmem:[#allocation206_spill] sm:$0xff] %v6348_v51  ;;  %10079 = vst [vmem:[#allocation207_spill] sm:$0xff] %v6351_v25  ;;  %v6354_v49 = vld [vmem:[#allocation6 + $0x168] sm:$0xff]  ;;  %v6357_v48 = vld [vmem:[#allocation6 + $0x178] sm:$0xff] }
 0x1d4   :  { %1464 = vmatprep.subr.mxu0 %v6342_v42  ;;  %1535 = vmatprep.subr.mxu1 %v6345_v54  ;;  %10080 = vst [vmem:[#allocation208_spill] sm:$0xff] %v6354_v49  ;;  %10081 = vst [vmem:[#allocation209_spill] sm:$0xff] %v6357_v48  ;;  %v6360_v42 = vld [vmem:[#allocation6 + $0x160] sm:$0xff]  ;;  %v6363_v54 = vld [vmem:[#allocation6 + $0x170] sm:$0xff] }
 0x1d5   :  { %1465 = vmatpush1.msra.mxu0 %v6348_v51  ;;  %1536 = vmatpush1.msra.mxu1 %v6351_v25  ;;  %10082 = vst [vmem:[#allocation210_spill] sm:$0xff] %v6360_v42  ;;  %10083 = vst [vmem:[#allocation211_spill] sm:$0xff] %v6363_v54  ;;  %v6366_v51 = vld [vmem:[#allocation6 + $0x128] sm:$0xff]  ;;  %v6369_v25 = vld [vmem:[#allocation6 + $0x138] sm:$0xff] }
 0x1d6   :  { %1466 = vmatprep.subr.mxu0 %v6354_v49  ;;  %1537 = vmatprep.subr.mxu1 %v6357_v48  ;;  %10084 = vst [vmem:[#allocation212_spill] sm:$0xff] %v6366_v51  ;;  %10085 = vst [vmem:[#allocation213_spill] sm:$0xff] %v6369_v25  ;;  %v6372_v49 = vld [vmem:[#allocation6 + $0x120] sm:$0xff]  ;;  %v6375_v48 = vld [vmem:[#allocation6 + $0x130] sm:$0xff] }
 0x1d7   :  { %1467 = vmatpush1.msra.mxu0 %v6360_v42  ;;  %1538 = vmatpush1.msra.mxu1 %v6363_v54  ;;  %10086 = vst [vmem:[#allocation214_spill] sm:$0xff] %v6372_v49  ;;  %10087 = vst [vmem:[#allocation215_spill] sm:$0xff] %v6375_v48  ;;  %v6378_v42 = vld [vmem:[#allocation6 + $0xe8] sm:$0xff]  ;;  %v6381_v54 = vld [vmem:[#allocation6 + $0xf8] sm:$0xff] }
 0x1d8   :  { %1468 = vmatprep.subr.mxu0 %v6366_v51  ;;  %1539 = vmatprep.subr.mxu1 %v6369_v25  ;;  %10088 = vst [vmem:[#allocation216_spill] sm:$0xff] %v6378_v42  ;;  %10089 = vst [vmem:[#allocation217_spill] sm:$0xff] %v6381_v54  ;;  %v6384_v51 = vld [vmem:[#allocation6 + $0xe0] sm:$0xff]  ;;  %v6387_v25 = vld [vmem:[#allocation6 + $0xf0] sm:$0xff] }
 0x1d9   :  { %1469 = vmatpush1.msra.mxu0 %v6372_v49  ;;  %1540 = vmatpush1.msra.mxu1 %v6375_v48  ;;  %10090 = vst [vmem:[#allocation218_spill] sm:$0xff] %v6384_v51  ;;  %10091 = vst [vmem:[#allocation219_spill] sm:$0xff] %v6387_v25  ;;  %v6390_v49 = vld [vmem:[#allocation6 + $0xa8] sm:$0xff]  ;;  %v6393_v48 = vld [vmem:[#allocation6 + $0xb8] sm:$0xff] }
 0x1da   :  { %1470 = vmatprep.subr.mxu0 %v6378_v42  ;;  %1541 = vmatprep.subr.mxu1 %v6381_v54  ;;  %10092 = vst [vmem:[#allocation220_spill] sm:$0xff] %v6390_v49  ;;  %10093 = vst [vmem:[#allocation221_spill] sm:$0xff] %v6393_v48  ;;  %v6396_v42 = vld [vmem:[#allocation6 + $0xa0] sm:$0xff]  ;;  %v6399_v54 = vld [vmem:[#allocation6 + $0xb0] sm:$0xff] }
 0x1db   :  { %1471 = vmatpush1.msra.mxu0 %v6384_v51  ;;  %1542 = vmatpush1.msra.mxu1 %v6387_v25  ;;  %10094 = vst [vmem:[#allocation222_spill] sm:$0xff] %v6396_v42  ;;  %10095 = vst [vmem:[#allocation223_spill] sm:$0xff] %v6399_v54  ;;  %v6402_v51 = vld [vmem:[#allocation6 + $0x68] sm:$0xff]  ;;  %v6405_v25 = vld [vmem:[#allocation6 + $0x78] sm:$0xff] }
 0x1dc   :  { %1472 = vmatprep.subr.mxu0 %v6390_v49  ;;  %1543 = vmatprep.subr.mxu1 %v6393_v48  ;;  %10096 = vst [vmem:[#allocation224_spill] sm:$0xff] %v6402_v51  ;;  %10097 = vst [vmem:[#allocation225_spill] sm:$0xff] %v6405_v25  ;;  %v6408_v49 = vld [vmem:[#allocation6 + $0x60] sm:$0xff]  ;;  %v6411_v48 = vld [vmem:[#allocation6 + $0x70] sm:$0xff] }
 0x1dd   :  { %1473 = vmatpush1.msra.mxu0 %v6396_v42  ;;  %1544 = vmatpush1.msra.mxu1 %v6399_v54  ;;  %10098 = vst [vmem:[#allocation226_spill] sm:$0xff] %v6408_v49  ;;  %10099 = vst [vmem:[#allocation227_spill] sm:$0xff] %v6411_v48  ;;  %v6414_v42 = vld [vmem:[#allocation6 + $0x28] sm:$0xff]  ;;  %v6417_v54 = vld [vmem:[#allocation6 + $0x38] sm:$0xff] }
 0x1de   :  { %1474 = vmatprep.subr.mxu0 %v6402_v51  ;;  %1545 = vmatprep.subr.mxu1 %v6405_v25  ;;  %10100 = vst [vmem:[#allocation228_spill] sm:$0xff] %v6414_v42  ;;  %10101 = vst [vmem:[#allocation229_spill] sm:$0xff] %v6417_v54  ;;  %v6420_v51 = vld [vmem:[#allocation6 + $0x20] sm:$0xff]  ;;  %v6423_v25 = vld [vmem:[#allocation6 + $0x30] sm:$0xff] }
 0x1df   :  { %1475 = vmatpush1.msra.mxu0 %v6408_v49  ;;  %1546 = vmatpush1.msra.mxu1 %v6411_v48  ;;  %10102 = vst [vmem:[#allocation230_spill] sm:$0xff] %v6420_v51  ;;  %10103 = vst [vmem:[#allocation231_spill] sm:$0xff] %v6423_v25  ;;  %v6426_v49 = vld [vmem:[#allocation6 + $0x7e8] sm:$0xff]  ;;  %v6429_v48 = vld [vmem:[#allocation6 + $0x7f8] sm:$0xff] }
 0x1e0   :  { %1476 = vmatprep.subr.mxu0 %v6414_v42  ;;  %1547 = vmatprep.subr.mxu1 %v6417_v54  ;;  %10104 = vst [vmem:[#allocation232_spill] sm:$0xff] %v6426_v49  ;;  %10105 = vst [vmem:[#allocation233_spill] sm:$0xff] %v6429_v48  ;;  %v6432_v42 = vld [vmem:[#allocation6 + $0x7e0] sm:$0xff]  ;;  %v6435_v54 = vld [vmem:[#allocation6 + $0x7f0] sm:$0xff] }
 0x1e1   :  { %1477 = vmatpush1.msra.mxu0 %v6420_v51  ;;  %1548 = vmatpush1.msra.mxu1 %v6423_v25  ;;  %10106 = vst [vmem:[#allocation234_spill] sm:$0xff] %v6432_v42  ;;  %10107 = vst [vmem:[#allocation235_spill] sm:$0xff] %v6435_v54  ;;  %v6438_v51 = vld [vmem:[#allocation6 + $0x7a8] sm:$0xff]  ;;  %v6441_v25 = vld [vmem:[#allocation6 + $0x7b8] sm:$0xff] }
 0x1e2   :  { %1478 = vmatprep.subr.mxu0 %v6426_v49  ;;  %1549 = vmatprep.subr.mxu1 %v6429_v48  ;;  %10108 = vst [vmem:[#allocation236_spill] sm:$0xff] %v6438_v51  ;;  %10109 = vst [vmem:[#allocation237_spill] sm:$0xff] %v6441_v25  ;;  %v6444_v49 = vld [vmem:[#allocation6 + $0x7a0] sm:$0xff]  ;;  %v6447_v48 = vld [vmem:[#allocation6 + $0x7b0] sm:$0xff] }
 0x1e3   :  { %1479 = vmatpush2.msra.mxu0 %v6432_v42  ;;  %1550 = vmatpush2.msra.mxu1 %v6435_v54  ;;  %10110 = vst [vmem:[#allocation238_spill] sm:$0xff] %v6444_v49  ;;  %10111 = vst [vmem:[#allocation239_spill] sm:$0xff] %v6447_v48  ;;  %v6450_v42 = vld [vmem:[#allocation6 + $0x768] sm:$0xff]  ;;  %v6453_v54 = vld [vmem:[#allocation6 + $0x778] sm:$0xff] }
 0x1e4   :  { %1480 = vmatprep.subr.mxu0 %v6438_v51  ;;  %1551 = vmatprep.subr.mxu1 %v6441_v25  ;;  %10112 = vst [vmem:[#allocation240_spill] sm:$0xff] %v6450_v42  ;;  %10113 = vst [vmem:[#allocation241_spill] sm:$0xff] %v6453_v54  ;;  %v6456_v51 = vld [vmem:[#allocation6 + $0x760] sm:$0xff]  ;;  %v6459_v25 = vld [vmem:[#allocation6 + $0x770] sm:$0xff] }
 0x1e5   :  { %1481 = vmatpush2.msra.mxu0 %v6444_v49  ;;  %1552 = vmatpush2.msra.mxu1 %v6447_v48  ;;  %10114 = vst [vmem:[#allocation242_spill] sm:$0xff] %v6456_v51  ;;  %10115 = vst [vmem:[#allocation243_spill] sm:$0xff] %v6459_v25  ;;  %v6462_v49 = vld [vmem:[#allocation6 + $0x728] sm:$0xff]  ;;  %v6465_v48 = vld [vmem:[#allocation6 + $0x738] sm:$0xff] }
 0x1e6   :  { %1482 = vmatprep.subr.mxu0 %v6450_v42  ;;  %1553 = vmatprep.subr.mxu1 %v6453_v54  ;;  %10116 = vst [vmem:[#allocation244_spill] sm:$0xff] %v6462_v49  ;;  %10117 = vst [vmem:[#allocation245_spill] sm:$0xff] %v6465_v48  ;;  %v6468_v42 = vld [vmem:[#allocation6 + $0x720] sm:$0xff]  ;;  %v6471_v54 = vld [vmem:[#allocation6 + $0x730] sm:$0xff] }
 0x1e7   :  { %1483 = vmatpush2.msra.mxu0 %v6456_v51  ;;  %1554 = vmatpush2.msra.mxu1 %v6459_v25  ;;  %10118 = vst [vmem:[#allocation246_spill] sm:$0xff] %v6468_v42  ;;  %10119 = vst [vmem:[#allocation247_spill] sm:$0xff] %v6471_v54  ;;  %v6474_v51 = vld [vmem:[#allocation6 + $0x6e8] sm:$0xff]  ;;  %v6477_v25 = vld [vmem:[#allocation6 + $0x6f8] sm:$0xff] }
 0x1e8   :  { %1484 = vmatprep.subr.mxu0 %v6462_v49  ;;  %1555 = vmatprep.subr.mxu1 %v6465_v48  ;;  %10120 = vst [vmem:[#allocation248_spill] sm:$0xff] %v6474_v51  ;;  %10121 = vst [vmem:[#allocation249_spill] sm:$0xff] %v6477_v25  ;;  %v6480_v49 = vld [vmem:[#allocation6 + $0x6e0] sm:$0xff]  ;;  %v6483_v48 = vld [vmem:[#allocation6 + $0x6f0] sm:$0xff] }
 0x1e9   :  { %1485 = vmatpush2.msra.mxu0 %v6468_v42  ;;  %1556 = vmatpush2.msra.mxu1 %v6471_v54  ;;  %10122 = vst [vmem:[#allocation250_spill] sm:$0xff] %v6480_v49  ;;  %10123 = vst [vmem:[#allocation251_spill] sm:$0xff] %v6483_v48  ;;  %v6486_v42 = vld [vmem:[#allocation6 + $0x6a8] sm:$0xff]  ;;  %v6489_v54 = vld [vmem:[#allocation6 + $0x6b8] sm:$0xff] }
 0x1ea   :  { %1486 = vmatprep.subr.mxu0 %v6474_v51  ;;  %1557 = vmatprep.subr.mxu1 %v6477_v25  ;;  %10124 = vst [vmem:[#allocation252_spill] sm:$0xff] %v6486_v42  ;;  %10125 = vst [vmem:[#allocation253_spill] sm:$0xff] %v6489_v54  ;;  %v6492_v51 = vld [vmem:[#allocation6 + $0x6a0] sm:$0xff]  ;;  %v6495_v25 = vld [vmem:[#allocation6 + $0x6b0] sm:$0xff] }
 0x1eb   :  { %1487 = vmatpush2.msra.mxu0 %v6480_v49  ;;  %1558 = vmatpush2.msra.mxu1 %v6483_v48  ;;  %v6498_v49 = vld [vmem:[#allocation6 + $0x668] sm:$0xff]  ;;  %v6501_v48 = vld [vmem:[#allocation6 + $0x678] sm:$0xff] }
 0x1ec   :  { %1488 = vmatprep.subr.mxu0 %v6486_v42  ;;  %1559 = vmatprep.subr.mxu1 %v6489_v54  ;;  %v6504_v42 = vld [vmem:[#allocation6 + $0x660] sm:$0xff]  ;;  %v6507_v54 = vld [vmem:[#allocation6 + $0x670] sm:$0xff] }
 0x1ed   :  { %1489 = vmatpush2.msra.mxu0 %v6492_v51  ;;  %1560 = vmatpush2.msra.mxu1 %v6495_v25 }
 0x1ee   :  { %1490 = vmatprep.subr.mxu0 %v6498_v49  ;;  %1561 = vmatprep.subr.mxu1 %v6501_v48 }
 0x1ef   :  { %1491 = vmatpush2.msra.mxu0 %v6504_v42  ;;  %1562 = vmatpush2.msra.mxu1 %v6507_v54 }
 0x1f0   :  { %1492 = vmatprep.subr.mxu0 %v5525_v60  ;;  %1563 = vmatprep.subr.mxu1 %v5527_v61  ;;  %v10126_v60 = vld [vmem:[#allocation15_spill] sm:$0xff]  ;;  %v10127_v61 = vld [vmem:[#allocation16_spill] sm:$0xff] }
 0x1f1   :  { %1493 = vmatpush2.msra.mxu0 %v5529_v62  ;;  %1564 = vmatpush2.msra.mxu1 %v5531_v63  ;;  %v10128_v62 = vld [vmem:[#allocation17_spill] sm:$0xff]  ;;  %v10129_v63 = vld [vmem:[#allocation18_spill] sm:$0xff] }
 0x1f2   :  { %1494 = vmatprep.subr.mxu0 %v5533_v1  ;;  %1565 = vmatprep.subr.mxu1 %v5535_v2  ;;  %v10130_v1 = vld [vmem:[#allocation19_spill] sm:$0xff]  ;;  %v10131_v2 = vld [vmem:[#allocation20_spill] sm:$0xff] }
 0x1f3   :  { %1495 = vmatpush2.msra.mxu0 %v5539_v3  ;;  %1566 = vmatpush2.msra.mxu1 %v5541_v4  ;;  %v10132_v3 = vld [vmem:[#allocation21_spill] sm:$0xff]  ;;  %v10133_v4 = vld [vmem:[#allocation22_spill] sm:$0xff] }
 0x1f4   :  { %1496 = vmatprep.subr.mxu0 %v5545_v22  ;;  %1567 = vmatprep.subr.mxu1 %v5547_v5  ;;  %v10134_v22 = vld [vmem:[#allocation23_spill] sm:$0xff]  ;;  %v10135_v5 = vld [vmem:[#allocation24_spill] sm:$0xff] }
 0x1f5   :  { %1497 = vmatpush2.msra.mxu0 %v5551_v6  ;;  %1568 = vmatpush2.msra.mxu1 %v5553_v7  ;;  %v10136_v6 = vld [vmem:[#allocation25_spill] sm:$0xff]  ;;  %v10137_v7 = vld [vmem:[#allocation26_spill] sm:$0xff] }
 0x1f6   :  { %1498 = vmatprep.subr.mxu0 %v5557_v8  ;;  %1569 = vmatprep.subr.mxu1 %v5559_v9  ;;  %v10138_v8 = vld [vmem:[#allocation27_spill] sm:$0xff]  ;;  %v10139_v9 = vld [vmem:[#allocation28_spill] sm:$0xff] }
 0x1f7   :  { %1499 = vmatpush2.msra.mxu0 %v5563_v10  ;;  %1570 = vmatpush2.msra.mxu1 %v5565_v11  ;;  %v10140_v10 = vld [vmem:[#allocation29_spill] sm:$0xff]  ;;  %v10141_v11 = vld [vmem:[#allocation30_spill] sm:$0xff] }
 0x1f8   :  { %1500 = vmatprep.subr.mxu0 %v5569_v27  ;;  %1571 = vmatprep.subr.mxu1 %v5571_v12  ;;  %v10142_v27 = vld [vmem:[#allocation31_spill] sm:$0xff]  ;;  %v10143_v12 = vld [vmem:[#allocation32_spill] sm:$0xff] }
 0x1f9   :  { %1501 = vmatpush2.msra.mxu0 %v5575_v13  ;;  %1572 = vmatpush2.msra.mxu1 %v5577_v14  ;;  %v10144_v13 = vld [vmem:[#allocation33_spill] sm:$0xff]  ;;  %v10145_v14 = vld [vmem:[#allocation34_spill] sm:$0xff] }
 0x1fa   :  { %1502 = vmatprep.subr.mxu0 %v5581_v15  ;;  %1573 = vmatprep.subr.mxu1 %v10126_v60  ;;  %v10146_v15 = vld [vmem:[#allocation35_spill] sm:$0xff]  ;;  %v10147_v60 = vld [vmem:[#allocation36_spill] sm:$0xff] }
 0x1fb   :  { %1503 = vmatpush2.msra.mxu0 %v10127_v61  ;;  %1574 = vmatpush2.msra.mxu1 %v10128_v62  ;;  %v10148_v61 = vld [vmem:[#allocation37_spill] sm:$0xff]  ;;  %v10149_v62 = vld [vmem:[#allocation38_spill] sm:$0xff] }
 0x1fc   :  { %1504 = vmatprep.subr.mxu0 %v10129_v63  ;;  %1575 = vmatprep.subr.mxu1 %v10130_v1  ;;  %v10150_v63 = vld [vmem:[#allocation39_spill] sm:$0xff]  ;;  %v10151_v1 = vld [vmem:[#allocation40_spill] sm:$0xff] }
 0x1fd   :  { %1505 = vmatpush2.msra.mxu0 %v10131_v2  ;;  %1576 = vmatpush2.msra.mxu1 %v10132_v3  ;;  %v10152_v2 = vld [vmem:[#allocation41_spill] sm:$0xff]  ;;  %v10153_v3 = vld [vmem:[#allocation42_spill] sm:$0xff] }
 0x1fe   :  { %1506 = vmatprep.subr.mxu0 %v10133_v4  ;;  %1577 = vmatprep.subr.mxu1 %v10134_v22  ;;  %v10154_v4 = vld [vmem:[#allocation43_spill] sm:$0xff]  ;;  %v10155_v22 = vld [vmem:[#allocation44_spill] sm:$0xff] }
 0x1ff   :  { %1507 = vmatpush2.msra.mxu0 %v10135_v5  ;;  %1578 = vmatpush2.msra.mxu1 %v10136_v6  ;;  %v10156_v5 = vld [vmem:[#allocation45_spill] sm:$0xff]  ;;  %v10157_v6 = vld [vmem:[#allocation46_spill] sm:$0xff] }
 0x200   :  { %1508 = vmatprep.subr.mxu0 %v10137_v7  ;;  %1579 = vmatprep.subr.mxu1 %v10138_v8  ;;  %v10158_v7 = vld [vmem:[#allocation47_spill] sm:$0xff]  ;;  %v10159_v8 = vld [vmem:[#allocation48_spill] sm:$0xff] }
 0x201   :  { %1509 = vmatpush2.msra.mxu0 %v10139_v9  ;;  %1580 = vmatpush2.msra.mxu1 %v10140_v10  ;;  %v10160_v9 = vld [vmem:[#allocation49_spill] sm:$0xff]  ;;  %v10161_v10 = vld [vmem:[#allocation50_spill] sm:$0xff] }
 0x202   :  { %3904 = vmatmul.mubr.msk.f32.vlgmr.msra.gmra.mxu0 %vm1288_vm5, %v6220_v20  ;;  %3906 = vmatmul.mubr.msk.f32.vlgmr.msra.gmra.mxu1 %vm1288_vm5, %v6220_v20 }
 0x203   :  { %1665 = vmatprep.subr.mxu0 %v10141_v11  ;;  %1736 = vmatprep.subr.mxu1 %v10142_v27  ;;  %v10162_v11 = vld [vmem:[#allocation51_spill] sm:$0xff]  ;;  %v10163_v27 = vld [vmem:[#allocation52_spill] sm:$0xff] }
 0x204   :  { %1666 = vmatpush1.msra.mxu0 %v10143_v12  ;;  %1737 = vmatpush1.msra.mxu1 %v10144_v13  ;;  %v10164_v12 = vld [vmem:[#allocation53_spill] sm:$0xff]  ;;  %v10165_v13 = vld [vmem:[#allocation54_spill] sm:$0xff] }
 0x205   :  { %1667 = vmatprep.subr.mxu0 %v10145_v14  ;;  %1738 = vmatprep.subr.mxu1 %v10146_v15  ;;  %v10166_v14 = vld [vmem:[#allocation55_spill] sm:$0xff]  ;;  %v10167_v15 = vld [vmem:[#allocation56_spill] sm:$0xff] }
 0x206   :  { %1668 = vmatpush1.msra.mxu0 %v10147_v60  ;;  %1739 = vmatpush1.msra.mxu1 %v10148_v61  ;;  %v10168_v60 = vld [vmem:[#allocation57_spill] sm:$0xff]  ;;  %v10169_v61 = vld [vmem:[#allocation58_spill] sm:$0xff] }
 0x207   :  { %1669 = vmatprep.subr.mxu0 %v10149_v62  ;;  %1740 = vmatprep.subr.mxu1 %v10150_v63  ;;  %v10170_v62 = vld [vmem:[#allocation59_spill] sm:$0xff]  ;;  %v10171_v63 = vld [vmem:[#allocation60_spill] sm:$0xff] }
 0x208   :  { %1670 = vmatpush1.msra.mxu0 %v10151_v1  ;;  %1741 = vmatpush1.msra.mxu1 %v10152_v2  ;;  %v10172_v1 = vld [vmem:[#allocation61_spill] sm:$0xff]  ;;  %v10173_v2 = vld [vmem:[#allocation62_spill] sm:$0xff] }
 0x209   :  { %1671 = vmatprep.subr.mxu0 %v10153_v3  ;;  %1742 = vmatprep.subr.mxu1 %v10154_v4  ;;  %v10174_v3 = vld [vmem:[#allocation65_spill] sm:$0xff]  ;;  %v10175_v4 = vld [vmem:[#allocation66_spill] sm:$0xff] }
 0x20a   :  { %1672 = vmatpush1.msra.mxu0 %v10155_v22  ;;  %1743 = vmatpush1.msra.mxu1 %v10156_v5  ;;  %v10176_v22 = vld [vmem:[#allocation67_spill] sm:$0xff]  ;;  %v10177_v5 = vld [vmem:[#allocation68_spill] sm:$0xff] }
 0x20b   :  { %1673 = vmatprep.subr.mxu0 %v10157_v6  ;;  %1744 = vmatprep.subr.mxu1 %v10158_v7  ;;  %v10178_v6 = vld [vmem:[#allocation71_spill] sm:$0xff]  ;;  %v10179_v7 = vld [vmem:[#allocation72_spill] sm:$0xff] }
 0x20c   :  { %1674 = vmatpush1.msra.mxu0 %v10159_v8  ;;  %1745 = vmatpush1.msra.mxu1 %v10160_v9  ;;  %v10180_v8 = vld [vmem:[#allocation73_spill] sm:$0xff]  ;;  %v10181_v9 = vld [vmem:[#allocation74_spill] sm:$0xff] }
 0x20d   :  { %1675 = vmatprep.subr.mxu0 %v10161_v10  ;;  %1746 = vmatprep.subr.mxu1 %v10162_v11  ;;  %v10182_v10 = vld [vmem:[#allocation77_spill] sm:$0xff]  ;;  %v10183_v11 = vld [vmem:[#allocation78_spill] sm:$0xff] }
 0x20e   :  { %1676 = vmatpush1.msra.mxu0 %v10163_v27  ;;  %1747 = vmatpush1.msra.mxu1 %v10164_v12  ;;  %v10184_v27 = vld [vmem:[#allocation79_spill] sm:$0xff]  ;;  %v10185_v12 = vld [vmem:[#allocation80_spill] sm:$0xff] }
 0x20f   :  { %1677 = vmatprep.subr.mxu0 %v10165_v13  ;;  %1748 = vmatprep.subr.mxu1 %v10166_v14  ;;  %v10186_v13 = vld [vmem:[#allocation83_spill] sm:$0xff]  ;;  %v10187_v14 = vld [vmem:[#allocation84_spill] sm:$0xff] }
 0x210   :  { %1678 = vmatpush1.msra.mxu0 %v10167_v15  ;;  %1749 = vmatpush1.msra.mxu1 %v10168_v60  ;;  %v10188_v15 = vld [vmem:[#allocation85_spill] sm:$0xff]  ;;  %v10189_v60 = vld [vmem:[#allocation86_spill] sm:$0xff] }
 0x211   :  { %1679 = vmatprep.subr.mxu0 %v10169_v61  ;;  %1750 = vmatprep.subr.mxu1 %v10170_v62  ;;  %v10190_v61 = vld [vmem:[#allocation89_spill] sm:$0xff]  ;;  %v10191_v62 = vld [vmem:[#allocation90_spill] sm:$0xff] }
 0x212   :  { %1680 = vmatpush1.msra.mxu0 %v10171_v63  ;;  %1751 = vmatpush1.msra.mxu1 %v10172_v1  ;;  %v10192_v63 = vld [vmem:[#allocation91_spill] sm:$0xff]  ;;  %v10193_v1 = vld [vmem:[#allocation92_spill] sm:$0xff] }
 0x213   :  { %1681 = vmatprep.subr.mxu0 %v10173_v2  ;;  %1752 = vmatprep.subr.mxu1 %v10174_v3  ;;  %v10194_v2 = vld [vmem:[#allocation95_spill] sm:$0xff]  ;;  %v10195_v3 = vld [vmem:[#allocation96_spill] sm:$0xff] }
 0x214   :  { %1682 = vmatpush1.msra.mxu0 %v10175_v4  ;;  %1753 = vmatpush1.msra.mxu1 %v10176_v22  ;;  %v10196_v4 = vld [vmem:[#allocation97_spill] sm:$0xff]  ;;  %v10197_v22 = vld [vmem:[#allocation98_spill] sm:$0xff] }
 0x215   :  { %1683 = vmatprep.subr.mxu0 %v10177_v5  ;;  %1754 = vmatprep.subr.mxu1 %v10178_v6  ;;  %v10198_v5 = vld [vmem:[#allocation101_spill] sm:$0xff]  ;;  %v10199_v6 = vld [vmem:[#allocation102_spill] sm:$0xff] }
 0x216   :  { %1684 = vmatpush1.msra.mxu0 %v10179_v7  ;;  %1755 = vmatpush1.msra.mxu1 %v10180_v8  ;;  %v10200_v7 = vld [vmem:[#allocation103_spill] sm:$0xff]  ;;  %v10201_v8 = vld [vmem:[#allocation104_spill] sm:$0xff] }
 0x217   :  { %1685 = vmatprep.subr.mxu0 %v10181_v9  ;;  %1756 = vmatprep.subr.mxu1 %v10182_v10  ;;  %v10202_v9 = vld [vmem:[#allocation107_spill] sm:$0xff]  ;;  %v10203_v10 = vld [vmem:[#allocation108_spill] sm:$0xff] }
 0x218   :  { %1686 = vmatpush1.msra.mxu0 %v10183_v11  ;;  %1757 = vmatpush1.msra.mxu1 %v10184_v27  ;;  %v10204_v11 = vld [vmem:[#allocation109_spill] sm:$0xff]  ;;  %v10205_v27 = vld [vmem:[#allocation110_spill] sm:$0xff] }
 0x219   :  { %1687 = vmatprep.subr.mxu0 %v10185_v12  ;;  %1758 = vmatprep.subr.mxu1 %v10186_v13  ;;  %v10206_v12 = vld [vmem:[#allocation113_spill] sm:$0xff]  ;;  %v10207_v13 = vld [vmem:[#allocation114_spill] sm:$0xff] }
 0x21a   :  { %1688 = vmatpush1.msra.mxu0 %v10187_v14  ;;  %1759 = vmatpush1.msra.mxu1 %v10188_v15  ;;  %v10208_v14 = vld [vmem:[#allocation115_spill] sm:$0xff]  ;;  %v10209_v15 = vld [vmem:[#allocation116_spill] sm:$0xff] }
 0x21b   :  { %1689 = vmatprep.subr.mxu0 %v10189_v60  ;;  %1760 = vmatprep.subr.mxu1 %v10190_v61  ;;  %v10210_v60 = vld [vmem:[#allocation119_spill] sm:$0xff]  ;;  %v10211_v61 = vld [vmem:[#allocation120_spill] sm:$0xff] }
 0x21c   :  { %1690 = vmatpush1.msra.mxu0 %v10191_v62  ;;  %1761 = vmatpush1.msra.mxu1 %v10192_v63  ;;  %v10212_v62 = vld [vmem:[#allocation121_spill] sm:$0xff]  ;;  %v10213_v63 = vld [vmem:[#allocation122_spill] sm:$0xff] }
 0x21d   :  { %1691 = vmatprep.subr.mxu0 %v10193_v1  ;;  %1762 = vmatprep.subr.mxu1 %v10194_v2  ;;  %v10214_v1 = vld [vmem:[#allocation125_spill] sm:$0xff]  ;;  %v10215_v2 = vld [vmem:[#allocation126_spill] sm:$0xff] }
 0x21e   :  { %1692 = vmatpush1.msra.mxu0 %v10195_v3  ;;  %1763 = vmatpush1.msra.mxu1 %v10196_v4  ;;  %v10216_v3 = vld [vmem:[#allocation127_spill] sm:$0xff]  ;;  %v10217_v4 = vld [vmem:[#allocation128_spill] sm:$0xff] }
 0x21f   :  { %1693 = vmatprep.subr.mxu0 %v10197_v22  ;;  %1764 = vmatprep.subr.mxu1 %v10198_v5  ;;  %v10218_v22 = vld [vmem:[#allocation131_spill] sm:$0xff]  ;;  %v10219_v5 = vld [vmem:[#allocation132_spill] sm:$0xff] }
 0x220   :  { %1694 = vmatpush1.msra.mxu0 %v10199_v6  ;;  %1765 = vmatpush1.msra.mxu1 %v10200_v7  ;;  %v10220_v6 = vld [vmem:[#allocation133_spill] sm:$0xff]  ;;  %v10221_v7 = vld [vmem:[#allocation134_spill] sm:$0xff] }
 0x221   :  { %1695 = vmatprep.subr.mxu0 %v10201_v8  ;;  %1766 = vmatprep.subr.mxu1 %v10202_v9  ;;  %v10222_v8 = vld [vmem:[#allocation137_spill] sm:$0xff]  ;;  %v10223_v9 = vld [vmem:[#allocation138_spill] sm:$0xff] }
 0x222   :  { %1696 = vmatpush1.msra.mxu0 %v10203_v10  ;;  %1767 = vmatpush1.msra.mxu1 %v10204_v11  ;;  %v10224_v10 = vld [vmem:[#allocation141_spill] sm:$0xff]  ;;  %v10225_v11 = vld [vmem:[#allocation142_spill] sm:$0xff] }
 0x223   :  { %1697 = vmatprep.subr.mxu0 %v10205_v27  ;;  %1768 = vmatprep.subr.mxu1 %v10206_v12  ;;  %v10226_v27 = vld [vmem:[#allocation143_spill] sm:$0xff]  ;;  %v10227_v12 = vld [vmem:[#allocation144_spill] sm:$0xff] }
 0x224   :  { %1698 = vmatpush2.msra.mxu0 %v10207_v13  ;;  %1769 = vmatpush2.msra.mxu1 %v10208_v14  ;;  %v10228_v13 = vld [vmem:[#allocation145_spill] sm:$0xff]  ;;  %v10230_v14 = vld [vmem:[#allocation147_spill] sm:$0xff] }
 0x225   :  { %1699 = vmatprep.subr.mxu0 %v10209_v15  ;;  %1770 = vmatprep.subr.mxu1 %v10210_v60  ;;  %v10231_v15 = vld [vmem:[#allocation148_spill] sm:$0xff] }
 0x226   :  { %1700 = vmatpush2.msra.mxu0 %v10211_v61  ;;  %1771 = vmatpush2.msra.mxu1 %v10212_v62  ;;  %v10235_v60 = vld [vmem:[#allocation152_spill] sm:$0xff]  ;;  %v10236_v61 = vld [vmem:[#allocation153_spill] sm:$0xff]  ;;  %v10237_v62 = vld [vmem:[#allocation154_spill] sm:$0xff] }
 0x227   :  { %1701 = vmatprep.subr.mxu0 %v10213_v63  ;;  %1772 = vmatprep.subr.mxu1 %v10214_v1  ;;  %v10238_v63 = vld [vmem:[#allocation155_spill] sm:$0xff]  ;;  %v6660_v1 = vld [vmem:[#allocation6 + $0x508] sm:$0xff] }
 0x228   :  { %1702 = vmatpush2.msra.mxu0 %v10215_v2  ;;  %1773 = vmatpush2.msra.mxu1 %v10216_v3  ;;  %v6663_v2 = vld [vmem:[#allocation6 + $0x518] sm:$0xff]  ;;  %v6666_v3 = vld [vmem:[#allocation6 + $0x500] sm:$0xff] }
 0x229   :  { %1703 = vmatprep.subr.mxu0 %v10217_v4  ;;  %1774 = vmatprep.subr.mxu1 %v10218_v22  ;;  %v6687_v4 = vld [vmem:[#allocation6 + $0x498] sm:$0xff]  ;;  %v6690_v22 = vld [vmem:[#allocation6 + $0x480] sm:$0xff] }
 0x22a   :  { %1704 = vmatpush2.msra.mxu0 %v10219_v5  ;;  %1775 = vmatpush2.msra.mxu1 %v10220_v6  ;;  %v6693_v5 = vld [vmem:[#allocation6 + $0x490] sm:$0xff]  ;;  %v6696_v6 = vld [vmem:[#allocation6 + $0x448] sm:$0xff] }
 0x22b   :  { %1705 = vmatprep.subr.mxu0 %v10221_v7  ;;  %1776 = vmatprep.subr.mxu1 %v6003_v18  ;;  %v10229_v18 = vld [vmem:[#allocation146_spill] sm:$0xff] }
 0x22c   :  { %1706 = vmatpush2.msra.mxu0 %v10222_v8  ;;  %1777 = vmatpush2.msra.mxu1 %v10223_v9  ;;  %v6699_v7 = vld [vmem:[#allocation6 + $0x458] sm:$0xff]  ;;  %v6702_v8 = vld [vmem:[#allocation6 + $0x440] sm:$0xff]  ;;  %v6705_v9 = vld [vmem:[#allocation6 + $0x450] sm:$0xff] }
 0x22d   :  { %1707 = vmatprep.subr.mxu0 %v6012_v56  ;;  %1778 = vmatprep.subr.mxu1 %v6021_v16  ;;  %v10232_v56 = vld [vmem:[#allocation149_spill] sm:$0xff]  ;;  %v10233_v16 = vld [vmem:[#allocation150_spill] sm:$0xff]  ;;  %10239 = vst [vmem:[#allocation15_spill] sm:$0xff] %v6702_v8  ;;  %10240 = vst [vmem:[#allocation16_spill] sm:$0xff] %v6705_v9 }
 0x22e   :  { %1708 = vmatpush2.msra.mxu0 %v6024_v37  ;;  %1779 = vmatpush2.msra.mxu1 %v10224_v10  ;;  %v10234_v37 = vld [vmem:[#allocation151_spill] sm:$0xff]  ;;  %v6708_v10 = vld [vmem:[#allocation6 + $0x408] sm:$0xff] }
 0x22f   :  { %1709 = vmatprep.subr.mxu0 %v10225_v11  ;;  %1780 = vmatprep.subr.mxu1 %v10226_v27  ;;  %10241 = vst [vmem:[#allocation17_spill] sm:$0xff] %v6708_v10  ;;  %v6711_v11 = vld [vmem:[#allocation6 + $0x418] sm:$0xff]  ;;  %v6714_v27 = vld [vmem:[#allocation6 + $0x400] sm:$0xff] }
 0x230   :  { %1710 = vmatpush2.msra.mxu0 %v10227_v12  ;;  %1781 = vmatpush2.msra.mxu1 %v10228_v13  ;;  %10242 = vst [vmem:[#allocation18_spill] sm:$0xff] %v6711_v11  ;;  %10243 = vst [vmem:[#allocation19_spill] sm:$0xff] %v6714_v27  ;;  %v6717_v12 = vld [vmem:[#allocation6 + $0x410] sm:$0xff]  ;;  %v6720_v13 = vld [vmem:[#allocation6 + $0x3e8] sm:$0xff] }
 0x231   :  { %1711 = vmatprep.subr.mxu0 %v10229_v18  ;;  %1782 = vmatprep.subr.mxu1 %v10230_v14  ;;  %10244 = vst [vmem:[#allocation20_spill] sm:$0xff] %v6717_v12  ;;  %10245 = vst [vmem:[#allocation21_spill] sm:$0xff] %v6720_v13  ;;  %v6723_v18 = vld [vmem:[#allocation6 + $0x3f8] sm:$0xff] }
 0x232   :  { %1712 = vmatpush2.msra.mxu0 %v10231_v15  ;;  %1783 = vmatpush2.msra.mxu1 %v10232_v56  ;;  %10246 = vst [vmem:[#allocation22_spill] sm:$0xff] %v6723_v18  ;;  %v10247_v15 = vld [vmem:[#allocation64_spill] sm:$0xff] }
 0x233   :  { %1713 = vmatprep.subr.mxu0 %v10233_v16  ;;  %1784 = vmatprep.subr.mxu1 %v10234_v37 }
 0x234   :  { %1714 = vmatpush2.msra.mxu0 %v10235_v60  ;;  %1785 = vmatpush2.msra.mxu1 %v10236_v61  ;;  %v10248_v60 = vld [vmem:[#allocation70_spill] sm:$0xff] }
 0x235   :  { %1715 = vmatprep.subr.mxu0 %v10237_v62  ;;  %1786 = vmatprep.subr.mxu1 %v10238_v63 }
 0x236   :  { %1716 = vmatpush2.msra.mxu0 %v6072_v24  ;;  %1787 = vmatpush2.msra.mxu1 %v6075_v17  ;;  %v6669_v17 = vld [vmem:[#allocation6 + $0x510] sm:$0xff]  ;;  %v6684_v24 = vld [vmem:[#allocation6 + $0x488] sm:$0xff] }
 0x237   :  { %1717 = vmatprep.subr.mxu0 %v6078_v32  ;;  %1788 = vmatprep.subr.mxu1 %v6081_v57  ;;  %v6672_v57 = vld [vmem:[#allocation6 + $0x4c8] sm:$0xff]  ;;  %v6678_v32 = vld [vmem:[#allocation6 + $0x4c0] sm:$0xff] }
 0x238   :  { %1718 = vmatpush2.msra.mxu0 %v6084_v19  ;;  %1789 = vmatpush2.msra.mxu1 %v6087_v26  ;;  %v6675_v19 = vld [vmem:[#allocation6 + $0x4d8] sm:$0xff]  ;;  %v6681_v26 = vld [vmem:[#allocation6 + $0x4d0] sm:$0xff] }
 0x239   :  { %1719 = vmatprep.subr.mxu0 %v6660_v1  ;;  %1790 = vmatprep.subr.mxu1 %v6663_v2 }
 0x23a   :  { %1720 = vmatpush2.msra.mxu0 %v6666_v3  ;;  %1791 = vmatpush2.msra.mxu1 %v6669_v17 }
 0x23b   :  { %1721 = vmatprep.subr.mxu0 %v6672_v57  ;;  %1792 = vmatprep.subr.mxu1 %v6675_v19 }
 0x23c   :  { %1722 = vmatpush2.msra.mxu0 %v6678_v32  ;;  %1793 = vmatpush2.msra.mxu1 %v6681_v26 }
 0x23d   :  { %1723 = vmatprep.subr.mxu0 %v6684_v24  ;;  %1794 = vmatprep.subr.mxu1 %v6687_v4 }
 0x23e   :  { %1724 = vmatpush2.msra.mxu0 %v6690_v22  ;;  %1795 = vmatpush2.msra.mxu1 %v6693_v5 }
 0x23f   :  { %1725 = vmatprep.subr.mxu0 %v6696_v6  ;;  %1796 = vmatprep.subr.mxu1 %v6699_v7 }
 0x240   :  { %1726 = vmatpush2.msra.mxu0 %v6702_v8  ;;  %1797 = vmatpush2.msra.mxu1 %v6705_v9 }
 0x241   :  { %1727 = vmatprep.subr.mxu0 %v6708_v10  ;;  %1798 = vmatprep.subr.mxu1 %v6711_v11 }
 0x242   :  { %1728 = vmatpush2.msra.mxu0 %v6714_v27  ;;  %1799 = vmatpush2.msra.mxu1 %v6717_v12 }
 0x243   :  { %1807 = vmatprep.subr.mxu0 %v6720_v13  ;;  %1878 = vmatprep.subr.mxu1 %v6723_v18  ;;  %v6731_v18 = vsel %vm1288_vm5, %v6209_v52, 0.0  ;;  %v4435_v52 = vld [vmem:[%s9308_s1] sm:$0xff]  ;;  %s5276_s1 = smov [#allocation9]  }
 0x244   :  { %vm2005_vm6 = vcmp.gt.s32.totalorder %v4435_v52, 2  ;;  %vm2366_vm7 = vcmp.gt.s32.totalorder %v4435_v52, 3  ;;  %vm3088_vm8 = vcmp.gt.s32.totalorder %v4435_v52, 5  ;;  %vm3810_vm9 = vcmp.gt.s32.totalorder %v4435_v52, 7  ;;  %v10251_v52 = vld [vmem:[#allocation156_spill] sm:$0xff]  ;;  %s3840_s27 = sshll.u32 %s5276_s1, 4  ;;  %s3841_s27 = int_to_ptr.vmem [resolvable:$true] %s3840_s27 }
 0x245   :  { %s5222_s28 = scalar_lea.vmem %s3841_s27, 256  ;;  %p5227_p11 = scmp.lt.s32.totalorder %s3841_s27, %s3841_s27 }
 0x246   :  { %p5223_p10 = scmp.ne.s32.totalorder %s3841_s27, %s5222_s28  ;;  %p5228_p12 = scmp.lt.s32.totalorder %s5222_s28, %s5222_s28 }
 0x248   :  { %p5229_p13 = por %p5228_p12, %p5227_p11 }
 0x24a   :  { %p5230_p0 = pnand %p5229_p13, %p5223_p10 }
 0x281   :  { %v1441_v14 = vpop.f32.mrf.mxu1  ;;  %v1370_v13 = vpop.f32.mrf.mxu0 }
 0x282   :  { %v1590_v56 = vadd.f32 %v1441_v14, %v10247_v15 }
 0x283   :  { %v1443_v16 = vpop.f32.mrf.mxu1 }
 0x284   :  { %v3909_v37 = vmul.f32 -1.442695, %v1590_v56  ;;  %v1591_v61 = vadd.f32 %v1443_v16, %v10248_v60  ;;  %v6737_v56 = vsel %vm1288_vm5, %v6212_v50, 0.0  ;;  %v1372_v16 = vpop.f32.mrf.mxu0  ;;  %v2367_v50 = vsel %vm2366_vm7, 1, %v9910_v58 }
 0x286   :  { %v3910_v62 = vmul.f32 -1.442695, %v1591_v61  ;;  %3991 = vpow2.f32 %v3909_v37  ;;  %v10250_v37 = vld [vmem:[#allocation69_spill] sm:$0xff] }
 0x287   :  { %v1589_v60 = vadd.f32 %v1372_v16, %v10250_v37  ;;  %v571_v37 = vadd.f32 %v6123_v33, %v6193_v43 }
 0x288   :  { %3993 = vpow2.f32 %v3910_v62  ;;  %v2006_v62 = vsel %vm2005_vm6, 1, %v9910_v58 }
 0x289   :  { %2008 = vperm.xlu1 %3958, %v2006_v62   ;;  %v460_v62 = vadd.f32 %v6125_v34, %v6196_v35 }
 0x28d   :  { %2369 = vperm.xlu1 %3958, %v2367_v50   ;;  %v573_v50 = vadd.f32 %v10251_v52, %v6199_v41 }
 0x293   :  { %v3992_v63 = vpop.eup %3991 }
 0x294   :  { %v1616_v12 = vadd.f32 1.0, %v3992_v63  ;;  %v3811_v63 = vsel %vm3810_vm9, 1, %v9910_v58 }
 0x295   :  { %v3994_v27 = vpop.eup %3993 }
 0x296   :  { %3995 = vrcp.f32 %v1616_v12  ;;  %v1617_v11 = vadd.f32 1.0, %v3994_v27  ;;  %v10249_v27 = vld [vmem:[#allocation63_spill] sm:$0xff] }
 0x298   :  { %3997 = vrcp.f32 %v1617_v11  ;;  %v1588_v11 = vadd.f32 %v1370_v13, %v10249_v27  ;;  %v3089_v13 = vsel %vm3088_vm8, 1, %v9910_v58 }
 0x299   :  { %3091 = vperm.xlu1 %3958, %v3089_v13  }
 0x29a   :  { %v3907_v61 = vmul.f32 -1.442695, %v1588_v11  ;;  %v458_v11 = vadd.f32 %v6121_v40, %v6190_v39 }
 0x29c   :  { %3999 = vpow2.f32 %v3907_v61 }
 0x29d   :  { %3813 = vperm.xlu1 %3958, %v3811_v63  }
 0x2a3   :  { %v3996_v10 = vpop.eup %3995 }
 0x2a4   :  { %v1634_v14 = vmul.f32 %v3996_v10, %v6731_v18  ;;  %v3908_v10 = vmul.f32 -1.442695, %v1589_v60 }
 0x2a5   :  { %v3998_v15 = vpop.eup %3997 }
 0x2a6   :  { %v1635_v12 = vmul.f32 %v3998_v15, %v6737_v56  ;;  %4001 = vpow2.f32 %v3908_v10 }
 0x2a9   :  { %v4000_v15 = vpop.eup %3999 }
 0x2aa   :  { %v1614_v27 = vadd.f32 1.0, %v4000_v15 }
 0x2ac   :  { %4003 = vrcp.f32 %v1614_v27 }
 0x2b3   :  { %v4002_v16 = vpop.eup %4001 }
 0x2b4   :  { %v1615_v60 = vadd.f32 1.0, %v4002_v16 }
 0x2b9   :  { %v4004_v16 = vpop.eup %4003 }
 0x2c2   :  { %v1512_v61 = vpop.f32.mrf.mxu0  ;;  %v1583_v10 = vpop.f32.mrf.mxu1 }
 0x2c3   :  { %v1592_v58 = vadd.f32 %v1512_v61, %v458_v11  ;;  %v1594_v13 = vadd.f32 %v1583_v10, %v571_v37  ;;  %v1648_v11 = vpop.permute.xlu0 %1647 }
 0x2c4   :  { %v1514_v63 = vpop.f32.mrf.mxu0  ;;  %v1585_v15 = vpop.f32.mrf.mxu1  ;;  %vm1649_vm10 = vcmp.eq.s32.totalorder %v1648_v11, 1  ;;  %v10276_v11 = vld [vmem:[#allocation208_spill] sm:$0xff] }
 0x2c5   :  { %v3911_v9 = vmul.f32 -1.442695, %v1592_v58  ;;  %4005 = vtanh.f32 %v1594_v13  ;;  %v1593_v40 = vadd.f32 %v1514_v63, %v460_v62  ;;  %v1595_v39 = vadd.f32 %v1585_v15, %v573_v50  ;;  %v10269_v63 = vld [vmem:[#allocation201_spill] sm:$0xff]  ;;  %v10270_v15 = vld [vmem:[#allocation202_spill] sm:$0xff] }
 0x2c6   :  { %4007 = vrcp.f32 %v1615_v60  ;;  %v1290_v13 = vsel %vm1288_vm5, %v6217_v28, 0.0  ;;  %v10253_v28 = vld [vmem:[#allocation185_spill] sm:$0xff] }
 0x2c7   :  { %4009 = vpow2.f32 %v3911_v9  ;;  %v3912_v33 = vmul.f32 -1.442695, %v1593_v40  ;;  %v10271_v40 = vld [vmem:[#allocation203_spill] sm:$0xff] }
 0x2c8   :  { %4011 = vtanh.f32 %v1595_v39 }
 0x2c9   :  { %4013 = vpow2.f32 %v3912_v33  ;;  %v10272_v33 = vld [vmem:[#allocation204_spill] sm:$0xff] }
 0x2d2   :  { %v4006_v43 = vpop.eup %4005 }
 0x2d3   :  { %v4008_v34 = vpop.eup %4007  ;;  %v1636_v35 = vmul.f32 %v4006_v43, %v4004_v16  ;;  %v10273_v16 = vld [vmem:[#allocation205_spill] sm:$0xff] }
 0x2d4   :  { %v4010_v8 = vpop.eup %4009 }
 0x2d5   :  { %v4012_v52 = vpop.eup %4011  ;;  %v1618_v37 = vadd.f32 1.0, %v4010_v8  ;;  %v1638_v27 = vadd.f32 %v1636_v35, %v1634_v14 }
 0x2d6   :  { %v4014_v61 = vpop.eup %4013  ;;  %v1637_v10 = vmul.f32 %v4012_v52, %v4008_v34  ;;  %v10274_v34 = vld [vmem:[#allocation206_spill] sm:$0xff]  ;;  %v10275_v52 = vld [vmem:[#allocation207_spill] sm:$0xff] }
 0x2d7   :  { %4015 = vrcp.f32 %v1618_v37  ;;  %v1619_v62 = vadd.f32 1.0, %v4014_v61  ;;  %v6759_v9 = vsel %vm1649_vm10, %v1638_v27, %v6731_v18  ;;  %v10277_v37 = vld [vmem:[#allocation209_spill] sm:$0xff]  ;;  %v10279_v61 = vld [vmem:[#allocation211_spill] sm:$0xff] }
 0x2d8   :  { %4017 = vtanh.f32 %v1638_v27  ;;  %v1639_v39 = vadd.f32 %v1637_v10, %v1635_v12  ;;  %v1289_v12 = vsel %vm1288_vm5, %v6220_v20, 0.0  ;;  %v10254_v20 = vld [vmem:[#allocation186_spill] sm:$0xff]  ;;  %v10280_v10 = vld [vmem:[#allocation212_spill] sm:$0xff] }
 0x2d9   :  { %4019 = vrcp.f32 %v1619_v62  ;;  %v10278_v27 = vld [vmem:[#allocation210_spill] sm:$0xff]  ;;  %v10281_v62 = vld [vmem:[#allocation213_spill] sm:$0xff] }
 0x2da   :  { %4021 = vtanh.f32 %v1639_v39  ;;  %v6763_v43 = vsel %vm1649_vm10, %v1639_v39, %v6737_v56  ;;  %v10282_v39 = vld [vmem:[#allocation214_spill] sm:$0xff] }
 0x2e4   :  { %v4016_v60 = vpop.eup %4015 }
 0x2e5   :  { %v4018_v8 = vpop.eup %4017 }
 0x2e6   :  { %v4020_v35 = vpop.eup %4019  ;;  %v1642_v14 = vmul.f32 %v4018_v8, %v4016_v60  ;;  %v10283_v60 = vld [vmem:[#allocation215_spill] sm:$0xff]  ;;  %v10284_v8 = vld [vmem:[#allocation216_spill] sm:$0xff] }
 0x2e7   :  { %v4022_v50 = vpop.eup %4021 }
 0x2e8   :  { %v1643_v58 = vmul.f32 %v4022_v50, %v4020_v35  ;;  %v6777_v56 = vsel %vm1649_vm10, %v1642_v14, %v1289_v12  ;;  %v10285_v35 = vld [vmem:[#allocation217_spill] sm:$0xff]  ;;  %v10286_v14 = vld [vmem:[#allocation218_spill] sm:$0xff]  ;;  %v10287_v50 = vld [vmem:[#allocation219_spill] sm:$0xff] }
 0x2e9   :  { %v10290_v12 = vld [vmem:[#allocation222_spill] sm:$0xff] }
 0x2ea   :  { %v6769_v18 = vsel %vm1649_vm10, %v1643_v58, %v1290_v13  ;;  %v10288_v58 = vld [vmem:[#allocation220_spill] sm:$0xff]  ;;  %v10289_v13 = vld [vmem:[#allocation221_spill] sm:$0xff] }
 0x2eb   :  { %1729 = vmatprep.mubr.f32.mxu0 %v6769_v18  ;;  %1800 = vmatprep.mubr.f32.mxu1 %v6769_v18 }
 0x2ec   :  { %1730 = vmatmul.mubr.f32.vlgmr.msra.gmra.mxu0 %v6777_v56  ;;  %1801 = vmatmul.mubr.f32.vlgmr.msra.gmra.mxu1 %v6777_v56 }
 0x2ed   :  { %1808 = vmatpush1.msra.mxu0 %v6234_v29  ;;  %1879 = vmatpush1.msra.mxu1 %v6237_v30  ;;  %v10255_v29 = vld [vmem:[#allocation187_spill] sm:$0xff]  ;;  %v10256_v30 = vld [vmem:[#allocation188_spill] sm:$0xff] }
 0x2ee   :  { %1809 = vmatprep.subr.mxu0 %v6240_v23  ;;  %1871 = vmatprep.mubr.f32.mxu0 %v6769_v18  ;;  %v10257_v23 = vld [vmem:[#allocation189_spill] sm:$0xff] }
 0x2ef   :  { %1880 = vmatprep.subr.mxu1 %v6246_v53  ;;  %1942 = vmatprep.mubr.f32.mxu1 %v6769_v18  ;;  %v10258_v53 = vld [vmem:[#allocation190_spill] sm:$0xff] }
 0x2f0   :  { %1810 = vmatpush1.msra.mxu0 %v6252_v59  ;;  %1881 = vmatpush1.msra.mxu1 %v6255_v21  ;;  %v10259_v59 = vld [vmem:[#allocation191_spill] sm:$0xff]  ;;  %v10260_v21 = vld [vmem:[#allocation192_spill] sm:$0xff] }
 0x2f1   :  { %1811 = vmatprep.subr.mxu0 %v6258_v31  ;;  %1882 = vmatprep.subr.mxu1 %v6261_v55  ;;  %v10261_v31 = vld [vmem:[#allocation193_spill] sm:$0xff]  ;;  %v10262_v55 = vld [vmem:[#allocation194_spill] sm:$0xff] }
 0x2f2   :  { %1812 = vmatpush1.msra.mxu0 %v6264_v36  ;;  %1883 = vmatpush1.msra.mxu1 %v6267_v38  ;;  %v10263_v36 = vld [vmem:[#allocation195_spill] sm:$0xff]  ;;  %v10264_v38 = vld [vmem:[#allocation196_spill] sm:$0xff] }
 0x2f3   :  { %1813 = vmatprep.subr.mxu0 %v6270_v44  ;;  %1884 = vmatprep.subr.mxu1 %v6273_v45  ;;  %v10265_v44 = vld [vmem:[#allocation197_spill] sm:$0xff]  ;;  %v10266_v45 = vld [vmem:[#allocation198_spill] sm:$0xff] }
 0x2f4   :  { %1814 = vmatpush1.msra.mxu0 %v6276_v46  ;;  %1885 = vmatpush1.msra.mxu1 %v6279_v47  ;;  %v10267_v46 = vld [vmem:[#allocation199_spill] sm:$0xff]  ;;  %v10268_v47 = vld [vmem:[#allocation200_spill] sm:$0xff] }
 0x2f5   :  { %1815 = vmatprep.subr.mxu0 %v10252_v0  ;;  %1886 = vmatprep.subr.mxu1 %v10253_v28  ;;  %v10291_v0 = vld [vmem:[#allocation223_spill] sm:$0xff]  ;;  %v10292_v28 = vld [vmem:[#allocation224_spill] sm:$0xff] }
 0x2f6   :  { %1816 = vmatpush1.msra.mxu0 %v10254_v20  ;;  %1887 = vmatpush1.msra.mxu1 %v10255_v29  ;;  %v10293_v20 = vld [vmem:[#allocation225_spill] sm:$0xff]  ;;  %v10294_v29 = vld [vmem:[#allocation226_spill] sm:$0xff] }
 0x2f7   :  { %1817 = vmatprep.subr.mxu0 %v10256_v30  ;;  %1888 = vmatprep.subr.mxu1 %v10257_v23  ;;  %v10295_v30 = vld [vmem:[#allocation227_spill] sm:$0xff]  ;;  %v10296_v23 = vld [vmem:[#allocation228_spill] sm:$0xff] }
 0x2f8   :  { %1818 = vmatpush1.msra.mxu0 %v10258_v53  ;;  %1889 = vmatpush1.msra.mxu1 %v10259_v59  ;;  %v10297_v53 = vld [vmem:[#allocation229_spill] sm:$0xff]  ;;  %v10298_v59 = vld [vmem:[#allocation230_spill] sm:$0xff] }
 0x2f9   :  { %1819 = vmatprep.subr.mxu0 %v10260_v21  ;;  %1890 = vmatprep.subr.mxu1 %v10261_v31  ;;  %v10299_v21 = vld [vmem:[#allocation231_spill] sm:$0xff]  ;;  %v10300_v31 = vld [vmem:[#allocation232_spill] sm:$0xff] }
 0x2fa   :  { %1820 = vmatpush1.msra.mxu0 %v10262_v55  ;;  %1891 = vmatpush1.msra.mxu1 %v10263_v36  ;;  %v10301_v55 = vld [vmem:[#allocation233_spill] sm:$0xff]  ;;  %v10302_v36 = vld [vmem:[#allocation234_spill] sm:$0xff] }
 0x2fb   :  { %1821 = vmatprep.subr.mxu0 %v10264_v38  ;;  %1892 = vmatprep.subr.mxu1 %v10265_v44  ;;  %v10303_v38 = vld [vmem:[#allocation235_spill] sm:$0xff]  ;;  %v10304_v44 = vld [vmem:[#allocation236_spill] sm:$0xff] }
 0x2fc   :  { %1822 = vmatpush1.msra.mxu0 %v10266_v45  ;;  %1893 = vmatpush1.msra.mxu1 %v10267_v46  ;;  %v10305_v45 = vld [vmem:[#allocation237_spill] sm:$0xff]  ;;  %v10306_v46 = vld [vmem:[#allocation238_spill] sm:$0xff] }
 0x2fd   :  { %1823 = vmatprep.subr.mxu0 %v10268_v47  ;;  %1894 = vmatprep.subr.mxu1 %v10269_v63  ;;  %v10307_v47 = vld [vmem:[#allocation239_spill] sm:$0xff]  ;;  %v10308_v63 = vld [vmem:[#allocation240_spill] sm:$0xff] }
 0x2fe   :  { %1824 = vmatpush1.msra.mxu0 %v10270_v15  ;;  %1895 = vmatpush1.msra.mxu1 %v10271_v40  ;;  %v10309_v15 = vld [vmem:[#allocation241_spill] sm:$0xff]  ;;  %v10310_v40 = vld [vmem:[#allocation242_spill] sm:$0xff] }
 0x2ff   :  { %1825 = vmatprep.subr.mxu0 %v10272_v33  ;;  %1896 = vmatprep.subr.mxu1 %v10273_v16  ;;  %v10311_v33 = vld [vmem:[#allocation243_spill] sm:$0xff]  ;;  %v10312_v16 = vld [vmem:[#allocation244_spill] sm:$0xff] }
 0x300   :  { %1826 = vmatpush1.msra.mxu0 %v10274_v34  ;;  %1897 = vmatpush1.msra.mxu1 %v10275_v52  ;;  %v10313_v34 = vld [vmem:[#allocation245_spill] sm:$0xff]  ;;  %v10314_v52 = vld [vmem:[#allocation246_spill] sm:$0xff] }
 0x301   :  { %1827 = vmatprep.subr.mxu0 %v10276_v11  ;;  %1898 = vmatprep.subr.mxu1 %v10277_v37  ;;  %v10315_v11 = vld [vmem:[#allocation247_spill] sm:$0xff]  ;;  %v10316_v37 = vld [vmem:[#allocation248_spill] sm:$0xff] }
 0x302   :  { %1828 = vmatpush1.msra.mxu0 %v10278_v27  ;;  %1899 = vmatpush1.msra.mxu1 %v10279_v61  ;;  %v10317_v27 = vld [vmem:[#allocation249_spill] sm:$0xff]  ;;  %v10318_v61 = vld [vmem:[#allocation250_spill] sm:$0xff] }
 0x303   :  { %1829 = vmatprep.subr.mxu0 %v10280_v10  ;;  %1900 = vmatprep.subr.mxu1 %v10281_v62  ;;  %v10319_v10 = vld [vmem:[#allocation251_spill] sm:$0xff]  ;;  %v10320_v62 = vld [vmem:[#allocation252_spill] sm:$0xff] }
 0x304   :  { %1830 = vmatpush1.msra.mxu0 %v10282_v39  ;;  %1901 = vmatpush1.msra.mxu1 %v10283_v60  ;;  %v10321_v39 = vld [vmem:[#allocation253_spill] sm:$0xff]  ;;  %v6873_v60 = vld [vmem:[#allocation6 + $0x628] sm:$0xff] }
 0x305   :  { %1831 = vmatprep.subr.mxu0 %v10284_v8  ;;  %1902 = vmatprep.subr.mxu1 %v10285_v35  ;;  %v6876_v8 = vld [vmem:[#allocation6 + $0x638] sm:$0xff]  ;;  %v6879_v35 = vld [vmem:[#allocation6 + $0x620] sm:$0xff] }
 0x306   :  { %1832 = vmatpush1.msra.mxu0 %v10286_v14  ;;  %1903 = vmatpush1.msra.mxu1 %v10287_v50  ;;  %v6900_v14 = vld [vmem:[#allocation6 + $0x5b8] sm:$0xff]  ;;  %v6903_v50 = vld [vmem:[#allocation6 + $0x5a0] sm:$0xff] }
 0x307   :  { %1833 = vmatprep.subr.mxu0 %v10288_v58  ;;  %1904 = vmatprep.subr.mxu1 %v10289_v13  ;;  %v6906_v58 = vld [vmem:[#allocation6 + $0x5b0] sm:$0xff]  ;;  %v6909_v13 = vld [vmem:[#allocation6 + $0x568] sm:$0xff] }
 0x308   :  { %1834 = vmatpush1.msra.mxu0 %v10290_v12  ;;  %1905 = vmatpush1.msra.mxu1 %v10291_v0  ;;  %v6912_v12 = vld [vmem:[#allocation6 + $0x578] sm:$0xff]  ;;  %v6915_v0 = vld [vmem:[#allocation6 + $0x560] sm:$0xff] }
 0x309   :  { %1835 = vmatprep.subr.mxu0 %v10292_v28  ;;  %1906 = vmatprep.subr.mxu1 %v10293_v20  ;;  %v6918_v28 = vld [vmem:[#allocation6 + $0x570] sm:$0xff]  ;;  %v6921_v20 = vld [vmem:[#allocation6 + $0x528] sm:$0xff] }
 0x30a   :  { %1836 = vmatpush1.msra.mxu0 %v10294_v29  ;;  %1907 = vmatpush1.msra.mxu1 %v10295_v30  ;;  %v6924_v29 = vld [vmem:[#allocation6 + $0x538] sm:$0xff]  ;;  %v6927_v30 = vld [vmem:[#allocation6 + $0x520] sm:$0xff] }
 0x30b   :  { %1837 = vmatprep.subr.mxu0 %v10296_v23  ;;  %1908 = vmatprep.subr.mxu1 %v10297_v53  ;;  %v6930_v23 = vld [vmem:[#allocation6 + $0x530] sm:$0xff]  ;;  %v6933_v53 = vld [vmem:[#allocation6 + $0x4e8] sm:$0xff] }
 0x30c   :  { %1838 = vmatpush1.msra.mxu0 %v10298_v59  ;;  %1909 = vmatpush1.msra.mxu1 %v10299_v21  ;;  %v6936_v59 = vld [vmem:[#allocation6 + $0x4f8] sm:$0xff]  ;;  %v6939_v21 = vld [vmem:[#allocation6 + $0x4e0] sm:$0xff] }
 0x30d   :  { %1839 = vmatprep.subr.mxu0 %v10300_v31  ;;  %1910 = vmatprep.subr.mxu1 %v10301_v55  ;;  %v6942_v31 = vld [vmem:[#allocation6 + $0x4f0] sm:$0xff]  ;;  %v6945_v55 = vld [vmem:[#allocation6 + $0x4a8] sm:$0xff] }
 0x30e   :  { %1840 = vmatpush2.msra.mxu0 %v10302_v36  ;;  %1911 = vmatpush2.msra.mxu1 %v10303_v38  ;;  %v6948_v36 = vld [vmem:[#allocation6 + $0x4b8] sm:$0xff]  ;;  %v6951_v38 = vld [vmem:[#allocation6 + $0x4a0] sm:$0xff] }
 0x30f   :  { %1841 = vmatprep.subr.mxu0 %v10304_v44  ;;  %1912 = vmatprep.subr.mxu1 %v10305_v45  ;;  %v6954_v44 = vld [vmem:[#allocation6 + $0x4b0] sm:$0xff]  ;;  %v6957_v45 = vld [vmem:[#allocation6 + $0x468] sm:$0xff] }
 0x310   :  { %1842 = vmatpush2.msra.mxu0 %v10306_v46  ;;  %1913 = vmatpush2.msra.mxu1 %v10307_v47  ;;  %v6960_v46 = vld [vmem:[#allocation6 + $0x478] sm:$0xff]  ;;  %v6963_v47 = vld [vmem:[#allocation6 + $0x460] sm:$0xff] }
 0x311   :  { %1843 = vmatprep.subr.mxu0 %v10308_v63  ;;  %1914 = vmatprep.subr.mxu1 %v10309_v15  ;;  %v6966_v63 = vld [vmem:[#allocation6 + $0x470] sm:$0xff]  ;;  %v6969_v15 = vld [vmem:[#allocation6 + $0x428] sm:$0xff] }
 0x312   :  { %1844 = vmatpush2.msra.mxu0 %v10310_v40  ;;  %1915 = vmatpush2.msra.mxu1 %v10311_v33  ;;  %v6972_v40 = vld [vmem:[#allocation6 + $0x438] sm:$0xff]  ;;  %v6975_v33 = vld [vmem:[#allocation6 + $0x420] sm:$0xff] }
 0x313   :  { %1845 = vmatprep.subr.mxu0 %v10312_v16  ;;  %1916 = vmatprep.subr.mxu1 %v10313_v34  ;;  %v6978_v16 = vld [vmem:[#allocation6 + $0x430] sm:$0xff]  ;;  %v6983_v34 = vld [vmem:[#allocation6 + $0x3c8] sm:$0xff] }
 0x314   :  { %1846 = vmatpush2.msra.mxu0 %v10314_v52  ;;  %1917 = vmatpush2.msra.mxu1 %v10315_v11  ;;  %10322 = vst [vmem:[#allocation23_spill] sm:$0xff] %v6978_v16  ;;  %10323 = vst [vmem:[#allocation24_spill] sm:$0xff] %v6983_v34  ;;  %v6986_v52 = vld [vmem:[#allocation6 + $0x3d8] sm:$0xff]  ;;  %v6989_v11 = vld [vmem:[#allocation6 + $0x3c0] sm:$0xff] }
 0x315   :  { %1847 = vmatprep.subr.mxu0 %v10316_v37  ;;  %1918 = vmatprep.subr.mxu1 %v10317_v27  ;;  %10324 = vst [vmem:[#allocation25_spill] sm:$0xff] %v6986_v52  ;;  %10325 = vst [vmem:[#allocation26_spill] sm:$0xff] %v6989_v11  ;;  %v6992_v37 = vld [vmem:[#allocation6 + $0x3d0] sm:$0xff]  ;;  %v6995_v27 = vld [vmem:[#allocation6 + $0x388] sm:$0xff] }
 0x316   :  { %1848 = vmatpush2.msra.mxu0 %v10318_v61  ;;  %1919 = vmatpush2.msra.mxu1 %v10319_v10  ;;  %10326 = vst [vmem:[#allocation27_spill] sm:$0xff] %v6992_v37  ;;  %10327 = vst [vmem:[#allocation28_spill] sm:$0xff] %v6995_v27  ;;  %v6998_v61 = vld [vmem:[#allocation6 + $0x398] sm:$0xff]  ;;  %v7001_v10 = vld [vmem:[#allocation6 + $0x380] sm:$0xff] }
 0x317   :  { %1849 = vmatprep.subr.mxu0 %v10320_v62  ;;  %1920 = vmatprep.subr.mxu1 %v10321_v39  ;;  %10328 = vst [vmem:[#allocation29_spill] sm:$0xff] %v6998_v61  ;;  %10329 = vst [vmem:[#allocation30_spill] sm:$0xff] %v7001_v10  ;;  %v7004_v62 = vld [vmem:[#allocation6 + $0x390] sm:$0xff]  ;;  %v7007_v39 = vld [vmem:[#allocation6 + $0x348] sm:$0xff] }
 0x318   :  { %1850 = vmatpush2.msra.mxu0 %v6492_v51  ;;  %1921 = vmatpush2.msra.mxu1 %v6495_v25  ;;  %v6882_v51 = vld [vmem:[#allocation6 + $0x630] sm:$0xff]  ;;  %v6897_v25 = vld [vmem:[#allocation6 + $0x5a8] sm:$0xff]  ;;  %10330 = vst [vmem:[#allocation31_spill] sm:$0xff] %v7004_v62  ;;  %10331 = vst [vmem:[#allocation32_spill] sm:$0xff] %v7007_v39 }
 0x319   :  { %1851 = vmatprep.subr.mxu0 %v6498_v49  ;;  %1922 = vmatprep.subr.mxu1 %v6501_v48  ;;  %v6885_v49 = vld [vmem:[#allocation6 + $0x5e8] sm:$0xff]  ;;  %v6888_v48 = vld [vmem:[#allocation6 + $0x5f8] sm:$0xff] }
 0x31a   :  { %1852 = vmatpush2.msra.mxu0 %v6504_v42  ;;  %1923 = vmatpush2.msra.mxu1 %v6507_v54  ;;  %v6891_v42 = vld [vmem:[#allocation6 + $0x5e0] sm:$0xff]  ;;  %v6894_v54 = vld [vmem:[#allocation6 + $0x5f0] sm:$0xff] }
 0x31b   :  { %1853 = vmatprep.subr.mxu0 %v6873_v60  ;;  %1924 = vmatprep.subr.mxu1 %v6876_v8 }
 0x31c   :  { %1854 = vmatpush2.msra.mxu0 %v6879_v35  ;;  %1925 = vmatpush2.msra.mxu1 %v6882_v51 }
 0x31d   :  { %1855 = vmatprep.subr.mxu0 %v6885_v49  ;;  %1926 = vmatprep.subr.mxu1 %v6888_v48 }
 0x31e   :  { %1856 = vmatpush2.msra.mxu0 %v6891_v42  ;;  %1927 = vmatpush2.msra.mxu1 %v6894_v54 }
 0x31f   :  { %1857 = vmatprep.subr.mxu0 %v6897_v25  ;;  %1928 = vmatprep.subr.mxu1 %v6900_v14 }
 0x320   :  { %1858 = vmatpush2.msra.mxu0 %v6903_v50  ;;  %1929 = vmatpush2.msra.mxu1 %v6906_v58 }
 0x321   :  { %1859 = vmatprep.subr.mxu0 %v6909_v13  ;;  %1930 = vmatprep.subr.mxu1 %v6912_v12 }
 0x322   :  { %1860 = vmatpush2.msra.mxu0 %v6915_v0  ;;  %1931 = vmatpush2.msra.mxu1 %v6918_v28 }
 0x323   :  { %1861 = vmatprep.subr.mxu0 %v6921_v20  ;;  %1932 = vmatprep.subr.mxu1 %v6924_v29 }
 0x324   :  { %1862 = vmatpush2.msra.mxu0 %v6927_v30  ;;  %1933 = vmatpush2.msra.mxu1 %v6930_v23 }
 0x325   :  { %1863 = vmatprep.subr.mxu0 %v6933_v53  ;;  %1934 = vmatprep.subr.mxu1 %v6936_v59 }
 0x326   :  { %1864 = vmatpush2.msra.mxu0 %v6939_v21  ;;  %1935 = vmatpush2.msra.mxu1 %v6942_v31 }
 0x327   :  { %1865 = vmatprep.subr.mxu0 %v6945_v55  ;;  %1936 = vmatprep.subr.mxu1 %v6948_v36 }
 0x328   :  { %1866 = vmatpush2.msra.mxu0 %v6951_v38  ;;  %1937 = vmatpush2.msra.mxu1 %v6954_v44 }
 0x329   :  { %1867 = vmatprep.subr.mxu0 %v6957_v45  ;;  %1938 = vmatprep.subr.mxu1 %v6960_v46 }
 0x32a   :  { %1868 = vmatpush2.msra.mxu0 %v6963_v47  ;;  %1939 = vmatpush2.msra.mxu1 %v6966_v63 }
 0x32b   :  { %1869 = vmatprep.subr.mxu0 %v6969_v15  ;;  %1940 = vmatprep.subr.mxu1 %v6972_v40 }
 0x32c   :  { %1870 = vmatpush2.msra.mxu0 %v6975_v33  ;;  %1941 = vmatpush2.msra.mxu1 %v6978_v16 }
 0x32d   :  { %1872 = vmatmul.mubr.f32.vlgmr.msra.gmra.mxu0 %v6777_v56  ;;  %1943 = vmatmul.mubr.f32.vlgmr.msra.gmra.mxu1 %v6777_v56 }
 0x32e   :  { %2026 = vmatprep.subr.mxu0 %v6983_v34  ;;  %2097 = vmatprep.subr.mxu1 %v6986_v52  ;;  %v10447_v34 = vld [vmem:[#allocation183_spill] sm:$0xff] }
 0x32f   :  { %2027 = vmatpush1.msra.mxu0 %v6989_v11  ;;  %2098 = vmatpush1.msra.mxu1 %v6992_v37  ;;  %v7010_v37 = vld [vmem:[#allocation6 + $0x358] sm:$0xff] }
 0x330   :  { %2028 = vmatprep.subr.mxu0 %v6995_v27  ;;  %2099 = vmatprep.subr.mxu1 %v6998_v61  ;;  %10332 = vst [vmem:[#allocation33_spill] sm:$0xff] %v7010_v37  ;;  %v7013_v27 = vld [vmem:[#allocation6 + $0x340] sm:$0xff]  ;;  %v7016_v61 = vld [vmem:[#allocation6 + $0x350] sm:$0xff] }
 0x331   :  { %2029 = vmatpush1.msra.mxu0 %v7001_v10  ;;  %2100 = vmatpush1.msra.mxu1 %v7004_v62  ;;  %10333 = vst [vmem:[#allocation34_spill] sm:$0xff] %v7013_v27  ;;  %10334 = vst [vmem:[#allocation35_spill] sm:$0xff] %v7016_v61  ;;  %v7019_v10 = vld [vmem:[#allocation6 + $0x308] sm:$0xff]  ;;  %v7022_v62 = vld [vmem:[#allocation6 + $0x318] sm:$0xff] }
 0x332   :  { %2030 = vmatprep.subr.mxu0 %v7007_v39  ;;  %2101 = vmatprep.subr.mxu1 %v7010_v37  ;;  %10335 = vst [vmem:[#allocation36_spill] sm:$0xff] %v7019_v10  ;;  %10336 = vst [vmem:[#allocation37_spill] sm:$0xff] %v7022_v62  ;;  %v7025_v39 = vld [vmem:[#allocation6 + $0x300] sm:$0xff]  ;;  %v7028_v37 = vld [vmem:[#allocation6 + $0x310] sm:$0xff] }
 0x333   :  { %2031 = vmatpush1.msra.mxu0 %v7013_v27  ;;  %2102 = vmatpush1.msra.mxu1 %v7016_v61  ;;  %10337 = vst [vmem:[#allocation38_spill] sm:$0xff] %v7025_v39  ;;  %10338 = vst [vmem:[#allocation39_spill] sm:$0xff] %v7028_v37  ;;  %v7031_v27 = vld [vmem:[#allocation6 + $0x2c8] sm:$0xff]  ;;  %v7034_v61 = vld [vmem:[#allocation6 + $0x2d8] sm:$0xff] }
 0x334   :  { %2032 = vmatprep.subr.mxu0 %v7019_v10  ;;  %2103 = vmatprep.subr.mxu1 %v7022_v62  ;;  %10339 = vst [vmem:[#allocation40_spill] sm:$0xff] %v7031_v27  ;;  %10340 = vst [vmem:[#allocation41_spill] sm:$0xff] %v7034_v61  ;;  %v7037_v10 = vld [vmem:[#allocation6 + $0x2c0] sm:$0xff]  ;;  %v7040_v62 = vld [vmem:[#allocation6 + $0x2d0] sm:$0xff] }
 0x335   :  { %2033 = vmatpush1.msra.mxu0 %v7025_v39  ;;  %2104 = vmatpush1.msra.mxu1 %v7028_v37  ;;  %10341 = vst [vmem:[#allocation42_spill] sm:$0xff] %v7037_v10  ;;  %10342 = vst [vmem:[#allocation43_spill] sm:$0xff] %v7040_v62  ;;  %v7043_v39 = vld [vmem:[#allocation6 + $0x288] sm:$0xff]  ;;  %v7046_v37 = vld [vmem:[#allocation6 + $0x298] sm:$0xff] }
 0x336   :  { %2034 = vmatprep.subr.mxu0 %v7031_v27  ;;  %2105 = vmatprep.subr.mxu1 %v7034_v61  ;;  %10343 = vst [vmem:[#allocation44_spill] sm:$0xff] %v7043_v39  ;;  %10344 = vst [vmem:[#allocation45_spill] sm:$0xff] %v7046_v37  ;;  %v7049_v27 = vld [vmem:[#allocation6 + $0x280] sm:$0xff]  ;;  %v7052_v61 = vld [vmem:[#allocation6 + $0x290] sm:$0xff] }
 0x337   :  { %2035 = vmatpush1.msra.mxu0 %v7037_v10  ;;  %2106 = vmatpush1.msra.mxu1 %v7040_v62  ;;  %10345 = vst [vmem:[#allocation46_spill] sm:$0xff] %v7049_v27  ;;  %10346 = vst [vmem:[#allocation47_spill] sm:$0xff] %v7052_v61  ;;  %v7055_v10 = vld [vmem:[#allocation6 + $0x248] sm:$0xff]  ;;  %v7058_v62 = vld [vmem:[#allocation6 + $0x258] sm:$0xff] }
 0x338   :  { %2036 = vmatprep.subr.mxu0 %v7043_v39  ;;  %2107 = vmatprep.subr.mxu1 %v7046_v37  ;;  %10347 = vst [vmem:[#allocation48_spill] sm:$0xff] %v7055_v10  ;;  %10348 = vst [vmem:[#allocation49_spill] sm:$0xff] %v7058_v62  ;;  %v7061_v39 = vld [vmem:[#allocation6 + $0x240] sm:$0xff]  ;;  %v7064_v37 = vld [vmem:[#allocation6 + $0x250] sm:$0xff] }
 0x339   :  { %2037 = vmatpush1.msra.mxu0 %v7049_v27  ;;  %2108 = vmatpush1.msra.mxu1 %v7052_v61  ;;  %10349 = vst [vmem:[#allocation50_spill] sm:$0xff] %v7061_v39  ;;  %10350 = vst [vmem:[#allocation51_spill] sm:$0xff] %v7064_v37  ;;  %v7067_v27 = vld [vmem:[#allocation6 + $0x208] sm:$0xff]  ;;  %v7070_v61 = vld [vmem:[#allocation6 + $0x218] sm:$0xff] }
 0x33a   :  { %2038 = vmatprep.subr.mxu0 %v7055_v10  ;;  %2109 = vmatprep.subr.mxu1 %v7058_v62  ;;  %10351 = vst [vmem:[#allocation52_spill] sm:$0xff] %v7067_v27  ;;  %10352 = vst [vmem:[#allocation53_spill] sm:$0xff] %v7070_v61  ;;  %v7073_v10 = vld [vmem:[#allocation6 + $0x200] sm:$0xff]  ;;  %v7076_v62 = vld [vmem:[#allocation6 + $0x210] sm:$0xff] }
 0x33b   :  { %2039 = vmatpush1.msra.mxu0 %v7061_v39  ;;  %2110 = vmatpush1.msra.mxu1 %v7064_v37  ;;  %10353 = vst [vmem:[#allocation54_spill] sm:$0xff] %v7073_v10  ;;  %10354 = vst [vmem:[#allocation55_spill] sm:$0xff] %v7076_v62  ;;  %v7079_v39 = vld [vmem:[#allocation6 + $0x1c8] sm:$0xff]  ;;  %v7082_v37 = vld [vmem:[#allocation6 + $0x1d8] sm:$0xff] }
 0x33c   :  { %2040 = vmatprep.subr.mxu0 %v7067_v27  ;;  %2111 = vmatprep.subr.mxu1 %v7070_v61  ;;  %10355 = vst [vmem:[#allocation56_spill] sm:$0xff] %v7079_v39  ;;  %10356 = vst [vmem:[#allocation57_spill] sm:$0xff] %v7082_v37  ;;  %v7085_v27 = vld [vmem:[#allocation6 + $0x1c0] sm:$0xff]  ;;  %v7088_v61 = vld [vmem:[#allocation6 + $0x1d0] sm:$0xff] }
 0x33d   :  { %2041 = vmatpush1.msra.mxu0 %v7073_v10  ;;  %2112 = vmatpush1.msra.mxu1 %v7076_v62  ;;  %10357 = vst [vmem:[#allocation58_spill] sm:$0xff] %v7085_v27  ;;  %10358 = vst [vmem:[#allocation59_spill] sm:$0xff] %v7088_v61  ;;  %v7091_v10 = vld [vmem:[#allocation6 + $0x188] sm:$0xff]  ;;  %v7094_v62 = vld [vmem:[#allocation6 + $0x198] sm:$0xff] }
 0x33e   :  { %2042 = vmatprep.subr.mxu0 %v7079_v39  ;;  %2113 = vmatprep.subr.mxu1 %v7082_v37  ;;  %10359 = vst [vmem:[#allocation60_spill] sm:$0xff] %v7091_v10  ;;  %10360 = vst [vmem:[#allocation61_spill] sm:$0xff] %v7094_v62  ;;  %v7097_v39 = vld [vmem:[#allocation6 + $0x180] sm:$0xff]  ;;  %v7100_v37 = vld [vmem:[#allocation6 + $0x190] sm:$0xff] }
 0x33f   :  { %2043 = vmatpush1.msra.mxu0 %v7085_v27  ;;  %2114 = vmatpush1.msra.mxu1 %v7088_v61  ;;  %10361 = vst [vmem:[#allocation62_spill] sm:$0xff] %v7097_v39  ;;  %10362 = vst [vmem:[#allocation65_spill] sm:$0xff] %v7100_v37  ;;  %v7103_v27 = vld [vmem:[#allocation6 + $0x148] sm:$0xff]  ;;  %v7106_v61 = vld [vmem:[#allocation6 + $0x158] sm:$0xff] }
 0x340   :  { %2044 = vmatprep.subr.mxu0 %v7091_v10  ;;  %2115 = vmatprep.subr.mxu1 %v7094_v62  ;;  %10363 = vst [vmem:[#allocation66_spill] sm:$0xff] %v7103_v27  ;;  %10364 = vst [vmem:[#allocation67_spill] sm:$0xff] %v7106_v61  ;;  %v7109_v10 = vld [vmem:[#allocation6 + $0x140] sm:$0xff]  ;;  %v7112_v62 = vld [vmem:[#allocation6 + $0x150] sm:$0xff] }
 0x341   :  { %2045 = vmatpush1.msra.mxu0 %v7097_v39  ;;  %2116 = vmatpush1.msra.mxu1 %v7100_v37  ;;  %10365 = vst [vmem:[#allocation68_spill] sm:$0xff] %v7109_v10  ;;  %10366 = vst [vmem:[#allocation71_spill] sm:$0xff] %v7112_v62  ;;  %v7115_v39 = vld [vmem:[#allocation6 + $0x108] sm:$0xff]  ;;  %v7118_v37 = vld [vmem:[#allocation6 + $0x118] sm:$0xff] }
 0x342   :  { %2046 = vmatprep.subr.mxu0 %v7103_v27  ;;  %2117 = vmatprep.subr.mxu1 %v7106_v61  ;;  %10367 = vst [vmem:[#allocation72_spill] sm:$0xff] %v7115_v39  ;;  %10368 = vst [vmem:[#allocation73_spill] sm:$0xff] %v7118_v37  ;;  %v7121_v27 = vld [vmem:[#allocation6 + $0x100] sm:$0xff]  ;;  %v7124_v61 = vld [vmem:[#allocation6 + $0x110] sm:$0xff] }
 0x343   :  { %2047 = vmatpush1.msra.mxu0 %v7109_v10  ;;  %2118 = vmatpush1.msra.mxu1 %v7112_v62  ;;  %10369 = vst [vmem:[#allocation74_spill] sm:$0xff] %v7121_v27  ;;  %10370 = vst [vmem:[#allocation77_spill] sm:$0xff] %v7124_v61  ;;  %v7127_v10 = vld [vmem:[#allocation6 + $0xc8] sm:$0xff]  ;;  %v7130_v62 = vld [vmem:[#allocation6 + $0xd8] sm:$0xff] }
 0x344   :  { %2048 = vmatprep.subr.mxu0 %v7115_v39  ;;  %2119 = vmatprep.subr.mxu1 %v7118_v37  ;;  %10371 = vst [vmem:[#allocation78_spill] sm:$0xff] %v7127_v10  ;;  %10372 = vst [vmem:[#allocation79_spill] sm:$0xff] %v7130_v62  ;;  %v7133_v39 = vld [vmem:[#allocation6 + $0xc0] sm:$0xff]  ;;  %v7136_v37 = vld [vmem:[#allocation6 + $0xd0] sm:$0xff] }
 0x345   :  { %2049 = vmatpush1.msra.mxu0 %v7121_v27  ;;  %2120 = vmatpush1.msra.mxu1 %v7124_v61  ;;  %10373 = vst [vmem:[#allocation80_spill] sm:$0xff] %v7133_v39  ;;  %10374 = vst [vmem:[#allocation83_spill] sm:$0xff] %v7136_v37  ;;  %v7139_v27 = vld [vmem:[#allocation6 + $0x88] sm:$0xff]  ;;  %v7142_v61 = vld [vmem:[#allocation6 + $0x98] sm:$0xff] }
 0x346   :  { %2050 = vmatprep.subr.mxu0 %v7127_v10  ;;  %2121 = vmatprep.subr.mxu1 %v7130_v62  ;;  %10375 = vst [vmem:[#allocation84_spill] sm:$0xff] %v7139_v27  ;;  %10376 = vst [vmem:[#allocation85_spill] sm:$0xff] %v7142_v61  ;;  %v7145_v10 = vld [vmem:[#allocation6 + $0x80] sm:$0xff]  ;;  %v7148_v62 = vld [vmem:[#allocation6 + $0x90] sm:$0xff] }
 0x347   :  { %2051 = vmatpush1.msra.mxu0 %v7133_v39  ;;  %2122 = vmatpush1.msra.mxu1 %v7136_v37  ;;  %10377 = vst [vmem:[#allocation86_spill] sm:$0xff] %v7145_v10  ;;  %10378 = vst [vmem:[#allocation89_spill] sm:$0xff] %v7148_v62  ;;  %v7151_v39 = vld [vmem:[#allocation6 + $0x48] sm:$0xff]  ;;  %v7154_v37 = vld [vmem:[#allocation6 + $0x58] sm:$0xff] }
 0x348   :  { %2052 = vmatprep.subr.mxu0 %v7139_v27  ;;  %2123 = vmatprep.subr.mxu1 %v7142_v61  ;;  %10379 = vst [vmem:[#allocation90_spill] sm:$0xff] %v7151_v39  ;;  %10380 = vst [vmem:[#allocation91_spill] sm:$0xff] %v7154_v37  ;;  %v7157_v27 = vld [vmem:[#allocation6 + $0x40] sm:$0xff]  ;;  %v7160_v61 = vld [vmem:[#allocation6 + $0x50] sm:$0xff] }
 0x349   :  { %2053 = vmatpush1.msra.mxu0 %v7145_v10  ;;  %2124 = vmatpush1.msra.mxu1 %v7148_v62  ;;  %10381 = vst [vmem:[#allocation92_spill] sm:$0xff] %v7157_v27  ;;  %10382 = vst [vmem:[#allocation95_spill] sm:$0xff] %v7160_v61  ;;  %v7163_v10 = vld [vmem:[#allocation6 + $0x8] sm:$0xff]  ;;  %v7166_v62 = vld [vmem:[#allocation6 + $0x18] sm:$0xff] }
 0x34a   :  { %2054 = vmatprep.subr.mxu0 %v7151_v39  ;;  %2125 = vmatprep.subr.mxu1 %v7154_v37  ;;  %10383 = vst [vmem:[#allocation96_spill] sm:$0xff] %v7163_v10  ;;  %10384 = vst [vmem:[#allocation97_spill] sm:$0xff] %v7166_v62  ;;  %v7169_v39 = vld [vmem:[#allocation6] sm:$0xff]  ;;  %v7172_v37 = vld [vmem:[#allocation6 + $0x10] sm:$0xff] }
 0x34b   :  { %2055 = vmatpush1.msra.mxu0 %v7157_v27  ;;  %2126 = vmatpush1.msra.mxu1 %v7160_v61  ;;  %10385 = vst [vmem:[#allocation98_spill] sm:$0xff] %v7169_v39  ;;  %10386 = vst [vmem:[#allocation101_spill] sm:$0xff] %v7172_v37  ;;  %v7175_v27 = vld [vmem:[#allocation6 + $0x7c8] sm:$0xff]  ;;  %v7178_v61 = vld [vmem:[#allocation6 + $0x7d8] sm:$0xff] }
 0x34c   :  { %2056 = vmatprep.subr.mxu0 %v7163_v10  ;;  %2127 = vmatprep.subr.mxu1 %v7166_v62  ;;  %10387 = vst [vmem:[#allocation102_spill] sm:$0xff] %v7175_v27  ;;  %10388 = vst [vmem:[#allocation103_spill] sm:$0xff] %v7178_v61  ;;  %v7181_v10 = vld [vmem:[#allocation6 + $0x7c0] sm:$0xff]  ;;  %v7184_v62 = vld [vmem:[#allocation6 + $0x7d0] sm:$0xff] }
 0x34d   :  { %2057 = vmatpush1.msra.mxu0 %v7169_v39  ;;  %2128 = vmatpush1.msra.mxu1 %v7172_v37  ;;  %10389 = vst [vmem:[#allocation104_spill] sm:$0xff] %v7181_v10  ;;  %10390 = vst [vmem:[#allocation107_spill] sm:$0xff] %v7184_v62  ;;  %v7187_v39 = vld [vmem:[#allocation6 + $0x788] sm:$0xff]  ;;  %v7190_v37 = vld [vmem:[#allocation6 + $0x798] sm:$0xff] }
 0x34e   :  { %2058 = vmatprep.subr.mxu0 %v7175_v27  ;;  %2129 = vmatprep.subr.mxu1 %v7178_v61  ;;  %10391 = vst [vmem:[#allocation108_spill] sm:$0xff] %v7187_v39  ;;  %10392 = vst [vmem:[#allocation109_spill] sm:$0xff] %v7190_v37  ;;  %v7193_v27 = vld [vmem:[#allocation6 + $0x780] sm:$0xff]  ;;  %v7196_v61 = vld [vmem:[#allocation6 + $0x790] sm:$0xff] }
 0x34f   :  { %2059 = vmatpush2.msra.mxu0 %v7181_v10  ;;  %2130 = vmatpush2.msra.mxu1 %v7184_v62  ;;  %10393 = vst [vmem:[#allocation110_spill] sm:$0xff] %v7193_v27  ;;  %10394 = vst [vmem:[#allocation113_spill] sm:$0xff] %v7196_v61  ;;  %v7199_v10 = vld [vmem:[#allocation6 + $0x748] sm:$0xff]  ;;  %v7202_v62 = vld [vmem:[#allocation6 + $0x758] sm:$0xff] }
 0x350   :  { %2060 = vmatprep.subr.mxu0 %v7187_v39  ;;  %2131 = vmatprep.subr.mxu1 %v7190_v37  ;;  %10395 = vst [vmem:[#allocation114_spill] sm:$0xff] %v7199_v10  ;;  %10396 = vst [vmem:[#allocation115_spill] sm:$0xff] %v7202_v62  ;;  %v7205_v39 = vld [vmem:[#allocation6 + $0x740] sm:$0xff]  ;;  %v7208_v37 = vld [vmem:[#allocation6 + $0x750] sm:$0xff] }
 0x351   :  { %2061 = vmatpush2.msra.mxu0 %v7193_v27  ;;  %2132 = vmatpush2.msra.mxu1 %v7196_v61  ;;  %10397 = vst [vmem:[#allocation116_spill] sm:$0xff] %v7205_v39  ;;  %10398 = vst [vmem:[#allocation119_spill] sm:$0xff] %v7208_v37  ;;  %v7211_v27 = vld [vmem:[#allocation6 + $0x708] sm:$0xff]  ;;  %v7214_v61 = vld [vmem:[#allocation6 + $0x718] sm:$0xff] }
 0x352   :  { %2062 = vmatprep.subr.mxu0 %v7199_v10  ;;  %2133 = vmatprep.subr.mxu1 %v7202_v62  ;;  %10399 = vst [vmem:[#allocation120_spill] sm:$0xff] %v7211_v27  ;;  %10400 = vst [vmem:[#allocation121_spill] sm:$0xff] %v7214_v61  ;;  %v7217_v10 = vld [vmem:[#allocation6 + $0x700] sm:$0xff]  ;;  %v7220_v62 = vld [vmem:[#allocation6 + $0x710] sm:$0xff] }
 0x353   :  { %2063 = vmatpush2.msra.mxu0 %v7205_v39  ;;  %2134 = vmatpush2.msra.mxu1 %v7208_v37  ;;  %10401 = vst [vmem:[#allocation122_spill] sm:$0xff] %v7217_v10  ;;  %10402 = vst [vmem:[#allocation125_spill] sm:$0xff] %v7220_v62  ;;  %v7223_v39 = vld [vmem:[#allocation6 + $0x6c8] sm:$0xff]  ;;  %v7226_v37 = vld [vmem:[#allocation6 + $0x6d8] sm:$0xff] }
 0x354   :  { %2064 = vmatprep.subr.mxu0 %v7211_v27  ;;  %2135 = vmatprep.subr.mxu1 %v7214_v61  ;;  %10403 = vst [vmem:[#allocation126_spill] sm:$0xff] %v7223_v39  ;;  %10404 = vst [vmem:[#allocation127_spill] sm:$0xff] %v7226_v37  ;;  %v7229_v27 = vld [vmem:[#allocation6 + $0x6c0] sm:$0xff]  ;;  %v7232_v61 = vld [vmem:[#allocation6 + $0x6d0] sm:$0xff] }
 0x355   :  { %2065 = vmatpush2.msra.mxu0 %v7217_v10  ;;  %2136 = vmatpush2.msra.mxu1 %v7220_v62  ;;  %10405 = vst [vmem:[#allocation128_spill] sm:$0xff] %v7229_v27  ;;  %10406 = vst [vmem:[#allocation131_spill] sm:$0xff] %v7232_v61  ;;  %v7235_v10 = vld [vmem:[#allocation6 + $0x688] sm:$0xff]  ;;  %v7238_v62 = vld [vmem:[#allocation6 + $0x698] sm:$0xff] }
 0x356   :  { %2066 = vmatprep.subr.mxu0 %v7223_v39  ;;  %2137 = vmatprep.subr.mxu1 %v7226_v37  ;;  %10407 = vst [vmem:[#allocation132_spill] sm:$0xff] %v7235_v10  ;;  %10408 = vst [vmem:[#allocation133_spill] sm:$0xff] %v7238_v62  ;;  %v7241_v39 = vld [vmem:[#allocation6 + $0x680] sm:$0xff]  ;;  %v7244_v37 = vld [vmem:[#allocation6 + $0x690] sm:$0xff] }
 0x357   :  { %2067 = vmatpush2.msra.mxu0 %v7229_v27  ;;  %2138 = vmatpush2.msra.mxu1 %v7232_v61  ;;  %10409 = vst [vmem:[#allocation134_spill] sm:$0xff] %v7241_v39  ;;  %10410 = vst [vmem:[#allocation137_spill] sm:$0xff] %v7244_v37  ;;  %v7247_v27 = vld [vmem:[#allocation6 + $0x648] sm:$0xff]  ;;  %v7250_v61 = vld [vmem:[#allocation6 + $0x658] sm:$0xff] }
 0x358   :  { %2068 = vmatprep.subr.mxu0 %v7235_v10  ;;  %2139 = vmatprep.subr.mxu1 %v7238_v62  ;;  %10411 = vst [vmem:[#allocation138_spill] sm:$0xff] %v7247_v27  ;;  %10412 = vst [vmem:[#allocation141_spill] sm:$0xff] %v7250_v61  ;;  %v7253_v10 = vld [vmem:[#allocation6 + $0x640] sm:$0xff]  ;;  %v7256_v62 = vld [vmem:[#allocation6 + $0x650] sm:$0xff] }
 0x359   :  { %2069 = vmatpush2.msra.mxu0 %v7241_v39  ;;  %2140 = vmatpush2.msra.mxu1 %v7244_v37  ;;  %10413 = vst [vmem:[#allocation142_spill] sm:$0xff] %v7253_v10  ;;  %10414 = vst [vmem:[#allocation143_spill] sm:$0xff] %v7256_v62  ;;  %v7259_v39 = vld [vmem:[#allocation6 + $0x608] sm:$0xff]  ;;  %v7262_v37 = vld [vmem:[#allocation6 + $0x618] sm:$0xff] }
 0x35a   :  { %2070 = vmatprep.subr.mxu0 %v7247_v27  ;;  %2141 = vmatprep.subr.mxu1 %v7250_v61  ;;  %10415 = vst [vmem:[#allocation144_spill] sm:$0xff] %v7259_v39  ;;  %10416 = vst [vmem:[#allocation145_spill] sm:$0xff] %v7262_v37  ;;  %v7265_v27 = vld [vmem:[#allocation6 + $0x600] sm:$0xff]  ;;  %v7268_v61 = vld [vmem:[#allocation6 + $0x610] sm:$0xff] }
 0x35b   :  { %2071 = vmatpush2.msra.mxu0 %v7253_v10  ;;  %2142 = vmatpush2.msra.mxu1 %v7256_v62  ;;  %10417 = vst [vmem:[#allocation146_spill] sm:$0xff] %v7265_v27  ;;  %10418 = vst [vmem:[#allocation147_spill] sm:$0xff] %v7268_v61  ;;  %v7271_v10 = vld [vmem:[#allocation6 + $0x5c8] sm:$0xff]  ;;  %v7274_v62 = vld [vmem:[#allocation6 + $0x5d8] sm:$0xff] }
 0x35c   :  { %2072 = vmatprep.subr.mxu0 %v7259_v39  ;;  %2143 = vmatprep.subr.mxu1 %v7262_v37  ;;  %10419 = vst [vmem:[#allocation148_spill] sm:$0xff] %v7271_v10  ;;  %10420 = vst [vmem:[#allocation149_spill] sm:$0xff] %v7274_v62  ;;  %v7277_v39 = vld [vmem:[#allocation6 + $0x5c0] sm:$0xff]  ;;  %v7280_v37 = vld [vmem:[#allocation6 + $0x5d0] sm:$0xff] }
 0x35d   :  { %2073 = vmatpush2.msra.mxu0 %v7265_v27  ;;  %2144 = vmatpush2.msra.mxu1 %v7268_v61  ;;  %10421 = vst [vmem:[#allocation150_spill] sm:$0xff] %v7277_v39  ;;  %10422 = vst [vmem:[#allocation151_spill] sm:$0xff] %v7280_v37  ;;  %v7283_v27 = vld [vmem:[#allocation6 + $0x588] sm:$0xff]  ;;  %v7286_v61 = vld [vmem:[#allocation6 + $0x598] sm:$0xff] }
 0x35e   :  { %2074 = vmatprep.subr.mxu0 %v7271_v10  ;;  %2145 = vmatprep.subr.mxu1 %v7274_v62  ;;  %10423 = vst [vmem:[#allocation152_spill] sm:$0xff] %v7283_v27  ;;  %10424 = vst [vmem:[#allocation153_spill] sm:$0xff] %v7286_v61  ;;  %v7289_v10 = vld [vmem:[#allocation6 + $0x580] sm:$0xff]  ;;  %v7292_v62 = vld [vmem:[#allocation6 + $0x590] sm:$0xff] }
 0x35f   :  { %2075 = vmatpush2.msra.mxu0 %v7277_v39  ;;  %2146 = vmatpush2.msra.mxu1 %v7280_v37  ;;  %10425 = vst [vmem:[#allocation154_spill] sm:$0xff] %v7289_v10  ;;  %10426 = vst [vmem:[#allocation155_spill] sm:$0xff] %v7292_v62  ;;  %v7295_v39 = vld [vmem:[#allocation6 + $0x548] sm:$0xff]  ;;  %v7298_v37 = vld [vmem:[#allocation6 + $0x558] sm:$0xff] }
 0x360   :  { %2076 = vmatprep.subr.mxu0 %v7283_v27  ;;  %2147 = vmatprep.subr.mxu1 %v7286_v61  ;;  %10427 = vst [vmem:[#allocation64_spill] sm:$0xff] %v7295_v39  ;;  %10428 = vst [vmem:[#allocation70_spill] sm:$0xff] %v7298_v37  ;;  %v7301_v27 = vld [vmem:[#allocation6 + $0x540] sm:$0xff]  ;;  %v7304_v61 = vld [vmem:[#allocation6 + $0x550] sm:$0xff] }
 0x361   :  { %2077 = vmatpush2.msra.mxu0 %v7289_v10  ;;  %2148 = vmatpush2.msra.mxu1 %v7292_v62  ;;  %10429 = vst [vmem:[#allocation63_spill] sm:$0xff] %v7301_v27  ;;  %10430 = vst [vmem:[#allocation69_spill] sm:$0xff] %v7304_v61  ;;  %v10445_v62 = vld [vmem:[#allocation182_spill] sm:$0xff] }
 0x362   :  { %2078 = vmatprep.subr.mxu0 %v7295_v39  ;;  %2149 = vmatprep.subr.mxu1 %v7298_v37 }
 0x363   :  { %2079 = vmatpush2.msra.mxu0 %v7301_v27  ;;  %2150 = vmatpush2.msra.mxu1 %v7304_v61 }
 0x364   :  { %2080 = vmatprep.subr.mxu0 %v6660_v1  ;;  %2151 = vmatprep.subr.mxu1 %v6663_v2  ;;  %v10431_v1 = vld [vmem:[#allocation15_spill] sm:$0xff]  ;;  %v10432_v2 = vld [vmem:[#allocation16_spill] sm:$0xff] }
 0x365   :  { %2081 = vmatpush2.msra.mxu0 %v6666_v3  ;;  %2152 = vmatpush2.msra.mxu1 %v6669_v17  ;;  %v10433_v3 = vld [vmem:[#allocation17_spill] sm:$0xff]  ;;  %v10434_v17 = vld [vmem:[#allocation18_spill] sm:$0xff] }
 0x366   :  { %2082 = vmatprep.subr.mxu0 %v6672_v57  ;;  %2153 = vmatprep.subr.mxu1 %v6675_v19  ;;  %v10435_v57 = vld [vmem:[#allocation19_spill] sm:$0xff]  ;;  %v10436_v19 = vld [vmem:[#allocation20_spill] sm:$0xff] }
 0x367   :  { %2083 = vmatpush2.msra.mxu0 %v6678_v32  ;;  %2154 = vmatpush2.msra.mxu1 %v6681_v26  ;;  %v10437_v32 = vld [vmem:[#allocation21_spill] sm:$0xff]  ;;  %v10438_v26 = vld [vmem:[#allocation22_spill] sm:$0xff] }
 0x368   :  { %2084 = vmatprep.subr.mxu0 %v6684_v24  ;;  %2155 = vmatprep.subr.mxu1 %v6687_v4  ;;  %v10439_v4 = vld [vmem:[#allocation76_spill] sm:$0xff] }
 0x369   :  { %2085 = vmatpush2.msra.mxu0 %v6690_v22  ;;  %2156 = vmatpush2.msra.mxu1 %v6693_v5 }
 0x36a   :  { %2086 = vmatprep.subr.mxu0 %v6696_v6  ;;  %2157 = vmatprep.subr.mxu1 %v6699_v7  ;;  %v10440_v7 = vld [vmem:[#allocation82_spill] sm:$0xff] }
 0x36b   :  { %2087 = vmatpush2.msra.mxu0 %v10431_v1  ;;  %2158 = vmatpush2.msra.mxu1 %v10432_v2 }
 0x36c   :  { %2088 = vmatprep.subr.mxu0 %v10433_v3  ;;  %2159 = vmatprep.subr.mxu1 %v10434_v17 }
 0x36d   :  { %2089 = vmatpush2.msra.mxu0 %v10435_v57  ;;  %2160 = vmatpush2.msra.mxu1 %v10436_v19 }
 0x36e   :  { %2168 = vmatprep.subr.mxu0 %v10437_v32  ;;  %2239 = vmatprep.subr.mxu1 %v10438_v26 }
 0x3ac   :  { %v1802_v24 = vpop.f32.mrf.mxu1  ;;  %v1731_v19 = vpop.f32.mrf.mxu0 }
 0x3ad   :  { %v1951_v22 = vadd.f32 %v1802_v24, %v10439_v4  ;;  %v10441_v4 = vld [vmem:[#allocation75_spill] sm:$0xff] }
 0x3ae   :  { %v1804_v5 = vpop.f32.mrf.mxu1  ;;  %v1733_v37 = vpop.f32.mrf.mxu0 }
 0x3af   :  { %v3915_v6 = vmul.f32 -1.442695, %v1951_v22  ;;  %v1952_v1 = vadd.f32 %v1804_v5, %v10440_v7  ;;  %v1949_v22 = vadd.f32 %v1731_v19, %v10441_v4  ;;  %v10442_v5 = vld [vmem:[#allocation81_spill] sm:$0xff]  ;;  %v10448_v19 = vld [vmem:[#allocation159_spill] sm:$0xff] }
 0x3b0   :  { %v1950_v7 = vadd.f32 %v1733_v37, %v10442_v5  ;;  %v466_v4 = vadd.f32 %v10448_v19, %v10447_v34  ;;  %v10449_v37 = vld [vmem:[#allocation160_spill] sm:$0xff] }
 0x3b1   :  { %v3916_v2 = vmul.f32 -1.442695, %v1952_v1  ;;  %4023 = vpow2.f32 %v3915_v6  ;;  %v3913_v6 = vmul.f32 -1.442695, %v1949_v22  ;;  %v579_v22 = vadd.f32 %v10449_v37, %v6199_v41 }
 0x3b2   :  { %v3914_v1 = vmul.f32 -1.442695, %v1950_v7 }
 0x3b3   :  { %4025 = vpow2.f32 %v3916_v2 }
 0x3be   :  { %v4024_v3 = vpop.eup %4023 }
 0x3bf   :  { %v1977_v17 = vadd.f32 1.0, %v4024_v3 }
 0x3c0   :  { %v4026_v61 = vpop.eup %4025 }
 0x3c1   :  { %4027 = vrcp.f32 %v1977_v17  ;;  %v1978_v57 = vadd.f32 1.0, %v4026_v61  ;;  %v10443_v17 = vld [vmem:[#allocation181_spill] sm:$0xff] }
 0x3c3   :  { %4029 = vrcp.f32 %v1978_v57  ;;  %v10444_v57 = vld [vmem:[#allocation157_spill] sm:$0xff] }
 0x3c4   :  { %4031 = vpow2.f32 %v3913_v6  ;;  %v464_v39 = vadd.f32 %v10444_v57, %v10443_v17 }
 0x3c5   :  { %4033 = vpow2.f32 %v3914_v1 }
 0x3ce   :  { %v4028_v32 = vpop.eup %4027 }
 0x3cf   :  { %v1995_v26 = vmul.f32 %v4028_v32, %v6759_v9  ;;  %v10446_v32 = vld [vmem:[#allocation158_spill] sm:$0xff] }
 0x3d0   :  { %v4030_v27 = vpop.eup %4029  ;;  %v577_v10 = vadd.f32 %v10446_v32, %v10445_v62  ;;  %v2009_v62 = vpop.permute.xlu1 %2008 }
 0x3d1   :  { %v1996_v24 = vmul.f32 %v4030_v27, %v6763_v43  ;;  %v4032_v2 = vpop.eup %4031  ;;  %vm2010_vm11 = vcmp.eq.s32.totalorder %v2009_v62, 1  ;;  %v7377_v62 = vld [vmem:[#allocation6 + $0x3a0] sm:$0xff] }
 0x3d2   :  { %v4034_v3 = vpop.eup %4033  ;;  %v1975_v61 = vadd.f32 1.0, %v4032_v2 }
 0x3d3   :  { %v1976_v11 = vadd.f32 1.0, %v4034_v3 }
 0x3d4   :  { %4035 = vrcp.f32 %v1975_v61 }
 0x3e1   :  { %v4036_v32 = vpop.eup %4035 }
 0x3ed   :  { %v1873_v52 = vpop.f32.mrf.mxu0  ;;  %v1944_v27 = vpop.f32.mrf.mxu1 }
 0x3ee   :  { %v1953_v5 = vadd.f32 %v1873_v52, %v464_v39  ;;  %v1955_v7 = vadd.f32 %v1944_v27, %v577_v10 }
 0x3ef   :  { %v1875_v6 = vpop.f32.mrf.mxu0  ;;  %v1946_v1 = vpop.f32.mrf.mxu1 }
 0x3f0   :  { %v3917_v2 = vmul.f32 -1.442695, %v1953_v5  ;;  %4037 = vtanh.f32 %v1955_v7  ;;  %v1954_v57 = vadd.f32 %v1875_v6, %v466_v4  ;;  %v1956_v17 = vadd.f32 %v1946_v1, %v579_v22 }
 0x3f1   :  { %4039 = vrcp.f32 %v1976_v11 }
 0x3f2   :  { %4041 = vpow2.f32 %v3917_v2  ;;  %v3918_v3 = vmul.f32 -1.442695, %v1954_v57  ;;  %v7380_v2 = vld [vmem:[#allocation6 + $0x3b0] sm:$0xff]  ;;  %v7383_v57 = vld [vmem:[#allocation6 + $0x368] sm:$0xff] }
 0x3f3   :  { %4043 = vtanh.f32 %v1956_v17 }
 0x3f4   :  { %4045 = vpow2.f32 %v3918_v3  ;;  %v7386_v3 = vld [vmem:[#allocation6 + $0x378] sm:$0xff] }
 0x3fd   :  { %v4038_v19 = vpop.eup %4037 }
 0x3fe   :  { %v4040_v34 = vpop.eup %4039  ;;  %v1997_v16 = vmul.f32 %v4038_v19, %v4036_v32  ;;  %v7389_v32 = vld [vmem:[#allocation6 + $0x360] sm:$0xff]  ;;  %v7392_v19 = vld [vmem:[#allocation6 + $0x370] sm:$0xff] }
 0x3ff   :  { %v4042_v37 = vpop.eup %4041 }
 0x400   :  { %v4044_v52 = vpop.eup %4043  ;;  %v1979_v10 = vadd.f32 1.0, %v4042_v37  ;;  %v1999_v39 = vadd.f32 %v1997_v16, %v1995_v26  ;;  %v7395_v37 = vld [vmem:[#allocation6 + $0x328] sm:$0xff] }
 0x401   :  { %v4046_v61 = vpop.eup %4045  ;;  %v1998_v27 = vmul.f32 %v4044_v52, %v4040_v34  ;;  %v7398_v52 = vld [vmem:[#allocation6 + $0x338] sm:$0xff] }
 0x402   :  { %4047 = vrcp.f32 %v1979_v10  ;;  %v1980_v4 = vadd.f32 1.0, %v4046_v61  ;;  %v7345_v11 = vsel %vm2010_vm11, %v1999_v39, %v6759_v9  ;;  %v7401_v10 = vld [vmem:[#allocation6 + $0x320] sm:$0xff]  ;;  %v7407_v61 = vld [vmem:[#allocation6 + $0x2e8] sm:$0xff] }
 0x403   :  { %v2000_v17 = vadd.f32 %v1998_v27, %v1996_v24  ;;  %4049 = vtanh.f32 %v1999_v39  ;;  %v7366_v24 = vld [vmem:[#allocation6 + $0x3f0] sm:$0xff]  ;;  %v7410_v27 = vld [vmem:[#allocation6 + $0x2f8] sm:$0xff] }
 0x404   :  { %4051 = vrcp.f32 %v1980_v4  ;;  %v7404_v39 = vld [vmem:[#allocation6 + $0x330] sm:$0xff]  ;;  %v7413_v4 = vld [vmem:[#allocation6 + $0x2e0] sm:$0xff] }
 0x405   :  { %4053 = vtanh.f32 %v2000_v17  ;;  %v7349_v22 = vsel %vm2010_vm11, %v2000_v17, %v6763_v43  ;;  %v7363_v43 = vld [vmem:[#allocation6 + $0x3e0] sm:$0xff]  ;;  %v7416_v17 = vld [vmem:[#allocation6 + $0x2f0] sm:$0xff] }
 0x40f   :  { %v4048_v5 = vpop.eup %4047 }
 0x410   :  { %v4050_v7 = vpop.eup %4049 }
 0x411   :  { %v4052_v6 = vpop.eup %4051  ;;  %v2003_v16 = vmul.f32 %v4050_v7, %v4048_v5  ;;  %v7419_v5 = vld [vmem:[#allocation6 + $0x2a8] sm:$0xff]  ;;  %v7422_v7 = vld [vmem:[#allocation6 + $0x2b8] sm:$0xff] }
 0x412   :  { %v4054_v26 = vpop.eup %4053  ;;  %10450 = vst [vmem:[#allocation156_spill] sm:$0xff] %v7419_v5  ;;  %10451 = vst [vmem:[#allocation184_spill] sm:$0xff] %v7422_v7 }
 0x413   :  { %v2004_v34 = vmul.f32 %v4054_v26, %v4052_v6  ;;  %v7357_v9 = vsel %vm2010_vm11, %v2003_v16, %v6777_v56  ;;  %v7373_v56 = vld [vmem:[#allocation6 + $0x3b8] sm:$0xff]  ;;  %v7425_v6 = vld [vmem:[#allocation6 + $0x2a0] sm:$0xff]  ;;  %v7428_v16 = vld [vmem:[#allocation6 + $0x2b0] sm:$0xff] }
 0x414   :  { %10452 = vst [vmem:[#allocation185_spill] sm:$0xff] %v7425_v6  ;;  %10453 = vst [vmem:[#allocation186_spill] sm:$0xff] %v7428_v16  ;;  %v7431_v26 = vld [vmem:[#allocation6 + $0x268] sm:$0xff] }
 0x415   :  { %v7353_v1 = vsel %vm2010_vm11, %v2004_v34, %v6769_v18  ;;  %v7369_v18 = vld [vmem:[#allocation6 + $0x3a8] sm:$0xff]  ;;  %10454 = vst [vmem:[#allocation187_spill] sm:$0xff] %v7431_v26  ;;  %v7434_v34 = vld [vmem:[#allocation6 + $0x278] sm:$0xff] }
 0x416   :  { %2090 = vmatprep.mubr.f32.mxu0 %v7353_v1  ;;  %2161 = vmatprep.mubr.f32.mxu1 %v7353_v1  ;;  %10455 = vst [vmem:[#allocation188_spill] sm:$0xff] %v7434_v34 }
 0x417   :  { %2091 = vmatmul.mubr.f32.vlgmr.msra.gmra.mxu0 %v7357_v9  ;;  %2162 = vmatmul.mubr.f32.vlgmr.msra.gmra.mxu1 %v7357_v9 }
 0x418   :  { %2169 = vmatpush1.msra.mxu0 %v7363_v43  ;;  %2240 = vmatpush1.msra.mxu1 %v7366_v24 }
 0x419   :  { %2170 = vmatprep.subr.mxu0 %v7369_v18  ;;  %2232 = vmatprep.mubr.f32.mxu0 %v7353_v1 }
 0x41a   :  { %2241 = vmatprep.subr.mxu1 %v7373_v56  ;;  %2303 = vmatprep.mubr.f32.mxu1 %v7353_v1 }
 0x41b   :  { %2171 = vmatpush1.msra.mxu0 %v7377_v62  ;;  %2242 = vmatpush1.msra.mxu1 %v7380_v2 }
 0x41c   :  { %2172 = vmatprep.subr.mxu0 %v7383_v57  ;;  %2243 = vmatprep.subr.mxu1 %v7386_v3 }
 0x41d   :  { %2173 = vmatpush1.msra.mxu0 %v7389_v32  ;;  %2244 = vmatpush1.msra.mxu1 %v7392_v19 }
 0x41e   :  { %2174 = vmatprep.subr.mxu0 %v7395_v37  ;;  %2245 = vmatprep.subr.mxu1 %v7398_v52 }
 0x41f   :  { %2175 = vmatpush1.msra.mxu0 %v7401_v10  ;;  %2246 = vmatpush1.msra.mxu1 %v7404_v39 }
 0x420   :  { %2176 = vmatprep.subr.mxu0 %v7407_v61  ;;  %2247 = vmatprep.subr.mxu1 %v7410_v27 }
 0x421   :  { %2177 = vmatpush1.msra.mxu0 %v7413_v4  ;;  %2248 = vmatpush1.msra.mxu1 %v7416_v17 }
 0x422   :  { %2178 = vmatprep.subr.mxu0 %v7419_v5  ;;  %2249 = vmatprep.subr.mxu1 %v7422_v7  ;;  %v7437_v5 = vld [vmem:[#allocation6 + $0x260] sm:$0xff]  ;;  %v7440_v7 = vld [vmem:[#allocation6 + $0x270] sm:$0xff] }
 0x423   :  { %2179 = vmatpush1.msra.mxu0 %v7425_v6  ;;  %2250 = vmatpush1.msra.mxu1 %v7428_v16  ;;  %10456 = vst [vmem:[#allocation189_spill] sm:$0xff] %v7437_v5  ;;  %10457 = vst [vmem:[#allocation190_spill] sm:$0xff] %v7440_v7  ;;  %v7443_v6 = vld [vmem:[#allocation6 + $0x228] sm:$0xff]  ;;  %v7446_v16 = vld [vmem:[#allocation6 + $0x238] sm:$0xff] }
 0x424   :  { %2180 = vmatprep.subr.mxu0 %v7431_v26  ;;  %2251 = vmatprep.subr.mxu1 %v7434_v34  ;;  %10458 = vst [vmem:[#allocation191_spill] sm:$0xff] %v7443_v6  ;;  %10459 = vst [vmem:[#allocation192_spill] sm:$0xff] %v7446_v16  ;;  %v7449_v26 = vld [vmem:[#allocation6 + $0x220] sm:$0xff]  ;;  %v7452_v34 = vld [vmem:[#allocation6 + $0x230] sm:$0xff] }
 0x425   :  { %2181 = vmatpush1.msra.mxu0 %v7437_v5  ;;  %2252 = vmatpush1.msra.mxu1 %v7440_v7  ;;  %10460 = vst [vmem:[#allocation193_spill] sm:$0xff] %v7449_v26  ;;  %10461 = vst [vmem:[#allocation194_spill] sm:$0xff] %v7452_v34  ;;  %v7455_v5 = vld [vmem:[#allocation6 + $0x1e8] sm:$0xff]  ;;  %v7458_v7 = vld [vmem:[#allocation6 + $0x1f8] sm:$0xff] }
 0x426   :  { %2182 = vmatprep.subr.mxu0 %v7443_v6  ;;  %2253 = vmatprep.subr.mxu1 %v7446_v16  ;;  %10462 = vst [vmem:[#allocation195_spill] sm:$0xff] %v7455_v5  ;;  %10463 = vst [vmem:[#allocation196_spill] sm:$0xff] %v7458_v7  ;;  %v7461_v6 = vld [vmem:[#allocation6 + $0x1e0] sm:$0xff]  ;;  %v7464_v16 = vld [vmem:[#allocation6 + $0x1f0] sm:$0xff] }
 0x427   :  { %2183 = vmatpush1.msra.mxu0 %v7449_v26  ;;  %2254 = vmatpush1.msra.mxu1 %v7452_v34  ;;  %10464 = vst [vmem:[#allocation197_spill] sm:$0xff] %v7461_v6  ;;  %10465 = vst [vmem:[#allocation198_spill] sm:$0xff] %v7464_v16  ;;  %v7467_v26 = vld [vmem:[#allocation6 + $0x1a8] sm:$0xff]  ;;  %v7470_v34 = vld [vmem:[#allocation6 + $0x1b8] sm:$0xff] }
 0x428   :  { %2184 = vmatprep.subr.mxu0 %v7455_v5  ;;  %2255 = vmatprep.subr.mxu1 %v7458_v7  ;;  %10466 = vst [vmem:[#allocation199_spill] sm:$0xff] %v7467_v26  ;;  %10467 = vst [vmem:[#allocation200_spill] sm:$0xff] %v7470_v34  ;;  %v7473_v5 = vld [vmem:[#allocation6 + $0x1a0] sm:$0xff]  ;;  %v7476_v7 = vld [vmem:[#allocation6 + $0x1b0] sm:$0xff] }
 0x429   :  { %2185 = vmatpush1.msra.mxu0 %v7461_v6  ;;  %2256 = vmatpush1.msra.mxu1 %v7464_v16  ;;  %10468 = vst [vmem:[#allocation201_spill] sm:$0xff] %v7473_v5  ;;  %10469 = vst [vmem:[#allocation202_spill] sm:$0xff] %v7476_v7  ;;  %v7479_v6 = vld [vmem:[#allocation6 + $0x168] sm:$0xff]  ;;  %v7482_v16 = vld [vmem:[#allocation6 + $0x178] sm:$0xff] }
 0x42a   :  { %2186 = vmatprep.subr.mxu0 %v7467_v26  ;;  %2257 = vmatprep.subr.mxu1 %v7470_v34  ;;  %10470 = vst [vmem:[#allocation203_spill] sm:$0xff] %v7479_v6  ;;  %10471 = vst [vmem:[#allocation204_spill] sm:$0xff] %v7482_v16  ;;  %v7485_v26 = vld [vmem:[#allocation6 + $0x160] sm:$0xff]  ;;  %v7488_v34 = vld [vmem:[#allocation6 + $0x170] sm:$0xff] }
 0x42b   :  { %2187 = vmatpush1.msra.mxu0 %v7473_v5  ;;  %2258 = vmatpush1.msra.mxu1 %v7476_v7  ;;  %10472 = vst [vmem:[#allocation205_spill] sm:$0xff] %v7485_v26  ;;  %10473 = vst [vmem:[#allocation206_spill] sm:$0xff] %v7488_v34  ;;  %v7491_v5 = vld [vmem:[#allocation6 + $0x128] sm:$0xff]  ;;  %v7494_v7 = vld [vmem:[#allocation6 + $0x138] sm:$0xff] }
 0x42c   :  { %2188 = vmatprep.subr.mxu0 %v7479_v6  ;;  %2259 = vmatprep.subr.mxu1 %v7482_v16  ;;  %10474 = vst [vmem:[#allocation207_spill] sm:$0xff] %v7491_v5  ;;  %10475 = vst [vmem:[#allocation208_spill] sm:$0xff] %v7494_v7  ;;  %v7497_v6 = vld [vmem:[#allocation6 + $0x120] sm:$0xff]  ;;  %v7500_v16 = vld [vmem:[#allocation6 + $0x130] sm:$0xff] }
 0x42d   :  { %2189 = vmatpush1.msra.mxu0 %v7485_v26  ;;  %2260 = vmatpush1.msra.mxu1 %v7488_v34  ;;  %10476 = vst [vmem:[#allocation209_spill] sm:$0xff] %v7497_v6  ;;  %10477 = vst [vmem:[#allocation210_spill] sm:$0xff] %v7500_v16  ;;  %v7503_v26 = vld [vmem:[#allocation6 + $0xe8] sm:$0xff]  ;;  %v7506_v34 = vld [vmem:[#allocation6 + $0xf8] sm:$0xff] }
 0x42e   :  { %2190 = vmatprep.subr.mxu0 %v7491_v5  ;;  %2261 = vmatprep.subr.mxu1 %v7494_v7  ;;  %10478 = vst [vmem:[#allocation211_spill] sm:$0xff] %v7503_v26  ;;  %10479 = vst [vmem:[#allocation212_spill] sm:$0xff] %v7506_v34  ;;  %v7509_v5 = vld [vmem:[#allocation6 + $0xe0] sm:$0xff]  ;;  %v7512_v7 = vld [vmem:[#allocation6 + $0xf0] sm:$0xff] }
 0x42f   :  { %2191 = vmatpush1.msra.mxu0 %v7497_v6  ;;  %2262 = vmatpush1.msra.mxu1 %v7500_v16  ;;  %10480 = vst [vmem:[#allocation213_spill] sm:$0xff] %v7509_v5  ;;  %10481 = vst [vmem:[#allocation214_spill] sm:$0xff] %v7512_v7  ;;  %v7515_v6 = vld [vmem:[#allocation6 + $0xa8] sm:$0xff]  ;;  %v7518_v16 = vld [vmem:[#allocation6 + $0xb8] sm:$0xff] }
 0x430   :  { %2192 = vmatprep.subr.mxu0 %v7503_v26  ;;  %2263 = vmatprep.subr.mxu1 %v7506_v34  ;;  %10482 = vst [vmem:[#allocation215_spill] sm:$0xff] %v7515_v6  ;;  %10483 = vst [vmem:[#allocation216_spill] sm:$0xff] %v7518_v16  ;;  %v7521_v26 = vld [vmem:[#allocation6 + $0xa0] sm:$0xff]  ;;  %v7524_v34 = vld [vmem:[#allocation6 + $0xb0] sm:$0xff] }
 0x431   :  { %2193 = vmatpush1.msra.mxu0 %v7509_v5  ;;  %2264 = vmatpush1.msra.mxu1 %v7512_v7  ;;  %10484 = vst [vmem:[#allocation217_spill] sm:$0xff] %v7521_v26  ;;  %10485 = vst [vmem:[#allocation218_spill] sm:$0xff] %v7524_v34  ;;  %v7527_v5 = vld [vmem:[#allocation6 + $0x68] sm:$0xff]  ;;  %v7530_v7 = vld [vmem:[#allocation6 + $0x78] sm:$0xff] }
 0x432   :  { %2194 = vmatprep.subr.mxu0 %v7515_v6  ;;  %2265 = vmatprep.subr.mxu1 %v7518_v16  ;;  %10486 = vst [vmem:[#allocation219_spill] sm:$0xff] %v7527_v5  ;;  %10487 = vst [vmem:[#allocation220_spill] sm:$0xff] %v7530_v7  ;;  %v7533_v6 = vld [vmem:[#allocation6 + $0x60] sm:$0xff]  ;;  %v7536_v16 = vld [vmem:[#allocation6 + $0x70] sm:$0xff] }
 0x433   :  { %2195 = vmatpush1.msra.mxu0 %v7521_v26  ;;  %2266 = vmatpush1.msra.mxu1 %v7524_v34  ;;  %10488 = vst [vmem:[#allocation221_spill] sm:$0xff] %v7533_v6  ;;  %10489 = vst [vmem:[#allocation222_spill] sm:$0xff] %v7536_v16  ;;  %v7539_v26 = vld [vmem:[#allocation6 + $0x28] sm:$0xff]  ;;  %v7542_v34 = vld [vmem:[#allocation6 + $0x38] sm:$0xff] }
 0x434   :  { %2196 = vmatprep.subr.mxu0 %v7527_v5  ;;  %2267 = vmatprep.subr.mxu1 %v7530_v7  ;;  %10490 = vst [vmem:[#allocation223_spill] sm:$0xff] %v7539_v26  ;;  %10491 = vst [vmem:[#allocation224_spill] sm:$0xff] %v7542_v34  ;;  %v7545_v5 = vld [vmem:[#allocation6 + $0x20] sm:$0xff]  ;;  %v7548_v7 = vld [vmem:[#allocation6 + $0x30] sm:$0xff] }
 0x435   :  { %2197 = vmatpush1.msra.mxu0 %v7533_v6  ;;  %2268 = vmatpush1.msra.mxu1 %v7536_v16  ;;  %10492 = vst [vmem:[#allocation225_spill] sm:$0xff] %v7545_v5  ;;  %10493 = vst [vmem:[#allocation226_spill] sm:$0xff] %v7548_v7  ;;  %v7551_v6 = vld [vmem:[#allocation6 + $0x7e8] sm:$0xff]  ;;  %v7554_v16 = vld [vmem:[#allocation6 + $0x7f8] sm:$0xff] }
 0x436   :  { %2198 = vmatprep.subr.mxu0 %v7539_v26  ;;  %2269 = vmatprep.subr.mxu1 %v7542_v34  ;;  %10494 = vst [vmem:[#allocation227_spill] sm:$0xff] %v7551_v6  ;;  %10495 = vst [vmem:[#allocation228_spill] sm:$0xff] %v7554_v16  ;;  %v7557_v26 = vld [vmem:[#allocation6 + $0x7e0] sm:$0xff]  ;;  %v7560_v34 = vld [vmem:[#allocation6 + $0x7f0] sm:$0xff] }
 0x437   :  { %2199 = vmatpush1.msra.mxu0 %v7545_v5  ;;  %2270 = vmatpush1.msra.mxu1 %v7548_v7  ;;  %10496 = vst [vmem:[#allocation229_spill] sm:$0xff] %v7557_v26  ;;  %10497 = vst [vmem:[#allocation230_spill] sm:$0xff] %v7560_v34  ;;  %v7563_v5 = vld [vmem:[#allocation6 + $0x7a8] sm:$0xff]  ;;  %v7566_v7 = vld [vmem:[#allocation6 + $0x7b8] sm:$0xff] }
 0x438   :  { %2200 = vmatprep.subr.mxu0 %v7551_v6  ;;  %2271 = vmatprep.subr.mxu1 %v7554_v16  ;;  %10498 = vst [vmem:[#allocation231_spill] sm:$0xff] %v7563_v5  ;;  %10499 = vst [vmem:[#allocation232_spill] sm:$0xff] %v7566_v7  ;;  %v7569_v6 = vld [vmem:[#allocation6 + $0x7a0] sm:$0xff]  ;;  %v7572_v16 = vld [vmem:[#allocation6 + $0x7b0] sm:$0xff] }
 0x439   :  { %2201 = vmatpush2.msra.mxu0 %v7557_v26  ;;  %2272 = vmatpush2.msra.mxu1 %v7560_v34  ;;  %10500 = vst [vmem:[#allocation233_spill] sm:$0xff] %v7569_v6  ;;  %10501 = vst [vmem:[#allocation234_spill] sm:$0xff] %v7572_v16  ;;  %v7575_v26 = vld [vmem:[#allocation6 + $0x768] sm:$0xff]  ;;  %v7578_v34 = vld [vmem:[#allocation6 + $0x778] sm:$0xff] }
 0x43a   :  { %2202 = vmatprep.subr.mxu0 %v7563_v5  ;;  %2273 = vmatprep.subr.mxu1 %v7566_v7  ;;  %10502 = vst [vmem:[#allocation235_spill] sm:$0xff] %v7575_v26  ;;  %10503 = vst [vmem:[#allocation236_spill] sm:$0xff] %v7578_v34  ;;  %v7581_v5 = vld [vmem:[#allocation6 + $0x760] sm:$0xff]  ;;  %v7584_v7 = vld [vmem:[#allocation6 + $0x770] sm:$0xff] }
 0x43b   :  { %2203 = vmatpush2.msra.mxu0 %v7569_v6  ;;  %2274 = vmatpush2.msra.mxu1 %v7572_v16  ;;  %10504 = vst [vmem:[#allocation237_spill] sm:$0xff] %v7581_v5  ;;  %10505 = vst [vmem:[#allocation238_spill] sm:$0xff] %v7584_v7  ;;  %v7587_v6 = vld [vmem:[#allocation6 + $0x728] sm:$0xff]  ;;  %v7590_v16 = vld [vmem:[#allocation6 + $0x738] sm:$0xff] }
 0x43c   :  { %2204 = vmatprep.subr.mxu0 %v7575_v26  ;;  %2275 = vmatprep.subr.mxu1 %v7578_v34  ;;  %10506 = vst [vmem:[#allocation239_spill] sm:$0xff] %v7587_v6  ;;  %10507 = vst [vmem:[#allocation240_spill] sm:$0xff] %v7590_v16  ;;  %v7593_v26 = vld [vmem:[#allocation6 + $0x720] sm:$0xff]  ;;  %v7596_v34 = vld [vmem:[#allocation6 + $0x730] sm:$0xff] }
 0x43d   :  { %2205 = vmatpush2.msra.mxu0 %v7581_v5  ;;  %2276 = vmatpush2.msra.mxu1 %v7584_v7  ;;  %10508 = vst [vmem:[#allocation241_spill] sm:$0xff] %v7593_v26  ;;  %10509 = vst [vmem:[#allocation242_spill] sm:$0xff] %v7596_v34  ;;  %v7599_v5 = vld [vmem:[#allocation6 + $0x6e8] sm:$0xff]  ;;  %v7602_v7 = vld [vmem:[#allocation6 + $0x6f8] sm:$0xff] }
 0x43e   :  { %2206 = vmatprep.subr.mxu0 %v7587_v6  ;;  %2277 = vmatprep.subr.mxu1 %v7590_v16  ;;  %10510 = vst [vmem:[#allocation243_spill] sm:$0xff] %v7599_v5  ;;  %10511 = vst [vmem:[#allocation244_spill] sm:$0xff] %v7602_v7  ;;  %v7605_v6 = vld [vmem:[#allocation6 + $0x6e0] sm:$0xff]  ;;  %v7608_v16 = vld [vmem:[#allocation6 + $0x6f0] sm:$0xff] }
 0x43f   :  { %2207 = vmatpush2.msra.mxu0 %v7593_v26  ;;  %2278 = vmatpush2.msra.mxu1 %v7596_v34  ;;  %10512 = vst [vmem:[#allocation245_spill] sm:$0xff] %v7605_v6  ;;  %10513 = vst [vmem:[#allocation246_spill] sm:$0xff] %v7608_v16  ;;  %v7611_v26 = vld [vmem:[#allocation6 + $0x6a8] sm:$0xff]  ;;  %v7614_v34 = vld [vmem:[#allocation6 + $0x6b8] sm:$0xff] }
 0x440   :  { %2208 = vmatprep.subr.mxu0 %v7599_v5  ;;  %2279 = vmatprep.subr.mxu1 %v7602_v7  ;;  %10514 = vst [vmem:[#allocation247_spill] sm:$0xff] %v7611_v26  ;;  %10515 = vst [vmem:[#allocation248_spill] sm:$0xff] %v7614_v34  ;;  %v7617_v5 = vld [vmem:[#allocation6 + $0x6a0] sm:$0xff]  ;;  %v7620_v7 = vld [vmem:[#allocation6 + $0x6b0] sm:$0xff] }
 0x441   :  { %2209 = vmatpush2.msra.mxu0 %v7605_v6  ;;  %2280 = vmatpush2.msra.mxu1 %v7608_v16  ;;  %v7623_v6 = vld [vmem:[#allocation6 + $0x668] sm:$0xff]  ;;  %v7626_v16 = vld [vmem:[#allocation6 + $0x678] sm:$0xff] }
 0x442   :  { %2210 = vmatprep.subr.mxu0 %v7611_v26  ;;  %2281 = vmatprep.subr.mxu1 %v7614_v34  ;;  %v7629_v26 = vld [vmem:[#allocation6 + $0x660] sm:$0xff]  ;;  %v7632_v34 = vld [vmem:[#allocation6 + $0x670] sm:$0xff] }
 0x443   :  { %2211 = vmatpush2.msra.mxu0 %v7617_v5  ;;  %2282 = vmatpush2.msra.mxu1 %v7620_v7 }
 0x444   :  { %2212 = vmatprep.subr.mxu0 %v7623_v6  ;;  %2283 = vmatprep.subr.mxu1 %v7626_v16 }
 0x445   :  { %2213 = vmatpush2.msra.mxu0 %v7629_v26  ;;  %2284 = vmatpush2.msra.mxu1 %v7632_v34 }
 0x446   :  { %2214 = vmatprep.subr.mxu0 %v6873_v60  ;;  %2285 = vmatprep.subr.mxu1 %v6876_v8  ;;  %v10516_v60 = vld [vmem:[#allocation23_spill] sm:$0xff]  ;;  %v10517_v8 = vld [vmem:[#allocation24_spill] sm:$0xff] }
 0x447   :  { %2215 = vmatpush2.msra.mxu0 %v6879_v35  ;;  %2286 = vmatpush2.msra.mxu1 %v6882_v51  ;;  %v10518_v35 = vld [vmem:[#allocation25_spill] sm:$0xff]  ;;  %v10519_v51 = vld [vmem:[#allocation26_spill] sm:$0xff] }
 0x448   :  { %2216 = vmatprep.subr.mxu0 %v6885_v49  ;;  %2287 = vmatprep.subr.mxu1 %v6888_v48  ;;  %v10520_v49 = vld [vmem:[#allocation27_spill] sm:$0xff]  ;;  %v10521_v48 = vld [vmem:[#allocation28_spill] sm:$0xff] }
 0x449   :  { %2217 = vmatpush2.msra.mxu0 %v6891_v42  ;;  %2288 = vmatpush2.msra.mxu1 %v6894_v54  ;;  %v10522_v42 = vld [vmem:[#allocation29_spill] sm:$0xff]  ;;  %v10523_v54 = vld [vmem:[#allocation30_spill] sm:$0xff] }
 0x44a   :  { %2218 = vmatprep.subr.mxu0 %v6897_v25  ;;  %2289 = vmatprep.subr.mxu1 %v6900_v14  ;;  %v10524_v25 = vld [vmem:[#allocation31_spill] sm:$0xff]  ;;  %v10525_v14 = vld [vmem:[#allocation32_spill] sm:$0xff] }
 0x44b   :  { %2219 = vmatpush2.msra.mxu0 %v6903_v50  ;;  %2290 = vmatpush2.msra.mxu1 %v6906_v58  ;;  %v10526_v50 = vld [vmem:[#allocation33_spill] sm:$0xff]  ;;  %v10527_v58 = vld [vmem:[#allocation34_spill] sm:$0xff] }
 0x44c   :  { %2220 = vmatprep.subr.mxu0 %v6909_v13  ;;  %2291 = vmatprep.subr.mxu1 %v6912_v12  ;;  %v10528_v13 = vld [vmem:[#allocation35_spill] sm:$0xff]  ;;  %v10529_v12 = vld [vmem:[#allocation36_spill] sm:$0xff] }
 0x44d   :  { %2221 = vmatpush2.msra.mxu0 %v6915_v0  ;;  %2292 = vmatpush2.msra.mxu1 %v6918_v28  ;;  %v10530_v0 = vld [vmem:[#allocation37_spill] sm:$0xff]  ;;  %v10531_v28 = vld [vmem:[#allocation38_spill] sm:$0xff] }
 0x44e   :  { %2222 = vmatprep.subr.mxu0 %v6921_v20  ;;  %2293 = vmatprep.subr.mxu1 %v6924_v29  ;;  %v10532_v20 = vld [vmem:[#allocation39_spill] sm:$0xff]  ;;  %v10533_v29 = vld [vmem:[#allocation40_spill] sm:$0xff] }
 0x44f   :  { %2223 = vmatpush2.msra.mxu0 %v6927_v30  ;;  %2294 = vmatpush2.msra.mxu1 %v6930_v23  ;;  %v10534_v30 = vld [vmem:[#allocation41_spill] sm:$0xff]  ;;  %v10535_v23 = vld [vmem:[#allocation42_spill] sm:$0xff] }
 0x450   :  { %2224 = vmatprep.subr.mxu0 %v6933_v53  ;;  %2295 = vmatprep.subr.mxu1 %v6936_v59  ;;  %v10536_v53 = vld [vmem:[#allocation43_spill] sm:$0xff]  ;;  %v10537_v59 = vld [vmem:[#allocation44_spill] sm:$0xff] }
 0x451   :  { %2225 = vmatpush2.msra.mxu0 %v6939_v21  ;;  %2296 = vmatpush2.msra.mxu1 %v6942_v31  ;;  %v10538_v21 = vld [vmem:[#allocation45_spill] sm:$0xff]  ;;  %v10539_v31 = vld [vmem:[#allocation46_spill] sm:$0xff] }
 0x452   :  { %2226 = vmatprep.subr.mxu0 %v6945_v55  ;;  %2297 = vmatprep.subr.mxu1 %v6948_v36  ;;  %v10540_v55 = vld [vmem:[#allocation47_spill] sm:$0xff]  ;;  %v10541_v36 = vld [vmem:[#allocation48_spill] sm:$0xff] }
 0x453   :  { %2227 = vmatpush2.msra.mxu0 %v6951_v38  ;;  %2298 = vmatpush2.msra.mxu1 %v6954_v44  ;;  %v10542_v38 = vld [vmem:[#allocation49_spill] sm:$0xff]  ;;  %v10543_v44 = vld [vmem:[#allocation50_spill] sm:$0xff] }
 0x454   :  { %2228 = vmatprep.subr.mxu0 %v6957_v45  ;;  %2299 = vmatprep.subr.mxu1 %v6960_v46  ;;  %v10544_v45 = vld [vmem:[#allocation51_spill] sm:$0xff]  ;;  %v10545_v46 = vld [vmem:[#allocation52_spill] sm:$0xff] }
 0x455   :  { %2229 = vmatpush2.msra.mxu0 %v6963_v47  ;;  %2300 = vmatpush2.msra.mxu1 %v6966_v63  ;;  %v10546_v47 = vld [vmem:[#allocation53_spill] sm:$0xff]  ;;  %v10547_v63 = vld [vmem:[#allocation54_spill] sm:$0xff] }
 0x456   :  { %2230 = vmatprep.subr.mxu0 %v6969_v15  ;;  %2301 = vmatprep.subr.mxu1 %v6972_v40  ;;  %v10548_v15 = vld [vmem:[#allocation55_spill] sm:$0xff]  ;;  %v10549_v40 = vld [vmem:[#allocation56_spill] sm:$0xff] }
 0x457   :  { %2231 = vmatpush2.msra.mxu0 %v6975_v33  ;;  %2302 = vmatpush2.msra.mxu1 %v10516_v60  ;;  %v10550_v33 = vld [vmem:[#allocation57_spill] sm:$0xff]  ;;  %v10551_v60 = vld [vmem:[#allocation58_spill] sm:$0xff] }
 0x458   :  { %2233 = vmatmul.mubr.f32.vlgmr.msra.gmra.mxu0 %v7357_v9  ;;  %2304 = vmatmul.mubr.f32.vlgmr.msra.gmra.mxu1 %v7357_v9 }
 0x459   :  { %2387 = vmatprep.subr.mxu0 %v10517_v8  ;;  %2458 = vmatprep.subr.mxu1 %v10518_v35  ;;  %v10552_v8 = vld [vmem:[#allocation59_spill] sm:$0xff]  ;;  %v10553_v35 = vld [vmem:[#allocation60_spill] sm:$0xff] }
 0x45a   :  { %2388 = vmatpush1.msra.mxu0 %v10519_v51  ;;  %2459 = vmatpush1.msra.mxu1 %v10520_v49  ;;  %v10554_v51 = vld [vmem:[#allocation61_spill] sm:$0xff]  ;;  %v10555_v49 = vld [vmem:[#allocation62_spill] sm:$0xff] }
 0x45b   :  { %2389 = vmatprep.subr.mxu0 %v10521_v48  ;;  %2460 = vmatprep.subr.mxu1 %v10522_v42  ;;  %v10556_v48 = vld [vmem:[#allocation65_spill] sm:$0xff]  ;;  %v10557_v42 = vld [vmem:[#allocation66_spill] sm:$0xff] }
 0x45c   :  { %2390 = vmatpush1.msra.mxu0 %v10523_v54  ;;  %2461 = vmatpush1.msra.mxu1 %v10524_v25  ;;  %v10558_v54 = vld [vmem:[#allocation67_spill] sm:$0xff]  ;;  %v10559_v25 = vld [vmem:[#allocation68_spill] sm:$0xff] }
 0x45d   :  { %2391 = vmatprep.subr.mxu0 %v10525_v14  ;;  %2462 = vmatprep.subr.mxu1 %v10526_v50  ;;  %v10560_v14 = vld [vmem:[#allocation71_spill] sm:$0xff]  ;;  %v10561_v50 = vld [vmem:[#allocation72_spill] sm:$0xff] }
 0x45e   :  { %2392 = vmatpush1.msra.mxu0 %v10527_v58  ;;  %2463 = vmatpush1.msra.mxu1 %v10528_v13  ;;  %v10562_v58 = vld [vmem:[#allocation73_spill] sm:$0xff]  ;;  %v10563_v13 = vld [vmem:[#allocation74_spill] sm:$0xff] }
 0x45f   :  { %2393 = vmatprep.subr.mxu0 %v10529_v12  ;;  %2464 = vmatprep.subr.mxu1 %v10530_v0  ;;  %v10564_v12 = vld [vmem:[#allocation77_spill] sm:$0xff]  ;;  %v10565_v0 = vld [vmem:[#allocation78_spill] sm:$0xff] }
 0x460   :  { %2394 = vmatpush1.msra.mxu0 %v10531_v28  ;;  %2465 = vmatpush1.msra.mxu1 %v10532_v20  ;;  %v10566_v28 = vld [vmem:[#allocation79_spill] sm:$0xff]  ;;  %v10567_v20 = vld [vmem:[#allocation80_spill] sm:$0xff] }
 0x461   :  { %2395 = vmatprep.subr.mxu0 %v10533_v29  ;;  %2466 = vmatprep.subr.mxu1 %v10534_v30  ;;  %v10568_v29 = vld [vmem:[#allocation83_spill] sm:$0xff]  ;;  %v10569_v30 = vld [vmem:[#allocation84_spill] sm:$0xff] }
 0x462   :  { %2396 = vmatpush1.msra.mxu0 %v10535_v23  ;;  %2467 = vmatpush1.msra.mxu1 %v10536_v53  ;;  %v10570_v23 = vld [vmem:[#allocation85_spill] sm:$0xff]  ;;  %v10571_v53 = vld [vmem:[#allocation86_spill] sm:$0xff] }
 0x463   :  { %2397 = vmatprep.subr.mxu0 %v10537_v59  ;;  %2468 = vmatprep.subr.mxu1 %v10538_v21  ;;  %v10572_v59 = vld [vmem:[#allocation89_spill] sm:$0xff]  ;;  %v10573_v21 = vld [vmem:[#allocation90_spill] sm:$0xff] }
 0x464   :  { %2398 = vmatpush1.msra.mxu0 %v10539_v31  ;;  %2469 = vmatpush1.msra.mxu1 %v10540_v55  ;;  %v10574_v31 = vld [vmem:[#allocation91_spill] sm:$0xff]  ;;  %v10575_v55 = vld [vmem:[#allocation92_spill] sm:$0xff] }
 0x465   :  { %2399 = vmatprep.subr.mxu0 %v10541_v36  ;;  %2470 = vmatprep.subr.mxu1 %v10542_v38  ;;  %v10576_v36 = vld [vmem:[#allocation95_spill] sm:$0xff]  ;;  %v10577_v38 = vld [vmem:[#allocation96_spill] sm:$0xff] }
 0x466   :  { %2400 = vmatpush1.msra.mxu0 %v10543_v44  ;;  %2471 = vmatpush1.msra.mxu1 %v10544_v45  ;;  %v10578_v44 = vld [vmem:[#allocation97_spill] sm:$0xff]  ;;  %v10579_v45 = vld [vmem:[#allocation98_spill] sm:$0xff] }
 0x467   :  { %2401 = vmatprep.subr.mxu0 %v10545_v46  ;;  %2472 = vmatprep.subr.mxu1 %v10546_v47  ;;  %v10580_v46 = vld [vmem:[#allocation101_spill] sm:$0xff]  ;;  %v10581_v47 = vld [vmem:[#allocation102_spill] sm:$0xff] }
 0x468   :  { %2402 = vmatpush1.msra.mxu0 %v10547_v63  ;;  %2473 = vmatpush1.msra.mxu1 %v10548_v15  ;;  %v10582_v63 = vld [vmem:[#allocation103_spill] sm:$0xff]  ;;  %v10583_v15 = vld [vmem:[#allocation104_spill] sm:$0xff] }
 0x469   :  { %2403 = vmatprep.subr.mxu0 %v10549_v40  ;;  %2474 = vmatprep.subr.mxu1 %v10550_v33  ;;  %v10584_v40 = vld [vmem:[#allocation107_spill] sm:$0xff]  ;;  %v10585_v33 = vld [vmem:[#allocation108_spill] sm:$0xff] }
 0x46a   :  { %2404 = vmatpush1.msra.mxu0 %v10551_v60  ;;  %2475 = vmatpush1.msra.mxu1 %v10552_v8  ;;  %v10586_v60 = vld [vmem:[#allocation109_spill] sm:$0xff]  ;;  %v10587_v8 = vld [vmem:[#allocation110_spill] sm:$0xff] }
 0x46b   :  { %2405 = vmatprep.subr.mxu0 %v10553_v35  ;;  %2476 = vmatprep.subr.mxu1 %v10554_v51  ;;  %v10588_v35 = vld [vmem:[#allocation113_spill] sm:$0xff]  ;;  %v10589_v51 = vld [vmem:[#allocation114_spill] sm:$0xff] }
 0x46c   :  { %2406 = vmatpush1.msra.mxu0 %v10555_v49  ;;  %2477 = vmatpush1.msra.mxu1 %v10556_v48  ;;  %v10590_v49 = vld [vmem:[#allocation115_spill] sm:$0xff]  ;;  %v10591_v48 = vld [vmem:[#allocation116_spill] sm:$0xff] }
 0x46d   :  { %2407 = vmatprep.subr.mxu0 %v10557_v42  ;;  %2478 = vmatprep.subr.mxu1 %v10558_v54  ;;  %v10592_v42 = vld [vmem:[#allocation119_spill] sm:$0xff]  ;;  %v10593_v54 = vld [vmem:[#allocation120_spill] sm:$0xff] }
 0x46e   :  { %2408 = vmatpush1.msra.mxu0 %v10559_v25  ;;  %2479 = vmatpush1.msra.mxu1 %v10560_v14  ;;  %v10594_v25 = vld [vmem:[#allocation121_spill] sm:$0xff]  ;;  %v10595_v14 = vld [vmem:[#allocation122_spill] sm:$0xff] }
 0x46f   :  { %2409 = vmatprep.subr.mxu0 %v10561_v50  ;;  %2480 = vmatprep.subr.mxu1 %v10562_v58  ;;  %v10596_v50 = vld [vmem:[#allocation125_spill] sm:$0xff]  ;;  %v10597_v58 = vld [vmem:[#allocation126_spill] sm:$0xff] }
 0x470   :  { %2410 = vmatpush1.msra.mxu0 %v10563_v13  ;;  %2481 = vmatpush1.msra.mxu1 %v10564_v12  ;;  %v10598_v13 = vld [vmem:[#allocation127_spill] sm:$0xff]  ;;  %v10599_v12 = vld [vmem:[#allocation128_spill] sm:$0xff] }
 0x471   :  { %2411 = vmatprep.subr.mxu0 %v10565_v0  ;;  %2482 = vmatprep.subr.mxu1 %v10566_v28  ;;  %v10600_v0 = vld [vmem:[#allocation131_spill] sm:$0xff]  ;;  %v10601_v28 = vld [vmem:[#allocation132_spill] sm:$0xff] }
 0x472   :  { %2412 = vmatpush1.msra.mxu0 %v10567_v20  ;;  %2483 = vmatpush1.msra.mxu1 %v10568_v29  ;;  %v10602_v20 = vld [vmem:[#allocation133_spill] sm:$0xff]  ;;  %v10603_v29 = vld [vmem:[#allocation134_spill] sm:$0xff] }
 0x473   :  { %2413 = vmatprep.subr.mxu0 %v10569_v30  ;;  %2484 = vmatprep.subr.mxu1 %v10570_v23  ;;  %v10604_v30 = vld [vmem:[#allocation137_spill] sm:$0xff]  ;;  %v10605_v23 = vld [vmem:[#allocation138_spill] sm:$0xff] }
 0x474   :  { %2414 = vmatpush1.msra.mxu0 %v10571_v53  ;;  %2485 = vmatpush1.msra.mxu1 %v10572_v59  ;;  %v10606_v53 = vld [vmem:[#allocation141_spill] sm:$0xff]  ;;  %v10607_v59 = vld [vmem:[#allocation142_spill] sm:$0xff] }
 0x475   :  { %2415 = vmatprep.subr.mxu0 %v10573_v21  ;;  %2486 = vmatprep.subr.mxu1 %v10574_v31  ;;  %v10608_v21 = vld [vmem:[#allocation143_spill] sm:$0xff]  ;;  %v10609_v31 = vld [vmem:[#allocation144_spill] sm:$0xff] }
 0x476   :  { %2416 = vmatpush1.msra.mxu0 %v10575_v55  ;;  %2487 = vmatpush1.msra.mxu1 %v10576_v36  ;;  %v10610_v55 = vld [vmem:[#allocation145_spill] sm:$0xff]  ;;  %v10611_v36 = vld [vmem:[#allocation146_spill] sm:$0xff] }
 0x477   :  { %2417 = vmatprep.subr.mxu0 %v10577_v38  ;;  %2488 = vmatprep.subr.mxu1 %v10578_v44  ;;  %v10612_v38 = vld [vmem:[#allocation147_spill] sm:$0xff]  ;;  %v10613_v44 = vld [vmem:[#allocation148_spill] sm:$0xff] }
 0x478   :  { %2418 = vmatpush1.msra.mxu0 %v10579_v45  ;;  %2489 = vmatpush1.msra.mxu1 %v10580_v46  ;;  %v10614_v45 = vld [vmem:[#allocation149_spill] sm:$0xff]  ;;  %v10615_v46 = vld [vmem:[#allocation150_spill] sm:$0xff] }
 0x479   :  { %2419 = vmatprep.subr.mxu0 %v10581_v47  ;;  %2490 = vmatprep.subr.mxu1 %v10582_v63  ;;  %v10616_v47 = vld [vmem:[#allocation151_spill] sm:$0xff]  ;;  %v10617_v63 = vld [vmem:[#allocation152_spill] sm:$0xff] }
 0x47a   :  { %2420 = vmatpush2.msra.mxu0 %v10583_v15  ;;  %2491 = vmatpush2.msra.mxu1 %v10584_v40  ;;  %v10618_v15 = vld [vmem:[#allocation153_spill] sm:$0xff]  ;;  %v10619_v40 = vld [vmem:[#allocation154_spill] sm:$0xff] }
 0x47b   :  { %2421 = vmatprep.subr.mxu0 %v10585_v33  ;;  %2492 = vmatprep.subr.mxu1 %v10586_v60  ;;  %v10620_v33 = vld [vmem:[#allocation155_spill] sm:$0xff]  ;;  %v10621_v60 = vld [vmem:[#allocation64_spill] sm:$0xff] }
 0x47c   :  { %2422 = vmatpush2.msra.mxu0 %v10587_v8  ;;  %2493 = vmatpush2.msra.mxu1 %v10588_v35  ;;  %v10622_v8 = vld [vmem:[#allocation70_spill] sm:$0xff]  ;;  %v10623_v35 = vld [vmem:[#allocation63_spill] sm:$0xff] }
 0x47d   :  { %2423 = vmatprep.subr.mxu0 %v10589_v51  ;;  %2494 = vmatprep.subr.mxu1 %v10590_v49  ;;  %v10624_v51 = vld [vmem:[#allocation69_spill] sm:$0xff]  ;;  %v7781_v49 = vld [vmem:[#allocation6 + $0x508] sm:$0xff] }
 0x47e   :  { %2424 = vmatpush2.msra.mxu0 %v10591_v48  ;;  %2495 = vmatpush2.msra.mxu1 %v10592_v42  ;;  %v7784_v48 = vld [vmem:[#allocation6 + $0x518] sm:$0xff]  ;;  %v7787_v42 = vld [vmem:[#allocation6 + $0x500] sm:$0xff] }
 0x47f   :  { %2425 = vmatprep.subr.mxu0 %v10593_v54  ;;  %2496 = vmatprep.subr.mxu1 %v10594_v25  ;;  %v7790_v54 = vld [vmem:[#allocation6 + $0x510] sm:$0xff]  ;;  %v7793_v25 = vld [vmem:[#allocation6 + $0x4c8] sm:$0xff] }
 0x480   :  { %2426 = vmatpush2.msra.mxu0 %v10595_v14  ;;  %2497 = vmatpush2.msra.mxu1 %v10596_v50  ;;  %v7796_v14 = vld [vmem:[#allocation6 + $0x4d8] sm:$0xff]  ;;  %v7799_v50 = vld [vmem:[#allocation6 + $0x4c0] sm:$0xff] }
 0x481   :  { %2427 = vmatprep.subr.mxu0 %v10597_v58  ;;  %2498 = vmatprep.subr.mxu1 %v10598_v13  ;;  %v7802_v58 = vld [vmem:[#allocation6 + $0x4d0] sm:$0xff]  ;;  %v7805_v13 = vld [vmem:[#allocation6 + $0x488] sm:$0xff] }
 0x482   :  { %2428 = vmatpush2.msra.mxu0 %v10599_v12  ;;  %2499 = vmatpush2.msra.mxu1 %v10600_v0  ;;  %v7808_v12 = vld [vmem:[#allocation6 + $0x498] sm:$0xff]  ;;  %v7811_v0 = vld [vmem:[#allocation6 + $0x480] sm:$0xff] }
 0x483   :  { %2429 = vmatprep.subr.mxu0 %v10601_v28  ;;  %2500 = vmatprep.subr.mxu1 %v10602_v20  ;;  %v7814_v28 = vld [vmem:[#allocation6 + $0x490] sm:$0xff]  ;;  %v7817_v20 = vld [vmem:[#allocation6 + $0x448] sm:$0xff] }
 0x484   :  { %2430 = vmatpush2.msra.mxu0 %v10603_v29  ;;  %2501 = vmatpush2.msra.mxu1 %v10604_v30  ;;  %10625 = vst [vmem:[#allocation249_spill] sm:$0xff] %v7814_v28  ;;  %10626 = vst [vmem:[#allocation250_spill] sm:$0xff] %v7817_v20  ;;  %v7820_v29 = vld [vmem:[#allocation6 + $0x458] sm:$0xff]  ;;  %v7823_v30 = vld [vmem:[#allocation6 + $0x440] sm:$0xff] }
 0x485   :  { %2431 = vmatprep.subr.mxu0 %v10605_v23  ;;  %2502 = vmatprep.subr.mxu1 %v10606_v53  ;;  %10627 = vst [vmem:[#allocation251_spill] sm:$0xff] %v7820_v29  ;;  %10628 = vst [vmem:[#allocation252_spill] sm:$0xff] %v7823_v30  ;;  %v7826_v23 = vld [vmem:[#allocation6 + $0x450] sm:$0xff]  ;;  %v7829_v53 = vld [vmem:[#allocation6 + $0x408] sm:$0xff] }
 0x486   :  { %2432 = vmatpush2.msra.mxu0 %v10607_v59  ;;  %2503 = vmatpush2.msra.mxu1 %v10608_v21  ;;  %10629 = vst [vmem:[#allocation253_spill] sm:$0xff] %v7826_v23  ;;  %10630 = vst [vmem:[#allocation15_spill] sm:$0xff] %v7829_v53  ;;  %v7832_v59 = vld [vmem:[#allocation6 + $0x418] sm:$0xff]  ;;  %v7835_v21 = vld [vmem:[#allocation6 + $0x400] sm:$0xff] }
 0x487   :  { %2433 = vmatprep.subr.mxu0 %v10609_v31  ;;  %2504 = vmatprep.subr.mxu1 %v10610_v55  ;;  %10631 = vst [vmem:[#allocation16_spill] sm:$0xff] %v7832_v59  ;;  %10632 = vst [vmem:[#allocation17_spill] sm:$0xff] %v7835_v21  ;;  %v7838_v31 = vld [vmem:[#allocation6 + $0x410] sm:$0xff]  ;;  %v7841_v55 = vld [vmem:[#allocation6 + $0x3e8] sm:$0xff] }
 0x488   :  { %2434 = vmatpush2.msra.mxu0 %v10611_v36  ;;  %2505 = vmatpush2.msra.mxu1 %v10612_v38  ;;  %10633 = vst [vmem:[#allocation18_spill] sm:$0xff] %v7838_v31  ;;  %10634 = vst [vmem:[#allocation19_spill] sm:$0xff] %v7841_v55  ;;  %v7844_v36 = vld [vmem:[#allocation6 + $0x3f8] sm:$0xff] }
 0x489   :  { %2435 = vmatprep.subr.mxu0 %v10613_v44  ;;  %2506 = vmatprep.subr.mxu1 %v10614_v45  ;;  %10635 = vst [vmem:[#allocation20_spill] sm:$0xff] %v7844_v36  ;;  %v10636_v44 = vld [vmem:[#allocation88_spill] sm:$0xff] }
 0x48a   :  { %2436 = vmatpush2.msra.mxu0 %v10615_v46  ;;  %2507 = vmatpush2.msra.mxu1 %v10616_v47 }
 0x48b   :  { %2437 = vmatprep.subr.mxu0 %v10617_v63  ;;  %2508 = vmatprep.subr.mxu1 %v10618_v15  ;;  %v10637_v63 = vld [vmem:[#allocation94_spill] sm:$0xff] }
 0x48c   :  { %2438 = vmatpush2.msra.mxu0 %v10619_v40  ;;  %2509 = vmatpush2.msra.mxu1 %v10620_v33 }
 0x48d   :  { %2439 = vmatprep.subr.mxu0 %v10621_v60  ;;  %2510 = vmatprep.subr.mxu1 %v10622_v8 }
 0x48e   :  { %2440 = vmatpush2.msra.mxu0 %v10623_v35  ;;  %2511 = vmatpush2.msra.mxu1 %v10624_v51 }
 0x48f   :  { %2441 = vmatprep.subr.mxu0 %v7781_v49  ;;  %2512 = vmatprep.subr.mxu1 %v7784_v48 }
 0x490   :  { %2442 = vmatpush2.msra.mxu0 %v7787_v42  ;;  %2513 = vmatpush2.msra.mxu1 %v7790_v54 }
 0x491   :  { %2443 = vmatprep.subr.mxu0 %v7793_v25  ;;  %2514 = vmatprep.subr.mxu1 %v7796_v14 }
 0x492   :  { %2444 = vmatpush2.msra.mxu0 %v7799_v50  ;;  %2515 = vmatpush2.msra.mxu1 %v7802_v58 }
 0x493   :  { %2445 = vmatprep.subr.mxu0 %v7805_v13  ;;  %2516 = vmatprep.subr.mxu1 %v7808_v12 }
 0x494   :  { %2446 = vmatpush2.msra.mxu0 %v7811_v0  ;;  %2517 = vmatpush2.msra.mxu1 %v7814_v28 }
 0x495   :  { %2447 = vmatprep.subr.mxu0 %v7817_v20  ;;  %2518 = vmatprep.subr.mxu1 %v7820_v29  ;;  %v10644_v20 = vld [vmem:[#allocation183_spill] sm:$0xff] }
 0x496   :  { %2448 = vmatpush2.msra.mxu0 %v7823_v30  ;;  %2519 = vmatpush2.msra.mxu1 %v7826_v23 }
 0x497   :  { %2449 = vmatprep.subr.mxu0 %v7829_v53  ;;  %2520 = vmatprep.subr.mxu1 %v7832_v59  ;;  %v10642_v53 = vld [vmem:[#allocation182_spill] sm:$0xff] }
 0x498   :  { %2450 = vmatpush2.msra.mxu0 %v7835_v21  ;;  %2521 = vmatpush2.msra.mxu1 %v7838_v31 }
 0x499   :  { %2529 = vmatprep.subr.mxu0 %v7841_v55  ;;  %2600 = vmatprep.subr.mxu1 %v7844_v36 }
 0x4d7   :  { %v2163_v38 = vpop.f32.mrf.mxu1  ;;  %v2092_v51 = vpop.f32.mrf.mxu0 }
 0x4d8   :  { %v2312_v45 = vadd.f32 %v2163_v38, %v10636_v44  ;;  %v10638_v44 = vld [vmem:[#allocation87_spill] sm:$0xff] }
 0x4d9   :  { %v2165_v46 = vpop.f32.mrf.mxu1  ;;  %v2094_v21 = vpop.f32.mrf.mxu0 }
 0x4da   :  { %v3921_v47 = vmul.f32 -1.442695, %v2312_v45  ;;  %v2313_v15 = vadd.f32 %v2165_v46, %v10637_v63  ;;  %v2310_v45 = vadd.f32 %v2092_v51, %v10638_v44  ;;  %v10639_v46 = vld [vmem:[#allocation93_spill] sm:$0xff]  ;;  %v10645_v51 = vld [vmem:[#allocation163_spill] sm:$0xff] }
 0x4db   :  { %v2311_v63 = vadd.f32 %v2094_v21, %v10639_v46  ;;  %v472_v44 = vadd.f32 %v10645_v51, %v10644_v20  ;;  %v10646_v21 = vld [vmem:[#allocation164_spill] sm:$0xff] }
 0x4dc   :  { %v3922_v40 = vmul.f32 -1.442695, %v2313_v15  ;;  %4055 = vpow2.f32 %v3921_v47  ;;  %v3919_v47 = vmul.f32 -1.442695, %v2310_v45  ;;  %v585_v45 = vadd.f32 %v10646_v21, %v6199_v41 }
 0x4dd   :  { %v3920_v15 = vmul.f32 -1.442695, %v2311_v63 }
 0x4de   :  { %4057 = vpow2.f32 %v3922_v40 }
 0x4e9   :  { %v4056_v33 = vpop.eup %4055 }
 0x4ea   :  { %v2338_v60 = vadd.f32 1.0, %v4056_v33 }
 0x4eb   :  { %v4058_v8 = vpop.eup %4057 }
 0x4ec   :  { %4059 = vrcp.f32 %v2338_v60  ;;  %v2339_v35 = vadd.f32 1.0, %v4058_v8  ;;  %v10640_v8 = vld [vmem:[#allocation181_spill] sm:$0xff] }
 0x4ee   :  { %4061 = vrcp.f32 %v2339_v35  ;;  %v10641_v35 = vld [vmem:[#allocation161_spill] sm:$0xff] }
 0x4ef   :  { %4063 = vpow2.f32 %v3919_v47  ;;  %v470_v59 = vadd.f32 %v10641_v35, %v10640_v8 }
 0x4f0   :  { %4065 = vpow2.f32 %v3920_v15 }
 0x4f9   :  { %v4060_v55 = vpop.eup %4059 }
 0x4fa   :  { %v2356_v36 = vmul.f32 %v4060_v55, %v7345_v11  ;;  %v10643_v55 = vld [vmem:[#allocation162_spill] sm:$0xff] }
 0x4fb   :  { %v4062_v31 = vpop.eup %4061  ;;  %v583_v23 = vadd.f32 %v10643_v55, %v10642_v53 }
 0x4fc   :  { %v2357_v38 = vmul.f32 %v4062_v31, %v7349_v22  ;;  %v4064_v40 = vpop.eup %4063 }
 0x4fd   :  { %v4066_v33 = vpop.eup %4065  ;;  %v2336_v60 = vadd.f32 1.0, %v4064_v40 }
 0x4fe   :  { %v2337_v30 = vadd.f32 1.0, %v4066_v33 }
 0x4ff   :  { %4067 = vrcp.f32 %v2336_v60 }
 0x50c   :  { %v4068_v55 = vpop.eup %4067 }
 0x518   :  { %v2234_v29 = vpop.f32.mrf.mxu0  ;;  %v2305_v31 = vpop.f32.mrf.mxu1 }
 0x519   :  { %v2314_v46 = vadd.f32 %v2234_v29, %v470_v59  ;;  %v2316_v63 = vadd.f32 %v2305_v31, %v583_v23  ;;  %v2370_v29 = vpop.permute.xlu1 %2369 }
 0x51a   :  { %v2236_v47 = vpop.f32.mrf.mxu0  ;;  %v2307_v15 = vpop.f32.mrf.mxu1  ;;  %vm2371_vm12 = vcmp.eq.s32.totalorder %v2370_v29, 1  ;;  %v10676_v29 = vld [vmem:[#allocation212_spill] sm:$0xff] }
 0x51b   :  { %v3923_v40 = vmul.f32 -1.442695, %v2314_v46  ;;  %4069 = vtanh.f32 %v2316_v63  ;;  %v2315_v35 = vadd.f32 %v2236_v47, %v472_v44  ;;  %v2317_v8 = vadd.f32 %v2307_v15, %v585_v45  ;;  %v10669_v15 = vld [vmem:[#allocation205_spill] sm:$0xff] }
 0x51c   :  { %4071 = vrcp.f32 %v2337_v30 }
 0x51d   :  { %4073 = vpow2.f32 %v3923_v40  ;;  %v3924_v33 = vmul.f32 -1.442695, %v2315_v35  ;;  %v10670_v40 = vld [vmem:[#allocation206_spill] sm:$0xff]  ;;  %v10671_v35 = vld [vmem:[#allocation207_spill] sm:$0xff] }
 0x51e   :  { %4075 = vtanh.f32 %v2317_v8 }
 0x51f   :  { %4077 = vpow2.f32 %v3924_v33  ;;  %v10672_v33 = vld [vmem:[#allocation208_spill] sm:$0xff] }
 0x528   :  { %v4070_v53 = vpop.eup %4069 }
 0x529   :  { %v4072_v51 = vpop.eup %4071  ;;  %v2358_v20 = vmul.f32 %v4070_v53, %v4068_v55  ;;  %v10673_v55 = vld [vmem:[#allocation209_spill] sm:$0xff] }
 0x52a   :  { %v4074_v28 = vpop.eup %4073 }
 0x52b   :  { %v4076_v21 = vpop.eup %4075  ;;  %v2340_v23 = vadd.f32 1.0, %v4074_v28  ;;  %v2360_v59 = vadd.f32 %v2358_v20, %v2356_v36 }
 0x52c   :  { %v4078_v60 = vpop.eup %4077  ;;  %v2359_v31 = vmul.f32 %v4076_v21, %v4072_v51  ;;  %v10674_v51 = vld [vmem:[#allocation210_spill] sm:$0xff]  ;;  %v10675_v21 = vld [vmem:[#allocation211_spill] sm:$0xff] }
 0x52d   :  { %4079 = vrcp.f32 %v2340_v23  ;;  %v2341_v44 = vadd.f32 1.0, %v4078_v60  ;;  %v7863_v30 = vsel %vm2371_vm12, %v2360_v59, %v7345_v11  ;;  %v10677_v23 = vld [vmem:[#allocation213_spill] sm:$0xff]  ;;  %v10679_v60 = vld [vmem:[#allocation215_spill] sm:$0xff] }
 0x52e   :  { %4081 = vtanh.f32 %v2360_v59  ;;  %v2361_v8 = vadd.f32 %v2359_v31, %v2357_v38  ;;  %v10668_v38 = vld [vmem:[#allocation204_spill] sm:$0xff]  ;;  %v10678_v59 = vld [vmem:[#allocation214_spill] sm:$0xff] }
 0x52f   :  { %4083 = vrcp.f32 %v2341_v44  ;;  %v10680_v31 = vld [vmem:[#allocation216_spill] sm:$0xff]  ;;  %v10681_v44 = vld [vmem:[#allocation217_spill] sm:$0xff] }
 0x530   :  { %4085 = vtanh.f32 %v2361_v8  ;;  %v7867_v53 = vsel %vm2371_vm12, %v2361_v8, %v7349_v22  ;;  %v10647_v22 = vld [vmem:[#allocation156_spill] sm:$0xff]  ;;  %v10682_v8 = vld [vmem:[#allocation218_spill] sm:$0xff] }
 0x53a   :  { %v4080_v45 = vpop.eup %4079 }
 0x53b   :  { %v4082_v28 = vpop.eup %4081 }
 0x53c   :  { %v4084_v20 = vpop.eup %4083  ;;  %v2364_v36 = vmul.f32 %v4082_v28, %v4080_v45  ;;  %v10683_v45 = vld [vmem:[#allocation219_spill] sm:$0xff]  ;;  %v10684_v28 = vld [vmem:[#allocation220_spill] sm:$0xff] }
 0x53d   :  { %v4086_v46 = vpop.eup %4085 }
 0x53e   :  { %v2365_v63 = vmul.f32 %v4086_v46, %v4084_v20  ;;  %v7877_v11 = vsel %vm2371_vm12, %v2364_v36, %v7357_v9  ;;  %v10649_v9 = vld [vmem:[#allocation185_spill] sm:$0xff]  ;;  %v10686_v36 = vld [vmem:[#allocation222_spill] sm:$0xff]  ;;  %v10687_v46 = vld [vmem:[#allocation223_spill] sm:$0xff] }
 0x53f   :  { %v10685_v20 = vld [vmem:[#allocation221_spill] sm:$0xff] }
 0x540   :  { %v7871_v47 = vsel %vm2371_vm12, %v2365_v63, %v7353_v1  ;;  %v10648_v1 = vld [vmem:[#allocation184_spill] sm:$0xff] }
 0x541   :  { %2451 = vmatprep.mubr.f32.mxu0 %v7871_v47  ;;  %2522 = vmatprep.mubr.f32.mxu1 %v7871_v47  ;;  %v10688_v63 = vld [vmem:[#allocation224_spill] sm:$0xff] }
 0x542   :  { %2452 = vmatmul.mubr.f32.vlgmr.msra.gmra.mxu0 %v7877_v11  ;;  %2523 = vmatmul.mubr.f32.vlgmr.msra.gmra.mxu1 %v7877_v11 }
 0x543   :  { %2530 = vmatpush1.msra.mxu0 %v7363_v43  ;;  %2601 = vmatpush1.msra.mxu1 %v7366_v24  ;;  %v10650_v43 = vld [vmem:[#allocation186_spill] sm:$0xff]  ;;  %v10651_v24 = vld [vmem:[#allocation187_spill] sm:$0xff] }
 0x544   :  { %2531 = vmatprep.subr.mxu0 %v7369_v18  ;;  %2593 = vmatprep.mubr.f32.mxu0 %v7871_v47  ;;  %v10652_v18 = vld [vmem:[#allocation188_spill] sm:$0xff] }
 0x545   :  { %2602 = vmatprep.subr.mxu1 %v7373_v56  ;;  %2664 = vmatprep.mubr.f32.mxu1 %v7871_v47  ;;  %v10653_v56 = vld [vmem:[#allocation189_spill] sm:$0xff] }
 0x546   :  { %2532 = vmatpush1.msra.mxu0 %v7377_v62  ;;  %2603 = vmatpush1.msra.mxu1 %v7380_v2  ;;  %v10654_v62 = vld [vmem:[#allocation190_spill] sm:$0xff]  ;;  %v10655_v2 = vld [vmem:[#allocation191_spill] sm:$0xff] }
 0x547   :  { %2533 = vmatprep.subr.mxu0 %v7383_v57  ;;  %2604 = vmatprep.subr.mxu1 %v7386_v3  ;;  %v10656_v57 = vld [vmem:[#allocation192_spill] sm:$0xff]  ;;  %v10657_v3 = vld [vmem:[#allocation193_spill] sm:$0xff] }
 0x548   :  { %2534 = vmatpush1.msra.mxu0 %v7389_v32  ;;  %2605 = vmatpush1.msra.mxu1 %v7392_v19  ;;  %v10658_v32 = vld [vmem:[#allocation194_spill] sm:$0xff]  ;;  %v10659_v19 = vld [vmem:[#allocation195_spill] sm:$0xff] }
 0x549   :  { %2535 = vmatprep.subr.mxu0 %v7395_v37  ;;  %2606 = vmatprep.subr.mxu1 %v7398_v52  ;;  %v10660_v37 = vld [vmem:[#allocation196_spill] sm:$0xff]  ;;  %v10661_v52 = vld [vmem:[#allocation197_spill] sm:$0xff] }
 0x54a   :  { %2536 = vmatpush1.msra.mxu0 %v7401_v10  ;;  %2607 = vmatpush1.msra.mxu1 %v7404_v39  ;;  %v10662_v10 = vld [vmem:[#allocation198_spill] sm:$0xff]  ;;  %v10663_v39 = vld [vmem:[#allocation199_spill] sm:$0xff] }
 0x54b   :  { %2537 = vmatprep.subr.mxu0 %v7407_v61  ;;  %2608 = vmatprep.subr.mxu1 %v7410_v27  ;;  %v10664_v61 = vld [vmem:[#allocation200_spill] sm:$0xff]  ;;  %v10665_v27 = vld [vmem:[#allocation201_spill] sm:$0xff] }
 0x54c   :  { %2538 = vmatpush1.msra.mxu0 %v7413_v4  ;;  %2609 = vmatpush1.msra.mxu1 %v7416_v17  ;;  %v10666_v4 = vld [vmem:[#allocation202_spill] sm:$0xff]  ;;  %v10667_v17 = vld [vmem:[#allocation203_spill] sm:$0xff] }
 0x54d   :  { %2539 = vmatprep.subr.mxu0 %v10647_v22  ;;  %2610 = vmatprep.subr.mxu1 %v10648_v1  ;;  %v10689_v22 = vld [vmem:[#allocation225_spill] sm:$0xff]  ;;  %v10690_v1 = vld [vmem:[#allocation226_spill] sm:$0xff] }
 0x54e   :  { %2540 = vmatpush1.msra.mxu0 %v10649_v9  ;;  %2611 = vmatpush1.msra.mxu1 %v10650_v43  ;;  %v10691_v9 = vld [vmem:[#allocation227_spill] sm:$0xff]  ;;  %v10692_v43 = vld [vmem:[#allocation228_spill] sm:$0xff] }
 0x54f   :  { %2541 = vmatprep.subr.mxu0 %v10651_v24  ;;  %2612 = vmatprep.subr.mxu1 %v10652_v18  ;;  %v10693_v24 = vld [vmem:[#allocation229_spill] sm:$0xff]  ;;  %v10694_v18 = vld [vmem:[#allocation230_spill] sm:$0xff] }
 0x550   :  { %2542 = vmatpush1.msra.mxu0 %v10653_v56  ;;  %2613 = vmatpush1.msra.mxu1 %v10654_v62  ;;  %v10695_v56 = vld [vmem:[#allocation231_spill] sm:$0xff]  ;;  %v10696_v62 = vld [vmem:[#allocation232_spill] sm:$0xff] }
 0x551   :  { %2543 = vmatprep.subr.mxu0 %v10655_v2  ;;  %2614 = vmatprep.subr.mxu1 %v10656_v57  ;;  %v10697_v2 = vld [vmem:[#allocation233_spill] sm:$0xff]  ;;  %v10698_v57 = vld [vmem:[#allocation234_spill] sm:$0xff] }
 0x552   :  { %2544 = vmatpush1.msra.mxu0 %v10657_v3  ;;  %2615 = vmatpush1.msra.mxu1 %v10658_v32  ;;  %v10699_v3 = vld [vmem:[#allocation235_spill] sm:$0xff]  ;;  %v10700_v32 = vld [vmem:[#allocation236_spill] sm:$0xff] }
 0x553   :  { %2545 = vmatprep.subr.mxu0 %v10659_v19  ;;  %2616 = vmatprep.subr.mxu1 %v10660_v37  ;;  %v10701_v19 = vld [vmem:[#allocation237_spill] sm:$0xff]  ;;  %v10702_v37 = vld [vmem:[#allocation238_spill] sm:$0xff] }
 0x554   :  { %2546 = vmatpush1.msra.mxu0 %v10661_v52  ;;  %2617 = vmatpush1.msra.mxu1 %v10662_v10  ;;  %v10703_v52 = vld [vmem:[#allocation239_spill] sm:$0xff]  ;;  %v10704_v10 = vld [vmem:[#allocation240_spill] sm:$0xff] }
 0x555   :  { %2547 = vmatprep.subr.mxu0 %v10663_v39  ;;  %2618 = vmatprep.subr.mxu1 %v10664_v61  ;;  %v10705_v39 = vld [vmem:[#allocation241_spill] sm:$0xff]  ;;  %v10706_v61 = vld [vmem:[#allocation242_spill] sm:$0xff] }
 0x556   :  { %2548 = vmatpush1.msra.mxu0 %v10665_v27  ;;  %2619 = vmatpush1.msra.mxu1 %v10666_v4  ;;  %v10707_v27 = vld [vmem:[#allocation243_spill] sm:$0xff]  ;;  %v10708_v4 = vld [vmem:[#allocation244_spill] sm:$0xff] }
 0x557   :  { %2549 = vmatprep.subr.mxu0 %v10667_v17  ;;  %2620 = vmatprep.subr.mxu1 %v10668_v38  ;;  %v10709_v17 = vld [vmem:[#allocation245_spill] sm:$0xff]  ;;  %v10710_v38 = vld [vmem:[#allocation246_spill] sm:$0xff] }
 0x558   :  { %2550 = vmatpush1.msra.mxu0 %v10669_v15  ;;  %2621 = vmatpush1.msra.mxu1 %v10670_v40  ;;  %v10711_v15 = vld [vmem:[#allocation247_spill] sm:$0xff]  ;;  %v10712_v40 = vld [vmem:[#allocation248_spill] sm:$0xff] }
 0x559   :  { %2551 = vmatprep.subr.mxu0 %v10671_v35  ;;  %2622 = vmatprep.subr.mxu1 %v10672_v33  ;;  %v7973_v35 = vld [vmem:[#allocation6 + $0x628] sm:$0xff]  ;;  %v7976_v33 = vld [vmem:[#allocation6 + $0x638] sm:$0xff] }
 0x55a   :  { %2552 = vmatpush1.msra.mxu0 %v10673_v55  ;;  %2623 = vmatpush1.msra.mxu1 %v10674_v51  ;;  %v7979_v55 = vld [vmem:[#allocation6 + $0x620] sm:$0xff]  ;;  %v8000_v51 = vld [vmem:[#allocation6 + $0x5b8] sm:$0xff] }
 0x55b   :  { %2553 = vmatprep.subr.mxu0 %v10675_v21  ;;  %2624 = vmatprep.subr.mxu1 %v10676_v29  ;;  %v8003_v21 = vld [vmem:[#allocation6 + $0x5a0] sm:$0xff]  ;;  %v8006_v29 = vld [vmem:[#allocation6 + $0x5b0] sm:$0xff] }
 0x55c   :  { %2554 = vmatpush1.msra.mxu0 %v10677_v23  ;;  %2625 = vmatpush1.msra.mxu1 %v10678_v59  ;;  %v8009_v23 = vld [vmem:[#allocation6 + $0x568] sm:$0xff]  ;;  %v8012_v59 = vld [vmem:[#allocation6 + $0x578] sm:$0xff] }
 0x55d   :  { %2555 = vmatprep.subr.mxu0 %v10679_v60  ;;  %2626 = vmatprep.subr.mxu1 %v10680_v31  ;;  %v8015_v60 = vld [vmem:[#allocation6 + $0x560] sm:$0xff]  ;;  %v8018_v31 = vld [vmem:[#allocation6 + $0x570] sm:$0xff] }
 0x55e   :  { %2556 = vmatpush1.msra.mxu0 %v10681_v44  ;;  %2627 = vmatpush1.msra.mxu1 %v10682_v8  ;;  %v8021_v44 = vld [vmem:[#allocation6 + $0x528] sm:$0xff]  ;;  %v8024_v8 = vld [vmem:[#allocation6 + $0x538] sm:$0xff] }
 0x55f   :  { %2557 = vmatprep.subr.mxu0 %v10683_v45  ;;  %2628 = vmatprep.subr.mxu1 %v10684_v28  ;;  %v8027_v45 = vld [vmem:[#allocation6 + $0x520] sm:$0xff]  ;;  %v8030_v28 = vld [vmem:[#allocation6 + $0x530] sm:$0xff] }
 0x560   :  { %2558 = vmatpush1.msra.mxu0 %v10685_v20  ;;  %2629 = vmatpush1.msra.mxu1 %v10686_v36  ;;  %v8033_v20 = vld [vmem:[#allocation6 + $0x4e8] sm:$0xff]  ;;  %v8036_v36 = vld [vmem:[#allocation6 + $0x4f8] sm:$0xff] }
 0x561   :  { %2559 = vmatprep.subr.mxu0 %v10687_v46  ;;  %2630 = vmatprep.subr.mxu1 %v10688_v63  ;;  %v8039_v46 = vld [vmem:[#allocation6 + $0x4e0] sm:$0xff]  ;;  %v8042_v63 = vld [vmem:[#allocation6 + $0x4f0] sm:$0xff] }
 0x562   :  { %2560 = vmatpush1.msra.mxu0 %v10689_v22  ;;  %2631 = vmatpush1.msra.mxu1 %v10690_v1  ;;  %v8045_v22 = vld [vmem:[#allocation6 + $0x4a8] sm:$0xff]  ;;  %v8048_v1 = vld [vmem:[#allocation6 + $0x4b8] sm:$0xff] }
 0x563   :  { %2561 = vmatprep.subr.mxu0 %v10691_v9  ;;  %2632 = vmatprep.subr.mxu1 %v10692_v43  ;;  %v8051_v9 = vld [vmem:[#allocation6 + $0x4a0] sm:$0xff]  ;;  %v8054_v43 = vld [vmem:[#allocation6 + $0x4b0] sm:$0xff] }
 0x564   :  { %2562 = vmatpush2.msra.mxu0 %v10693_v24  ;;  %2633 = vmatpush2.msra.mxu1 %v10694_v18  ;;  %v8057_v24 = vld [vmem:[#allocation6 + $0x468] sm:$0xff]  ;;  %v8060_v18 = vld [vmem:[#allocation6 + $0x478] sm:$0xff] }
 0x565   :  { %2563 = vmatprep.subr.mxu0 %v10695_v56  ;;  %2634 = vmatprep.subr.mxu1 %v10696_v62  ;;  %v8063_v56 = vld [vmem:[#allocation6 + $0x460] sm:$0xff]  ;;  %v8066_v62 = vld [vmem:[#allocation6 + $0x470] sm:$0xff] }
 0x566   :  { %2564 = vmatpush2.msra.mxu0 %v10697_v2  ;;  %2635 = vmatpush2.msra.mxu1 %v10698_v57  ;;  %v8069_v2 = vld [vmem:[#allocation6 + $0x428] sm:$0xff]  ;;  %v8072_v57 = vld [vmem:[#allocation6 + $0x438] sm:$0xff] }
 0x567   :  { %2565 = vmatprep.subr.mxu0 %v10699_v3  ;;  %2636 = vmatprep.subr.mxu1 %v10700_v32  ;;  %v8075_v3 = vld [vmem:[#allocation6 + $0x420] sm:$0xff]  ;;  %v8078_v32 = vld [vmem:[#allocation6 + $0x430] sm:$0xff] }
 0x568   :  { %2566 = vmatpush2.msra.mxu0 %v10701_v19  ;;  %2637 = vmatpush2.msra.mxu1 %v10702_v37  ;;  %10713 = vst [vmem:[#allocation21_spill] sm:$0xff] %v8078_v32  ;;  %v8083_v19 = vld [vmem:[#allocation6 + $0x3c8] sm:$0xff]  ;;  %v8086_v37 = vld [vmem:[#allocation6 + $0x3d8] sm:$0xff] }
 0x569   :  { %2567 = vmatprep.subr.mxu0 %v10703_v52  ;;  %2638 = vmatprep.subr.mxu1 %v10704_v10  ;;  %10714 = vst [vmem:[#allocation22_spill] sm:$0xff] %v8083_v19  ;;  %10715 = vst [vmem:[#allocation76_spill] sm:$0xff] %v8086_v37  ;;  %v8089_v52 = vld [vmem:[#allocation6 + $0x3c0] sm:$0xff]  ;;  %v8092_v10 = vld [vmem:[#allocation6 + $0x3d0] sm:$0xff] }
 0x56a   :  { %2568 = vmatpush2.msra.mxu0 %v10705_v39  ;;  %2639 = vmatpush2.msra.mxu1 %v10706_v61  ;;  %10716 = vst [vmem:[#allocation82_spill] sm:$0xff] %v8089_v52  ;;  %10717 = vst [vmem:[#allocation75_spill] sm:$0xff] %v8092_v10  ;;  %v8095_v39 = vld [vmem:[#allocation6 + $0x388] sm:$0xff]  ;;  %v8098_v61 = vld [vmem:[#allocation6 + $0x398] sm:$0xff] }
 0x56b   :  { %2569 = vmatprep.subr.mxu0 %v10707_v27  ;;  %2640 = vmatprep.subr.mxu1 %v10708_v4  ;;  %10718 = vst [vmem:[#allocation81_spill] sm:$0xff] %v8095_v39  ;;  %10719 = vst [vmem:[#allocation157_spill] sm:$0xff] %v8098_v61  ;;  %v8101_v27 = vld [vmem:[#allocation6 + $0x380] sm:$0xff]  ;;  %v8104_v4 = vld [vmem:[#allocation6 + $0x390] sm:$0xff] }
 0x56c   :  { %2570 = vmatpush2.msra.mxu0 %v10709_v17  ;;  %2641 = vmatpush2.msra.mxu1 %v10710_v38  ;;  %10720 = vst [vmem:[#allocation158_spill] sm:$0xff] %v8101_v27  ;;  %10721 = vst [vmem:[#allocation159_spill] sm:$0xff] %v8104_v4  ;;  %v8107_v17 = vld [vmem:[#allocation6 + $0x348] sm:$0xff]  ;;  %v8110_v38 = vld [vmem:[#allocation6 + $0x358] sm:$0xff] }
 0x56d   :  { %2571 = vmatprep.subr.mxu0 %v10711_v15  ;;  %2642 = vmatprep.subr.mxu1 %v10712_v40  ;;  %10722 = vst [vmem:[#allocation160_spill] sm:$0xff] %v8107_v17  ;;  %10723 = vst [vmem:[#allocation23_spill] sm:$0xff] %v8110_v38  ;;  %v8113_v15 = vld [vmem:[#allocation6 + $0x340] sm:$0xff]  ;;  %v8116_v40 = vld [vmem:[#allocation6 + $0x350] sm:$0xff] }
 0x56e   :  { %2572 = vmatpush2.msra.mxu0 %v7617_v5  ;;  %2643 = vmatpush2.msra.mxu1 %v7620_v7  ;;  %v7982_v5 = vld [vmem:[#allocation6 + $0x630] sm:$0xff]  ;;  %v7985_v7 = vld [vmem:[#allocation6 + $0x5e8] sm:$0xff]  ;;  %10724 = vst [vmem:[#allocation24_spill] sm:$0xff] %v8113_v15  ;;  %10725 = vst [vmem:[#allocation25_spill] sm:$0xff] %v8116_v40 }
 0x56f   :  { %2573 = vmatprep.subr.mxu0 %v7623_v6  ;;  %2644 = vmatprep.subr.mxu1 %v7626_v16  ;;  %v7988_v6 = vld [vmem:[#allocation6 + $0x5f8] sm:$0xff]  ;;  %v7991_v16 = vld [vmem:[#allocation6 + $0x5e0] sm:$0xff] }
 0x570   :  { %2574 = vmatpush2.msra.mxu0 %v7629_v26  ;;  %2645 = vmatpush2.msra.mxu1 %v7632_v34  ;;  %v7994_v26 = vld [vmem:[#allocation6 + $0x5f0] sm:$0xff]  ;;  %v7997_v34 = vld [vmem:[#allocation6 + $0x5a8] sm:$0xff] }
 0x571   :  { %2575 = vmatprep.subr.mxu0 %v7973_v35  ;;  %2646 = vmatprep.subr.mxu1 %v7976_v33 }
 0x572   :  { %2576 = vmatpush2.msra.mxu0 %v7979_v55  ;;  %2647 = vmatpush2.msra.mxu1 %v7982_v5 }
 0x573   :  { %2577 = vmatprep.subr.mxu0 %v7985_v7  ;;  %2648 = vmatprep.subr.mxu1 %v7988_v6 }
 0x574   :  { %2578 = vmatpush2.msra.mxu0 %v7991_v16  ;;  %2649 = vmatpush2.msra.mxu1 %v7994_v26 }
 0x575   :  { %2579 = vmatprep.subr.mxu0 %v7997_v34  ;;  %2650 = vmatprep.subr.mxu1 %v8000_v51 }
 0x576   :  { %2580 = vmatpush2.msra.mxu0 %v8003_v21  ;;  %2651 = vmatpush2.msra.mxu1 %v8006_v29 }
 0x577   :  { %2581 = vmatprep.subr.mxu0 %v8009_v23  ;;  %2652 = vmatprep.subr.mxu1 %v8012_v59 }
 0x578   :  { %2582 = vmatpush2.msra.mxu0 %v8015_v60  ;;  %2653 = vmatpush2.msra.mxu1 %v8018_v31 }
 0x579   :  { %2583 = vmatprep.subr.mxu0 %v8021_v44  ;;  %2654 = vmatprep.subr.mxu1 %v8024_v8 }
 0x57a   :  { %2584 = vmatpush2.msra.mxu0 %v8027_v45  ;;  %2655 = vmatpush2.msra.mxu1 %v8030_v28 }
 0x57b   :  { %2585 = vmatprep.subr.mxu0 %v8033_v20  ;;  %2656 = vmatprep.subr.mxu1 %v8036_v36 }
 0x57c   :  { %2586 = vmatpush2.msra.mxu0 %v8039_v46  ;;  %2657 = vmatpush2.msra.mxu1 %v8042_v63 }
 0x57d   :  { %2587 = vmatprep.subr.mxu0 %v8045_v22  ;;  %2658 = vmatprep.subr.mxu1 %v8048_v1 }
 0x57e   :  { %2588 = vmatpush2.msra.mxu0 %v8051_v9  ;;  %2659 = vmatpush2.msra.mxu1 %v8054_v43 }
 0x57f   :  { %2589 = vmatprep.subr.mxu0 %v8057_v24  ;;  %2660 = vmatprep.subr.mxu1 %v8060_v18 }
 0x580   :  { %2590 = vmatpush2.msra.mxu0 %v8063_v56  ;;  %2661 = vmatpush2.msra.mxu1 %v8066_v62 }
 0x581   :  { %2591 = vmatprep.subr.mxu0 %v8069_v2  ;;  %2662 = vmatprep.subr.mxu1 %v8072_v57 }
 0x582   :  { %2592 = vmatpush2.msra.mxu0 %v8075_v3  ;;  %2663 = vmatpush2.msra.mxu1 %v8078_v32 }
 0x583   :  { %2594 = vmatmul.mubr.f32.vlgmr.msra.gmra.mxu0 %v7877_v11  ;;  %2665 = vmatmul.mubr.f32.vlgmr.msra.gmra.mxu1 %v7877_v11 }
 0x584   :  { %2748 = vmatprep.subr.mxu0 %v8083_v19  ;;  %2819 = vmatprep.subr.mxu1 %v8086_v37  ;;  %v10841_v19 = vld [vmem:[#allocation183_spill] sm:$0xff] }
 0x585   :  { %2749 = vmatpush1.msra.mxu0 %v8089_v52  ;;  %2820 = vmatpush1.msra.mxu1 %v8092_v10 }
 0x586   :  { %2750 = vmatprep.subr.mxu0 %v8095_v39  ;;  %2821 = vmatprep.subr.mxu1 %v8098_v61  ;;  %v10839_v39 = vld [vmem:[#allocation182_spill] sm:$0xff] }
 0x587   :  { %2751 = vmatpush1.msra.mxu0 %v8101_v27  ;;  %2822 = vmatpush1.msra.mxu1 %v8104_v4  ;;  %v8119_v27 = vld [vmem:[#allocation6 + $0x308] sm:$0xff]  ;;  %v8122_v4 = vld [vmem:[#allocation6 + $0x318] sm:$0xff] }
 0x588   :  { %2752 = vmatprep.subr.mxu0 %v8107_v17  ;;  %2823 = vmatprep.subr.mxu1 %v8110_v38  ;;  %10726 = vst [vmem:[#allocation26_spill] sm:$0xff] %v8119_v27  ;;  %10727 = vst [vmem:[#allocation27_spill] sm:$0xff] %v8122_v4  ;;  %v8125_v17 = vld [vmem:[#allocation6 + $0x300] sm:$0xff]  ;;  %v8128_v38 = vld [vmem:[#allocation6 + $0x310] sm:$0xff] }
 0x589   :  { %2753 = vmatpush1.msra.mxu0 %v8113_v15  ;;  %2824 = vmatpush1.msra.mxu1 %v8116_v40  ;;  %10728 = vst [vmem:[#allocation28_spill] sm:$0xff] %v8125_v17  ;;  %10729 = vst [vmem:[#allocation29_spill] sm:$0xff] %v8128_v38  ;;  %v8131_v15 = vld [vmem:[#allocation6 + $0x2c8] sm:$0xff]  ;;  %v8134_v40 = vld [vmem:[#allocation6 + $0x2d8] sm:$0xff] }
 0x58a   :  { %2754 = vmatprep.subr.mxu0 %v8119_v27  ;;  %2825 = vmatprep.subr.mxu1 %v8122_v4  ;;  %10730 = vst [vmem:[#allocation30_spill] sm:$0xff] %v8131_v15  ;;  %10731 = vst [vmem:[#allocation31_spill] sm:$0xff] %v8134_v40  ;;  %v8137_v27 = vld [vmem:[#allocation6 + $0x2c0] sm:$0xff]  ;;  %v8140_v4 = vld [vmem:[#allocation6 + $0x2d0] sm:$0xff] }
 0x58b   :  { %2755 = vmatpush1.msra.mxu0 %v8125_v17  ;;  %2826 = vmatpush1.msra.mxu1 %v8128_v38  ;;  %10732 = vst [vmem:[#allocation32_spill] sm:$0xff] %v8137_v27  ;;  %10733 = vst [vmem:[#allocation33_spill] sm:$0xff] %v8140_v4  ;;  %v8143_v17 = vld [vmem:[#allocation6 + $0x288] sm:$0xff]  ;;  %v8146_v38 = vld [vmem:[#allocation6 + $0x298] sm:$0xff] }
 0x58c   :  { %2756 = vmatprep.subr.mxu0 %v8131_v15  ;;  %2827 = vmatprep.subr.mxu1 %v8134_v40  ;;  %10734 = vst [vmem:[#allocation34_spill] sm:$0xff] %v8143_v17  ;;  %10735 = vst [vmem:[#allocation35_spill] sm:$0xff] %v8146_v38  ;;  %v8149_v15 = vld [vmem:[#allocation6 + $0x280] sm:$0xff]  ;;  %v8152_v40 = vld [vmem:[#allocation6 + $0x290] sm:$0xff] }
 0x58d   :  { %2757 = vmatpush1.msra.mxu0 %v8137_v27  ;;  %2828 = vmatpush1.msra.mxu1 %v8140_v4  ;;  %10736 = vst [vmem:[#allocation36_spill] sm:$0xff] %v8149_v15  ;;  %10737 = vst [vmem:[#allocation37_spill] sm:$0xff] %v8152_v40  ;;  %v8155_v27 = vld [vmem:[#allocation6 + $0x248] sm:$0xff]  ;;  %v8158_v4 = vld [vmem:[#allocation6 + $0x258] sm:$0xff] }
 0x58e   :  { %2758 = vmatprep.subr.mxu0 %v8143_v17  ;;  %2829 = vmatprep.subr.mxu1 %v8146_v38  ;;  %10738 = vst [vmem:[#allocation38_spill] sm:$0xff] %v8155_v27  ;;  %10739 = vst [vmem:[#allocation39_spill] sm:$0xff] %v8158_v4  ;;  %v8161_v17 = vld [vmem:[#allocation6 + $0x240] sm:$0xff]  ;;  %v8164_v38 = vld [vmem:[#allocation6 + $0x250] sm:$0xff] }
 0x58f   :  { %2759 = vmatpush1.msra.mxu0 %v8149_v15  ;;  %2830 = vmatpush1.msra.mxu1 %v8152_v40  ;;  %10740 = vst [vmem:[#allocation40_spill] sm:$0xff] %v8161_v17  ;;  %10741 = vst [vmem:[#allocation41_spill] sm:$0xff] %v8164_v38  ;;  %v8167_v15 = vld [vmem:[#allocation6 + $0x208] sm:$0xff]  ;;  %v8170_v40 = vld [vmem:[#allocation6 + $0x218] sm:$0xff] }
 0x590   :  { %2760 = vmatprep.subr.mxu0 %v8155_v27  ;;  %2831 = vmatprep.subr.mxu1 %v8158_v4  ;;  %10742 = vst [vmem:[#allocation42_spill] sm:$0xff] %v8167_v15  ;;  %10743 = vst [vmem:[#allocation43_spill] sm:$0xff] %v8170_v40  ;;  %v8173_v27 = vld [vmem:[#allocation6 + $0x200] sm:$0xff]  ;;  %v8176_v4 = vld [vmem:[#allocation6 + $0x210] sm:$0xff] }
 0x591   :  { %2761 = vmatpush1.msra.mxu0 %v8161_v17  ;;  %2832 = vmatpush1.msra.mxu1 %v8164_v38  ;;  %10744 = vst [vmem:[#allocation44_spill] sm:$0xff] %v8173_v27  ;;  %10745 = vst [vmem:[#allocation45_spill] sm:$0xff] %v8176_v4  ;;  %v8179_v17 = vld [vmem:[#allocation6 + $0x1c8] sm:$0xff]  ;;  %v8182_v38 = vld [vmem:[#allocation6 + $0x1d8] sm:$0xff] }
 0x592   :  { %2762 = vmatprep.subr.mxu0 %v8167_v15  ;;  %2833 = vmatprep.subr.mxu1 %v8170_v40  ;;  %10746 = vst [vmem:[#allocation46_spill] sm:$0xff] %v8179_v17  ;;  %10747 = vst [vmem:[#allocation47_spill] sm:$0xff] %v8182_v38  ;;  %v8185_v15 = vld [vmem:[#allocation6 + $0x1c0] sm:$0xff]  ;;  %v8188_v40 = vld [vmem:[#allocation6 + $0x1d0] sm:$0xff] }
 0x593   :  { %2763 = vmatpush1.msra.mxu0 %v8173_v27  ;;  %2834 = vmatpush1.msra.mxu1 %v8176_v4  ;;  %10748 = vst [vmem:[#allocation48_spill] sm:$0xff] %v8185_v15  ;;  %10749 = vst [vmem:[#allocation49_spill] sm:$0xff] %v8188_v40  ;;  %v8191_v27 = vld [vmem:[#allocation6 + $0x188] sm:$0xff]  ;;  %v8194_v4 = vld [vmem:[#allocation6 + $0x198] sm:$0xff] }
 0x594   :  { %2764 = vmatprep.subr.mxu0 %v8179_v17  ;;  %2835 = vmatprep.subr.mxu1 %v8182_v38  ;;  %10750 = vst [vmem:[#allocation50_spill] sm:$0xff] %v8191_v27  ;;  %10751 = vst [vmem:[#allocation51_spill] sm:$0xff] %v8194_v4  ;;  %v8197_v17 = vld [vmem:[#allocation6 + $0x180] sm:$0xff]  ;;  %v8200_v38 = vld [vmem:[#allocation6 + $0x190] sm:$0xff] }
 0x595   :  { %2765 = vmatpush1.msra.mxu0 %v8185_v15  ;;  %2836 = vmatpush1.msra.mxu1 %v8188_v40  ;;  %10752 = vst [vmem:[#allocation52_spill] sm:$0xff] %v8197_v17  ;;  %10753 = vst [vmem:[#allocation53_spill] sm:$0xff] %v8200_v38  ;;  %v8203_v15 = vld [vmem:[#allocation6 + $0x148] sm:$0xff]  ;;  %v8206_v40 = vld [vmem:[#allocation6 + $0x158] sm:$0xff] }
 0x596   :  { %2766 = vmatprep.subr.mxu0 %v8191_v27  ;;  %2837 = vmatprep.subr.mxu1 %v8194_v4  ;;  %10754 = vst [vmem:[#allocation54_spill] sm:$0xff] %v8203_v15  ;;  %10755 = vst [vmem:[#allocation55_spill] sm:$0xff] %v8206_v40  ;;  %v8209_v27 = vld [vmem:[#allocation6 + $0x140] sm:$0xff]  ;;  %v8212_v4 = vld [vmem:[#allocation6 + $0x150] sm:$0xff] }
 0x597   :  { %2767 = vmatpush1.msra.mxu0 %v8197_v17  ;;  %2838 = vmatpush1.msra.mxu1 %v8200_v38  ;;  %10756 = vst [vmem:[#allocation56_spill] sm:$0xff] %v8209_v27  ;;  %10757 = vst [vmem:[#allocation57_spill] sm:$0xff] %v8212_v4  ;;  %v8215_v17 = vld [vmem:[#allocation6 + $0x108] sm:$0xff]  ;;  %v8218_v38 = vld [vmem:[#allocation6 + $0x118] sm:$0xff] }
 0x598   :  { %2768 = vmatprep.subr.mxu0 %v8203_v15  ;;  %2839 = vmatprep.subr.mxu1 %v8206_v40  ;;  %10758 = vst [vmem:[#allocation58_spill] sm:$0xff] %v8215_v17  ;;  %10759 = vst [vmem:[#allocation59_spill] sm:$0xff] %v8218_v38  ;;  %v8221_v15 = vld [vmem:[#allocation6 + $0x100] sm:$0xff]  ;;  %v8224_v40 = vld [vmem:[#allocation6 + $0x110] sm:$0xff] }
 0x599   :  { %2769 = vmatpush1.msra.mxu0 %v8209_v27  ;;  %2840 = vmatpush1.msra.mxu1 %v8212_v4  ;;  %10760 = vst [vmem:[#allocation60_spill] sm:$0xff] %v8221_v15  ;;  %10761 = vst [vmem:[#allocation61_spill] sm:$0xff] %v8224_v40  ;;  %v8227_v27 = vld [vmem:[#allocation6 + $0xc8] sm:$0xff]  ;;  %v8230_v4 = vld [vmem:[#allocation6 + $0xd8] sm:$0xff] }
 0x59a   :  { %2770 = vmatprep.subr.mxu0 %v8215_v17  ;;  %2841 = vmatprep.subr.mxu1 %v8218_v38  ;;  %10762 = vst [vmem:[#allocation62_spill] sm:$0xff] %v8227_v27  ;;  %10763 = vst [vmem:[#allocation65_spill] sm:$0xff] %v8230_v4  ;;  %v8233_v17 = vld [vmem:[#allocation6 + $0xc0] sm:$0xff]  ;;  %v8236_v38 = vld [vmem:[#allocation6 + $0xd0] sm:$0xff] }
 0x59b   :  { %2771 = vmatpush1.msra.mxu0 %v8221_v15  ;;  %2842 = vmatpush1.msra.mxu1 %v8224_v40  ;;  %10764 = vst [vmem:[#allocation66_spill] sm:$0xff] %v8233_v17  ;;  %10765 = vst [vmem:[#allocation67_spill] sm:$0xff] %v8236_v38  ;;  %v8239_v15 = vld [vmem:[#allocation6 + $0x88] sm:$0xff]  ;;  %v8242_v40 = vld [vmem:[#allocation6 + $0x98] sm:$0xff] }
 0x59c   :  { %2772 = vmatprep.subr.mxu0 %v8227_v27  ;;  %2843 = vmatprep.subr.mxu1 %v8230_v4  ;;  %10766 = vst [vmem:[#allocation68_spill] sm:$0xff] %v8239_v15  ;;  %10767 = vst [vmem:[#allocation71_spill] sm:$0xff] %v8242_v40  ;;  %v8245_v27 = vld [vmem:[#allocation6 + $0x80] sm:$0xff]  ;;  %v8248_v4 = vld [vmem:[#allocation6 + $0x90] sm:$0xff] }
 0x59d   :  { %2773 = vmatpush1.msra.mxu0 %v8233_v17  ;;  %2844 = vmatpush1.msra.mxu1 %v8236_v38  ;;  %10768 = vst [vmem:[#allocation72_spill] sm:$0xff] %v8245_v27  ;;  %10769 = vst [vmem:[#allocation73_spill] sm:$0xff] %v8248_v4  ;;  %v8251_v17 = vld [vmem:[#allocation6 + $0x48] sm:$0xff]  ;;  %v8254_v38 = vld [vmem:[#allocation6 + $0x58] sm:$0xff] }
 0x59e   :  { %2774 = vmatprep.subr.mxu0 %v8239_v15  ;;  %2845 = vmatprep.subr.mxu1 %v8242_v40  ;;  %10770 = vst [vmem:[#allocation74_spill] sm:$0xff] %v8251_v17  ;;  %10771 = vst [vmem:[#allocation77_spill] sm:$0xff] %v8254_v38  ;;  %v8257_v15 = vld [vmem:[#allocation6 + $0x40] sm:$0xff]  ;;  %v8260_v40 = vld [vmem:[#allocation6 + $0x50] sm:$0xff] }
 0x59f   :  { %2775 = vmatpush1.msra.mxu0 %v8245_v27  ;;  %2846 = vmatpush1.msra.mxu1 %v8248_v4  ;;  %10772 = vst [vmem:[#allocation78_spill] sm:$0xff] %v8257_v15  ;;  %10773 = vst [vmem:[#allocation79_spill] sm:$0xff] %v8260_v40  ;;  %v8263_v27 = vld [vmem:[#allocation6 + $0x8] sm:$0xff]  ;;  %v8266_v4 = vld [vmem:[#allocation6 + $0x18] sm:$0xff] }
 0x5a0   :  { %2776 = vmatprep.subr.mxu0 %v8251_v17  ;;  %2847 = vmatprep.subr.mxu1 %v8254_v38  ;;  %10774 = vst [vmem:[#allocation80_spill] sm:$0xff] %v8263_v27  ;;  %10775 = vst [vmem:[#allocation83_spill] sm:$0xff] %v8266_v4  ;;  %v8269_v17 = vld [vmem:[#allocation6] sm:$0xff]  ;;  %v8272_v38 = vld [vmem:[#allocation6 + $0x10] sm:$0xff] }
 0x5a1   :  { %2777 = vmatpush1.msra.mxu0 %v8257_v15  ;;  %2848 = vmatpush1.msra.mxu1 %v8260_v40  ;;  %10776 = vst [vmem:[#allocation84_spill] sm:$0xff] %v8269_v17  ;;  %10777 = vst [vmem:[#allocation85_spill] sm:$0xff] %v8272_v38  ;;  %v8275_v15 = vld [vmem:[#allocation6 + $0x7c8] sm:$0xff]  ;;  %v8278_v40 = vld [vmem:[#allocation6 + $0x7d8] sm:$0xff] }
 0x5a2   :  { %2778 = vmatprep.subr.mxu0 %v8263_v27  ;;  %2849 = vmatprep.subr.mxu1 %v8266_v4  ;;  %10778 = vst [vmem:[#allocation86_spill] sm:$0xff] %v8275_v15  ;;  %10779 = vst [vmem:[#allocation89_spill] sm:$0xff] %v8278_v40  ;;  %v8281_v27 = vld [vmem:[#allocation6 + $0x7c0] sm:$0xff]  ;;  %v8284_v4 = vld [vmem:[#allocation6 + $0x7d0] sm:$0xff] }
 0x5a3   :  { %2779 = vmatpush1.msra.mxu0 %v8269_v17  ;;  %2850 = vmatpush1.msra.mxu1 %v8272_v38  ;;  %10780 = vst [vmem:[#allocation90_spill] sm:$0xff] %v8281_v27  ;;  %10781 = vst [vmem:[#allocation91_spill] sm:$0xff] %v8284_v4  ;;  %v8287_v17 = vld [vmem:[#allocation6 + $0x788] sm:$0xff]  ;;  %v8290_v38 = vld [vmem:[#allocation6 + $0x798] sm:$0xff] }
 0x5a4   :  { %2780 = vmatprep.subr.mxu0 %v8275_v15  ;;  %2851 = vmatprep.subr.mxu1 %v8278_v40  ;;  %10782 = vst [vmem:[#allocation92_spill] sm:$0xff] %v8287_v17  ;;  %10783 = vst [vmem:[#allocation95_spill] sm:$0xff] %v8290_v38  ;;  %v8293_v15 = vld [vmem:[#allocation6 + $0x780] sm:$0xff]  ;;  %v8296_v40 = vld [vmem:[#allocation6 + $0x790] sm:$0xff] }
 0x5a5   :  { %2781 = vmatpush2.msra.mxu0 %v8281_v27  ;;  %2852 = vmatpush2.msra.mxu1 %v8284_v4  ;;  %10784 = vst [vmem:[#allocation96_spill] sm:$0xff] %v8293_v15  ;;  %10785 = vst [vmem:[#allocation97_spill] sm:$0xff] %v8296_v40  ;;  %v8299_v27 = vld [vmem:[#allocation6 + $0x748] sm:$0xff]  ;;  %v8302_v4 = vld [vmem:[#allocation6 + $0x758] sm:$0xff] }
 0x5a6   :  { %2782 = vmatprep.subr.mxu0 %v8287_v17  ;;  %2853 = vmatprep.subr.mxu1 %v8290_v38  ;;  %10786 = vst [vmem:[#allocation98_spill] sm:$0xff] %v8299_v27  ;;  %10787 = vst [vmem:[#allocation101_spill] sm:$0xff] %v8302_v4  ;;  %v8305_v17 = vld [vmem:[#allocation6 + $0x740] sm:$0xff]  ;;  %v8308_v38 = vld [vmem:[#allocation6 + $0x750] sm:$0xff] }
 0x5a7   :  { %2783 = vmatpush2.msra.mxu0 %v8293_v15  ;;  %2854 = vmatpush2.msra.mxu1 %v8296_v40  ;;  %10788 = vst [vmem:[#allocation102_spill] sm:$0xff] %v8305_v17  ;;  %10789 = vst [vmem:[#allocation103_spill] sm:$0xff] %v8308_v38  ;;  %v8311_v15 = vld [vmem:[#allocation6 + $0x708] sm:$0xff]  ;;  %v8314_v40 = vld [vmem:[#allocation6 + $0x718] sm:$0xff] }
 0x5a8   :  { %2784 = vmatprep.subr.mxu0 %v8299_v27  ;;  %2855 = vmatprep.subr.mxu1 %v8302_v4  ;;  %10790 = vst [vmem:[#allocation104_spill] sm:$0xff] %v8311_v15  ;;  %10791 = vst [vmem:[#allocation107_spill] sm:$0xff] %v8314_v40  ;;  %v8317_v27 = vld [vmem:[#allocation6 + $0x700] sm:$0xff]  ;;  %v8320_v4 = vld [vmem:[#allocation6 + $0x710] sm:$0xff] }
 0x5a9   :  { %2785 = vmatpush2.msra.mxu0 %v8305_v17  ;;  %2856 = vmatpush2.msra.mxu1 %v8308_v38  ;;  %10792 = vst [vmem:[#allocation108_spill] sm:$0xff] %v8317_v27  ;;  %10793 = vst [vmem:[#allocation109_spill] sm:$0xff] %v8320_v4  ;;  %v8323_v17 = vld [vmem:[#allocation6 + $0x6c8] sm:$0xff]  ;;  %v8326_v38 = vld [vmem:[#allocation6 + $0x6d8] sm:$0xff] }
 0x5aa   :  { %2786 = vmatprep.subr.mxu0 %v8311_v15  ;;  %2857 = vmatprep.subr.mxu1 %v8314_v40  ;;  %10794 = vst [vmem:[#allocation110_spill] sm:$0xff] %v8323_v17  ;;  %10795 = vst [vmem:[#allocation113_spill] sm:$0xff] %v8326_v38  ;;  %v8329_v15 = vld [vmem:[#allocation6 + $0x6c0] sm:$0xff]  ;;  %v8332_v40 = vld [vmem:[#allocation6 + $0x6d0] sm:$0xff] }
 0x5ab   :  { %2787 = vmatpush2.msra.mxu0 %v8317_v27  ;;  %2858 = vmatpush2.msra.mxu1 %v8320_v4  ;;  %10796 = vst [vmem:[#allocation114_spill] sm:$0xff] %v8329_v15  ;;  %10797 = vst [vmem:[#allocation115_spill] sm:$0xff] %v8332_v40  ;;  %v8335_v27 = vld [vmem:[#allocation6 + $0x688] sm:$0xff]  ;;  %v8338_v4 = vld [vmem:[#allocation6 + $0x698] sm:$0xff] }
 0x5ac   :  { %2788 = vmatprep.subr.mxu0 %v8323_v17  ;;  %2859 = vmatprep.subr.mxu1 %v8326_v38  ;;  %10798 = vst [vmem:[#allocation116_spill] sm:$0xff] %v8335_v27  ;;  %10799 = vst [vmem:[#allocation119_spill] sm:$0xff] %v8338_v4  ;;  %v8341_v17 = vld [vmem:[#allocation6 + $0x680] sm:$0xff]  ;;  %v8344_v38 = vld [vmem:[#allocation6 + $0x690] sm:$0xff] }
 0x5ad   :  { %2789 = vmatpush2.msra.mxu0 %v8329_v15  ;;  %2860 = vmatpush2.msra.mxu1 %v8332_v40  ;;  %10800 = vst [vmem:[#allocation120_spill] sm:$0xff] %v8341_v17  ;;  %10801 = vst [vmem:[#allocation121_spill] sm:$0xff] %v8344_v38  ;;  %v8347_v15 = vld [vmem:[#allocation6 + $0x648] sm:$0xff]  ;;  %v8350_v40 = vld [vmem:[#allocation6 + $0x658] sm:$0xff] }
 0x5ae   :  { %2790 = vmatprep.subr.mxu0 %v8335_v27  ;;  %2861 = vmatprep.subr.mxu1 %v8338_v4  ;;  %10802 = vst [vmem:[#allocation122_spill] sm:$0xff] %v8347_v15  ;;  %10803 = vst [vmem:[#allocation125_spill] sm:$0xff] %v8350_v40  ;;  %v8353_v27 = vld [vmem:[#allocation6 + $0x640] sm:$0xff]  ;;  %v8356_v4 = vld [vmem:[#allocation6 + $0x650] sm:$0xff] }
 0x5af   :  { %2791 = vmatpush2.msra.mxu0 %v8341_v17  ;;  %2862 = vmatpush2.msra.mxu1 %v8344_v38  ;;  %10804 = vst [vmem:[#allocation126_spill] sm:$0xff] %v8353_v27  ;;  %10805 = vst [vmem:[#allocation127_spill] sm:$0xff] %v8356_v4  ;;  %v8359_v17 = vld [vmem:[#allocation6 + $0x608] sm:$0xff]  ;;  %v8362_v38 = vld [vmem:[#allocation6 + $0x618] sm:$0xff] }
 0x5b0   :  { %2792 = vmatprep.subr.mxu0 %v8347_v15  ;;  %2863 = vmatprep.subr.mxu1 %v8350_v40  ;;  %10806 = vst [vmem:[#allocation128_spill] sm:$0xff] %v8359_v17  ;;  %10807 = vst [vmem:[#allocation131_spill] sm:$0xff] %v8362_v38  ;;  %v8365_v15 = vld [vmem:[#allocation6 + $0x600] sm:$0xff]  ;;  %v8368_v40 = vld [vmem:[#allocation6 + $0x610] sm:$0xff] }
 0x5b1   :  { %2793 = vmatpush2.msra.mxu0 %v8353_v27  ;;  %2864 = vmatpush2.msra.mxu1 %v8356_v4  ;;  %10808 = vst [vmem:[#allocation132_spill] sm:$0xff] %v8365_v15  ;;  %10809 = vst [vmem:[#allocation133_spill] sm:$0xff] %v8368_v40  ;;  %v8371_v27 = vld [vmem:[#allocation6 + $0x5c8] sm:$0xff]  ;;  %v8374_v4 = vld [vmem:[#allocation6 + $0x5d8] sm:$0xff] }
 0x5b2   :  { %2794 = vmatprep.subr.mxu0 %v8359_v17  ;;  %2865 = vmatprep.subr.mxu1 %v8362_v38  ;;  %10810 = vst [vmem:[#allocation134_spill] sm:$0xff] %v8371_v27  ;;  %10811 = vst [vmem:[#allocation137_spill] sm:$0xff] %v8374_v4  ;;  %v8377_v17 = vld [vmem:[#allocation6 + $0x5c0] sm:$0xff]  ;;  %v8380_v38 = vld [vmem:[#allocation6 + $0x5d0] sm:$0xff] }
 0x5b3   :  { %2795 = vmatpush2.msra.mxu0 %v8365_v15  ;;  %2866 = vmatpush2.msra.mxu1 %v8368_v40  ;;  %10812 = vst [vmem:[#allocation138_spill] sm:$0xff] %v8377_v17  ;;  %10813 = vst [vmem:[#allocation141_spill] sm:$0xff] %v8380_v38  ;;  %v8383_v15 = vld [vmem:[#allocation6 + $0x588] sm:$0xff]  ;;  %v8386_v40 = vld [vmem:[#allocation6 + $0x598] sm:$0xff] }
 0x5b4   :  { %2796 = vmatprep.subr.mxu0 %v8371_v27  ;;  %2867 = vmatprep.subr.mxu1 %v8374_v4  ;;  %10814 = vst [vmem:[#allocation142_spill] sm:$0xff] %v8383_v15  ;;  %10815 = vst [vmem:[#allocation143_spill] sm:$0xff] %v8386_v40  ;;  %v8389_v27 = vld [vmem:[#allocation6 + $0x580] sm:$0xff]  ;;  %v8392_v4 = vld [vmem:[#allocation6 + $0x590] sm:$0xff] }
 0x5b5   :  { %2797 = vmatpush2.msra.mxu0 %v8377_v17  ;;  %2868 = vmatpush2.msra.mxu1 %v8380_v38  ;;  %10816 = vst [vmem:[#allocation144_spill] sm:$0xff] %v8389_v27  ;;  %10817 = vst [vmem:[#allocation145_spill] sm:$0xff] %v8392_v4  ;;  %v8395_v17 = vld [vmem:[#allocation6 + $0x548] sm:$0xff]  ;;  %v8398_v38 = vld [vmem:[#allocation6 + $0x558] sm:$0xff] }
 0x5b6   :  { %2798 = vmatprep.subr.mxu0 %v8383_v15  ;;  %2869 = vmatprep.subr.mxu1 %v8386_v40  ;;  %10818 = vst [vmem:[#allocation146_spill] sm:$0xff] %v8395_v17  ;;  %10819 = vst [vmem:[#allocation147_spill] sm:$0xff] %v8398_v38  ;;  %v8401_v15 = vld [vmem:[#allocation6 + $0x540] sm:$0xff]  ;;  %v8404_v40 = vld [vmem:[#allocation6 + $0x550] sm:$0xff] }
 0x5b7   :  { %2799 = vmatpush2.msra.mxu0 %v8389_v27  ;;  %2870 = vmatpush2.msra.mxu1 %v8392_v4  ;;  %10820 = vst [vmem:[#allocation148_spill] sm:$0xff] %v8401_v15  ;;  %10821 = vst [vmem:[#allocation149_spill] sm:$0xff] %v8404_v40 }
 0x5b8   :  { %2800 = vmatprep.subr.mxu0 %v8395_v17  ;;  %2871 = vmatprep.subr.mxu1 %v8398_v38 }
 0x5b9   :  { %2801 = vmatpush2.msra.mxu0 %v8401_v15  ;;  %2872 = vmatpush2.msra.mxu1 %v8404_v40 }
 0x5ba   :  { %2802 = vmatprep.subr.mxu0 %v7781_v49  ;;  %2873 = vmatprep.subr.mxu1 %v7784_v48  ;;  %v10822_v49 = vld [vmem:[#allocation249_spill] sm:$0xff]  ;;  %v10823_v48 = vld [vmem:[#allocation250_spill] sm:$0xff] }
 0x5bb   :  { %2803 = vmatpush2.msra.mxu0 %v7787_v42  ;;  %2874 = vmatpush2.msra.mxu1 %v7790_v54  ;;  %v10824_v42 = vld [vmem:[#allocation251_spill] sm:$0xff]  ;;  %v10825_v54 = vld [vmem:[#allocation252_spill] sm:$0xff] }
 0x5bc   :  { %2804 = vmatprep.subr.mxu0 %v7793_v25  ;;  %2875 = vmatprep.subr.mxu1 %v7796_v14  ;;  %v10826_v25 = vld [vmem:[#allocation253_spill] sm:$0xff]  ;;  %v10827_v14 = vld [vmem:[#allocation15_spill] sm:$0xff] }
 0x5bd   :  { %2805 = vmatpush2.msra.mxu0 %v7799_v50  ;;  %2876 = vmatpush2.msra.mxu1 %v7802_v58  ;;  %v10828_v50 = vld [vmem:[#allocation16_spill] sm:$0xff]  ;;  %v10829_v58 = vld [vmem:[#allocation17_spill] sm:$0xff] }
 0x5be   :  { %2806 = vmatprep.subr.mxu0 %v7805_v13  ;;  %2877 = vmatprep.subr.mxu1 %v7808_v12  ;;  %v10830_v13 = vld [vmem:[#allocation18_spill] sm:$0xff]  ;;  %v10831_v12 = vld [vmem:[#allocation19_spill] sm:$0xff] }
 0x5bf   :  { %2807 = vmatpush2.msra.mxu0 %v7811_v0  ;;  %2878 = vmatpush2.msra.mxu1 %v10822_v49  ;;  %v10832_v0 = vld [vmem:[#allocation20_spill] sm:$0xff] }
 0x5c0   :  { %2808 = vmatprep.subr.mxu0 %v10823_v48  ;;  %2879 = vmatprep.subr.mxu1 %v10824_v42  ;;  %v10833_v48 = vld [vmem:[#allocation100_spill] sm:$0xff] }
 0x5c1   :  { %2809 = vmatpush2.msra.mxu0 %v10825_v54  ;;  %2880 = vmatpush2.msra.mxu1 %v10826_v25  ;;  %v10834_v54 = vld [vmem:[#allocation106_spill] sm:$0xff] }
 0x5c2   :  { %2810 = vmatprep.subr.mxu0 %v10827_v14  ;;  %2881 = vmatprep.subr.mxu1 %v10828_v50 }
 0x5c3   :  { %2811 = vmatpush2.msra.mxu0 %v10829_v58  ;;  %2882 = vmatpush2.msra.mxu1 %v10830_v13 }
 0x5c4   :  { %2890 = vmatprep.subr.mxu0 %v10831_v12  ;;  %2961 = vmatprep.subr.mxu1 %v10832_v0 }
 0x602   :  { %v2524_v49 = vpop.f32.mrf.mxu1  ;;  %v2453_v13 = vpop.f32.mrf.mxu0 }
 0x603   :  { %v2673_v40 = vadd.f32 %v2524_v49, %v10833_v48 }
 0x604   :  { %v2526_v42 = vpop.f32.mrf.mxu1  ;;  %v2455_v27 = vpop.f32.mrf.mxu0 }
 0x605   :  { %v3927_v15 = vmul.f32 -1.442695, %v2673_v40  ;;  %v2674_v38 = vadd.f32 %v2526_v42, %v10834_v54  ;;  %v10835_v40 = vld [vmem:[#allocation99_spill] sm:$0xff]  ;;  %v10836_v42 = vld [vmem:[#allocation105_spill] sm:$0xff] }
 0x606   :  { %v2671_v48 = vadd.f32 %v2453_v13, %v10835_v40  ;;  %v10842_v13 = vld [vmem:[#allocation167_spill] sm:$0xff] }
 0x607   :  { %v3928_v25 = vmul.f32 -1.442695, %v2674_v38  ;;  %4087 = vpow2.f32 %v3927_v15  ;;  %v2672_v38 = vadd.f32 %v2455_v27, %v10836_v42  ;;  %v478_v40 = vadd.f32 %v10842_v13, %v10841_v19  ;;  %v10843_v27 = vld [vmem:[#allocation168_spill] sm:$0xff] }
 0x608   :  { %v3925_v15 = vmul.f32 -1.442695, %v2671_v48  ;;  %v591_v48 = vadd.f32 %v10843_v27, %v6199_v41 }
 0x609   :  { %4089 = vpow2.f32 %v3928_v25  ;;  %v3926_v54 = vmul.f32 -1.442695, %v2672_v38 }
 0x614   :  { %v4088_v14 = vpop.eup %4087 }
 0x615   :  { %v2699_v50 = vadd.f32 1.0, %v4088_v14 }
 0x616   :  { %v4090_v17 = vpop.eup %4089 }
 0x617   :  { %4091 = vrcp.f32 %v2699_v50  ;;  %v2700_v58 = vadd.f32 1.0, %v4090_v17  ;;  %v10837_v50 = vld [vmem:[#allocation181_spill] sm:$0xff] }
 0x619   :  { %4093 = vrcp.f32 %v2700_v58  ;;  %v10838_v58 = vld [vmem:[#allocation165_spill] sm:$0xff] }
 0x61a   :  { %4095 = vpow2.f32 %v3925_v15  ;;  %v476_v61 = vadd.f32 %v10838_v58, %v10837_v50 }
 0x61b   :  { %4097 = vpow2.f32 %v3926_v54 }
 0x624   :  { %v4092_v12 = vpop.eup %4091 }
 0x625   :  { %v2717_v0 = vmul.f32 %v4092_v12, %v7863_v30  ;;  %v10840_v12 = vld [vmem:[#allocation166_spill] sm:$0xff] }
 0x626   :  { %v4094_v4 = vpop.eup %4093  ;;  %v589_v10 = vadd.f32 %v10840_v12, %v10839_v39 }
 0x627   :  { %v2718_v49 = vmul.f32 %v4094_v4, %v7867_v53  ;;  %v4096_v25 = vpop.eup %4095 }
 0x628   :  { %v4098_v14 = vpop.eup %4097  ;;  %v2697_v17 = vadd.f32 1.0, %v4096_v25 }
 0x629   :  { %v2698_v52 = vadd.f32 1.0, %v4098_v14 }
 0x62a   :  { %4099 = vrcp.f32 %v2697_v17 }
 0x637   :  { %v4100_v12 = vpop.eup %4099 }
 0x643   :  { %v2595_v37 = vpop.f32.mrf.mxu0  ;;  %v2666_v4 = vpop.f32.mrf.mxu1 }
 0x644   :  { %v2675_v42 = vadd.f32 %v2595_v37, %v476_v61  ;;  %v2677_v38 = vadd.f32 %v2666_v4, %v589_v10  ;;  %v2731_v37 = vpop.permute.xlu0 %2730 }
 0x645   :  { %v2597_v15 = vpop.f32.mrf.mxu0  ;;  %v2668_v54 = vpop.f32.mrf.mxu1  ;;  %vm2732_vm13 = vcmp.eq.s32.totalorder %v2731_v37, 1  ;;  %v8498_v37 = vld [vmem:[#allocation6 + $0x338] sm:$0xff] }
 0x646   :  { %v3929_v25 = vmul.f32 -1.442695, %v2675_v42  ;;  %4101 = vtanh.f32 %v2677_v38  ;;  %v2676_v58 = vadd.f32 %v2597_v15, %v478_v40  ;;  %v2678_v50 = vadd.f32 %v2668_v54, %v591_v48  ;;  %v8477_v54 = vld [vmem:[#allocation6 + $0x3a0] sm:$0xff] }
 0x647   :  { %4103 = vrcp.f32 %v2698_v52 }
 0x648   :  { %4105 = vpow2.f32 %v3929_v25  ;;  %v3930_v14 = vmul.f32 -1.442695, %v2676_v58  ;;  %v8480_v25 = vld [vmem:[#allocation6 + $0x3b0] sm:$0xff]  ;;  %v8483_v58 = vld [vmem:[#allocation6 + $0x368] sm:$0xff] }
 0x649   :  { %4107 = vtanh.f32 %v2678_v50 }
 0x64a   :  { %4109 = vpow2.f32 %v3930_v14  ;;  %v8486_v14 = vld [vmem:[#allocation6 + $0x378] sm:$0xff] }
 0x653   :  { %v4102_v39 = vpop.eup %4101 }
 0x654   :  { %v4104_v13 = vpop.eup %4103  ;;  %v2719_v19 = vmul.f32 %v4102_v39, %v4100_v12  ;;  %v8489_v12 = vld [vmem:[#allocation6 + $0x360] sm:$0xff] }
 0x655   :  { %v4106_v32 = vpop.eup %4105 }
 0x656   :  { %v4108_v27 = vpop.eup %4107  ;;  %v2701_v10 = vadd.f32 1.0, %v4106_v32  ;;  %v2721_v61 = vadd.f32 %v2719_v19, %v2717_v0 }
 0x657   :  { %v4110_v17 = vpop.eup %4109  ;;  %v2720_v4 = vmul.f32 %v4108_v27, %v4104_v13  ;;  %v8492_v13 = vld [vmem:[#allocation6 + $0x370] sm:$0xff]  ;;  %v8495_v27 = vld [vmem:[#allocation6 + $0x328] sm:$0xff] }
 0x658   :  { %4111 = vrcp.f32 %v2701_v10  ;;  %v2702_v40 = vadd.f32 1.0, %v4110_v17  ;;  %v8445_v52 = vsel %vm2732_vm13, %v2721_v61, %v7863_v30  ;;  %v8501_v10 = vld [vmem:[#allocation6 + $0x320] sm:$0xff]  ;;  %v8507_v17 = vld [vmem:[#allocation6 + $0x2e8] sm:$0xff] }
 0x659   :  { %4113 = vtanh.f32 %v2721_v61  ;;  %v2722_v50 = vadd.f32 %v2720_v4, %v2718_v49  ;;  %v8466_v49 = vld [vmem:[#allocation6 + $0x3f0] sm:$0xff]  ;;  %v8510_v4 = vld [vmem:[#allocation6 + $0x2f8] sm:$0xff] }
 0x65a   :  { %4115 = vrcp.f32 %v2702_v40  ;;  %v8504_v61 = vld [vmem:[#allocation6 + $0x330] sm:$0xff]  ;;  %v8513_v40 = vld [vmem:[#allocation6 + $0x2e0] sm:$0xff] }
 0x65b   :  { %4117 = vtanh.f32 %v2722_v50  ;;  %v8449_v39 = vsel %vm2732_vm13, %v2722_v50, %v7867_v53  ;;  %v8463_v53 = vld [vmem:[#allocation6 + $0x3e0] sm:$0xff]  ;;  %v8516_v50 = vld [vmem:[#allocation6 + $0x2f0] sm:$0xff] }
 0x665   :  { %v4112_v48 = vpop.eup %4111 }
 0x666   :  { %v4114_v32 = vpop.eup %4113 }
 0x667   :  { %v4116_v19 = vpop.eup %4115  ;;  %v2725_v0 = vmul.f32 %v4114_v32, %v4112_v48  ;;  %v8519_v48 = vld [vmem:[#allocation6 + $0x2a8] sm:$0xff]  ;;  %v8522_v32 = vld [vmem:[#allocation6 + $0x2b8] sm:$0xff] }
 0x668   :  { %v4118_v42 = vpop.eup %4117  ;;  %10844 = vst [vmem:[#allocation150_spill] sm:$0xff] %v8519_v48  ;;  %10845 = vst [vmem:[#allocation151_spill] sm:$0xff] %v8522_v32 }
 0x669   :  { %v2726_v38 = vmul.f32 %v4118_v42, %v4116_v19  ;;  %v8459_v30 = vsel %vm2732_vm13, %v2725_v0, %v7877_v11  ;;  %v8473_v11 = vld [vmem:[#allocation6 + $0x3b8] sm:$0xff]  ;;  %v8525_v19 = vld [vmem:[#allocation6 + $0x2a0] sm:$0xff]  ;;  %v8528_v0 = vld [vmem:[#allocation6 + $0x2b0] sm:$0xff] }
 0x66a   :  { %10846 = vst [vmem:[#allocation152_spill] sm:$0xff] %v8525_v19  ;;  %10847 = vst [vmem:[#allocation153_spill] sm:$0xff] %v8528_v0  ;;  %v8531_v42 = vld [vmem:[#allocation6 + $0x268] sm:$0xff] }
 0x66b   :  { %v8453_v15 = vsel %vm2732_vm13, %v2726_v38, %v7871_v47  ;;  %v8469_v47 = vld [vmem:[#allocation6 + $0x3a8] sm:$0xff]  ;;  %10848 = vst [vmem:[#allocation154_spill] sm:$0xff] %v8531_v42  ;;  %v8534_v38 = vld [vmem:[#allocation6 + $0x278] sm:$0xff] }
 0x66c   :  { %2812 = vmatprep.mubr.f32.mxu0 %v8453_v15  ;;  %2883 = vmatprep.mubr.f32.mxu1 %v8453_v15  ;;  %10849 = vst [vmem:[#allocation155_spill] sm:$0xff] %v8534_v38 }
 0x66d   :  { %2813 = vmatmul.mubr.f32.vlgmr.msra.gmra.mxu0 %v8459_v30  ;;  %2884 = vmatmul.mubr.f32.vlgmr.msra.gmra.mxu1 %v8459_v30 }
 0x66e   :  { %2891 = vmatpush1.msra.mxu0 %v8463_v53  ;;  %2962 = vmatpush1.msra.mxu1 %v8466_v49 }
 0x66f   :  { %2892 = vmatprep.subr.mxu0 %v8469_v47  ;;  %2954 = vmatprep.mubr.f32.mxu0 %v8453_v15 }
 0x670   :  { %2963 = vmatprep.subr.mxu1 %v8473_v11  ;;  %3025 = vmatprep.mubr.f32.mxu1 %v8453_v15 }
 0x671   :  { %2893 = vmatpush1.msra.mxu0 %v8477_v54  ;;  %2964 = vmatpush1.msra.mxu1 %v8480_v25 }
 0x672   :  { %2894 = vmatprep.subr.mxu0 %v8483_v58  ;;  %2965 = vmatprep.subr.mxu1 %v8486_v14 }
 0x673   :  { %2895 = vmatpush1.msra.mxu0 %v8489_v12  ;;  %2966 = vmatpush1.msra.mxu1 %v8492_v13 }
 0x674   :  { %2896 = vmatprep.subr.mxu0 %v8495_v27  ;;  %2967 = vmatprep.subr.mxu1 %v8498_v37 }
 0x675   :  { %2897 = vmatpush1.msra.mxu0 %v8501_v10  ;;  %2968 = vmatpush1.msra.mxu1 %v8504_v61 }
 0x676   :  { %2898 = vmatprep.subr.mxu0 %v8507_v17  ;;  %2969 = vmatprep.subr.mxu1 %v8510_v4 }
 0x677   :  { %2899 = vmatpush1.msra.mxu0 %v8513_v40  ;;  %2970 = vmatpush1.msra.mxu1 %v8516_v50 }
 0x678   :  { %2900 = vmatprep.subr.mxu0 %v8519_v48  ;;  %2971 = vmatprep.subr.mxu1 %v8522_v32  ;;  %v8537_v48 = vld [vmem:[#allocation6 + $0x260] sm:$0xff]  ;;  %v8540_v32 = vld [vmem:[#allocation6 + $0x270] sm:$0xff] }
 0x679   :  { %2901 = vmatpush1.msra.mxu0 %v8525_v19  ;;  %2972 = vmatpush1.msra.mxu1 %v8528_v0  ;;  %10850 = vst [vmem:[#allocation64_spill] sm:$0xff] %v8537_v48  ;;  %10851 = vst [vmem:[#allocation70_spill] sm:$0xff] %v8540_v32  ;;  %v8543_v19 = vld [vmem:[#allocation6 + $0x228] sm:$0xff]  ;;  %v8546_v0 = vld [vmem:[#allocation6 + $0x238] sm:$0xff] }
 0x67a   :  { %2902 = vmatprep.subr.mxu0 %v8531_v42  ;;  %2973 = vmatprep.subr.mxu1 %v8534_v38  ;;  %10852 = vst [vmem:[#allocation63_spill] sm:$0xff] %v8543_v19  ;;  %10853 = vst [vmem:[#allocation69_spill] sm:$0xff] %v8546_v0  ;;  %v8549_v42 = vld [vmem:[#allocation6 + $0x220] sm:$0xff]  ;;  %v8552_v38 = vld [vmem:[#allocation6 + $0x230] sm:$0xff] }
 0x67b   :  { %2903 = vmatpush1.msra.mxu0 %v8537_v48  ;;  %2974 = vmatpush1.msra.mxu1 %v8540_v32  ;;  %10854 = vst [vmem:[#allocation88_spill] sm:$0xff] %v8549_v42  ;;  %10855 = vst [vmem:[#allocation94_spill] sm:$0xff] %v8552_v38  ;;  %v8555_v48 = vld [vmem:[#allocation6 + $0x1e8] sm:$0xff]  ;;  %v8558_v32 = vld [vmem:[#allocation6 + $0x1f8] sm:$0xff] }
 0x67c   :  { %2904 = vmatprep.subr.mxu0 %v8543_v19  ;;  %2975 = vmatprep.subr.mxu1 %v8546_v0  ;;  %10856 = vst [vmem:[#allocation87_spill] sm:$0xff] %v8555_v48  ;;  %10857 = vst [vmem:[#allocation93_spill] sm:$0xff] %v8558_v32  ;;  %v8561_v19 = vld [vmem:[#allocation6 + $0x1e0] sm:$0xff]  ;;  %v8564_v0 = vld [vmem:[#allocation6 + $0x1f0] sm:$0xff] }
 0x67d   :  { %2905 = vmatpush1.msra.mxu0 %v8549_v42  ;;  %2976 = vmatpush1.msra.mxu1 %v8552_v38  ;;  %10858 = vst [vmem:[#allocation161_spill] sm:$0xff] %v8561_v19  ;;  %10859 = vst [vmem:[#allocation162_spill] sm:$0xff] %v8564_v0  ;;  %v8567_v42 = vld [vmem:[#allocation6 + $0x1a8] sm:$0xff]  ;;  %v8570_v38 = vld [vmem:[#allocation6 + $0x1b8] sm:$0xff] }
 0x67e   :  { %2906 = vmatprep.subr.mxu0 %v8555_v48  ;;  %2977 = vmatprep.subr.mxu1 %v8558_v32  ;;  %10860 = vst [vmem:[#allocation163_spill] sm:$0xff] %v8567_v42  ;;  %10861 = vst [vmem:[#allocation164_spill] sm:$0xff] %v8570_v38  ;;  %v8573_v48 = vld [vmem:[#allocation6 + $0x1a0] sm:$0xff]  ;;  %v8576_v32 = vld [vmem:[#allocation6 + $0x1b0] sm:$0xff] }
 0x67f   :  { %2907 = vmatpush1.msra.mxu0 %v8561_v19  ;;  %2978 = vmatpush1.msra.mxu1 %v8564_v0  ;;  %10862 = vst [vmem:[#allocation156_spill] sm:$0xff] %v8573_v48  ;;  %10863 = vst [vmem:[#allocation184_spill] sm:$0xff] %v8576_v32  ;;  %v8579_v19 = vld [vmem:[#allocation6 + $0x168] sm:$0xff]  ;;  %v8582_v0 = vld [vmem:[#allocation6 + $0x178] sm:$0xff] }
 0x680   :  { %2908 = vmatprep.subr.mxu0 %v8567_v42  ;;  %2979 = vmatprep.subr.mxu1 %v8570_v38  ;;  %10864 = vst [vmem:[#allocation185_spill] sm:$0xff] %v8579_v19  ;;  %10865 = vst [vmem:[#allocation186_spill] sm:$0xff] %v8582_v0  ;;  %v8585_v42 = vld [vmem:[#allocation6 + $0x160] sm:$0xff]  ;;  %v8588_v38 = vld [vmem:[#allocation6 + $0x170] sm:$0xff] }
 0x681   :  { %2909 = vmatpush1.msra.mxu0 %v8573_v48  ;;  %2980 = vmatpush1.msra.mxu1 %v8576_v32  ;;  %10866 = vst [vmem:[#allocation187_spill] sm:$0xff] %v8585_v42  ;;  %10867 = vst [vmem:[#allocation188_spill] sm:$0xff] %v8588_v38  ;;  %v8591_v48 = vld [vmem:[#allocation6 + $0x128] sm:$0xff]  ;;  %v8594_v32 = vld [vmem:[#allocation6 + $0x138] sm:$0xff] }
 0x682   :  { %2910 = vmatprep.subr.mxu0 %v8579_v19  ;;  %2981 = vmatprep.subr.mxu1 %v8582_v0  ;;  %10868 = vst [vmem:[#allocation189_spill] sm:$0xff] %v8591_v48  ;;  %10869 = vst [vmem:[#allocation190_spill] sm:$0xff] %v8594_v32  ;;  %v8597_v19 = vld [vmem:[#allocation6 + $0x120] sm:$0xff]  ;;  %v8600_v0 = vld [vmem:[#allocation6 + $0x130] sm:$0xff] }
 0x683   :  { %2911 = vmatpush1.msra.mxu0 %v8585_v42  ;;  %2982 = vmatpush1.msra.mxu1 %v8588_v38  ;;  %10870 = vst [vmem:[#allocation191_spill] sm:$0xff] %v8597_v19  ;;  %10871 = vst [vmem:[#allocation192_spill] sm:$0xff] %v8600_v0  ;;  %v8603_v42 = vld [vmem:[#allocation6 + $0xe8] sm:$0xff]  ;;  %v8606_v38 = vld [vmem:[#allocation6 + $0xf8] sm:$0xff] }
 0x684   :  { %2912 = vmatprep.subr.mxu0 %v8591_v48  ;;  %2983 = vmatprep.subr.mxu1 %v8594_v32  ;;  %10872 = vst [vmem:[#allocation193_spill] sm:$0xff] %v8603_v42  ;;  %10873 = vst [vmem:[#allocation194_spill] sm:$0xff] %v8606_v38  ;;  %v8609_v48 = vld [vmem:[#allocation6 + $0xe0] sm:$0xff]  ;;  %v8612_v32 = vld [vmem:[#allocation6 + $0xf0] sm:$0xff] }
 0x685   :  { %2913 = vmatpush1.msra.mxu0 %v8597_v19  ;;  %2984 = vmatpush1.msra.mxu1 %v8600_v0  ;;  %10874 = vst [vmem:[#allocation195_spill] sm:$0xff] %v8609_v48  ;;  %10875 = vst [vmem:[#allocation196_spill] sm:$0xff] %v8612_v32  ;;  %v8615_v19 = vld [vmem:[#allocation6 + $0xa8] sm:$0xff]  ;;  %v8618_v0 = vld [vmem:[#allocation6 + $0xb8] sm:$0xff] }
 0x686   :  { %2914 = vmatprep.subr.mxu0 %v8603_v42  ;;  %2985 = vmatprep.subr.mxu1 %v8606_v38  ;;  %10876 = vst [vmem:[#allocation197_spill] sm:$0xff] %v8615_v19  ;;  %10877 = vst [vmem:[#allocation198_spill] sm:$0xff] %v8618_v0  ;;  %v8621_v42 = vld [vmem:[#allocation6 + $0xa0] sm:$0xff]  ;;  %v8624_v38 = vld [vmem:[#allocation6 + $0xb0] sm:$0xff] }
 0x687   :  { %2915 = vmatpush1.msra.mxu0 %v8609_v48  ;;  %2986 = vmatpush1.msra.mxu1 %v8612_v32  ;;  %10878 = vst [vmem:[#allocation199_spill] sm:$0xff] %v8621_v42  ;;  %10879 = vst [vmem:[#allocation200_spill] sm:$0xff] %v8624_v38  ;;  %v8627_v48 = vld [vmem:[#allocation6 + $0x68] sm:$0xff]  ;;  %v8630_v32 = vld [vmem:[#allocation6 + $0x78] sm:$0xff] }
 0x688   :  { %2916 = vmatprep.subr.mxu0 %v8615_v19  ;;  %2987 = vmatprep.subr.mxu1 %v8618_v0  ;;  %10880 = vst [vmem:[#allocation201_spill] sm:$0xff] %v8627_v48  ;;  %10881 = vst [vmem:[#allocation202_spill] sm:$0xff] %v8630_v32  ;;  %v8633_v19 = vld [vmem:[#allocation6 + $0x60] sm:$0xff]  ;;  %v8636_v0 = vld [vmem:[#allocation6 + $0x70] sm:$0xff] }
 0x689   :  { %2917 = vmatpush1.msra.mxu0 %v8621_v42  ;;  %2988 = vmatpush1.msra.mxu1 %v8624_v38  ;;  %10882 = vst [vmem:[#allocation203_spill] sm:$0xff] %v8633_v19  ;;  %10883 = vst [vmem:[#allocation204_spill] sm:$0xff] %v8636_v0  ;;  %v8639_v42 = vld [vmem:[#allocation6 + $0x28] sm:$0xff]  ;;  %v8642_v38 = vld [vmem:[#allocation6 + $0x38] sm:$0xff] }
 0x68a   :  { %2918 = vmatprep.subr.mxu0 %v8627_v48  ;;  %2989 = vmatprep.subr.mxu1 %v8630_v32  ;;  %10884 = vst [vmem:[#allocation205_spill] sm:$0xff] %v8639_v42  ;;  %10885 = vst [vmem:[#allocation206_spill] sm:$0xff] %v8642_v38  ;;  %v8645_v48 = vld [vmem:[#allocation6 + $0x20] sm:$0xff]  ;;  %v8648_v32 = vld [vmem:[#allocation6 + $0x30] sm:$0xff] }
 0x68b   :  { %2919 = vmatpush1.msra.mxu0 %v8633_v19  ;;  %2990 = vmatpush1.msra.mxu1 %v8636_v0  ;;  %10886 = vst [vmem:[#allocation207_spill] sm:$0xff] %v8645_v48  ;;  %10887 = vst [vmem:[#allocation208_spill] sm:$0xff] %v8648_v32  ;;  %v8651_v19 = vld [vmem:[#allocation6 + $0x7e8] sm:$0xff]  ;;  %v8654_v0 = vld [vmem:[#allocation6 + $0x7f8] sm:$0xff] }
 0x68c   :  { %2920 = vmatprep.subr.mxu0 %v8639_v42  ;;  %2991 = vmatprep.subr.mxu1 %v8642_v38  ;;  %10888 = vst [vmem:[#allocation209_spill] sm:$0xff] %v8651_v19  ;;  %10889 = vst [vmem:[#allocation210_spill] sm:$0xff] %v8654_v0  ;;  %v8657_v42 = vld [vmem:[#allocation6 + $0x7e0] sm:$0xff]  ;;  %v8660_v38 = vld [vmem:[#allocation6 + $0x7f0] sm:$0xff] }
 0x68d   :  { %2921 = vmatpush1.msra.mxu0 %v8645_v48  ;;  %2992 = vmatpush1.msra.mxu1 %v8648_v32  ;;  %10890 = vst [vmem:[#allocation211_spill] sm:$0xff] %v8657_v42  ;;  %10891 = vst [vmem:[#allocation212_spill] sm:$0xff] %v8660_v38  ;;  %v8663_v48 = vld [vmem:[#allocation6 + $0x7a8] sm:$0xff]  ;;  %v8666_v32 = vld [vmem:[#allocation6 + $0x7b8] sm:$0xff] }
 0x68e   :  { %2922 = vmatprep.subr.mxu0 %v8651_v19  ;;  %2993 = vmatprep.subr.mxu1 %v8654_v0  ;;  %10892 = vst [vmem:[#allocation213_spill] sm:$0xff] %v8663_v48  ;;  %10893 = vst [vmem:[#allocation214_spill] sm:$0xff] %v8666_v32  ;;  %v8669_v19 = vld [vmem:[#allocation6 + $0x7a0] sm:$0xff]  ;;  %v8672_v0 = vld [vmem:[#allocation6 + $0x7b0] sm:$0xff] }
 0x68f   :  { %2923 = vmatpush2.msra.mxu0 %v8657_v42  ;;  %2994 = vmatpush2.msra.mxu1 %v8660_v38  ;;  %10894 = vst [vmem:[#allocation215_spill] sm:$0xff] %v8669_v19  ;;  %10895 = vst [vmem:[#allocation216_spill] sm:$0xff] %v8672_v0  ;;  %v8675_v42 = vld [vmem:[#allocation6 + $0x768] sm:$0xff]  ;;  %v8678_v38 = vld [vmem:[#allocation6 + $0x778] sm:$0xff] }
 0x690   :  { %2924 = vmatprep.subr.mxu0 %v8663_v48  ;;  %2995 = vmatprep.subr.mxu1 %v8666_v32  ;;  %10896 = vst [vmem:[#allocation217_spill] sm:$0xff] %v8675_v42  ;;  %10897 = vst [vmem:[#allocation218_spill] sm:$0xff] %v8678_v38  ;;  %v8681_v48 = vld [vmem:[#allocation6 + $0x760] sm:$0xff]  ;;  %v8684_v32 = vld [vmem:[#allocation6 + $0x770] sm:$0xff] }
 0x691   :  { %2925 = vmatpush2.msra.mxu0 %v8669_v19  ;;  %2996 = vmatpush2.msra.mxu1 %v8672_v0  ;;  %10898 = vst [vmem:[#allocation219_spill] sm:$0xff] %v8681_v48  ;;  %10899 = vst [vmem:[#allocation220_spill] sm:$0xff] %v8684_v32  ;;  %v8687_v19 = vld [vmem:[#allocation6 + $0x728] sm:$0xff]  ;;  %v8690_v0 = vld [vmem:[#allocation6 + $0x738] sm:$0xff] }
 0x692   :  { %2926 = vmatprep.subr.mxu0 %v8675_v42  ;;  %2997 = vmatprep.subr.mxu1 %v8678_v38  ;;  %10900 = vst [vmem:[#allocation221_spill] sm:$0xff] %v8687_v19  ;;  %10901 = vst [vmem:[#allocation222_spill] sm:$0xff] %v8690_v0  ;;  %v8693_v42 = vld [vmem:[#allocation6 + $0x720] sm:$0xff]  ;;  %v8696_v38 = vld [vmem:[#allocation6 + $0x730] sm:$0xff] }
 0x693   :  { %2927 = vmatpush2.msra.mxu0 %v8681_v48  ;;  %2998 = vmatpush2.msra.mxu1 %v8684_v32  ;;  %10902 = vst [vmem:[#allocation223_spill] sm:$0xff] %v8693_v42  ;;  %10903 = vst [vmem:[#allocation224_spill] sm:$0xff] %v8696_v38  ;;  %v8699_v48 = vld [vmem:[#allocation6 + $0x6e8] sm:$0xff]  ;;  %v8702_v32 = vld [vmem:[#allocation6 + $0x6f8] sm:$0xff] }
 0x694   :  { %2928 = vmatprep.subr.mxu0 %v8687_v19  ;;  %2999 = vmatprep.subr.mxu1 %v8690_v0  ;;  %10904 = vst [vmem:[#allocation225_spill] sm:$0xff] %v8699_v48  ;;  %10905 = vst [vmem:[#allocation226_spill] sm:$0xff] %v8702_v32  ;;  %v8705_v19 = vld [vmem:[#allocation6 + $0x6e0] sm:$0xff]  ;;  %v8708_v0 = vld [vmem:[#allocation6 + $0x6f0] sm:$0xff] }
 0x695   :  { %2929 = vmatpush2.msra.mxu0 %v8693_v42  ;;  %3000 = vmatpush2.msra.mxu1 %v8696_v38  ;;  %10906 = vst [vmem:[#allocation227_spill] sm:$0xff] %v8705_v19  ;;  %10907 = vst [vmem:[#allocation228_spill] sm:$0xff] %v8708_v0  ;;  %v8711_v42 = vld [vmem:[#allocation6 + $0x6a8] sm:$0xff]  ;;  %v8714_v38 = vld [vmem:[#allocation6 + $0x6b8] sm:$0xff] }
 0x696   :  { %2930 = vmatprep.subr.mxu0 %v8699_v48  ;;  %3001 = vmatprep.subr.mxu1 %v8702_v32  ;;  %10908 = vst [vmem:[#allocation229_spill] sm:$0xff] %v8711_v42  ;;  %10909 = vst [vmem:[#allocation230_spill] sm:$0xff] %v8714_v38  ;;  %v8717_v48 = vld [vmem:[#allocation6 + $0x6a0] sm:$0xff]  ;;  %v8720_v32 = vld [vmem:[#allocation6 + $0x6b0] sm:$0xff] }
 0x697   :  { %2931 = vmatpush2.msra.mxu0 %v8705_v19  ;;  %3002 = vmatpush2.msra.mxu1 %v8708_v0  ;;  %v8723_v19 = vld [vmem:[#allocation6 + $0x668] sm:$0xff]  ;;  %v8726_v0 = vld [vmem:[#allocation6 + $0x678] sm:$0xff] }
 0x698   :  { %2932 = vmatprep.subr.mxu0 %v8711_v42  ;;  %3003 = vmatprep.subr.mxu1 %v8714_v38  ;;  %v8729_v42 = vld [vmem:[#allocation6 + $0x660] sm:$0xff]  ;;  %v8732_v38 = vld [vmem:[#allocation6 + $0x670] sm:$0xff] }
 0x699   :  { %2933 = vmatpush2.msra.mxu0 %v8717_v48  ;;  %3004 = vmatpush2.msra.mxu1 %v8720_v32 }
 0x69a   :  { %2934 = vmatprep.subr.mxu0 %v8723_v19  ;;  %3005 = vmatprep.subr.mxu1 %v8726_v0 }
 0x69b   :  { %2935 = vmatpush2.msra.mxu0 %v8729_v42  ;;  %3006 = vmatpush2.msra.mxu1 %v8732_v38 }
 0x69c   :  { %2936 = vmatprep.subr.mxu0 %v7973_v35  ;;  %3007 = vmatprep.subr.mxu1 %v7976_v33  ;;  %v10910_v35 = vld [vmem:[#allocation21_spill] sm:$0xff]  ;;  %v10911_v33 = vld [vmem:[#allocation22_spill] sm:$0xff] }
 0x69d   :  { %2937 = vmatpush2.msra.mxu0 %v7979_v55  ;;  %3008 = vmatpush2.msra.mxu1 %v7982_v5  ;;  %v10912_v55 = vld [vmem:[#allocation76_spill] sm:$0xff]  ;;  %v10913_v5 = vld [vmem:[#allocation82_spill] sm:$0xff] }
 0x69e   :  { %2938 = vmatprep.subr.mxu0 %v7985_v7  ;;  %3009 = vmatprep.subr.mxu1 %v7988_v6  ;;  %v10914_v7 = vld [vmem:[#allocation75_spill] sm:$0xff]  ;;  %v10915_v6 = vld [vmem:[#allocation81_spill] sm:$0xff] }
 0x69f   :  { %2939 = vmatpush2.msra.mxu0 %v7991_v16  ;;  %3010 = vmatpush2.msra.mxu1 %v7994_v26  ;;  %v10916_v16 = vld [vmem:[#allocation157_spill] sm:$0xff]  ;;  %v10917_v26 = vld [vmem:[#allocation158_spill] sm:$0xff] }
 0x6a0   :  { %2940 = vmatprep.subr.mxu0 %v7997_v34  ;;  %3011 = vmatprep.subr.mxu1 %v8000_v51  ;;  %v10918_v34 = vld [vmem:[#allocation159_spill] sm:$0xff]  ;;  %v10919_v51 = vld [vmem:[#allocation160_spill] sm:$0xff] }
 0x6a1   :  { %2941 = vmatpush2.msra.mxu0 %v8003_v21  ;;  %3012 = vmatpush2.msra.mxu1 %v8006_v29  ;;  %v10920_v21 = vld [vmem:[#allocation23_spill] sm:$0xff]  ;;  %v10921_v29 = vld [vmem:[#allocation24_spill] sm:$0xff] }
 0x6a2   :  { %2942 = vmatprep.subr.mxu0 %v8009_v23  ;;  %3013 = vmatprep.subr.mxu1 %v8012_v59  ;;  %v10922_v23 = vld [vmem:[#allocation25_spill] sm:$0xff]  ;;  %v10923_v59 = vld [vmem:[#allocation26_spill] sm:$0xff] }
 0x6a3   :  { %2943 = vmatpush2.msra.mxu0 %v8015_v60  ;;  %3014 = vmatpush2.msra.mxu1 %v8018_v31  ;;  %v10924_v60 = vld [vmem:[#allocation27_spill] sm:$0xff]  ;;  %v10925_v31 = vld [vmem:[#allocation28_spill] sm:$0xff] }
 0x6a4   :  { %2944 = vmatprep.subr.mxu0 %v8021_v44  ;;  %3015 = vmatprep.subr.mxu1 %v8024_v8  ;;  %v10926_v44 = vld [vmem:[#allocation29_spill] sm:$0xff]  ;;  %v10927_v8 = vld [vmem:[#allocation30_spill] sm:$0xff] }
 0x6a5   :  { %2945 = vmatpush2.msra.mxu0 %v8027_v45  ;;  %3016 = vmatpush2.msra.mxu1 %v8030_v28  ;;  %v10928_v45 = vld [vmem:[#allocation31_spill] sm:$0xff]  ;;  %v10929_v28 = vld [vmem:[#allocation32_spill] sm:$0xff] }
 0x6a6   :  { %2946 = vmatprep.subr.mxu0 %v8033_v20  ;;  %3017 = vmatprep.subr.mxu1 %v8036_v36  ;;  %v10930_v20 = vld [vmem:[#allocation33_spill] sm:$0xff]  ;;  %v10931_v36 = vld [vmem:[#allocation34_spill] sm:$0xff] }
 0x6a7   :  { %2947 = vmatpush2.msra.mxu0 %v8039_v46  ;;  %3018 = vmatpush2.msra.mxu1 %v8042_v63  ;;  %v10932_v46 = vld [vmem:[#allocation35_spill] sm:$0xff]  ;;  %v10933_v63 = vld [vmem:[#allocation36_spill] sm:$0xff] }
 0x6a8   :  { %2948 = vmatprep.subr.mxu0 %v8045_v22  ;;  %3019 = vmatprep.subr.mxu1 %v8048_v1  ;;  %v10934_v22 = vld [vmem:[#allocation37_spill] sm:$0xff]  ;;  %v10935_v1 = vld [vmem:[#allocation38_spill] sm:$0xff] }
 0x6a9   :  { %2949 = vmatpush2.msra.mxu0 %v8051_v9  ;;  %3020 = vmatpush2.msra.mxu1 %v8054_v43  ;;  %v10936_v9 = vld [vmem:[#allocation39_spill] sm:$0xff]  ;;  %v10937_v43 = vld [vmem:[#allocation40_spill] sm:$0xff] }
 0x6aa   :  { %2950 = vmatprep.subr.mxu0 %v8057_v24  ;;  %3021 = vmatprep.subr.mxu1 %v8060_v18  ;;  %v10938_v24 = vld [vmem:[#allocation41_spill] sm:$0xff]  ;;  %v10939_v18 = vld [vmem:[#allocation42_spill] sm:$0xff] }
 0x6ab   :  { %2951 = vmatpush2.msra.mxu0 %v8063_v56  ;;  %3022 = vmatpush2.msra.mxu1 %v8066_v62  ;;  %v10940_v56 = vld [vmem:[#allocation43_spill] sm:$0xff]  ;;  %v10941_v62 = vld [vmem:[#allocation44_spill] sm:$0xff] }
 0x6ac   :  { %2952 = vmatprep.subr.mxu0 %v8069_v2  ;;  %3023 = vmatprep.subr.mxu1 %v8072_v57  ;;  %v10942_v2 = vld [vmem:[#allocation45_spill] sm:$0xff]  ;;  %v10943_v57 = vld [vmem:[#allocation46_spill] sm:$0xff] }
 0x6ad   :  { %2953 = vmatpush2.msra.mxu0 %v8075_v3  ;;  %3024 = vmatpush2.msra.mxu1 %v10910_v35  ;;  %v10944_v3 = vld [vmem:[#allocation47_spill] sm:$0xff]  ;;  %v10945_v35 = vld [vmem:[#allocation48_spill] sm:$0xff] }
 0x6ae   :  { %2955 = vmatmul.mubr.f32.vlgmr.msra.gmra.mxu0 %v8459_v30  ;;  %3026 = vmatmul.mubr.f32.vlgmr.msra.gmra.mxu1 %v8459_v30 }
 0x6af   :  { %3109 = vmatprep.subr.mxu0 %v10911_v33  ;;  %3180 = vmatprep.subr.mxu1 %v10912_v55  ;;  %v10946_v33 = vld [vmem:[#allocation49_spill] sm:$0xff]  ;;  %v10947_v55 = vld [vmem:[#allocation50_spill] sm:$0xff] }
 0x6b0   :  { %3110 = vmatpush1.msra.mxu0 %v10913_v5  ;;  %3181 = vmatpush1.msra.mxu1 %v10914_v7  ;;  %v10948_v5 = vld [vmem:[#allocation51_spill] sm:$0xff]  ;;  %v10949_v7 = vld [vmem:[#allocation52_spill] sm:$0xff] }
 0x6b1   :  { %3111 = vmatprep.subr.mxu0 %v10915_v6  ;;  %3182 = vmatprep.subr.mxu1 %v10916_v16  ;;  %v10950_v6 = vld [vmem:[#allocation53_spill] sm:$0xff]  ;;  %v10951_v16 = vld [vmem:[#allocation54_spill] sm:$0xff] }
 0x6b2   :  { %3112 = vmatpush1.msra.mxu0 %v10917_v26  ;;  %3183 = vmatpush1.msra.mxu1 %v10918_v34  ;;  %v10952_v26 = vld [vmem:[#allocation55_spill] sm:$0xff]  ;;  %v10953_v34 = vld [vmem:[#allocation56_spill] sm:$0xff] }
 0x6b3   :  { %3113 = vmatprep.subr.mxu0 %v10919_v51  ;;  %3184 = vmatprep.subr.mxu1 %v10920_v21  ;;  %v10954_v51 = vld [vmem:[#allocation57_spill] sm:$0xff]  ;;  %v10955_v21 = vld [vmem:[#allocation58_spill] sm:$0xff] }
 0x6b4   :  { %3114 = vmatpush1.msra.mxu0 %v10921_v29  ;;  %3185 = vmatpush1.msra.mxu1 %v10922_v23  ;;  %v10956_v29 = vld [vmem:[#allocation59_spill] sm:$0xff]  ;;  %v10957_v23 = vld [vmem:[#allocation60_spill] sm:$0xff] }
 0x6b5   :  { %3115 = vmatprep.subr.mxu0 %v10923_v59  ;;  %3186 = vmatprep.subr.mxu1 %v10924_v60  ;;  %v10958_v59 = vld [vmem:[#allocation61_spill] sm:$0xff]  ;;  %v10959_v60 = vld [vmem:[#allocation62_spill] sm:$0xff] }
 0x6b6   :  { %3116 = vmatpush1.msra.mxu0 %v10925_v31  ;;  %3187 = vmatpush1.msra.mxu1 %v10926_v44  ;;  %v10960_v31 = vld [vmem:[#allocation65_spill] sm:$0xff]  ;;  %v10961_v44 = vld [vmem:[#allocation66_spill] sm:$0xff] }
 0x6b7   :  { %3117 = vmatprep.subr.mxu0 %v10927_v8  ;;  %3188 = vmatprep.subr.mxu1 %v10928_v45  ;;  %v10962_v8 = vld [vmem:[#allocation67_spill] sm:$0xff]  ;;  %v10963_v45 = vld [vmem:[#allocation68_spill] sm:$0xff] }
 0x6b8   :  { %3118 = vmatpush1.msra.mxu0 %v10929_v28  ;;  %3189 = vmatpush1.msra.mxu1 %v10930_v20  ;;  %v10964_v28 = vld [vmem:[#allocation71_spill] sm:$0xff]  ;;  %v10965_v20 = vld [vmem:[#allocation72_spill] sm:$0xff] }
 0x6b9   :  { %3119 = vmatprep.subr.mxu0 %v10931_v36  ;;  %3190 = vmatprep.subr.mxu1 %v10932_v46  ;;  %v10966_v36 = vld [vmem:[#allocation73_spill] sm:$0xff]  ;;  %v10967_v46 = vld [vmem:[#allocation74_spill] sm:$0xff] }
 0x6ba   :  { %3120 = vmatpush1.msra.mxu0 %v10933_v63  ;;  %3191 = vmatpush1.msra.mxu1 %v10934_v22  ;;  %v10968_v63 = vld [vmem:[#allocation77_spill] sm:$0xff]  ;;  %v10969_v22 = vld [vmem:[#allocation78_spill] sm:$0xff] }
 0x6bb   :  { %3121 = vmatprep.subr.mxu0 %v10935_v1  ;;  %3192 = vmatprep.subr.mxu1 %v10936_v9  ;;  %v10970_v1 = vld [vmem:[#allocation79_spill] sm:$0xff]  ;;  %v10971_v9 = vld [vmem:[#allocation80_spill] sm:$0xff] }
 0x6bc   :  { %3122 = vmatpush1.msra.mxu0 %v10937_v43  ;;  %3193 = vmatpush1.msra.mxu1 %v10938_v24  ;;  %v10972_v43 = vld [vmem:[#allocation83_spill] sm:$0xff]  ;;  %v10973_v24 = vld [vmem:[#allocation84_spill] sm:$0xff] }
 0x6bd   :  { %3123 = vmatprep.subr.mxu0 %v10939_v18  ;;  %3194 = vmatprep.subr.mxu1 %v10940_v56  ;;  %v10974_v18 = vld [vmem:[#allocation85_spill] sm:$0xff]  ;;  %v10975_v56 = vld [vmem:[#allocation86_spill] sm:$0xff] }
 0x6be   :  { %3124 = vmatpush1.msra.mxu0 %v10941_v62  ;;  %3195 = vmatpush1.msra.mxu1 %v10942_v2  ;;  %v10976_v62 = vld [vmem:[#allocation89_spill] sm:$0xff]  ;;  %v10977_v2 = vld [vmem:[#allocation90_spill] sm:$0xff] }
 0x6bf   :  { %3125 = vmatprep.subr.mxu0 %v10943_v57  ;;  %3196 = vmatprep.subr.mxu1 %v10944_v3  ;;  %v10978_v57 = vld [vmem:[#allocation91_spill] sm:$0xff]  ;;  %v10979_v3 = vld [vmem:[#allocation92_spill] sm:$0xff] }
 0x6c0   :  { %3126 = vmatpush1.msra.mxu0 %v10945_v35  ;;  %3197 = vmatpush1.msra.mxu1 %v10946_v33  ;;  %v10980_v35 = vld [vmem:[#allocation95_spill] sm:$0xff]  ;;  %v10981_v33 = vld [vmem:[#allocation96_spill] sm:$0xff] }
 0x6c1   :  { %3127 = vmatprep.subr.mxu0 %v10947_v55  ;;  %3198 = vmatprep.subr.mxu1 %v10948_v5  ;;  %v10982_v55 = vld [vmem:[#allocation97_spill] sm:$0xff]  ;;  %v10983_v5 = vld [vmem:[#allocation98_spill] sm:$0xff] }
 0x6c2   :  { %3128 = vmatpush1.msra.mxu0 %v10949_v7  ;;  %3199 = vmatpush1.msra.mxu1 %v10950_v6  ;;  %v10984_v7 = vld [vmem:[#allocation101_spill] sm:$0xff]  ;;  %v10985_v6 = vld [vmem:[#allocation102_spill] sm:$0xff] }
 0x6c3   :  { %3129 = vmatprep.subr.mxu0 %v10951_v16  ;;  %3200 = vmatprep.subr.mxu1 %v10952_v26  ;;  %v10986_v16 = vld [vmem:[#allocation103_spill] sm:$0xff]  ;;  %v10987_v26 = vld [vmem:[#allocation104_spill] sm:$0xff] }
 0x6c4   :  { %3130 = vmatpush1.msra.mxu0 %v10953_v34  ;;  %3201 = vmatpush1.msra.mxu1 %v10954_v51  ;;  %v10988_v34 = vld [vmem:[#allocation107_spill] sm:$0xff]  ;;  %v10989_v51 = vld [vmem:[#allocation108_spill] sm:$0xff] }
 0x6c5   :  { %3131 = vmatprep.subr.mxu0 %v10955_v21  ;;  %3202 = vmatprep.subr.mxu1 %v10956_v29  ;;  %v10990_v21 = vld [vmem:[#allocation109_spill] sm:$0xff]  ;;  %v10991_v29 = vld [vmem:[#allocation110_spill] sm:$0xff] }
 0x6c6   :  { %3132 = vmatpush1.msra.mxu0 %v10957_v23  ;;  %3203 = vmatpush1.msra.mxu1 %v10958_v59  ;;  %v10992_v23 = vld [vmem:[#allocation113_spill] sm:$0xff]  ;;  %v10993_v59 = vld [vmem:[#allocation114_spill] sm:$0xff] }
 0x6c7   :  { %3133 = vmatprep.subr.mxu0 %v10959_v60  ;;  %3204 = vmatprep.subr.mxu1 %v10960_v31  ;;  %v10994_v60 = vld [vmem:[#allocation115_spill] sm:$0xff]  ;;  %v10995_v31 = vld [vmem:[#allocation116_spill] sm:$0xff] }
 0x6c8   :  { %3134 = vmatpush1.msra.mxu0 %v10961_v44  ;;  %3205 = vmatpush1.msra.mxu1 %v10962_v8  ;;  %v10996_v44 = vld [vmem:[#allocation119_spill] sm:$0xff]  ;;  %v10997_v8 = vld [vmem:[#allocation120_spill] sm:$0xff] }
 0x6c9   :  { %3135 = vmatprep.subr.mxu0 %v10963_v45  ;;  %3206 = vmatprep.subr.mxu1 %v10964_v28  ;;  %v10998_v45 = vld [vmem:[#allocation121_spill] sm:$0xff]  ;;  %v10999_v28 = vld [vmem:[#allocation122_spill] sm:$0xff] }
 0x6ca   :  { %3136 = vmatpush1.msra.mxu0 %v10965_v20  ;;  %3207 = vmatpush1.msra.mxu1 %v10966_v36  ;;  %v11000_v20 = vld [vmem:[#allocation125_spill] sm:$0xff]  ;;  %v11001_v36 = vld [vmem:[#allocation126_spill] sm:$0xff] }
 0x6cb   :  { %3137 = vmatprep.subr.mxu0 %v10967_v46  ;;  %3208 = vmatprep.subr.mxu1 %v10968_v63  ;;  %v11002_v46 = vld [vmem:[#allocation127_spill] sm:$0xff]  ;;  %v11003_v63 = vld [vmem:[#allocation128_spill] sm:$0xff] }
 0x6cc   :  { %3138 = vmatpush1.msra.mxu0 %v10969_v22  ;;  %3209 = vmatpush1.msra.mxu1 %v10970_v1  ;;  %v11004_v22 = vld [vmem:[#allocation131_spill] sm:$0xff]  ;;  %v11005_v1 = vld [vmem:[#allocation132_spill] sm:$0xff] }
 0x6cd   :  { %3139 = vmatprep.subr.mxu0 %v10971_v9  ;;  %3210 = vmatprep.subr.mxu1 %v10972_v43  ;;  %v11006_v9 = vld [vmem:[#allocation133_spill] sm:$0xff]  ;;  %v11007_v43 = vld [vmem:[#allocation134_spill] sm:$0xff] }
 0x6ce   :  { %3140 = vmatpush1.msra.mxu0 %v10973_v24  ;;  %3211 = vmatpush1.msra.mxu1 %v10974_v18  ;;  %v11008_v24 = vld [vmem:[#allocation137_spill] sm:$0xff]  ;;  %v11009_v18 = vld [vmem:[#allocation138_spill] sm:$0xff] }
 0x6cf   :  { %3141 = vmatprep.subr.mxu0 %v10975_v56  ;;  %3212 = vmatprep.subr.mxu1 %v10976_v62  ;;  %v11010_v56 = vld [vmem:[#allocation141_spill] sm:$0xff]  ;;  %v11011_v62 = vld [vmem:[#allocation142_spill] sm:$0xff] }
 0x6d0   :  { %3142 = vmatpush2.msra.mxu0 %v10977_v2  ;;  %3213 = vmatpush2.msra.mxu1 %v10978_v57  ;;  %v11012_v2 = vld [vmem:[#allocation143_spill] sm:$0xff]  ;;  %v11013_v57 = vld [vmem:[#allocation144_spill] sm:$0xff] }
 0x6d1   :  { %3143 = vmatprep.subr.mxu0 %v10979_v3  ;;  %3214 = vmatprep.subr.mxu1 %v10980_v35  ;;  %v11014_v3 = vld [vmem:[#allocation145_spill] sm:$0xff]  ;;  %v11015_v35 = vld [vmem:[#allocation146_spill] sm:$0xff] }
 0x6d2   :  { %3144 = vmatpush2.msra.mxu0 %v10981_v33  ;;  %3215 = vmatpush2.msra.mxu1 %v10982_v55  ;;  %v11016_v33 = vld [vmem:[#allocation147_spill] sm:$0xff]  ;;  %v11017_v55 = vld [vmem:[#allocation148_spill] sm:$0xff] }
 0x6d3   :  { %3145 = vmatprep.subr.mxu0 %v10983_v5  ;;  %3216 = vmatprep.subr.mxu1 %v10984_v7  ;;  %v11018_v5 = vld [vmem:[#allocation149_spill] sm:$0xff]  ;;  %v8881_v7 = vld [vmem:[#allocation6 + $0x508] sm:$0xff] }
 0x6d4   :  { %3146 = vmatpush2.msra.mxu0 %v10985_v6  ;;  %3217 = vmatpush2.msra.mxu1 %v10986_v16  ;;  %v8884_v6 = vld [vmem:[#allocation6 + $0x518] sm:$0xff]  ;;  %v8887_v16 = vld [vmem:[#allocation6 + $0x500] sm:$0xff] }
 0x6d5   :  { %3147 = vmatprep.subr.mxu0 %v10987_v26  ;;  %3218 = vmatprep.subr.mxu1 %v10988_v34  ;;  %v8890_v26 = vld [vmem:[#allocation6 + $0x510] sm:$0xff]  ;;  %v8893_v34 = vld [vmem:[#allocation6 + $0x4c8] sm:$0xff] }
 0x6d6   :  { %3148 = vmatpush2.msra.mxu0 %v10989_v51  ;;  %3219 = vmatpush2.msra.mxu1 %v10990_v21  ;;  %v8896_v51 = vld [vmem:[#allocation6 + $0x4d8] sm:$0xff]  ;;  %v8899_v21 = vld [vmem:[#allocation6 + $0x4c0] sm:$0xff] }
 0x6d7   :  { %3149 = vmatprep.subr.mxu0 %v10991_v29  ;;  %3220 = vmatprep.subr.mxu1 %v10992_v23  ;;  %v8902_v29 = vld [vmem:[#allocation6 + $0x4d0] sm:$0xff]  ;;  %v8905_v23 = vld [vmem:[#allocation6 + $0x488] sm:$0xff] }
 0x6d8   :  { %3150 = vmatpush2.msra.mxu0 %v10993_v59  ;;  %3221 = vmatpush2.msra.mxu1 %v10994_v60  ;;  %v8908_v59 = vld [vmem:[#allocation6 + $0x498] sm:$0xff]  ;;  %v8911_v60 = vld [vmem:[#allocation6 + $0x480] sm:$0xff] }
 0x6d9   :  { %3151 = vmatprep.subr.mxu0 %v10995_v31  ;;  %3222 = vmatprep.subr.mxu1 %v10996_v44  ;;  %v8914_v31 = vld [vmem:[#allocation6 + $0x490] sm:$0xff]  ;;  %v8917_v44 = vld [vmem:[#allocation6 + $0x448] sm:$0xff] }
 0x6da   :  { %3152 = vmatpush2.msra.mxu0 %v10997_v8  ;;  %3223 = vmatpush2.msra.mxu1 %v10998_v45  ;;  %11019 = vst [vmem:[#allocation231_spill] sm:$0xff] %v8914_v31  ;;  %11020 = vst [vmem:[#allocation232_spill] sm:$0xff] %v8917_v44  ;;  %v8920_v8 = vld [vmem:[#allocation6 + $0x458] sm:$0xff]  ;;  %v8923_v45 = vld [vmem:[#allocation6 + $0x440] sm:$0xff] }
 0x6db   :  { %3153 = vmatprep.subr.mxu0 %v10999_v28  ;;  %3224 = vmatprep.subr.mxu1 %v11000_v20  ;;  %11021 = vst [vmem:[#allocation233_spill] sm:$0xff] %v8920_v8  ;;  %11022 = vst [vmem:[#allocation234_spill] sm:$0xff] %v8923_v45  ;;  %v8926_v28 = vld [vmem:[#allocation6 + $0x450] sm:$0xff]  ;;  %v8929_v20 = vld [vmem:[#allocation6 + $0x408] sm:$0xff] }
 0x6dc   :  { %3154 = vmatpush2.msra.mxu0 %v11001_v36  ;;  %3225 = vmatpush2.msra.mxu1 %v11002_v46  ;;  %11023 = vst [vmem:[#allocation235_spill] sm:$0xff] %v8926_v28  ;;  %11024 = vst [vmem:[#allocation236_spill] sm:$0xff] %v8929_v20  ;;  %v8932_v36 = vld [vmem:[#allocation6 + $0x418] sm:$0xff]  ;;  %v8935_v46 = vld [vmem:[#allocation6 + $0x400] sm:$0xff] }
 0x6dd   :  { %3155 = vmatprep.subr.mxu0 %v11003_v63  ;;  %3226 = vmatprep.subr.mxu1 %v11004_v22  ;;  %11025 = vst [vmem:[#allocation237_spill] sm:$0xff] %v8932_v36  ;;  %11026 = vst [vmem:[#allocation238_spill] sm:$0xff] %v8935_v46  ;;  %v8938_v63 = vld [vmem:[#allocation6 + $0x410] sm:$0xff]  ;;  %v8941_v22 = vld [vmem:[#allocation6 + $0x3e8] sm:$0xff] }
 0x6de   :  { %3156 = vmatpush2.msra.mxu0 %v11005_v1  ;;  %3227 = vmatpush2.msra.mxu1 %v11006_v9  ;;  %11027 = vst [vmem:[#allocation239_spill] sm:$0xff] %v8938_v63  ;;  %11028 = vst [vmem:[#allocation240_spill] sm:$0xff] %v8941_v22  ;;  %v8944_v1 = vld [vmem:[#allocation6 + $0x3f8] sm:$0xff] }
 0x6df   :  { %3157 = vmatprep.subr.mxu0 %v11007_v43  ;;  %3228 = vmatprep.subr.mxu1 %v11008_v24  ;;  %11029 = vst [vmem:[#allocation241_spill] sm:$0xff] %v8944_v1  ;;  %v11030_v43 = vld [vmem:[#allocation112_spill] sm:$0xff] }
 0x6e0   :  { %3158 = vmatpush2.msra.mxu0 %v11009_v18  ;;  %3229 = vmatpush2.msra.mxu1 %v11010_v56 }
 0x6e1   :  { %3159 = vmatprep.subr.mxu0 %v11011_v62  ;;  %3230 = vmatprep.subr.mxu1 %v11012_v2  ;;  %v11031_v62 = vld [vmem:[#allocation118_spill] sm:$0xff] }
 0x6e2   :  { %3160 = vmatpush2.msra.mxu0 %v11013_v57  ;;  %3231 = vmatpush2.msra.mxu1 %v11014_v3 }
 0x6e3   :  { %3161 = vmatprep.subr.mxu0 %v11015_v35  ;;  %3232 = vmatprep.subr.mxu1 %v11016_v33 }
 0x6e4   :  { %3162 = vmatpush2.msra.mxu0 %v11017_v55  ;;  %3233 = vmatpush2.msra.mxu1 %v11018_v5 }
 0x6e5   :  { %3163 = vmatprep.subr.mxu0 %v8881_v7  ;;  %3234 = vmatprep.subr.mxu1 %v8884_v6 }
 0x6e6   :  { %3164 = vmatpush2.msra.mxu0 %v8887_v16  ;;  %3235 = vmatpush2.msra.mxu1 %v8890_v26 }
 0x6e7   :  { %3165 = vmatprep.subr.mxu0 %v8893_v34  ;;  %3236 = vmatprep.subr.mxu1 %v8896_v51 }
 0x6e8   :  { %3166 = vmatpush2.msra.mxu0 %v8899_v21  ;;  %3237 = vmatpush2.msra.mxu1 %v8902_v29 }
 0x6e9   :  { %3167 = vmatprep.subr.mxu0 %v8905_v23  ;;  %3238 = vmatprep.subr.mxu1 %v8908_v59 }
 0x6ea   :  { %3168 = vmatpush2.msra.mxu0 %v8911_v60  ;;  %3239 = vmatpush2.msra.mxu1 %v8914_v31 }
 0x6eb   :  { %3169 = vmatprep.subr.mxu0 %v8917_v44  ;;  %3240 = vmatprep.subr.mxu1 %v8920_v8  ;;  %v11038_v44 = vld [vmem:[#allocation183_spill] sm:$0xff] }
 0x6ec   :  { %3170 = vmatpush2.msra.mxu0 %v8923_v45  ;;  %3241 = vmatpush2.msra.mxu1 %v8926_v28 }
 0x6ed   :  { %3171 = vmatprep.subr.mxu0 %v8929_v20  ;;  %3242 = vmatprep.subr.mxu1 %v8932_v36  ;;  %v11036_v20 = vld [vmem:[#allocation182_spill] sm:$0xff] }
 0x6ee   :  { %3172 = vmatpush2.msra.mxu0 %v8935_v46  ;;  %3243 = vmatpush2.msra.mxu1 %v8938_v63 }
 0x6ef   :  { %3251 = vmatprep.subr.mxu0 %v8941_v22  ;;  %3322 = vmatprep.subr.mxu1 %v8944_v1 }
 0x72d   :  { %v2885_v9 = vpop.f32.mrf.mxu1  ;;  %v2814_v5 = vpop.f32.mrf.mxu0 }
 0x72e   :  { %v3034_v24 = vadd.f32 %v2885_v9, %v11030_v43  ;;  %v11032_v43 = vld [vmem:[#allocation111_spill] sm:$0xff] }
 0x72f   :  { %v2887_v18 = vpop.f32.mrf.mxu1  ;;  %v2816_v46 = vpop.f32.mrf.mxu0 }
 0x730   :  { %v3933_v56 = vmul.f32 -1.442695, %v3034_v24  ;;  %v3035_v2 = vadd.f32 %v2887_v18, %v11031_v62  ;;  %v3032_v24 = vadd.f32 %v2814_v5, %v11032_v43  ;;  %v11033_v18 = vld [vmem:[#allocation117_spill] sm:$0xff]  ;;  %v11039_v5 = vld [vmem:[#allocation171_spill] sm:$0xff] }
 0x731   :  { %v3033_v62 = vadd.f32 %v2816_v46, %v11033_v18  ;;  %v484_v43 = vadd.f32 %v11039_v5, %v11038_v44  ;;  %v11040_v46 = vld [vmem:[#allocation172_spill] sm:$0xff] }
 0x732   :  { %v3934_v57 = vmul.f32 -1.442695, %v3035_v2  ;;  %4119 = vpow2.f32 %v3933_v56  ;;  %v3931_v56 = vmul.f32 -1.442695, %v3032_v24  ;;  %v597_v24 = vadd.f32 %v11040_v46, %v6199_v41 }
 0x733   :  { %v3932_v2 = vmul.f32 -1.442695, %v3033_v62 }
 0x734   :  { %4121 = vpow2.f32 %v3934_v57 }
 0x73f   :  { %v4120_v3 = vpop.eup %4119 }
 0x740   :  { %v3060_v35 = vadd.f32 1.0, %v4120_v3 }
 0x741   :  { %v4122_v33 = vpop.eup %4121 }
 0x742   :  { %4123 = vrcp.f32 %v3060_v35  ;;  %v3061_v55 = vadd.f32 1.0, %v4122_v33  ;;  %v11034_v33 = vld [vmem:[#allocation181_spill] sm:$0xff] }
 0x744   :  { %4125 = vrcp.f32 %v3061_v55  ;;  %v11035_v55 = vld [vmem:[#allocation169_spill] sm:$0xff] }
 0x745   :  { %4127 = vpow2.f32 %v3931_v56  ;;  %v482_v36 = vadd.f32 %v11035_v55, %v11034_v33 }
 0x746   :  { %4129 = vpow2.f32 %v3932_v2 }
 0x74f   :  { %v4124_v22 = vpop.eup %4123 }
 0x750   :  { %v3078_v1 = vmul.f32 %v4124_v22, %v8445_v52  ;;  %v11037_v22 = vld [vmem:[#allocation170_spill] sm:$0xff] }
 0x751   :  { %v4126_v63 = vpop.eup %4125  ;;  %v595_v28 = vadd.f32 %v11037_v22, %v11036_v20 }
 0x752   :  { %v3079_v9 = vmul.f32 %v4126_v63, %v8449_v39  ;;  %v4128_v57 = vpop.eup %4127 }
 0x753   :  { %v4130_v3 = vpop.eup %4129  ;;  %v3058_v35 = vadd.f32 1.0, %v4128_v57 }
 0x754   :  { %v3059_v45 = vadd.f32 1.0, %v4130_v3 }
 0x755   :  { %4131 = vrcp.f32 %v3058_v35 }
 0x762   :  { %v4132_v22 = vpop.eup %4131 }
 0x76e   :  { %v2956_v8 = vpop.f32.mrf.mxu0  ;;  %v3027_v63 = vpop.f32.mrf.mxu1 }
 0x76f   :  { %v3036_v18 = vadd.f32 %v2956_v8, %v482_v36  ;;  %v3038_v62 = vadd.f32 %v3027_v63, %v595_v28  ;;  %v3092_v8 = vpop.permute.xlu1 %3091 }
 0x770   :  { %v2958_v56 = vpop.f32.mrf.mxu0  ;;  %v3029_v2 = vpop.f32.mrf.mxu1  ;;  %vm3093_vm14 = vcmp.eq.s32.totalorder %v3092_v8, 1  ;;  %v11070_v8 = vld [vmem:[#allocation194_spill] sm:$0xff] }
 0x771   :  { %v3935_v57 = vmul.f32 -1.442695, %v3036_v18  ;;  %4133 = vtanh.f32 %v3038_v62  ;;  %v3037_v55 = vadd.f32 %v2958_v56, %v484_v43  ;;  %v3039_v33 = vadd.f32 %v3029_v2, %v597_v24  ;;  %v11063_v2 = vld [vmem:[#allocation187_spill] sm:$0xff] }
 0x772   :  { %4135 = vrcp.f32 %v3059_v45 }
 0x773   :  { %4137 = vpow2.f32 %v3935_v57  ;;  %v3936_v3 = vmul.f32 -1.442695, %v3037_v55  ;;  %v11064_v57 = vld [vmem:[#allocation188_spill] sm:$0xff]  ;;  %v11065_v55 = vld [vmem:[#allocation189_spill] sm:$0xff] }
 0x774   :  { %4139 = vtanh.f32 %v3039_v33 }
 0x775   :  { %4141 = vpow2.f32 %v3936_v3  ;;  %v11066_v3 = vld [vmem:[#allocation190_spill] sm:$0xff] }
 0x77e   :  { %v4134_v20 = vpop.eup %4133 }
 0x77f   :  { %v4136_v5 = vpop.eup %4135  ;;  %v3080_v44 = vmul.f32 %v4134_v20, %v4132_v22  ;;  %v11067_v22 = vld [vmem:[#allocation191_spill] sm:$0xff] }
 0x780   :  { %v4138_v31 = vpop.eup %4137 }
 0x781   :  { %v4140_v46 = vpop.eup %4139  ;;  %v3062_v28 = vadd.f32 1.0, %v4138_v31  ;;  %v3082_v36 = vadd.f32 %v3080_v44, %v3078_v1 }
 0x782   :  { %v4142_v35 = vpop.eup %4141  ;;  %v3081_v63 = vmul.f32 %v4140_v46, %v4136_v5  ;;  %v11068_v5 = vld [vmem:[#allocation192_spill] sm:$0xff]  ;;  %v11069_v46 = vld [vmem:[#allocation193_spill] sm:$0xff] }
 0x783   :  { %4143 = vrcp.f32 %v3062_v28  ;;  %v3063_v43 = vadd.f32 1.0, %v4142_v35  ;;  %v8963_v45 = vsel %vm3093_vm14, %v3082_v36, %v8445_v52  ;;  %v11071_v28 = vld [vmem:[#allocation195_spill] sm:$0xff]  ;;  %v11073_v35 = vld [vmem:[#allocation197_spill] sm:$0xff] }
 0x784   :  { %4145 = vtanh.f32 %v3082_v36  ;;  %v3083_v33 = vadd.f32 %v3081_v63, %v3079_v9  ;;  %v11062_v9 = vld [vmem:[#allocation186_spill] sm:$0xff]  ;;  %v11072_v36 = vld [vmem:[#allocation196_spill] sm:$0xff] }
 0x785   :  { %4147 = vrcp.f32 %v3063_v43  ;;  %v11074_v63 = vld [vmem:[#allocation198_spill] sm:$0xff]  ;;  %v11075_v43 = vld [vmem:[#allocation199_spill] sm:$0xff] }
 0x786   :  { %4149 = vtanh.f32 %v3083_v33  ;;  %v8967_v20 = vsel %vm3093_vm14, %v3083_v33, %v8449_v39  ;;  %v11041_v39 = vld [vmem:[#allocation150_spill] sm:$0xff]  ;;  %v11076_v33 = vld [vmem:[#allocation200_spill] sm:$0xff] }
 0x790   :  { %v4144_v24 = vpop.eup %4143 }
 0x791   :  { %v4146_v31 = vpop.eup %4145 }
 0x792   :  { %v4148_v44 = vpop.eup %4147  ;;  %v3086_v1 = vmul.f32 %v4146_v31, %v4144_v24  ;;  %v11077_v24 = vld [vmem:[#allocation201_spill] sm:$0xff]  ;;  %v11078_v31 = vld [vmem:[#allocation202_spill] sm:$0xff] }
 0x793   :  { %v4150_v18 = vpop.eup %4149 }
 0x794   :  { %v3087_v62 = vmul.f32 %v4150_v18, %v4148_v44  ;;  %v8977_v52 = vsel %vm3093_vm14, %v3086_v1, %v8459_v30  ;;  %v11043_v30 = vld [vmem:[#allocation152_spill] sm:$0xff]  ;;  %v11079_v44 = vld [vmem:[#allocation203_spill] sm:$0xff]  ;;  %v11081_v18 = vld [vmem:[#allocation205_spill] sm:$0xff] }
 0x795   :  { %v11080_v1 = vld [vmem:[#allocation204_spill] sm:$0xff] }
 0x796   :  { %v8971_v56 = vsel %vm3093_vm14, %v3087_v62, %v8453_v15  ;;  %v11042_v15 = vld [vmem:[#allocation151_spill] sm:$0xff]  ;;  %v11082_v62 = vld [vmem:[#allocation206_spill] sm:$0xff] }
 0x797   :  { %3173 = vmatprep.mubr.f32.mxu0 %v8971_v56  ;;  %3244 = vmatprep.mubr.f32.mxu1 %v8971_v56 }
 0x798   :  { %3174 = vmatmul.mubr.f32.vlgmr.msra.gmra.mxu0 %v8977_v52  ;;  %3245 = vmatmul.mubr.f32.vlgmr.msra.gmra.mxu1 %v8977_v52 }
 0x799   :  { %3252 = vmatpush1.msra.mxu0 %v8463_v53  ;;  %3323 = vmatpush1.msra.mxu1 %v8466_v49  ;;  %v11044_v53 = vld [vmem:[#allocation153_spill] sm:$0xff]  ;;  %v11045_v49 = vld [vmem:[#allocation154_spill] sm:$0xff] }
 0x79a   :  { %3253 = vmatprep.subr.mxu0 %v8469_v47  ;;  %3315 = vmatprep.mubr.f32.mxu0 %v8971_v56  ;;  %v11046_v47 = vld [vmem:[#allocation155_spill] sm:$0xff] }
 0x79b   :  { %3324 = vmatprep.subr.mxu1 %v8473_v11  ;;  %3386 = vmatprep.mubr.f32.mxu1 %v8971_v56  ;;  %v11047_v11 = vld [vmem:[#allocation64_spill] sm:$0xff] }
 0x79c   :  { %3254 = vmatpush1.msra.mxu0 %v8477_v54  ;;  %3325 = vmatpush1.msra.mxu1 %v8480_v25  ;;  %v11048_v54 = vld [vmem:[#allocation70_spill] sm:$0xff]  ;;  %v11049_v25 = vld [vmem:[#allocation63_spill] sm:$0xff] }
 0x79d   :  { %3255 = vmatprep.subr.mxu0 %v8483_v58  ;;  %3326 = vmatprep.subr.mxu1 %v8486_v14  ;;  %v11050_v58 = vld [vmem:[#allocation69_spill] sm:$0xff]  ;;  %v11051_v14 = vld [vmem:[#allocation88_spill] sm:$0xff] }
 0x79e   :  { %3256 = vmatpush1.msra.mxu0 %v8489_v12  ;;  %3327 = vmatpush1.msra.mxu1 %v8492_v13  ;;  %v11052_v12 = vld [vmem:[#allocation94_spill] sm:$0xff]  ;;  %v11053_v13 = vld [vmem:[#allocation87_spill] sm:$0xff] }
 0x79f   :  { %3257 = vmatprep.subr.mxu0 %v8495_v27  ;;  %3328 = vmatprep.subr.mxu1 %v8498_v37  ;;  %v11054_v27 = vld [vmem:[#allocation93_spill] sm:$0xff] }
 0x7a0   :  { %3258 = vmatpush1.msra.mxu0 %v8501_v10  ;;  %3329 = vmatpush1.msra.mxu1 %v8504_v61  ;;  %v11055_v37 = vld [vmem:[#allocation161_spill] sm:$0xff]  ;;  %v11056_v10 = vld [vmem:[#allocation162_spill] sm:$0xff]  ;;  %v11057_v61 = vld [vmem:[#allocation163_spill] sm:$0xff] }
 0x7a1   :  { %3259 = vmatprep.subr.mxu0 %v8507_v17  ;;  %3330 = vmatprep.subr.mxu1 %v8510_v4  ;;  %v11058_v17 = vld [vmem:[#allocation164_spill] sm:$0xff] }
 0x7a2   :  { %3260 = vmatpush1.msra.mxu0 %v8513_v40  ;;  %3331 = vmatpush1.msra.mxu1 %v8516_v50  ;;  %v11059_v4 = vld [vmem:[#allocation156_spill] sm:$0xff]  ;;  %v11061_v50 = vld [vmem:[#allocation185_spill] sm:$0xff] }
 0x7a3   :  { %3261 = vmatprep.subr.mxu0 %v11041_v39  ;;  %3332 = vmatprep.subr.mxu1 %v11042_v15  ;;  %v11060_v40 = vld [vmem:[#allocation184_spill] sm:$0xff]  ;;  %v11083_v39 = vld [vmem:[#allocation207_spill] sm:$0xff] }
 0x7a4   :  { %3262 = vmatpush1.msra.mxu0 %v11043_v30  ;;  %3333 = vmatpush1.msra.mxu1 %v11044_v53  ;;  %v11084_v15 = vld [vmem:[#allocation208_spill] sm:$0xff]  ;;  %v11085_v30 = vld [vmem:[#allocation209_spill] sm:$0xff]  ;;  %v11086_v53 = vld [vmem:[#allocation210_spill] sm:$0xff] }
 0x7a5   :  { %3263 = vmatprep.subr.mxu0 %v11045_v49  ;;  %3334 = vmatprep.subr.mxu1 %v11046_v47  ;;  %v11087_v49 = vld [vmem:[#allocation211_spill] sm:$0xff]  ;;  %v11088_v47 = vld [vmem:[#allocation212_spill] sm:$0xff] }
 0x7a6   :  { %3264 = vmatpush1.msra.mxu0 %v11047_v11  ;;  %3335 = vmatpush1.msra.mxu1 %v11048_v54  ;;  %v11089_v11 = vld [vmem:[#allocation213_spill] sm:$0xff]  ;;  %v11090_v54 = vld [vmem:[#allocation214_spill] sm:$0xff] }
 0x7a7   :  { %3265 = vmatprep.subr.mxu0 %v11049_v25  ;;  %3336 = vmatprep.subr.mxu1 %v11050_v58  ;;  %v11091_v25 = vld [vmem:[#allocation215_spill] sm:$0xff]  ;;  %v11092_v58 = vld [vmem:[#allocation216_spill] sm:$0xff] }
 0x7a8   :  { %3266 = vmatpush1.msra.mxu0 %v11051_v14  ;;  %3337 = vmatpush1.msra.mxu1 %v11052_v12  ;;  %v11093_v14 = vld [vmem:[#allocation217_spill] sm:$0xff]  ;;  %v11094_v12 = vld [vmem:[#allocation218_spill] sm:$0xff] }
 0x7a9   :  { %3267 = vmatprep.subr.mxu0 %v11053_v13  ;;  %3338 = vmatprep.subr.mxu1 %v11054_v27  ;;  %v11095_v13 = vld [vmem:[#allocation219_spill] sm:$0xff]  ;;  %v11096_v27 = vld [vmem:[#allocation220_spill] sm:$0xff] }
 0x7aa   :  { %3268 = vmatpush1.msra.mxu0 %v11055_v37  ;;  %3339 = vmatpush1.msra.mxu1 %v11056_v10  ;;  %v11097_v37 = vld [vmem:[#allocation221_spill] sm:$0xff]  ;;  %v11098_v10 = vld [vmem:[#allocation222_spill] sm:$0xff] }
 0x7ab   :  { %3269 = vmatprep.subr.mxu0 %v11057_v61  ;;  %3340 = vmatprep.subr.mxu1 %v11058_v17  ;;  %v11099_v61 = vld [vmem:[#allocation223_spill] sm:$0xff]  ;;  %v11100_v17 = vld [vmem:[#allocation224_spill] sm:$0xff] }
 0x7ac   :  { %3270 = vmatpush1.msra.mxu0 %v11059_v4  ;;  %3341 = vmatpush1.msra.mxu1 %v11060_v40  ;;  %v11101_v4 = vld [vmem:[#allocation225_spill] sm:$0xff]  ;;  %v11102_v40 = vld [vmem:[#allocation226_spill] sm:$0xff] }
 0x7ad   :  { %3271 = vmatprep.subr.mxu0 %v11061_v50  ;;  %3342 = vmatprep.subr.mxu1 %v11062_v9  ;;  %v11103_v50 = vld [vmem:[#allocation227_spill] sm:$0xff]  ;;  %v11104_v9 = vld [vmem:[#allocation228_spill] sm:$0xff] }
 0x7ae   :  { %3272 = vmatpush1.msra.mxu0 %v11063_v2  ;;  %3343 = vmatpush1.msra.mxu1 %v11064_v57  ;;  %v11105_v2 = vld [vmem:[#allocation229_spill] sm:$0xff]  ;;  %v11106_v57 = vld [vmem:[#allocation230_spill] sm:$0xff] }
 0x7af   :  { %3273 = vmatprep.subr.mxu0 %v11065_v55  ;;  %3344 = vmatprep.subr.mxu1 %v11066_v3  ;;  %v9073_v55 = vld [vmem:[#allocation6 + $0x628] sm:$0xff]  ;;  %v9076_v3 = vld [vmem:[#allocation6 + $0x638] sm:$0xff] }
 0x7b0   :  { %3274 = vmatpush1.msra.mxu0 %v11067_v22  ;;  %3345 = vmatpush1.msra.mxu1 %v11068_v5  ;;  %v9079_v22 = vld [vmem:[#allocation6 + $0x620] sm:$0xff]  ;;  %v9100_v5 = vld [vmem:[#allocation6 + $0x5b8] sm:$0xff] }
 0x7b1   :  { %3275 = vmatprep.subr.mxu0 %v11069_v46  ;;  %3346 = vmatprep.subr.mxu1 %v11070_v8  ;;  %v9103_v46 = vld [vmem:[#allocation6 + $0x5a0] sm:$0xff]  ;;  %v9106_v8 = vld [vmem:[#allocation6 + $0x5b0] sm:$0xff] }
 0x7b2   :  { %3276 = vmatpush1.msra.mxu0 %v11071_v28  ;;  %3347 = vmatpush1.msra.mxu1 %v11072_v36  ;;  %v9109_v28 = vld [vmem:[#allocation6 + $0x568] sm:$0xff]  ;;  %v9112_v36 = vld [vmem:[#allocation6 + $0x578] sm:$0xff] }
 0x7b3   :  { %3277 = vmatprep.subr.mxu0 %v11073_v35  ;;  %3348 = vmatprep.subr.mxu1 %v11074_v63  ;;  %v9115_v35 = vld [vmem:[#allocation6 + $0x560] sm:$0xff]  ;;  %v9118_v63 = vld [vmem:[#allocation6 + $0x570] sm:$0xff] }
 0x7b4   :  { %3278 = vmatpush1.msra.mxu0 %v11075_v43  ;;  %3349 = vmatpush1.msra.mxu1 %v11076_v33  ;;  %v9121_v43 = vld [vmem:[#allocation6 + $0x528] sm:$0xff]  ;;  %v9124_v33 = vld [vmem:[#allocation6 + $0x538] sm:$0xff] }
 0x7b5   :  { %3279 = vmatprep.subr.mxu0 %v11077_v24  ;;  %3350 = vmatprep.subr.mxu1 %v11078_v31  ;;  %v9127_v24 = vld [vmem:[#allocation6 + $0x520] sm:$0xff]  ;;  %v9130_v31 = vld [vmem:[#allocation6 + $0x530] sm:$0xff] }
 0x7b6   :  { %3280 = vmatpush1.msra.mxu0 %v11079_v44  ;;  %3351 = vmatpush1.msra.mxu1 %v11080_v1  ;;  %v9133_v44 = vld [vmem:[#allocation6 + $0x4e8] sm:$0xff]  ;;  %v9136_v1 = vld [vmem:[#allocation6 + $0x4f8] sm:$0xff] }
 0x7b7   :  { %3281 = vmatprep.subr.mxu0 %v11081_v18  ;;  %3352 = vmatprep.subr.mxu1 %v11082_v62  ;;  %v9139_v18 = vld [vmem:[#allocation6 + $0x4e0] sm:$0xff]  ;;  %v9142_v62 = vld [vmem:[#allocation6 + $0x4f0] sm:$0xff] }
 0x7b8   :  { %3282 = vmatpush1.msra.mxu0 %v11083_v39  ;;  %3353 = vmatpush1.msra.mxu1 %v11084_v15  ;;  %v9145_v39 = vld [vmem:[#allocation6 + $0x4a8] sm:$0xff]  ;;  %v9148_v15 = vld [vmem:[#allocation6 + $0x4b8] sm:$0xff] }
 0x7b9   :  { %3283 = vmatprep.subr.mxu0 %v11085_v30  ;;  %3354 = vmatprep.subr.mxu1 %v11086_v53  ;;  %v9151_v30 = vld [vmem:[#allocation6 + $0x4a0] sm:$0xff]  ;;  %v9154_v53 = vld [vmem:[#allocation6 + $0x4b0] sm:$0xff] }
 0x7ba   :  { %3284 = vmatpush2.msra.mxu0 %v11087_v49  ;;  %3355 = vmatpush2.msra.mxu1 %v11088_v47  ;;  %v9157_v49 = vld [vmem:[#allocation6 + $0x468] sm:$0xff]  ;;  %v9160_v47 = vld [vmem:[#allocation6 + $0x478] sm:$0xff] }
 0x7bb   :  { %3285 = vmatprep.subr.mxu0 %v11089_v11  ;;  %3356 = vmatprep.subr.mxu1 %v11090_v54  ;;  %v9163_v11 = vld [vmem:[#allocation6 + $0x460] sm:$0xff]  ;;  %v9166_v54 = vld [vmem:[#allocation6 + $0x470] sm:$0xff] }
 0x7bc   :  { %3286 = vmatpush2.msra.mxu0 %v11091_v25  ;;  %3357 = vmatpush2.msra.mxu1 %v11092_v58  ;;  %v9169_v25 = vld [vmem:[#allocation6 + $0x428] sm:$0xff]  ;;  %v9172_v58 = vld [vmem:[#allocation6 + $0x438] sm:$0xff] }
 0x7bd   :  { %3287 = vmatprep.subr.mxu0 %v11093_v14  ;;  %3358 = vmatprep.subr.mxu1 %v11094_v12  ;;  %v9175_v14 = vld [vmem:[#allocation6 + $0x420] sm:$0xff]  ;;  %v9178_v12 = vld [vmem:[#allocation6 + $0x430] sm:$0xff] }
 0x7be   :  { %3288 = vmatpush2.msra.mxu0 %v11095_v13  ;;  %3359 = vmatpush2.msra.mxu1 %v11096_v27  ;;  %11107 = vst [vmem:[#allocation242_spill] sm:$0xff] %v9178_v12  ;;  %v4984_v13 = vld [vmem:[#allocation6 + $0x3c8] sm:$0xff]  ;;  %v4985_v27 = vld [vmem:[#allocation6 + $0x3d8] sm:$0xff] }
 0x7bf   :  { %3289 = vmatprep.subr.mxu0 %v11097_v37  ;;  %3360 = vmatprep.subr.mxu1 %v11098_v10  ;;  %v4986_v37 = vld [vmem:[#allocation6 + $0x3c0] sm:$0xff]  ;;  %v4987_v10 = vld [vmem:[#allocation6 + $0x3d0] sm:$0xff] }
 0x7c0   :  { %3290 = vmatpush2.msra.mxu0 %v11099_v61  ;;  %3361 = vmatpush2.msra.mxu1 %v11100_v17  ;;  %v4988_v61 = vld [vmem:[#allocation6 + $0x388] sm:$0xff]  ;;  %v4989_v17 = vld [vmem:[#allocation6 + $0x398] sm:$0xff] }
 0x7c1   :  { %3291 = vmatprep.subr.mxu0 %v11101_v4  ;;  %3362 = vmatprep.subr.mxu1 %v11102_v40  ;;  %v4990_v4 = vld [vmem:[#allocation6 + $0x380] sm:$0xff]  ;;  %v4991_v40 = vld [vmem:[#allocation6 + $0x390] sm:$0xff] }
 0x7c2   :  { %3292 = vmatpush2.msra.mxu0 %v11103_v50  ;;  %3363 = vmatpush2.msra.mxu1 %v11104_v9  ;;  %v4992_v50 = vld [vmem:[#allocation6 + $0x348] sm:$0xff]  ;;  %v4993_v9 = vld [vmem:[#allocation6 + $0x358] sm:$0xff] }
 0x7c3   :  { %3293 = vmatprep.subr.mxu0 %v11105_v2  ;;  %3364 = vmatprep.subr.mxu1 %v11106_v57  ;;  %v4994_v2 = vld [vmem:[#allocation6 + $0x340] sm:$0xff]  ;;  %v4995_v57 = vld [vmem:[#allocation6 + $0x350] sm:$0xff] }
 0x7c4   :  { %3294 = vmatpush2.msra.mxu0 %v8717_v48  ;;  %3365 = vmatpush2.msra.mxu1 %v8720_v32  ;;  %v9082_v48 = vld [vmem:[#allocation6 + $0x630] sm:$0xff]  ;;  %v9085_v32 = vld [vmem:[#allocation6 + $0x5e8] sm:$0xff] }
 0x7c5   :  { %3295 = vmatprep.subr.mxu0 %v8723_v19  ;;  %3366 = vmatprep.subr.mxu1 %v8726_v0  ;;  %v9088_v19 = vld [vmem:[#allocation6 + $0x5f8] sm:$0xff]  ;;  %v9091_v0 = vld [vmem:[#allocation6 + $0x5e0] sm:$0xff] }
 0x7c6   :  { %3296 = vmatpush2.msra.mxu0 %v8729_v42  ;;  %3367 = vmatpush2.msra.mxu1 %v8732_v38  ;;  %v9094_v42 = vld [vmem:[#allocation6 + $0x5f0] sm:$0xff]  ;;  %v9097_v38 = vld [vmem:[#allocation6 + $0x5a8] sm:$0xff] }
 0x7c7   :  { %3297 = vmatprep.subr.mxu0 %v9073_v55  ;;  %3368 = vmatprep.subr.mxu1 %v9076_v3 }
 0x7c8   :  { %3298 = vmatpush2.msra.mxu0 %v9079_v22  ;;  %3369 = vmatpush2.msra.mxu1 %v9082_v48 }
 0x7c9   :  { %3299 = vmatprep.subr.mxu0 %v9085_v32  ;;  %3370 = vmatprep.subr.mxu1 %v9088_v19 }
 0x7ca   :  { %3300 = vmatpush2.msra.mxu0 %v9091_v0  ;;  %3371 = vmatpush2.msra.mxu1 %v9094_v42 }
 0x7cb   :  { %3301 = vmatprep.subr.mxu0 %v9097_v38  ;;  %3372 = vmatprep.subr.mxu1 %v9100_v5 }
 0x7cc   :  { %3302 = vmatpush2.msra.mxu0 %v9103_v46  ;;  %3373 = vmatpush2.msra.mxu1 %v9106_v8 }
 0x7cd   :  { %3303 = vmatprep.subr.mxu0 %v9109_v28  ;;  %3374 = vmatprep.subr.mxu1 %v9112_v36 }
 0x7ce   :  { %3304 = vmatpush2.msra.mxu0 %v9115_v35  ;;  %3375 = vmatpush2.msra.mxu1 %v9118_v63 }
 0x7cf   :  { %3305 = vmatprep.subr.mxu0 %v9121_v43  ;;  %3376 = vmatprep.subr.mxu1 %v9124_v33 }
 0x7d0   :  { %3306 = vmatpush2.msra.mxu0 %v9127_v24  ;;  %3377 = vmatpush2.msra.mxu1 %v9130_v31 }
 0x7d1   :  { %3307 = vmatprep.subr.mxu0 %v9133_v44  ;;  %3378 = vmatprep.subr.mxu1 %v9136_v1 }
 0x7d2   :  { %3308 = vmatpush2.msra.mxu0 %v9139_v18  ;;  %3379 = vmatpush2.msra.mxu1 %v9142_v62 }
 0x7d3   :  { %3309 = vmatprep.subr.mxu0 %v9145_v39  ;;  %3380 = vmatprep.subr.mxu1 %v9148_v15 }
 0x7d4   :  { %3310 = vmatpush2.msra.mxu0 %v9151_v30  ;;  %3381 = vmatpush2.msra.mxu1 %v9154_v53 }
 0x7d5   :  { %3311 = vmatprep.subr.mxu0 %v9157_v49  ;;  %3382 = vmatprep.subr.mxu1 %v9160_v47 }
 0x7d6   :  { %3312 = vmatpush2.msra.mxu0 %v9163_v11  ;;  %3383 = vmatpush2.msra.mxu1 %v9166_v54 }
 0x7d7   :  { %3313 = vmatprep.subr.mxu0 %v9169_v25  ;;  %3384 = vmatprep.subr.mxu1 %v9172_v58 }
 0x7d8   :  { %3314 = vmatpush2.msra.mxu0 %v9175_v14  ;;  %3385 = vmatpush2.msra.mxu1 %v9178_v12 }
 0x7d9   :  { %3316 = vmatmul.mubr.f32.vlgmr.msra.gmra.mxu0 %v8977_v52  ;;  %3387 = vmatmul.mubr.f32.vlgmr.msra.gmra.mxu1 %v8977_v52 }
 0x7da   :  { %3470 = vmatprep.subr.mxu0 %v4984_v13  ;;  %3541 = vmatprep.subr.mxu1 %v4985_v27  ;;  %v4996_v13 = vld [vmem:[#allocation6 + $0x308] sm:$0xff]  ;;  %v4997_v27 = vld [vmem:[#allocation6 + $0x318] sm:$0xff] }
 0x7db   :  { %3471 = vmatpush1.msra.mxu0 %v4986_v37  ;;  %3542 = vmatpush1.msra.mxu1 %v4987_v10  ;;  %v4998_v37 = vld [vmem:[#allocation6 + $0x300] sm:$0xff]  ;;  %v4999_v10 = vld [vmem:[#allocation6 + $0x310] sm:$0xff] }
 0x7dc   :  { %3472 = vmatprep.subr.mxu0 %v4988_v61  ;;  %3543 = vmatprep.subr.mxu1 %v4989_v17  ;;  %v5000_v61 = vld [vmem:[#allocation6 + $0x2c8] sm:$0xff]  ;;  %v5001_v17 = vld [vmem:[#allocation6 + $0x2d8] sm:$0xff] }
 0x7dd   :  { %3473 = vmatpush1.msra.mxu0 %v4990_v4  ;;  %3544 = vmatpush1.msra.mxu1 %v4991_v40  ;;  %v5002_v4 = vld [vmem:[#allocation6 + $0x2c0] sm:$0xff]  ;;  %v5003_v40 = vld [vmem:[#allocation6 + $0x2d0] sm:$0xff] }
 0x7de   :  { %3474 = vmatprep.subr.mxu0 %v4992_v50  ;;  %3545 = vmatprep.subr.mxu1 %v4993_v9  ;;  %v5004_v50 = vld [vmem:[#allocation6 + $0x288] sm:$0xff]  ;;  %v5005_v9 = vld [vmem:[#allocation6 + $0x298] sm:$0xff] }
 0x7df   :  { %3475 = vmatpush1.msra.mxu0 %v4994_v2  ;;  %3546 = vmatpush1.msra.mxu1 %v4995_v57  ;;  %v5006_v2 = vld [vmem:[#allocation6 + $0x280] sm:$0xff]  ;;  %v5007_v57 = vld [vmem:[#allocation6 + $0x290] sm:$0xff] }
 0x7e0   :  { %3476 = vmatprep.subr.mxu0 %v4996_v13  ;;  %3547 = vmatprep.subr.mxu1 %v4997_v27  ;;  %v5008_v13 = vld [vmem:[#allocation6 + $0x248] sm:$0xff]  ;;  %v5009_v27 = vld [vmem:[#allocation6 + $0x258] sm:$0xff] }
 0x7e1   :  { %3477 = vmatpush1.msra.mxu0 %v4998_v37  ;;  %3548 = vmatpush1.msra.mxu1 %v4999_v10  ;;  %v5010_v37 = vld [vmem:[#allocation6 + $0x240] sm:$0xff]  ;;  %v5011_v10 = vld [vmem:[#allocation6 + $0x250] sm:$0xff] }
 0x7e2   :  { %3478 = vmatprep.subr.mxu0 %v5000_v61  ;;  %3549 = vmatprep.subr.mxu1 %v5001_v17  ;;  %v5012_v61 = vld [vmem:[#allocation6 + $0x208] sm:$0xff]  ;;  %v5013_v17 = vld [vmem:[#allocation6 + $0x218] sm:$0xff] }
 0x7e3   :  { %3479 = vmatpush1.msra.mxu0 %v5002_v4  ;;  %3550 = vmatpush1.msra.mxu1 %v5003_v40  ;;  %v5014_v4 = vld [vmem:[#allocation6 + $0x200] sm:$0xff]  ;;  %v5015_v40 = vld [vmem:[#allocation6 + $0x210] sm:$0xff] }
 0x7e4   :  { %3480 = vmatprep.subr.mxu0 %v5004_v50  ;;  %3551 = vmatprep.subr.mxu1 %v5005_v9  ;;  %v5016_v50 = vld [vmem:[#allocation6 + $0x1c8] sm:$0xff]  ;;  %v5017_v9 = vld [vmem:[#allocation6 + $0x1d8] sm:$0xff] }
 0x7e5   :  { %3481 = vmatpush1.msra.mxu0 %v5006_v2  ;;  %3552 = vmatpush1.msra.mxu1 %v5007_v57  ;;  %v5018_v2 = vld [vmem:[#allocation6 + $0x1c0] sm:$0xff]  ;;  %v5019_v57 = vld [vmem:[#allocation6 + $0x1d0] sm:$0xff] }
 0x7e6   :  { %3482 = vmatprep.subr.mxu0 %v5008_v13  ;;  %3553 = vmatprep.subr.mxu1 %v5009_v27  ;;  %v5020_v13 = vld [vmem:[#allocation6 + $0x188] sm:$0xff]  ;;  %v5021_v27 = vld [vmem:[#allocation6 + $0x198] sm:$0xff] }
 0x7e7   :  { %3483 = vmatpush1.msra.mxu0 %v5010_v37  ;;  %3554 = vmatpush1.msra.mxu1 %v5011_v10  ;;  %v5022_v37 = vld [vmem:[#allocation6 + $0x180] sm:$0xff]  ;;  %v5023_v10 = vld [vmem:[#allocation6 + $0x190] sm:$0xff] }
 0x7e8   :  { %3484 = vmatprep.subr.mxu0 %v5012_v61  ;;  %3555 = vmatprep.subr.mxu1 %v5013_v17  ;;  %v5024_v61 = vld [vmem:[#allocation6 + $0x148] sm:$0xff]  ;;  %v5025_v17 = vld [vmem:[#allocation6 + $0x158] sm:$0xff] }
 0x7e9   :  { %3485 = vmatpush1.msra.mxu0 %v5014_v4  ;;  %3556 = vmatpush1.msra.mxu1 %v5015_v40  ;;  %v5026_v4 = vld [vmem:[#allocation6 + $0x140] sm:$0xff]  ;;  %v5027_v40 = vld [vmem:[#allocation6 + $0x150] sm:$0xff] }
 0x7ea   :  { %3486 = vmatprep.subr.mxu0 %v5016_v50  ;;  %3557 = vmatprep.subr.mxu1 %v5017_v9  ;;  %v5028_v50 = vld [vmem:[#allocation6 + $0x108] sm:$0xff]  ;;  %v5029_v9 = vld [vmem:[#allocation6 + $0x118] sm:$0xff] }
 0x7eb   :  { %3487 = vmatpush1.msra.mxu0 %v5018_v2  ;;  %3558 = vmatpush1.msra.mxu1 %v5019_v57  ;;  %v5030_v2 = vld [vmem:[#allocation6 + $0x100] sm:$0xff]  ;;  %v5031_v57 = vld [vmem:[#allocation6 + $0x110] sm:$0xff] }
 0x7ec   :  { %3488 = vmatprep.subr.mxu0 %v5020_v13  ;;  %3559 = vmatprep.subr.mxu1 %v5021_v27  ;;  %v5032_v13 = vld [vmem:[#allocation6 + $0xc8] sm:$0xff]  ;;  %v5033_v27 = vld [vmem:[#allocation6 + $0xd8] sm:$0xff] }
 0x7ed   :  { %3489 = vmatpush1.msra.mxu0 %v5022_v37  ;;  %3560 = vmatpush1.msra.mxu1 %v5023_v10  ;;  %v5034_v37 = vld [vmem:[#allocation6 + $0xc0] sm:$0xff]  ;;  %v5035_v10 = vld [vmem:[#allocation6 + $0xd0] sm:$0xff] }
 0x7ee   :  { %3490 = vmatprep.subr.mxu0 %v5024_v61  ;;  %3561 = vmatprep.subr.mxu1 %v5025_v17  ;;  %v5036_v61 = vld [vmem:[#allocation6 + $0x88] sm:$0xff]  ;;  %v5037_v17 = vld [vmem:[#allocation6 + $0x98] sm:$0xff] }
 0x7ef   :  { %3491 = vmatpush1.msra.mxu0 %v5026_v4  ;;  %3562 = vmatpush1.msra.mxu1 %v5027_v40  ;;  %v5038_v4 = vld [vmem:[#allocation6 + $0x80] sm:$0xff]  ;;  %v5039_v40 = vld [vmem:[#allocation6 + $0x90] sm:$0xff] }
 0x7f0   :  { %3492 = vmatprep.subr.mxu0 %v5028_v50  ;;  %3563 = vmatprep.subr.mxu1 %v5029_v9  ;;  %v5040_v50 = vld [vmem:[#allocation6 + $0x48] sm:$0xff]  ;;  %v5041_v9 = vld [vmem:[#allocation6 + $0x58] sm:$0xff] }
 0x7f1   :  { %3493 = vmatpush1.msra.mxu0 %v5030_v2  ;;  %3564 = vmatpush1.msra.mxu1 %v5031_v57  ;;  %v5042_v2 = vld [vmem:[#allocation6 + $0x40] sm:$0xff]  ;;  %v5043_v57 = vld [vmem:[#allocation6 + $0x50] sm:$0xff] }
 0x7f2   :  { %3494 = vmatprep.subr.mxu0 %v5032_v13  ;;  %3565 = vmatprep.subr.mxu1 %v5033_v27  ;;  %v5044_v13 = vld [vmem:[#allocation6 + $0x8] sm:$0xff]  ;;  %v5045_v27 = vld [vmem:[#allocation6 + $0x18] sm:$0xff] }
 0x7f3   :  { %3495 = vmatpush1.msra.mxu0 %v5034_v37  ;;  %3566 = vmatpush1.msra.mxu1 %v5035_v10  ;;  %v5046_v37 = vld [vmem:[#allocation6] sm:$0xff]  ;;  %v5047_v10 = vld [vmem:[#allocation6 + $0x10] sm:$0xff] }
 0x7f4   :  { %3496 = vmatprep.subr.mxu0 %v5036_v61  ;;  %3567 = vmatprep.subr.mxu1 %v5037_v17  ;;  %v5048_v61 = vld [vmem:[#allocation6 + $0x7c8] sm:$0xff]  ;;  %v5049_v17 = vld [vmem:[#allocation6 + $0x7d8] sm:$0xff] }
 0x7f5   :  { %3497 = vmatpush1.msra.mxu0 %v5038_v4  ;;  %3568 = vmatpush1.msra.mxu1 %v5039_v40  ;;  %v5050_v4 = vld [vmem:[#allocation6 + $0x7c0] sm:$0xff]  ;;  %v5051_v40 = vld [vmem:[#allocation6 + $0x7d0] sm:$0xff] }
 0x7f6   :  { %3498 = vmatprep.subr.mxu0 %v5040_v50  ;;  %3569 = vmatprep.subr.mxu1 %v5041_v9  ;;  %v5052_v50 = vld [vmem:[#allocation6 + $0x788] sm:$0xff]  ;;  %v5053_v9 = vld [vmem:[#allocation6 + $0x798] sm:$0xff] }
 0x7f7   :  { %3499 = vmatpush1.msra.mxu0 %v5042_v2  ;;  %3570 = vmatpush1.msra.mxu1 %v5043_v57  ;;  %v5054_v2 = vld [vmem:[#allocation6 + $0x780] sm:$0xff]  ;;  %v5055_v57 = vld [vmem:[#allocation6 + $0x790] sm:$0xff] }
 0x7f8   :  { %3500 = vmatprep.subr.mxu0 %v5044_v13  ;;  %3571 = vmatprep.subr.mxu1 %v5045_v27  ;;  %v5056_v13 = vld [vmem:[#allocation6 + $0x748] sm:$0xff]  ;;  %v5057_v27 = vld [vmem:[#allocation6 + $0x758] sm:$0xff] }
 0x7f9   :  { %3501 = vmatpush1.msra.mxu0 %v5046_v37  ;;  %3572 = vmatpush1.msra.mxu1 %v5047_v10  ;;  %v5058_v37 = vld [vmem:[#allocation6 + $0x740] sm:$0xff]  ;;  %v5059_v10 = vld [vmem:[#allocation6 + $0x750] sm:$0xff] }
 0x7fa   :  { %3502 = vmatprep.subr.mxu0 %v5048_v61  ;;  %3573 = vmatprep.subr.mxu1 %v5049_v17  ;;  %v5060_v61 = vld [vmem:[#allocation6 + $0x708] sm:$0xff]  ;;  %v5061_v17 = vld [vmem:[#allocation6 + $0x718] sm:$0xff] }
 0x7fb   :  { %3503 = vmatpush2.msra.mxu0 %v5050_v4  ;;  %3574 = vmatpush2.msra.mxu1 %v5051_v40  ;;  %v5062_v4 = vld [vmem:[#allocation6 + $0x700] sm:$0xff]  ;;  %v5063_v40 = vld [vmem:[#allocation6 + $0x710] sm:$0xff] }
 0x7fc   :  { %3504 = vmatprep.subr.mxu0 %v5052_v50  ;;  %3575 = vmatprep.subr.mxu1 %v5053_v9  ;;  %v5064_v50 = vld [vmem:[#allocation6 + $0x6c8] sm:$0xff]  ;;  %v5065_v9 = vld [vmem:[#allocation6 + $0x6d8] sm:$0xff] }
 0x7fd   :  { %3505 = vmatpush2.msra.mxu0 %v5054_v2  ;;  %3576 = vmatpush2.msra.mxu1 %v5055_v57  ;;  %v5066_v2 = vld [vmem:[#allocation6 + $0x6c0] sm:$0xff]  ;;  %v5067_v57 = vld [vmem:[#allocation6 + $0x6d0] sm:$0xff] }
 0x7fe   :  { %3506 = vmatprep.subr.mxu0 %v5056_v13  ;;  %3577 = vmatprep.subr.mxu1 %v5057_v27  ;;  %v5068_v13 = vld [vmem:[#allocation6 + $0x688] sm:$0xff]  ;;  %v5069_v27 = vld [vmem:[#allocation6 + $0x698] sm:$0xff] }
 0x7ff   :  { %3507 = vmatpush2.msra.mxu0 %v5058_v37  ;;  %3578 = vmatpush2.msra.mxu1 %v5059_v10  ;;  %v5070_v37 = vld [vmem:[#allocation6 + $0x680] sm:$0xff]  ;;  %v5071_v10 = vld [vmem:[#allocation6 + $0x690] sm:$0xff] }
 0x800   :  { %3508 = vmatprep.subr.mxu0 %v5060_v61  ;;  %3579 = vmatprep.subr.mxu1 %v5061_v17  ;;  %v5072_v61 = vld [vmem:[#allocation6 + $0x648] sm:$0xff]  ;;  %v5073_v17 = vld [vmem:[#allocation6 + $0x658] sm:$0xff] }
 0x801   :  { %3509 = vmatpush2.msra.mxu0 %v5062_v4  ;;  %3580 = vmatpush2.msra.mxu1 %v5063_v40  ;;  %v5074_v4 = vld [vmem:[#allocation6 + $0x640] sm:$0xff]  ;;  %v5075_v40 = vld [vmem:[#allocation6 + $0x650] sm:$0xff] }
 0x802   :  { %3510 = vmatprep.subr.mxu0 %v5064_v50  ;;  %3581 = vmatprep.subr.mxu1 %v5065_v9  ;;  %v5076_v50 = vld [vmem:[#allocation6 + $0x608] sm:$0xff]  ;;  %v5077_v9 = vld [vmem:[#allocation6 + $0x618] sm:$0xff] }
 0x803   :  { %3511 = vmatpush2.msra.mxu0 %v5066_v2  ;;  %3582 = vmatpush2.msra.mxu1 %v5067_v57  ;;  %v5078_v2 = vld [vmem:[#allocation6 + $0x600] sm:$0xff]  ;;  %v5079_v57 = vld [vmem:[#allocation6 + $0x610] sm:$0xff] }
 0x804   :  { %3512 = vmatprep.subr.mxu0 %v5068_v13  ;;  %3583 = vmatprep.subr.mxu1 %v5069_v27  ;;  %v5080_v13 = vld [vmem:[#allocation6 + $0x5c8] sm:$0xff]  ;;  %v5081_v27 = vld [vmem:[#allocation6 + $0x5d8] sm:$0xff] }
 0x805   :  { %3513 = vmatpush2.msra.mxu0 %v5070_v37  ;;  %3584 = vmatpush2.msra.mxu1 %v5071_v10  ;;  %v5082_v37 = vld [vmem:[#allocation6 + $0x5c0] sm:$0xff]  ;;  %v5083_v10 = vld [vmem:[#allocation6 + $0x5d0] sm:$0xff] }
 0x806   :  { %3514 = vmatprep.subr.mxu0 %v5072_v61  ;;  %3585 = vmatprep.subr.mxu1 %v5073_v17  ;;  %v5084_v61 = vld [vmem:[#allocation6 + $0x588] sm:$0xff]  ;;  %v5085_v17 = vld [vmem:[#allocation6 + $0x598] sm:$0xff] }
 0x807   :  { %3515 = vmatpush2.msra.mxu0 %v5074_v4  ;;  %3586 = vmatpush2.msra.mxu1 %v5075_v40  ;;  %v5086_v4 = vld [vmem:[#allocation6 + $0x580] sm:$0xff]  ;;  %v5087_v40 = vld [vmem:[#allocation6 + $0x590] sm:$0xff] }
 0x808   :  { %3516 = vmatprep.subr.mxu0 %v5076_v50  ;;  %3587 = vmatprep.subr.mxu1 %v5077_v9  ;;  %v5088_v50 = vld [vmem:[#allocation6 + $0x548] sm:$0xff]  ;;  %v5089_v9 = vld [vmem:[#allocation6 + $0x558] sm:$0xff] }
 0x809   :  { %3517 = vmatpush2.msra.mxu0 %v5078_v2  ;;  %3588 = vmatpush2.msra.mxu1 %v5079_v57  ;;  %v5090_v2 = vld [vmem:[#allocation6 + $0x540] sm:$0xff]  ;;  %v5091_v57 = vld [vmem:[#allocation6 + $0x550] sm:$0xff] }
 0x80a   :  { %3518 = vmatprep.subr.mxu0 %v5080_v13  ;;  %3589 = vmatprep.subr.mxu1 %v5081_v27  ;;  %v11119_v27 = vld [vmem:[#allocation124_spill] sm:$0xff] }
 0x80b   :  { %3519 = vmatpush2.msra.mxu0 %v5082_v37  ;;  %3590 = vmatpush2.msra.mxu1 %v5083_v10 }
 0x80c   :  { %3520 = vmatprep.subr.mxu0 %v5084_v61  ;;  %3591 = vmatprep.subr.mxu1 %v5085_v17  ;;  %v11120_v17 = vld [vmem:[#allocation130_spill] sm:$0xff] }
 0x80d   :  { %3521 = vmatpush2.msra.mxu0 %v5086_v4  ;;  %3592 = vmatpush2.msra.mxu1 %v5087_v40 }
 0x80e   :  { %3522 = vmatprep.subr.mxu0 %v5088_v50  ;;  %3593 = vmatprep.subr.mxu1 %v5089_v9 }
 0x80f   :  { %3523 = vmatpush2.msra.mxu0 %v5090_v2  ;;  %3594 = vmatpush2.msra.mxu1 %v5091_v57 }
 0x810   :  { %3524 = vmatprep.subr.mxu0 %v8881_v7  ;;  %3595 = vmatprep.subr.mxu1 %v8884_v6  ;;  %v11108_v7 = vld [vmem:[#allocation231_spill] sm:$0xff]  ;;  %v11109_v6 = vld [vmem:[#allocation232_spill] sm:$0xff] }
 0x811   :  { %3525 = vmatpush2.msra.mxu0 %v8887_v16  ;;  %3596 = vmatpush2.msra.mxu1 %v8890_v26  ;;  %v11110_v16 = vld [vmem:[#allocation233_spill] sm:$0xff]  ;;  %v11111_v26 = vld [vmem:[#allocation234_spill] sm:$0xff] }
 0x812   :  { %3526 = vmatprep.subr.mxu0 %v8893_v34  ;;  %3597 = vmatprep.subr.mxu1 %v8896_v51  ;;  %v11112_v34 = vld [vmem:[#allocation235_spill] sm:$0xff]  ;;  %v11113_v51 = vld [vmem:[#allocation236_spill] sm:$0xff] }
 0x813   :  { %3527 = vmatpush2.msra.mxu0 %v8899_v21  ;;  %3598 = vmatpush2.msra.mxu1 %v8902_v29  ;;  %v11114_v21 = vld [vmem:[#allocation237_spill] sm:$0xff]  ;;  %v11115_v29 = vld [vmem:[#allocation238_spill] sm:$0xff] }
 0x814   :  { %3528 = vmatprep.subr.mxu0 %v8905_v23  ;;  %3599 = vmatprep.subr.mxu1 %v8908_v59  ;;  %v11116_v23 = vld [vmem:[#allocation239_spill] sm:$0xff]  ;;  %v11117_v59 = vld [vmem:[#allocation240_spill] sm:$0xff] }
 0x815   :  { %3529 = vmatpush2.msra.mxu0 %v8911_v60  ;;  %3600 = vmatpush2.msra.mxu1 %v11108_v7  ;;  %v11118_v60 = vld [vmem:[#allocation241_spill] sm:$0xff] }
 0x816   :  { %3530 = vmatprep.subr.mxu0 %v11109_v6  ;;  %3601 = vmatprep.subr.mxu1 %v11110_v16 }
 0x817   :  { %3531 = vmatpush2.msra.mxu0 %v11111_v26  ;;  %3602 = vmatpush2.msra.mxu1 %v11112_v34 }
 0x818   :  { %3532 = vmatprep.subr.mxu0 %v11113_v51  ;;  %3603 = vmatprep.subr.mxu1 %v11114_v21  ;;  %v11121_v21 = vld [vmem:[#allocation123_spill] sm:$0xff] }
 0x819   :  { %3533 = vmatpush2.msra.mxu0 %v11115_v29  ;;  %3604 = vmatpush2.msra.mxu1 %v11116_v23  ;;  %v11122_v23 = vld [vmem:[#allocation129_spill] sm:$0xff] }
 0x81a   :  { %3612 = vmatprep.subr.mxu0 %v11117_v59  ;;  %3683 = vmatprep.subr.mxu1 %v11118_v60 }
 0x858   :  { %v3246_v13 = vpop.f32.mrf.mxu1  ;;  %v3175_v7 = vpop.f32.mrf.mxu0 }
 0x859   :  { %v3395_v37 = vadd.f32 %v3246_v13, %v11119_v27  ;;  %v3393_v29 = vadd.f32 %v3175_v7, %v11121_v21  ;;  %v11128_v7 = vld [vmem:[#allocation175_spill] sm:$0xff] }
 0x85a   :  { %v3248_v10 = vpop.f32.mrf.mxu1  ;;  %v3177_v34 = vpop.f32.mrf.mxu0 }
 0x85b   :  { %v3939_v61 = vmul.f32 -1.442695, %v3395_v37  ;;  %v3396_v4 = vadd.f32 %v3248_v10, %v11120_v17  ;;  %v3394_v59 = vadd.f32 %v3177_v34, %v11122_v23  ;;  %v3937_v60 = vmul.f32 -1.442695, %v3393_v29  ;;  %v11124_v17 = vld [vmem:[#allocation173_spill] sm:$0xff]  ;;  %v11129_v34 = vld [vmem:[#allocation176_spill] sm:$0xff] }
 0x85c   :  { %v603_v29 = vadd.f32 %v11129_v34, %v6199_v41 }
 0x85d   :  { %v3940_v40 = vmul.f32 -1.442695, %v3396_v4  ;;  %4151 = vpow2.f32 %v3939_v61  ;;  %v3938_v13 = vmul.f32 -1.442695, %v3394_v59  ;;  %v11123_v61 = vld [vmem:[#allocation181_spill] sm:$0xff] }
 0x85e   :  { %v488_v4 = vadd.f32 %v11124_v17, %v11123_v61 }
 0x85f   :  { %4153 = vpow2.f32 %v3940_v40  ;;  %v11125_v40 = vld [vmem:[#allocation182_spill] sm:$0xff] }
 0x86a   :  { %v4152_v50 = vpop.eup %4151 }
 0x86b   :  { %v3421_v9 = vadd.f32 1.0, %v4152_v50  ;;  %v11126_v50 = vld [vmem:[#allocation174_spill] sm:$0xff] }
 0x86c   :  { %v4154_v2 = vpop.eup %4153 }
 0x86d   :  { %4155 = vrcp.f32 %v3421_v9  ;;  %v3422_v57 = vadd.f32 1.0, %v4154_v2  ;;  %v601_v9 = vadd.f32 %v11126_v50, %v11125_v40 }
 0x86f   :  { %4157 = vrcp.f32 %v3422_v57 }
 0x870   :  { %4159 = vpow2.f32 %v3937_v60 }
 0x871   :  { %4161 = vpow2.f32 %v3938_v13 }
 0x87a   :  { %v4156_v6 = vpop.eup %4155 }
 0x87b   :  { %v3439_v16 = vmul.f32 %v4156_v6, %v8963_v45 }
 0x87c   :  { %v4158_v26 = vpop.eup %4157 }
 0x87d   :  { %v3440_v51 = vmul.f32 %v4158_v26, %v8967_v20  ;;  %v4160_v27 = vpop.eup %4159  ;;  %v11127_v26 = vld [vmem:[#allocation183_spill] sm:$0xff] }
 0x87e   :  { %v4162_v37 = vpop.eup %4161  ;;  %v3419_v10 = vadd.f32 1.0, %v4160_v27  ;;  %v490_v21 = vadd.f32 %v11128_v7, %v11127_v26  ;;  %v3453_v26 = vpop.permute.xlu0 %3452 }
 0x87f   :  { %v3420_v2 = vadd.f32 1.0, %v4162_v37  ;;  %vm3454_vm15 = vcmp.eq.s32.totalorder %v3453_v26, 1  ;;  %v5098_v26 = vld [vmem:[#allocation6 + $0x368] sm:$0xff] }
 0x880   :  { %4163 = vrcp.f32 %v3419_v10 }
 0x88d   :  { %v4164_v50 = vpop.eup %4163 }
 0x899   :  { %v3317_v57 = vpop.f32.mrf.mxu0  ;;  %v3388_v6 = vpop.f32.mrf.mxu1 }
 0x89a   :  { %v3397_v23 = vadd.f32 %v3317_v57, %v488_v4  ;;  %v3399_v59 = vadd.f32 %v3388_v6, %v601_v9 }
 0x89b   :  { %v3319_v60 = vpop.f32.mrf.mxu0  ;;  %v3390_v13 = vpop.f32.mrf.mxu1 }
 0x89c   :  { %v3941_v27 = vmul.f32 -1.442695, %v3397_v23  ;;  %4165 = vtanh.f32 %v3399_v59  ;;  %v3398_v17 = vadd.f32 %v3319_v60, %v490_v21  ;;  %v3400_v61 = vadd.f32 %v3390_v13, %v603_v29 }
 0x89d   :  { %4167 = vrcp.f32 %v3420_v2 }
 0x89e   :  { %4169 = vpow2.f32 %v3941_v27  ;;  %v3942_v37 = vmul.f32 -1.442695, %v3398_v17  ;;  %v5094_v27 = vld [vmem:[#allocation6 + $0x3a8] sm:$0xff]  ;;  %v5096_v17 = vld [vmem:[#allocation6 + $0x3a0] sm:$0xff] }
 0x89f   :  { %4171 = vtanh.f32 %v3400_v61 }
 0x8a0   :  { %4173 = vpow2.f32 %v3942_v37  ;;  %v5099_v37 = vld [vmem:[#allocation6 + $0x378] sm:$0xff] }
 0x8a9   :  { %v4166_v40 = vpop.eup %4165 }
 0x8aa   :  { %v4168_v7 = vpop.eup %4167  ;;  %v3441_v12 = vmul.f32 %v4166_v40, %v4164_v50  ;;  %v5100_v50 = vld [vmem:[#allocation6 + $0x360] sm:$0xff] }
 0x8ab   :  { %v4170_v34 = vpop.eup %4169 }
 0x8ac   :  { %v4172_v4 = vpop.eup %4171  ;;  %v3423_v9 = vadd.f32 1.0, %v4170_v34  ;;  %v3443_v10 = vadd.f32 %v3441_v12, %v3439_v16  ;;  %v5102_v34 = vld [vmem:[#allocation6 + $0x328] sm:$0xff] }
 0x8ad   :  { %v4174_v57 = vpop.eup %4173  ;;  %v3442_v6 = vmul.f32 %v4172_v4, %v4168_v7  ;;  %v5101_v7 = vld [vmem:[#allocation6 + $0x370] sm:$0xff]  ;;  %v5103_v4 = vld [vmem:[#allocation6 + $0x338] sm:$0xff] }
 0x8ae   :  { %4175 = vrcp.f32 %v3423_v9  ;;  %v3424_v21 = vadd.f32 1.0, %v4174_v57  ;;  %v9221_v2 = vsel %vm3454_vm15, %v3443_v10, %v8963_v45  ;;  %v5104_v9 = vld [vmem:[#allocation6 + $0x320] sm:$0xff]  ;;  %v5106_v57 = vld [vmem:[#allocation6 + $0x2e8] sm:$0xff] }
 0x8af   :  { %4177 = vtanh.f32 %v3443_v10  ;;  %v3444_v61 = vadd.f32 %v3442_v6, %v3440_v51  ;;  %v5093_v51 = vld [vmem:[#allocation6 + $0x3f0] sm:$0xff]  ;;  %v5107_v6 = vld [vmem:[#allocation6 + $0x2f8] sm:$0xff] }
 0x8b0   :  { %4179 = vrcp.f32 %v3424_v21  ;;  %v5105_v10 = vld [vmem:[#allocation6 + $0x330] sm:$0xff]  ;;  %v5108_v21 = vld [vmem:[#allocation6 + $0x2e0] sm:$0xff] }
 0x8b1   :  { %4181 = vtanh.f32 %v3444_v61  ;;  %v9225_v40 = vsel %vm3454_vm15, %v3444_v61, %v8967_v20  ;;  %v5092_v20 = vld [vmem:[#allocation6 + $0x3e0] sm:$0xff]  ;;  %v5109_v61 = vld [vmem:[#allocation6 + $0x2f0] sm:$0xff] }
 0x8bb   :  { %v4176_v29 = vpop.eup %4175 }
 0x8bc   :  { %v4178_v23 = vpop.eup %4177 }
 0x8bd   :  { %v4180_v12 = vpop.eup %4179  ;;  %v3447_v16 = vmul.f32 %v4178_v23, %v4176_v29  ;;  %v5110_v29 = vld [vmem:[#allocation6 + $0x2a8] sm:$0xff]  ;;  %v5111_v23 = vld [vmem:[#allocation6 + $0x2b8] sm:$0xff] }
 0x8be   :  { %v4182_v59 = vpop.eup %4181 }
 0x8bf   :  { %v3448_v60 = vmul.f32 %v4182_v59, %v4180_v12  ;;  %v9235_v45 = vsel %vm3454_vm15, %v3447_v16, %v8977_v52  ;;  %v5097_v52 = vld [vmem:[#allocation6 + $0x3b0] sm:$0xff]  ;;  %v5112_v12 = vld [vmem:[#allocation6 + $0x2a0] sm:$0xff]  ;;  %v5114_v59 = vld [vmem:[#allocation6 + $0x268] sm:$0xff] }
 0x8c0   :  { %v5113_v16 = vld [vmem:[#allocation6 + $0x2b0] sm:$0xff] }
 0x8c1   :  { %v9229_v13 = vsel %vm3454_vm15, %v3448_v60, %v8971_v56  ;;  %v5095_v56 = vld [vmem:[#allocation6 + $0x3b8] sm:$0xff] }
 0x8c2   :  { %3534 = vmatprep.mubr.f32.mxu0 %v9229_v13  ;;  %3605 = vmatprep.mubr.f32.mxu1 %v9229_v13  ;;  %v5115_v60 = vld [vmem:[#allocation6 + $0x278] sm:$0xff] }
 0x8c3   :  { %3535 = vmatmul.mubr.f32.vlgmr.msra.gmra.mxu0 %v9235_v45  ;;  %3606 = vmatmul.mubr.f32.vlgmr.msra.gmra.mxu1 %v9235_v45 }
 0x8c4   :  { %3613 = vmatpush1.msra.mxu0 %v5092_v20  ;;  %3684 = vmatpush1.msra.mxu1 %v5093_v51  ;;  %v5116_v20 = vld [vmem:[#allocation6 + $0x260] sm:$0xff]  ;;  %v5117_v51 = vld [vmem:[#allocation6 + $0x270] sm:$0xff] }
 0x8c5   :  { %3614 = vmatprep.subr.mxu0 %v5094_v27  ;;  %3676 = vmatprep.mubr.f32.mxu0 %v9229_v13  ;;  %v5118_v27 = vld [vmem:[#allocation6 + $0x228] sm:$0xff] }
 0x8c6   :  { %3685 = vmatprep.subr.mxu1 %v5095_v56  ;;  %3747 = vmatprep.mubr.f32.mxu1 %v9229_v13  ;;  %v5119_v56 = vld [vmem:[#allocation6 + $0x238] sm:$0xff] }
 0x8c7   :  { %3615 = vmatpush1.msra.mxu0 %v5096_v17  ;;  %3686 = vmatpush1.msra.mxu1 %v5097_v52  ;;  %v5120_v17 = vld [vmem:[#allocation6 + $0x220] sm:$0xff]  ;;  %v5121_v52 = vld [vmem:[#allocation6 + $0x230] sm:$0xff] }
 0x8c8   :  { %3616 = vmatprep.subr.mxu0 %v5098_v26  ;;  %3687 = vmatprep.subr.mxu1 %v5099_v37  ;;  %v5122_v26 = vld [vmem:[#allocation6 + $0x1e8] sm:$0xff]  ;;  %v5123_v37 = vld [vmem:[#allocation6 + $0x1f8] sm:$0xff] }
 0x8c9   :  { %3617 = vmatpush1.msra.mxu0 %v5100_v50  ;;  %3688 = vmatpush1.msra.mxu1 %v5101_v7  ;;  %v5124_v50 = vld [vmem:[#allocation6 + $0x1e0] sm:$0xff]  ;;  %v5125_v7 = vld [vmem:[#allocation6 + $0x1f0] sm:$0xff] }
 0x8ca   :  { %3618 = vmatprep.subr.mxu0 %v5102_v34  ;;  %3689 = vmatprep.subr.mxu1 %v5103_v4  ;;  %v5126_v34 = vld [vmem:[#allocation6 + $0x1a8] sm:$0xff]  ;;  %v5127_v4 = vld [vmem:[#allocation6 + $0x1b8] sm:$0xff] }
 0x8cb   :  { %3619 = vmatpush1.msra.mxu0 %v5104_v9  ;;  %3690 = vmatpush1.msra.mxu1 %v5105_v10  ;;  %v5128_v9 = vld [vmem:[#allocation6 + $0x1a0] sm:$0xff]  ;;  %v5129_v10 = vld [vmem:[#allocation6 + $0x1b0] sm:$0xff] }
 0x8cc   :  { %3620 = vmatprep.subr.mxu0 %v5106_v57  ;;  %3691 = vmatprep.subr.mxu1 %v5107_v6  ;;  %v5130_v57 = vld [vmem:[#allocation6 + $0x168] sm:$0xff]  ;;  %v5131_v6 = vld [vmem:[#allocation6 + $0x178] sm:$0xff] }
 0x8cd   :  { %3621 = vmatpush1.msra.mxu0 %v5108_v21  ;;  %3692 = vmatpush1.msra.mxu1 %v5109_v61  ;;  %v5132_v21 = vld [vmem:[#allocation6 + $0x160] sm:$0xff]  ;;  %v5133_v61 = vld [vmem:[#allocation6 + $0x170] sm:$0xff] }
 0x8ce   :  { %3622 = vmatprep.subr.mxu0 %v5110_v29  ;;  %3693 = vmatprep.subr.mxu1 %v5111_v23  ;;  %v5134_v29 = vld [vmem:[#allocation6 + $0x128] sm:$0xff]  ;;  %v5135_v23 = vld [vmem:[#allocation6 + $0x138] sm:$0xff] }
 0x8cf   :  { %3623 = vmatpush1.msra.mxu0 %v5112_v12  ;;  %3694 = vmatpush1.msra.mxu1 %v5113_v16  ;;  %v5136_v12 = vld [vmem:[#allocation6 + $0x120] sm:$0xff]  ;;  %v5137_v16 = vld [vmem:[#allocation6 + $0x130] sm:$0xff] }
 0x8d0   :  { %3624 = vmatprep.subr.mxu0 %v5114_v59  ;;  %3695 = vmatprep.subr.mxu1 %v5115_v60  ;;  %v5138_v59 = vld [vmem:[#allocation6 + $0xe8] sm:$0xff]  ;;  %v5139_v60 = vld [vmem:[#allocation6 + $0xf8] sm:$0xff] }
 0x8d1   :  { %3625 = vmatpush1.msra.mxu0 %v5116_v20  ;;  %3696 = vmatpush1.msra.mxu1 %v5117_v51  ;;  %v5140_v20 = vld [vmem:[#allocation6 + $0xe0] sm:$0xff]  ;;  %v5141_v51 = vld [vmem:[#allocation6 + $0xf0] sm:$0xff] }
 0x8d2   :  { %3626 = vmatprep.subr.mxu0 %v5118_v27  ;;  %3697 = vmatprep.subr.mxu1 %v5119_v56  ;;  %v5142_v27 = vld [vmem:[#allocation6 + $0xa8] sm:$0xff]  ;;  %v5143_v56 = vld [vmem:[#allocation6 + $0xb8] sm:$0xff] }
 0x8d3   :  { %3627 = vmatpush1.msra.mxu0 %v5120_v17  ;;  %3698 = vmatpush1.msra.mxu1 %v5121_v52  ;;  %v5144_v17 = vld [vmem:[#allocation6 + $0xa0] sm:$0xff]  ;;  %v5145_v52 = vld [vmem:[#allocation6 + $0xb0] sm:$0xff] }
 0x8d4   :  { %3628 = vmatprep.subr.mxu0 %v5122_v26  ;;  %3699 = vmatprep.subr.mxu1 %v5123_v37  ;;  %v5146_v26 = vld [vmem:[#allocation6 + $0x68] sm:$0xff]  ;;  %v5147_v37 = vld [vmem:[#allocation6 + $0x78] sm:$0xff] }
 0x8d5   :  { %3629 = vmatpush1.msra.mxu0 %v5124_v50  ;;  %3700 = vmatpush1.msra.mxu1 %v5125_v7  ;;  %v5148_v50 = vld [vmem:[#allocation6 + $0x60] sm:$0xff]  ;;  %v5149_v7 = vld [vmem:[#allocation6 + $0x70] sm:$0xff] }
 0x8d6   :  { %3630 = vmatprep.subr.mxu0 %v5126_v34  ;;  %3701 = vmatprep.subr.mxu1 %v5127_v4  ;;  %v5150_v34 = vld [vmem:[#allocation6 + $0x28] sm:$0xff]  ;;  %v5151_v4 = vld [vmem:[#allocation6 + $0x38] sm:$0xff] }
 0x8d7   :  { %3631 = vmatpush1.msra.mxu0 %v5128_v9  ;;  %3702 = vmatpush1.msra.mxu1 %v5129_v10  ;;  %v5152_v9 = vld [vmem:[#allocation6 + $0x20] sm:$0xff]  ;;  %v5153_v10 = vld [vmem:[#allocation6 + $0x30] sm:$0xff] }
 0x8d8   :  { %3632 = vmatprep.subr.mxu0 %v5130_v57  ;;  %3703 = vmatprep.subr.mxu1 %v5131_v6  ;;  %v5154_v57 = vld [vmem:[#allocation6 + $0x7e8] sm:$0xff]  ;;  %v5155_v6 = vld [vmem:[#allocation6 + $0x7f8] sm:$0xff] }
 0x8d9   :  { %3633 = vmatpush1.msra.mxu0 %v5132_v21  ;;  %3704 = vmatpush1.msra.mxu1 %v5133_v61  ;;  %v5156_v21 = vld [vmem:[#allocation6 + $0x7e0] sm:$0xff]  ;;  %v5157_v61 = vld [vmem:[#allocation6 + $0x7f0] sm:$0xff] }
 0x8da   :  { %3634 = vmatprep.subr.mxu0 %v5134_v29  ;;  %3705 = vmatprep.subr.mxu1 %v5135_v23  ;;  %v5158_v29 = vld [vmem:[#allocation6 + $0x7a8] sm:$0xff]  ;;  %v5159_v23 = vld [vmem:[#allocation6 + $0x7b8] sm:$0xff] }
 0x8db   :  { %3635 = vmatpush1.msra.mxu0 %v5136_v12  ;;  %3706 = vmatpush1.msra.mxu1 %v5137_v16  ;;  %v5160_v12 = vld [vmem:[#allocation6 + $0x7a0] sm:$0xff]  ;;  %v5161_v16 = vld [vmem:[#allocation6 + $0x7b0] sm:$0xff] }
 0x8dc   :  { %3636 = vmatprep.subr.mxu0 %v5138_v59  ;;  %3707 = vmatprep.subr.mxu1 %v5139_v60  ;;  %v5162_v59 = vld [vmem:[#allocation6 + $0x768] sm:$0xff]  ;;  %v5163_v60 = vld [vmem:[#allocation6 + $0x778] sm:$0xff] }
 0x8dd   :  { %3637 = vmatpush1.msra.mxu0 %v5140_v20  ;;  %3708 = vmatpush1.msra.mxu1 %v5141_v51  ;;  %v5164_v20 = vld [vmem:[#allocation6 + $0x760] sm:$0xff]  ;;  %v5165_v51 = vld [vmem:[#allocation6 + $0x770] sm:$0xff] }
 0x8de   :  { %3638 = vmatprep.subr.mxu0 %v5142_v27  ;;  %3709 = vmatprep.subr.mxu1 %v5143_v56  ;;  %v5166_v27 = vld [vmem:[#allocation6 + $0x728] sm:$0xff]  ;;  %v5167_v56 = vld [vmem:[#allocation6 + $0x738] sm:$0xff] }
 0x8df   :  { %3639 = vmatpush1.msra.mxu0 %v5144_v17  ;;  %3710 = vmatpush1.msra.mxu1 %v5145_v52  ;;  %v5168_v17 = vld [vmem:[#allocation6 + $0x720] sm:$0xff]  ;;  %v5169_v52 = vld [vmem:[#allocation6 + $0x730] sm:$0xff] }
 0x8e0   :  { %3640 = vmatprep.subr.mxu0 %v5146_v26  ;;  %3711 = vmatprep.subr.mxu1 %v5147_v37  ;;  %v5170_v26 = vld [vmem:[#allocation6 + $0x6e8] sm:$0xff]  ;;  %v5171_v37 = vld [vmem:[#allocation6 + $0x6f8] sm:$0xff] }
 0x8e1   :  { %3641 = vmatpush1.msra.mxu0 %v5148_v50  ;;  %3712 = vmatpush1.msra.mxu1 %v5149_v7  ;;  %v5172_v50 = vld [vmem:[#allocation6 + $0x6e0] sm:$0xff]  ;;  %v5173_v7 = vld [vmem:[#allocation6 + $0x6f0] sm:$0xff] }
 0x8e2   :  { %3642 = vmatprep.subr.mxu0 %v5150_v34  ;;  %3713 = vmatprep.subr.mxu1 %v5151_v4  ;;  %v5174_v34 = vld [vmem:[#allocation6 + $0x6a8] sm:$0xff]  ;;  %v5175_v4 = vld [vmem:[#allocation6 + $0x6b8] sm:$0xff] }
 0x8e3   :  { %3643 = vmatpush1.msra.mxu0 %v5152_v9  ;;  %3714 = vmatpush1.msra.mxu1 %v5153_v10  ;;  %v5176_v9 = vld [vmem:[#allocation6 + $0x6a0] sm:$0xff]  ;;  %v5177_v10 = vld [vmem:[#allocation6 + $0x6b0] sm:$0xff] }
 0x8e4   :  { %3644 = vmatprep.subr.mxu0 %v5154_v57  ;;  %3715 = vmatprep.subr.mxu1 %v5155_v6  ;;  %v5178_v57 = vld [vmem:[#allocation6 + $0x668] sm:$0xff]  ;;  %v5179_v6 = vld [vmem:[#allocation6 + $0x678] sm:$0xff] }
 0x8e5   :  { %3645 = vmatpush2.msra.mxu0 %v5156_v21  ;;  %3716 = vmatpush2.msra.mxu1 %v5157_v61  ;;  %v5180_v21 = vld [vmem:[#allocation6 + $0x660] sm:$0xff]  ;;  %v5181_v61 = vld [vmem:[#allocation6 + $0x670] sm:$0xff] }
 0x8e6   :  { %3646 = vmatprep.subr.mxu0 %v5158_v29  ;;  %3717 = vmatprep.subr.mxu1 %v5159_v23 }
 0x8e7   :  { %3647 = vmatpush2.msra.mxu0 %v5160_v12  ;;  %3718 = vmatpush2.msra.mxu1 %v5161_v16  ;;  %v11139_v12 = vld [vmem:[#allocation183_spill] sm:$0xff] }
 0x8e8   :  { %3648 = vmatprep.subr.mxu0 %v5162_v59  ;;  %3719 = vmatprep.subr.mxu1 %v5163_v60  ;;  %v11140_v16 = vld [vmem:[#allocation179_spill] sm:$0xff]  ;;  %v11141_v60 = vld [vmem:[#allocation180_spill] sm:$0xff] }
 0x8e9   :  { %3649 = vmatpush2.msra.mxu0 %v5164_v20  ;;  %3720 = vmatpush2.msra.mxu1 %v5165_v51  ;;  %v496_v59 = vadd.f32 %v11140_v16, %v11139_v12  ;;  %v609_v20 = vadd.f32 %v11141_v60, %v6199_v41 }
 0x8ea   :  { %3650 = vmatprep.subr.mxu0 %v5166_v27  ;;  %3721 = vmatprep.subr.mxu1 %v5167_v56 }
 0x8eb   :  { %3651 = vmatpush2.msra.mxu0 %v5168_v17  ;;  %3722 = vmatpush2.msra.mxu1 %v5169_v52 }
 0x8ec   :  { %3652 = vmatprep.subr.mxu0 %v5170_v26  ;;  %3723 = vmatprep.subr.mxu1 %v5171_v37 }
 0x8ed   :  { %3653 = vmatpush2.msra.mxu0 %v5172_v50  ;;  %3724 = vmatpush2.msra.mxu1 %v5173_v7 }
 0x8ee   :  { %3654 = vmatprep.subr.mxu0 %v5174_v34  ;;  %3725 = vmatprep.subr.mxu1 %v5175_v4 }
 0x8ef   :  { %3655 = vmatpush2.msra.mxu0 %v5176_v9  ;;  %3726 = vmatpush2.msra.mxu1 %v5177_v10  ;;  %v3814_v9 = vpop.permute.xlu1 %3813 }
 0x8f0   :  { %3656 = vmatprep.subr.mxu0 %v5178_v57  ;;  %3727 = vmatprep.subr.mxu1 %v5179_v6  ;;  %vm3815_vm0 = vcmp.eq.s32.totalorder %v3814_v9, 1 }
 0x8f1   :  { %3657 = vmatpush2.msra.mxu0 %v5180_v21  ;;  %3728 = vmatpush2.msra.mxu1 %v5181_v61 }
 0x8f2   :  { %3658 = vmatprep.subr.mxu0 %v9073_v55  ;;  %3729 = vmatprep.subr.mxu1 %v9076_v3  ;;  %v11130_v55 = vld [vmem:[#allocation242_spill] sm:$0xff] }
 0x8f3   :  { %3659 = vmatpush2.msra.mxu0 %v9079_v22  ;;  %3730 = vmatpush2.msra.mxu1 %v9082_v48  ;;  %v11131_v22 = vld [vmem:[#allocation136_spill] sm:$0xff] }
 0x8f4   :  { %3660 = vmatprep.subr.mxu0 %v9085_v32  ;;  %3731 = vmatprep.subr.mxu1 %v9088_v19 }
 0x8f5   :  { %3661 = vmatpush2.msra.mxu0 %v9091_v0  ;;  %3732 = vmatpush2.msra.mxu1 %v9094_v42  ;;  %v11132_v0 = vld [vmem:[#allocation140_spill] sm:$0xff] }
 0x8f6   :  { %3662 = vmatprep.subr.mxu0 %v9097_v38  ;;  %3733 = vmatprep.subr.mxu1 %v9100_v5 }
 0x8f7   :  { %3663 = vmatpush2.msra.mxu0 %v9103_v46  ;;  %3734 = vmatpush2.msra.mxu1 %v9106_v8 }
 0x8f8   :  { %3664 = vmatprep.subr.mxu0 %v9109_v28  ;;  %3735 = vmatprep.subr.mxu1 %v9112_v36 }
 0x8f9   :  { %3665 = vmatpush2.msra.mxu0 %v9115_v35  ;;  %3736 = vmatpush2.msra.mxu1 %v9118_v63 }
 0x8fa   :  { %3666 = vmatprep.subr.mxu0 %v9121_v43  ;;  %3737 = vmatprep.subr.mxu1 %v9124_v33 }
 0x8fb   :  { %3667 = vmatpush2.msra.mxu0 %v9127_v24  ;;  %3738 = vmatpush2.msra.mxu1 %v9130_v31  ;;  %v11133_v31 = vld [vmem:[#allocation135_spill] sm:$0xff] }
 0x8fc   :  { %3668 = vmatprep.subr.mxu0 %v9133_v44  ;;  %3739 = vmatprep.subr.mxu1 %v9136_v1  ;;  %v11134_v1 = vld [vmem:[#allocation139_spill] sm:$0xff] }
 0x8fd   :  { %3669 = vmatpush2.msra.mxu0 %v9139_v18  ;;  %3740 = vmatpush2.msra.mxu1 %v9142_v62 }
 0x8fe   :  { %3670 = vmatprep.subr.mxu0 %v9145_v39  ;;  %3741 = vmatprep.subr.mxu1 %v9148_v15 }
 0x8ff   :  { %3671 = vmatpush2.msra.mxu0 %v9151_v30  ;;  %3742 = vmatpush2.msra.mxu1 %v9154_v53 }
 0x900   :  { %3672 = vmatprep.subr.mxu0 %v9157_v49  ;;  %3743 = vmatprep.subr.mxu1 %v9160_v47  ;;  %v11135_v49 = vld [vmem:[#allocation181_spill] sm:$0xff] }
 0x901   :  { %3673 = vmatpush2.msra.mxu0 %v9163_v11  ;;  %3744 = vmatpush2.msra.mxu1 %v9166_v54  ;;  %v11136_v47 = vld [vmem:[#allocation177_spill] sm:$0xff]  ;;  %v11137_v54 = vld [vmem:[#allocation182_spill] sm:$0xff] }
 0x902   :  { %3674 = vmatprep.subr.mxu0 %v9169_v25  ;;  %3745 = vmatprep.subr.mxu1 %v9172_v58  ;;  %v494_v11 = vadd.f32 %v11136_v47, %v11135_v49  ;;  %v11138_v25 = vld [vmem:[#allocation178_spill] sm:$0xff] }
 0x903   :  { %3675 = vmatpush2.msra.mxu0 %v9175_v14  ;;  %3746 = vmatpush2.msra.mxu1 %v11130_v55  ;;  %v607_v58 = vadd.f32 %v11138_v25, %v11137_v54 }
 0x904   :  { %3677 = vmatmul.mubr.f32.vlgmr.msra.gmra.mxu0 %v9235_v45  ;;  %3748 = vmatmul.mubr.f32.vlgmr.msra.gmra.mxu1 %v9235_v45 }
 0x983   :  { %v3607_v3 = vpop.f32.mrf.mxu1  ;;  %v3536_v36 = vpop.f32.mrf.mxu0 }
 0x984   :  { %v3756_v48 = vadd.f32 %v3607_v3, %v11131_v22  ;;  %v3754_v44 = vadd.f32 %v3536_v36, %v11133_v31 }
 0x985   :  { %v3609_v32 = vpop.f32.mrf.mxu1  ;;  %v3538_v33 = vpop.f32.mrf.mxu0 }
 0x986   :  { %v3945_v19 = vmul.f32 -1.442695, %v3756_v48  ;;  %v3757_v42 = vadd.f32 %v3609_v32, %v11132_v0  ;;  %v3755_v18 = vadd.f32 %v3538_v33, %v11134_v1  ;;  %v3943_v62 = vmul.f32 -1.442695, %v3754_v44 }
 0x988   :  { %v3946_v38 = vmul.f32 -1.442695, %v3757_v42  ;;  %4183 = vpow2.f32 %v3945_v19  ;;  %v3944_v39 = vmul.f32 -1.442695, %v3755_v18 }
 0x98a   :  { %4185 = vpow2.f32 %v3946_v38 }
 0x995   :  { %v4184_v5 = vpop.eup %4183 }
 0x996   :  { %v3782_v46 = vadd.f32 1.0, %v4184_v5 }
 0x997   :  { %v4186_v8 = vpop.eup %4185 }
 0x998   :  { %4187 = vrcp.f32 %v3782_v46  ;;  %v3783_v28 = vadd.f32 1.0, %v4186_v8 }
 0x99a   :  { %4189 = vrcp.f32 %v3783_v28 }
 0x99b   :  { %4191 = vpow2.f32 %v3943_v62 }
 0x99c   :  { %4193 = vpow2.f32 %v3944_v39 }
 0x9a5   :  { %v4188_v35 = vpop.eup %4187 }
 0x9a6   :  { %v3800_v63 = vmul.f32 %v4188_v35, %v9221_v2 }
 0x9a7   :  { %v4190_v43 = vpop.eup %4189 }
 0x9a8   :  { %v3801_v24 = vmul.f32 %v4190_v43, %v9225_v40  ;;  %v4192_v15 = vpop.eup %4191 }
 0x9a9   :  { %v4194_v30 = vpop.eup %4193  ;;  %v3780_v53 = vadd.f32 1.0, %v4192_v15 }
 0x9aa   :  { %v3781_v14 = vadd.f32 1.0, %v4194_v30 }
 0x9ab   :  { %4195 = vrcp.f32 %v3780_v53 }
 0x9b8   :  { %v4196_v7 = vpop.eup %4195 }
 0x9c4   :  { %v3678_v29 = vpop.f32.mrf.mxu0  ;;  %v3749_v23 = vpop.f32.mrf.mxu1 }
 0x9c5   :  { %v3758_v51 = vadd.f32 %v3678_v29, %v494_v11  ;;  %v3760_v27 = vadd.f32 %v3749_v23, %v607_v58 }
 0x9c6   :  { %v3680_v56 = vpop.f32.mrf.mxu0  ;;  %v3751_v17 = vpop.f32.mrf.mxu1 }
 0x9c7   :  { %v3947_v52 = vmul.f32 -1.442695, %v3758_v51  ;;  %4197 = vtanh.f32 %v3760_v27  ;;  %v3759_v26 = vadd.f32 %v3680_v56, %v496_v59  ;;  %v3761_v37 = vadd.f32 %v3751_v17, %v609_v20 }
 0x9c8   :  { %4199 = vrcp.f32 %v3781_v14 }
 0x9c9   :  { %4201 = vpow2.f32 %v3947_v52  ;;  %v3948_v50 = vmul.f32 -1.442695, %v3759_v26 }
 0x9ca   :  { %4203 = vtanh.f32 %v3761_v37 }
 0x9cb   :  { %4205 = vpow2.f32 %v3948_v50 }
 0x9d4   :  { %v4198_v34 = vpop.eup %4197 }
 0x9d5   :  { %v4200_v4 = vpop.eup %4199  ;;  %v3802_v10 = vmul.f32 %v4198_v34, %v4196_v7 }
 0x9d6   :  { %v4202_v41 = vpop.eup %4201 }
 0x9d7   :  { %v4204_v57 = vpop.eup %4203  ;;  %v3784_v6 = vadd.f32 1.0, %v4202_v41  ;;  %v3804_v21 = vadd.f32 %v3802_v10, %v3800_v63 }
 0x9d8   :  { %v4206_v61 = vpop.eup %4205  ;;  %v3803_v55 = vmul.f32 %v4204_v57, %v4200_v4 }
 0x9d9   :  { %4207 = vrcp.f32 %v3784_v6  ;;  %v3785_v3 = vadd.f32 1.0, %v4206_v61  ;;  %v3818_v22 = vsel %vm3815_vm0, %v3804_v21, %v9221_v2 }
 0x9da   :  { %4209 = vtanh.f32 %v3804_v21  ;;  %v3805_v48 = vadd.f32 %v3803_v55, %v3801_v24  ;;  %3822 = vst [vmem:[#allocation9] sm:$0xff] %v3818_v22 }
 0x9db   :  { %4211 = vrcp.f32 %v3785_v3 }
 0x9dc   :  { %4213 = vtanh.f32 %v3805_v48  ;;  %v3819_v32 = vsel %vm3815_vm0, %v3805_v48, %v9225_v40 }
 0x9dd   :  { %3823 = vst [vmem:[#allocation9 + $0x8] sm:$0xff] %v3819_v32 }
 0x9de   :  { %5233 = shalt.err (!%p5230_p0)
}
 0x9df   :  { %3843 = dma.vmem_to_hbm [thread:$0]  %s3841_s27, 256, %s9313_s6, [#allocation10]  }
 0x9e0   :  { %s5277_s7 = smov [#allocation8]  }
 0x9e1   :  { %s3830_s8 = sshll.u32 %s5277_s7, 4  ;;  %s3831_s8 = int_to_ptr.vmem [resolvable:$true] %s3830_s8 }
 0x9e2   :  { %s5242_s2 = scalar_lea.vmem %s3831_s8, 256  ;;  %p5247_p2 = scmp.lt.s32.totalorder %s3831_s8, %s3831_s8 }
 0x9e3   :  { %p5243_p1 = scmp.ne.s32.totalorder %s3831_s8, %s5242_s2  ;;  %p5248_p3 = scmp.lt.s32.totalorder %s5242_s2, %s5242_s2 }
 0x9e5   :  { %p5249_p4 = por %p5248_p3, %p5247_p2 }
 0x9e6   :  { %v4208_v2 = vpop.eup %4207 }
 0x9e7   :  { %v4210_v19 = vpop.eup %4209  ;;  %p5250_p5 = pnand %p5249_p4, %p5243_p1 }
 0x9e8   :  { %v4212_v0 = vpop.eup %4211  ;;  %v3808_v42 = vmul.f32 %v4210_v19, %v4208_v2 }
 0x9e9   :  { %v4214_v38 = vpop.eup %4213 }
 0x9ea   :  { %v3809_v40 = vmul.f32 %v4214_v38, %v4212_v0  ;;  %v3816_v5 = vsel %vm3815_vm0, %v3808_v42, %v9235_v45 }
 0x9eb   :  { %3820 = vst [vmem:[#allocation8] sm:$0xff] %v3816_v5 }
 0x9ec   :  { %v3817_v46 = vsel %vm3815_vm0, %v3809_v40, %v9229_v13 }
 0x9ed   :  { %3821 = vst [vmem:[#allocation8 + $0x8] sm:$0xff] %v3817_v46 }
 0x9ee   :  { %5253 = shalt.err (!%p5250_p5)
}
 0x9ef   :  { %3833 = dma.vmem_to_hbm [thread:$0]  %s3831_s8, 256, %s9312_s5, [#allocation5]  }
 0x9f0   :  { %5266 = dma.done.wait [#allocation5], 256  }
 0x9f1   :  { %5267 = vsyncadd [#allocation5], 4294967040 }
 0x9f2   :  { %5268 = dma.done.wait [#allocation10], 256  }
 0x9f3   :  { %5269 = vsyncadd [#allocation10], 4294967040 }
 0x9f4   :  { %3850 = vsyncpa [#allocation4], 1 }
 0x9f5   :  { %3851 = vsyncpa [#allocation7], 1 }
 0x9f6   :  { %3852 = vsyncpa [#allocation5], 1 }
 0x9f7   :  { %3853 = vsyncpa [#allocation10], 1 }

</bundles_post_ra>
